<compile_context>
chip_gen: v7x
topology: tpu7x:2x2x1
jax: 0.10.0
libtpu: 0.0.40
codegen_flags: <defaults>
</compile_context>

<pallas_src>
import jax
import jax.numpy as jnp
from jax.experimental import pallas as pl
from jax.experimental.pallas import tpu as pltpu


# ----------------------------------------------------------------------------
# Wrapper-side layout helpers (cheap rearrangements, no data expansion)
# ----------------------------------------------------------------------------
def _space_to_depth(x, f):
    """(N, H, W, C) -> (N, H/f, W/f, f*f*C); channel order (u, v, c)."""
    N, H, W, C = x.shape
    x = x.reshape(N, H // f, f, W // f, f, C)
    x = jnp.transpose(x, (0, 1, 3, 2, 4, 5))
    return x.reshape(N, H // f, W // f, f * f * C)


def _regroup_s2_weights(w, cin_pad=None):
    """(Cout, Cin, 4, 4) OIHW -> (2, 2, 4*Cin', Cout) for a stride-2 4x4 conv.

    Tap (kh, kw) is split as kh = 2*dh + a, kw = 2*dw + b; the K axis is ordered
    (a, b, cin) to match the space-to-depth-by-2 activation channel layout.
    """
    cout, cin, kh, kw = w.shape
    assert (kh, kw) == (4, 4)
    if cin_pad is not None and cin_pad > cin:
        w = jnp.pad(w, ((0, 0), (0, cin_pad - cin), (0, 0), (0, 0)))
        cin = cin_pad
    w = w.reshape(cout, cin, 2, 2, 2, 2)       # (o, c, dh, a, dw, b)
    w = jnp.transpose(w, (2, 4, 3, 5, 1, 0))   # (dh, dw, a, b, c, o)
    return w.reshape(2, 2, 4 * cin, cout)


def _regroup_s1_weights(w):
    """(Cout, Cin, KH, KW) -> (KH*KW, Cin, Cout) for a stride-1 conv."""
    cout, cin, kh, kw = w.shape
    return jnp.transpose(w, (2, 3, 1, 0)).reshape(kh * kw, cin, cout)


def _bn_affine(bn, eps=1e-5):
    scale = bn["gamma"] / jnp.sqrt(bn["var"] + eps)
    shift = bn["beta"] - bn["mean"] * scale
    return scale, shift


# ----------------------------------------------------------------------------
# Stage 1 kernel: maxpool + concat(pre-arranged) + conv1 + BN1 + LeakyReLU
# ----------------------------------------------------------------------------
def _stage1_kernel(x_ref, w1_ref, s1_ref, t1_ref, o_ref, m_ref):
    # x_ref : (1, 9, 9, 128) f32   space-to-depth-by-4 of the padded, channel-
    #                              padded concat([inp, tar]); channel = (u,v,c8)
    # w1_ref: (2, 2, 32, 64) bf16  conv1 weights regrouped per stride-2 tap
    # s1/t1 : (1, 64) f32          folded BatchNorm1 scale / shift
    # o_ref : (64, 64) f32         conv1 output rows (ch*8 + cw, cout)
    # m_ref : (9, 9, 32) f32       scratch: s2d-by-2 of the zero-ring-padded
    #                              2x2 maxpool output
    # --- fused 2x2/s2 maxpool: pure lane-group max over the 16 phase blocks ---
    for a in range(2):
        for b in range(2):
            blk = None
            for u in (2 * a, 2 * a + 1):
                for v in (2 * b, 2 * b + 1):
                    c0 = (u * 4 + v) * 8
                    t = x_ref[0, :, :, c0:c0 + 8]
                    blk = t if blk is None else jnp.maximum(blk, t)
            d0 = (a * 2 + b) * 8
            m_ref[:, :, d0:d0 + 8] = blk

    # --- conv1 as 4 stride-1 tap matmuls on the s2d maxpool map (bf16 MXU) ---
    scale = s1_ref[...]
    shift = t1_ref[...]
    for ch in range(8):
        acc = jnp.zeros((8, 64), jnp.float32)
        for dh in range(2):
            for dw in range(2):
                lhs = m_ref[ch + dh, dw:dw + 8, :].astype(jnp.bfloat16)
                acc += jnp.dot(lhs, w1_ref[dh, dw, :, :],
                               preferred_element_type=jnp.float32)
        y = acc * scale + shift
        y = jnp.where(y >= 0.0, y, 0.2 * y)       # LeakyReLU(0.2)
        o_ref[ch * 8:(ch + 1) * 8, :] = y


# ----------------------------------------------------------------------------
# Stage 2 kernel: conv2+BN2+LReLU -> conv3+LReLU -> zero_pad+last_conv -> sigmoid
# ----------------------------------------------------------------------------
def _stage2_kernel(p1_ref, w2_ref, s2_ref, t2_ref, w3_ref, w4_ref, b4_ref,
                   o_ref, p2_ref, p3_ref):
    # p1_ref: (1, 5, 5, 256) f32    s2d-by-2 of the zero-padded conv1 output
    # w2_ref: (2, 2, 256, 128) bf16 ; w3_ref: (16, 128, 256) bf16
    # w4_ref: (16, 256) f32         ; b4_ref: (1, 1) f32 (last_conv bias)
    # o_ref : (1, 2, 2, 1) f32
    # p2_ref: (6, 6, 128) f32 scratch (zero-padded conv2 output)
    # p3_ref: (5, 5, 256) f32 scratch (zero-padded conv3 output)

    # ---- conv2 + bn2 + leaky_relu, written into the zero-padded scratch ----
    p2_ref[...] = jnp.zeros(p2_ref.shape, p2_ref.dtype)
    scale = s2_ref[...]
    shift = t2_ref[...]
    for ch in range(4):
        acc = jnp.zeros((4, 128), jnp.float32)
        for dh in range(2):
            for dw in range(2):
                lhs = p1_ref[0, ch + dh, dw:dw + 4, :].astype(jnp.bfloat16)
                acc += jnp.dot(lhs, w2_ref[dh, dw, :, :],
                               preferred_element_type=jnp.float32)
        y = acc * scale + shift
        y = jnp.where(y >= 0.0, y, 0.2 * y)
        p2_ref[1 + ch, 1:5, :] = y

    # ---- conv3 + leaky_relu (bn3 is unused in the reference forward) ----
    p3_ref[...] = jnp.zeros(p3_ref.shape, p3_ref.dtype)
    for oh in range(3):
        acc = jnp.zeros((3, 256), jnp.float32)
        for kh in range(4):
            for kw in range(4):
                lhs = p2_ref[oh + kh, kw:kw + 3, :].astype(jnp.bfloat16)
                acc += jnp.dot(lhs, w3_ref[kh * 4 + kw, :, :],
                               preferred_element_type=jnp.float32)
        y = jnp.where(acc >= 0.0, acc, 0.2 * acc)
        p3_ref[1 + oh, 1:4, :] = y

    # ---- zero_pad1 + last_conv(+bias) + numerically-stable sigmoid ----
    bias = b4_ref[...]
    for oh in range(2):
        acc = jnp.zeros((2, 1), jnp.float32)
        for kh in range(4):
            for kw in range(4):
                row = p3_ref[oh + kh, kw:kw + 2, :]          # (2, 256)
                wrow = w4_ref[kh * 4 + kw:kh * 4 + kw + 1, :]  # (1, 256)
                acc += jnp.sum(row * wrow, axis=-1, keepdims=True)
        y = acc + bias
        z = jnp.exp(-jnp.abs(y))
        sig = jnp.where(y >= 0.0, 1.0 / (1.0 + z), z / (1.0 + z))
        o_ref[0, oh, :, :] = sig


# ----------------------------------------------------------------------------
# Parameters (deterministic synthetic init matching the PyTorch module shapes)
# ----------------------------------------------------------------------------
def _conv_weight(key, cout, cin, kh, kw):
    fan_in = cin * kh * kw
    bound = 1.0 / jnp.sqrt(float(fan_in))
    return jax.random.uniform(key, (cout, cin, kh, kw), jnp.float32, -bound, bound)


def _bn_params(keys, c):
    kg, kb, km, kv = keys
    return dict(
        gamma=jax.random.uniform(kg, (c,), jnp.float32, 0.5, 1.5),
        beta=jax.random.normal(kb, (c,), jnp.float32) * 0.1,
        mean=jax.random.normal(km, (c,), jnp.float32) * 0.1,
        var=jax.random.uniform(kv, (c,), jnp.float32, 0.5, 1.5),
    )


def init_params(key):
    ks = jax.random.split(key, 16)
    bound4 = 1.0 / jnp.sqrt(256.0 * 16.0)
    return {
        "conv1_w": _conv_weight(ks[0], 64, 6, 4, 4),
        "conv2_w": _conv_weight(ks[1], 128, 64, 4, 4),
        "conv3_w": _conv_weight(ks[2], 256, 128, 4, 4),
        "last_w": _conv_weight(ks[3], 1, 256, 4, 4),
        "last_b": jax.random.uniform(ks[4], (1,), jnp.float32, -bound4, bound4),
        "bn1": _bn_params(ks[5:9], 64),
        "bn2": _bn_params(ks[9:13], 128),
    }


# ----------------------------------------------------------------------------
# Forward pass (mirrors Discriminator2.forward, eval mode)
# ----------------------------------------------------------------------------
def discriminator2_forward(params, inp, tar):
    N = inp.shape[0]

    # NCHW -> NHWC; concat along channels (commutes with the per-channel maxpool);
    # zero-pad spatially by 2 (so the fused maxpool also produces conv1's padding
    # ring) and channels 6 -> 8; space-to-depth by 4 so both the maxpool and
    # conv1's stride-2 become stride-1 / lane-group ops in-kernel.
    inp_nhwc = jnp.transpose(inp, (0, 2, 3, 1))
    tar_nhwc = jnp.transpose(tar, (0, 2, 3, 1))
    xcat = jnp.concatenate([inp_nhwc, tar_nhwc], axis=-1)       # (N,32,32,6)
    xcat = jnp.pad(xcat, ((0, 0), (2, 2), (2, 2), (0, 2)))       # (N,36,36,8)
    x4 = _space_to_depth(xcat, 4).astype(jnp.float32)            # (N,9,9,128)

    w1 = _regroup_s2_weights(params["conv1_w"], cin_pad=8).astype(jnp.bfloat16)
    s1, t1 = _bn_affine(params["bn1"])
    s1 = s1.reshape(1, 64).astype(jnp.float32)
    t1 = t1.reshape(1, 64).astype(jnp.float32)

    cparams = pltpu.CompilerParams(
        dimension_semantics=("parallel",),
        vmem_limit_bytes=32 * 1024 * 1024,
    )

    # ---------------- stage 1: maxpool + concat + conv1 + BN1 + LReLU --------
    out1 = pl.pallas_call(
        _stage1_kernel,
        out_shape=jax.ShapeDtypeStruct((N * 64, 64), jnp.float32),
        grid_spec=pltpu.PrefetchScalarGridSpec(
            num_scalar_prefetch=0,
            grid=(N,),
            in_specs=[
                pl.BlockSpec((1, 9, 9, 128), lambda n: (n, 0, 0, 0)),
                pl.BlockSpec((2, 2, 32, 64), lambda n: (0, 0, 0, 0)),
                pl.BlockSpec((1, 64), lambda n: (0, 0)),
                pl.BlockSpec((1, 64), lambda n: (0, 0)),
            ],
            out_specs=pl.BlockSpec((64, 64), lambda n: (n, 0)),
            scratch_shapes=[pltpu.VMEM((9, 9, 32), jnp.float32)],
        ),
        compiler_params=cparams,
    )(x4, w1, s1, t1)

    # Re-layout conv1 output for the stride-2 conv2: zero-pad(1) + s2d-by-2.
    # (~100 KB of glue; every later intermediate stays inside VMEM.)
    x2 = out1.reshape(N, 8, 8, 64)
    x2p = jnp.pad(x2, ((0, 0), (1, 1), (1, 1), (0, 0)))          # (N,10,10,64)
    p1 = _space_to_depth(x2p, 2).astype(jnp.float32)             # (N,5,5,256)

    w2 = _regroup_s2_weights(params["conv2_w"]).astype(jnp.bfloat16)   # (2,2,256,128)
    s2, t2 = _bn_affine(params["bn2"])
    s2 = s2.reshape(1, 128).astype(jnp.float32)
    t2 = t2.reshape(1, 128).astype(jnp.float32)
    w3 = _regroup_s1_weights(params["conv3_w"]).astype(jnp.bfloat16)   # (16,128,256)
    w4 = _regroup_s1_weights(params["last_w"]).reshape(16, 256).astype(jnp.float32)
    b4 = params["last_b"].reshape(1, 1).astype(jnp.float32)

    # ------------- stage 2: conv2 -> conv3 -> last_conv -> sigmoid -----------
    out = pl.pallas_call(
        _stage2_kernel,
        out_shape=jax.ShapeDtypeStruct((N, 2, 2, 1), jnp.float32),
        grid_spec=pltpu.PrefetchScalarGridSpec(
            num_scalar_prefetch=0,
            grid=(N,),
            in_specs=[
                pl.BlockSpec((1, 5, 5, 256), lambda n: (n, 0, 0, 0)),
                pl.BlockSpec((2, 2, 256, 128), lambda n: (0, 0, 0, 0)),
                pl.BlockSpec((1, 128), lambda n: (0, 0)),
                pl.BlockSpec((1, 128), lambda n: (0, 0)),
                pl.BlockSpec((16, 128, 256), lambda n: (0, 0, 0)),
                pl.BlockSpec((16, 256), lambda n: (0, 0)),
                pl.BlockSpec((1, 1), lambda n: (0, 0)),
            ],
            out_specs=pl.BlockSpec((1, 2, 2, 1), lambda n: (n, 0, 0, 0)),
            scratch_shapes=[
                pltpu.VMEM((6, 6, 128), jnp.float32),
                pltpu.VMEM((5, 5, 256), jnp.float32),
            ],
        ),
        compiler_params=cparams,
    )(p1, w2, s2, t2, w3, w4, b4)

    return jnp.transpose(out, (0, 3, 1, 2))                      # NCHW (N,1,2,2)


# ----------------------------------------------------------------------------
if __name__ == "__main__":
    key = jax.random.PRNGKey(0)
    kp, ki, kt = jax.random.split(key, 3)

    params = init_params(kp)
    # (N,3,32,32) -> maxpool 16 -> conv1 8 -> conv2 4 -> conv3 3 -> pad 5 -> last 2
    inp = jax.random.normal(ki, (2, 3, 32, 32), jnp.float32)
    tar = jax.random.normal(kt, (2, 3, 32, 32), jnp.float32)

    out = jax.jit(discriminator2_forward)(params, inp, tar)
    out = jax.block_until_ready(out)

    assert out.shape == (2, 1, 2, 2), out.shape
    assert bool(jnp.all(jnp.isfinite(out)))
    assert bool(jnp.all((out >= 0.0) & (out <= 1.0)))
    print("KERNEL_OK")
</pallas_src>

<mosaic_0001>
module attributes {stable_mosaic.version = 11 : i64} {
  func.func @_stage1_kernel(%arg0: i32, %arg1: memref<1x9x9x128xf32, #tpu.memory_space<vmem>>, %arg2: memref<2x2x32x64xbf16, #tpu.memory_space<vmem>>, %arg3: memref<1x64xf32, #tpu.memory_space<vmem>>, %arg4: memref<1x64xf32, #tpu.memory_space<vmem>>, %arg5: memref<64x64xf32, #tpu.memory_space<vmem>>, %arg6: memref<9x9x32xf32, #tpu.memory_space<vmem>>) attributes {dimension_semantics = [#tpu.dimension_semantics<parallel>], iteration_bounds = array<i64: 2>, scalar_prefetch = 0 : i64, scratch_operands = 1 : i64, tpu.core_type = #tpu.core_type<tc>, window_params = [{transform_indices = @transform_0, window_bounds = array<i64: 1, 9, 9, 128>}, {pipeline_mode = #tpu.pipeline_mode<synchronous>, transform_indices = @transform_1, window_bounds = array<i64: 2, 2, 32, 64>}, {pipeline_mode = #tpu.pipeline_mode<synchronous>, transform_indices = @transform_2, window_bounds = array<i64: 1, 64>}, {pipeline_mode = #tpu.pipeline_mode<synchronous>, transform_indices = @transform_3, window_bounds = array<i64: 1, 64>}, {transform_indices = @transform_4, window_bounds = array<i64: 64, 64>}]} {
    %c0 = arith.constant 0 : index
    %c0_0 = arith.constant 0 : index
    %c0_1 = arith.constant 0 : index
    %c0_2 = arith.constant 0 : index
    %0 = vector.load %arg1[%c0, %c0_0, %c0_1, %c0_2] : memref<1x9x9x128xf32, #tpu.memory_space<vmem>>, vector<1x9x9x8xf32>
    %1 = vector.shape_cast %0 : vector<1x9x9x8xf32> to vector<9x9x8xf32>
    %c0_3 = arith.constant 0 : index
    %c0_4 = arith.constant 0 : index
    %c0_5 = arith.constant 0 : index
    %c8 = arith.constant 8 : index
    %2 = vector.load %arg1[%c0_3, %c0_4, %c0_5, %c8] : memref<1x9x9x128xf32, #tpu.memory_space<vmem>>, vector<1x9x9x8xf32>
    %3 = vector.shape_cast %2 : vector<1x9x9x8xf32> to vector<9x9x8xf32>
    %4 = arith.maximumf %1, %3 : vector<9x9x8xf32>
    %c0_6 = arith.constant 0 : index
    %c0_7 = arith.constant 0 : index
    %c0_8 = arith.constant 0 : index
    %c32 = arith.constant 32 : index
    %5 = vector.load %arg1[%c0_6, %c0_7, %c0_8, %c32] : memref<1x9x9x128xf32, #tpu.memory_space<vmem>>, vector<1x9x9x8xf32>
    %6 = vector.shape_cast %5 : vector<1x9x9x8xf32> to vector<9x9x8xf32>
    %7 = arith.maximumf %4, %6 : vector<9x9x8xf32>
    %c0_9 = arith.constant 0 : index
    %c0_10 = arith.constant 0 : index
    %c0_11 = arith.constant 0 : index
    %c40 = arith.constant 40 : index
    %8 = vector.load %arg1[%c0_9, %c0_10, %c0_11, %c40] : memref<1x9x9x128xf32, #tpu.memory_space<vmem>>, vector<1x9x9x8xf32>
    %9 = vector.shape_cast %8 : vector<1x9x9x8xf32> to vector<9x9x8xf32>
    %10 = arith.maximumf %7, %9 : vector<9x9x8xf32>
    %c0_12 = arith.constant 0 : index
    %c0_13 = arith.constant 0 : index
    %c0_14 = arith.constant 0 : index
    %11 = vector.load %arg6[%c0_12, %c0_13, %c0_14] : memref<9x9x32xf32, #tpu.memory_space<vmem>>, vector<9x9x8xf32>
    tpu.vector_store %arg6[%c0_12, %c0_13, %c0_14], %10 {strides = array<i32>} : memref<9x9x32xf32, #tpu.memory_space<vmem>>, vector<9x9x8xf32>,
    %c0_15 = arith.constant 0 : index
    %c0_16 = arith.constant 0 : index
    %c0_17 = arith.constant 0 : index
    %c16 = arith.constant 16 : index
    %12 = vector.load %arg1[%c0_15, %c0_16, %c0_17, %c16] : memref<1x9x9x128xf32, #tpu.memory_space<vmem>>, vector<1x9x9x8xf32>
    %13 = vector.shape_cast %12 : vector<1x9x9x8xf32> to vector<9x9x8xf32>
    %c0_18 = arith.constant 0 : index
    %c0_19 = arith.constant 0 : index
    %c0_20 = arith.constant 0 : index
    %c24 = arith.constant 24 : index
    %14 = vector.load %arg1[%c0_18, %c0_19, %c0_20, %c24] : memref<1x9x9x128xf32, #tpu.memory_space<vmem>>, vector<1x9x9x8xf32>
    %15 = vector.shape_cast %14 : vector<1x9x9x8xf32> to vector<9x9x8xf32>
    %16 = arith.maximumf %13, %15 : vector<9x9x8xf32>
    %c0_21 = arith.constant 0 : index
    %c0_22 = arith.constant 0 : index
    %c0_23 = arith.constant 0 : index
    %c48 = arith.constant 48 : index
    %17 = vector.load %arg1[%c0_21, %c0_22, %c0_23, %c48] : memref<1x9x9x128xf32, #tpu.memory_space<vmem>>, vector<1x9x9x8xf32>
    %18 = vector.shape_cast %17 : vector<1x9x9x8xf32> to vector<9x9x8xf32>
    %19 = arith.maximumf %16, %18 : vector<9x9x8xf32>
    %c0_24 = arith.constant 0 : index
    %c0_25 = arith.constant 0 : index
    %c0_26 = arith.constant 0 : index
    %c56 = arith.constant 56 : index
    %20 = vector.load %arg1[%c0_24, %c0_25, %c0_26, %c56] : memref<1x9x9x128xf32, #tpu.memory_space<vmem>>, vector<1x9x9x8xf32>
    %21 = vector.shape_cast %20 : vector<1x9x9x8xf32> to vector<9x9x8xf32>
    %22 = arith.maximumf %19, %21 : vector<9x9x8xf32>
    %c0_27 = arith.constant 0 : index
    %c0_28 = arith.constant 0 : index
    %c8_29 = arith.constant 8 : index
    %23 = vector.load %arg6[%c0_27, %c0_28, %c8_29] : memref<9x9x32xf32, #tpu.memory_space<vmem>>, vector<9x9x8xf32>
    tpu.vector_store %arg6[%c0_27, %c0_28, %c8_29], %22 {strides = array<i32>} : memref<9x9x32xf32, #tpu.memory_space<vmem>>, vector<9x9x8xf32>,
    %c0_30 = arith.constant 0 : index
    %c0_31 = arith.constant 0 : index
    %c0_32 = arith.constant 0 : index
    %c64 = arith.constant 64 : index
    %24 = vector.load %arg1[%c0_30, %c0_31, %c0_32, %c64] : memref<1x9x9x128xf32, #tpu.memory_space<vmem>>, vector<1x9x9x8xf32>
    %25 = vector.shape_cast %24 : vector<1x9x9x8xf32> to vector<9x9x8xf32>
    %c0_33 = arith.constant 0 : index
    %c0_34 = arith.constant 0 : index
    %c0_35 = arith.constant 0 : index
    %c72 = arith.constant 72 : index
    %26 = vector.load %arg1[%c0_33, %c0_34, %c0_35, %c72] : memref<1x9x9x128xf32, #tpu.memory_space<vmem>>, vector<1x9x9x8xf32>
    %27 = vector.shape_cast %26 : vector<1x9x9x8xf32> to vector<9x9x8xf32>
    %28 = arith.maximumf %25, %27 : vector<9x9x8xf32>
    %c0_36 = arith.constant 0 : index
    %c0_37 = arith.constant 0 : index
    %c0_38 = arith.constant 0 : index
    %c96 = arith.constant 96 : index
    %29 = vector.load %arg1[%c0_36, %c0_37, %c0_38, %c96] : memref<1x9x9x128xf32, #tpu.memory_space<vmem>>, vector<1x9x9x8xf32>
    %30 = vector.shape_cast %29 : vector<1x9x9x8xf32> to vector<9x9x8xf32>
    %31 = arith.maximumf %28, %30 : vector<9x9x8xf32>
    %c0_39 = arith.constant 0 : index
    %c0_40 = arith.constant 0 : index
    %c0_41 = arith.constant 0 : index
    %c104 = arith.constant 104 : index
    %32 = vector.load %arg1[%c0_39, %c0_40, %c0_41, %c104] : memref<1x9x9x128xf32, #tpu.memory_space<vmem>>, vector<1x9x9x8xf32>
    %33 = vector.shape_cast %32 : vector<1x9x9x8xf32> to vector<9x9x8xf32>
    %34 = arith.maximumf %31, %33 : vector<9x9x8xf32>
    %c0_42 = arith.constant 0 : index
    %c0_43 = arith.constant 0 : index
    %c16_44 = arith.constant 16 : index
    %35 = vector.load %arg6[%c0_42, %c0_43, %c16_44] : memref<9x9x32xf32, #tpu.memory_space<vmem>>, vector<9x9x8xf32>
    tpu.vector_store %arg6[%c0_42, %c0_43, %c16_44], %34 {strides = array<i32>} : memref<9x9x32xf32, #tpu.memory_space<vmem>>, vector<9x9x8xf32>,
    %c0_45 = arith.constant 0 : index
    %c0_46 = arith.constant 0 : index
    %c0_47 = arith.constant 0 : index
    %c80 = arith.constant 80 : index
    %36 = vector.load %arg1[%c0_45, %c0_46, %c0_47, %c80] : memref<1x9x9x128xf32, #tpu.memory_space<vmem>>, vector<1x9x9x8xf32>
    %37 = vector.shape_cast %36 : vector<1x9x9x8xf32> to vector<9x9x8xf32>
    %c0_48 = arith.constant 0 : index
    %c0_49 = arith.constant 0 : index
    %c0_50 = arith.constant 0 : index
    %c88 = arith.constant 88 : index
    %38 = vector.load %arg1[%c0_48, %c0_49, %c0_50, %c88] : memref<1x9x9x128xf32, #tpu.memory_space<vmem>>, vector<1x9x9x8xf32>
    %39 = vector.shape_cast %38 : vector<1x9x9x8xf32> to vector<9x9x8xf32>
    %40 = arith.maximumf %37, %39 : vector<9x9x8xf32>
    %c0_51 = arith.constant 0 : index
    %c0_52 = arith.constant 0 : index
    %c0_53 = arith.constant 0 : index
    %c112 = arith.constant 112 : index
    %41 = vector.load %arg1[%c0_51, %c0_52, %c0_53, %c112] : memref<1x9x9x128xf32, #tpu.memory_space<vmem>>, vector<1x9x9x8xf32>
    %42 = vector.shape_cast %41 : vector<1x9x9x8xf32> to vector<9x9x8xf32>
    %43 = arith.maximumf %40, %42 : vector<9x9x8xf32>
    %c0_54 = arith.constant 0 : index
    %c0_55 = arith.constant 0 : index
    %c0_56 = arith.constant 0 : index
    %c120 = arith.constant 120 : index
    %44 = vector.load %arg1[%c0_54, %c0_55, %c0_56, %c120] : memref<1x9x9x128xf32, #tpu.memory_space<vmem>>, vector<1x9x9x8xf32>
    %45 = vector.shape_cast %44 : vector<1x9x9x8xf32> to vector<9x9x8xf32>
    %46 = arith.maximumf %43, %45 : vector<9x9x8xf32>
    %c0_57 = arith.constant 0 : index
    %c0_58 = arith.constant 0 : index
    %c24_59 = arith.constant 24 : index
    %47 = vector.load %arg6[%c0_57, %c0_58, %c24_59] : memref<9x9x32xf32, #tpu.memory_space<vmem>>, vector<9x9x8xf32>
    tpu.vector_store %arg6[%c0_57, %c0_58, %c24_59], %46 {strides = array<i32>} : memref<9x9x32xf32, #tpu.memory_space<vmem>>, vector<9x9x8xf32>,
    %c0_60 = arith.constant 0 : index
    %c0_61 = arith.constant 0 : index
    %48 = vector.load %arg3[%c0_60, %c0_61] : memref<1x64xf32, #tpu.memory_space<vmem>>, vector<1x64xf32>
    %c0_62 = arith.constant 0 : index
    %c0_63 = arith.constant 0 : index
    %49 = vector.load %arg4[%c0_62, %c0_63] : memref<1x64xf32, #tpu.memory_space<vmem>>, vector<1x64xf32>
    %cst = arith.constant 0.000000e+00 : f32
    %50 = vector.broadcast %cst : f32 to vector<8x64xf32>
    %c0_64 = arith.constant 0 : index
    %c0_65 = arith.constant 0 : index
    %c0_66 = arith.constant 0 : index
    %51 = vector.load %arg6[%c0_64, %c0_65, %c0_66] : memref<9x9x32xf32, #tpu.memory_space<vmem>>, vector<1x8x32xf32>
    %52 = vector.shape_cast %51 : vector<1x8x32xf32> to vector<8x32xf32>
    %53 = arith.truncf %52 : vector<8x32xf32> to vector<8x32xbf16>
    %c0_67 = arith.constant 0 : index
    %c0_68 = arith.constant 0 : index
    %c0_69 = arith.constant 0 : index
    %c0_70 = arith.constant 0 : index
    %54 = vector.load %arg2[%c0_67, %c0_68, %c0_69, %c0_70] : memref<2x2x32x64xbf16, #tpu.memory_space<vmem>>, vector<1x1x32x64xbf16>
    %55 = vector.shape_cast %54 : vector<1x1x32x64xbf16> to vector<32x64xbf16>
    %cst_71 = arith.constant dense<0.000000e+00> : vector<8x64xf32>
    %56 = tpu.matmul %53, %55, %cst_71 {dimension_numbers = #tpu.dot_dimension_numbers<[1], [0], [0], [1], [0, 0, 1, 1], [], []>} : vector<8x32xbf16>, vector<32x64xbf16>, vector<8x64xf32> -> vector<8x64xf32>
    %57 = arith.addf %50, %56 : vector<8x64xf32>
    %c0_72 = arith.constant 0 : index
    %c1 = arith.constant 1 : index
    %c0_73 = arith.constant 0 : index
    %58 = vector.load %arg6[%c0_72, %c1, %c0_73] : memref<9x9x32xf32, #tpu.memory_space<vmem>>, vector<1x8x32xf32>
    %59 = vector.shape_cast %58 : vector<1x8x32xf32> to vector<8x32xf32>
    %60 = arith.truncf %59 : vector<8x32xf32> to vector<8x32xbf16>
    %c0_74 = arith.constant 0 : index
    %c1_75 = arith.constant 1 : index
    %c0_76 = arith.constant 0 : index
    %c0_77 = arith.constant 0 : index
    %61 = vector.load %arg2[%c0_74, %c1_75, %c0_76, %c0_77] : memref<2x2x32x64xbf16, #tpu.memory_space<vmem>>, vector<1x1x32x64xbf16>
    %62 = vector.shape_cast %61 : vector<1x1x32x64xbf16> to vector<32x64xbf16>
    %cst_78 = arith.constant dense<0.000000e+00> : vector<8x64xf32>
    %63 = tpu.matmul %60, %62, %cst_78 {dimension_numbers = #tpu.dot_dimension_numbers<[1], [0], [0], [1], [0, 0, 1, 1], [], []>} : vector<8x32xbf16>, vector<32x64xbf16>, vector<8x64xf32> -> vector<8x64xf32>
    %64 = arith.addf %57, %63 : vector<8x64xf32>
    %c1_79 = arith.constant 1 : index
    %c0_80 = arith.constant 0 : index
    %c0_81 = arith.constant 0 : index
    %65 = vector.load %arg6[%c1_79, %c0_80, %c0_81] : memref<9x9x32xf32, #tpu.memory_space<vmem>>, vector<1x8x32xf32>
    %66 = vector.shape_cast %65 : vector<1x8x32xf32> to vector<8x32xf32>
    %67 = arith.truncf %66 : vector<8x32xf32> to vector<8x32xbf16>
    %c1_82 = arith.constant 1 : index
    %c0_83 = arith.constant 0 : index
    %c0_84 = arith.constant 0 : index
    %c0_85 = arith.constant 0 : index
    %68 = vector.load %arg2[%c1_82, %c0_83, %c0_84, %c0_85] : memref<2x2x32x64xbf16, #tpu.memory_space<vmem>>, vector<1x1x32x64xbf16>
    %69 = vector.shape_cast %68 : vector<1x1x32x64xbf16> to vector<32x64xbf16>
    %cst_86 = arith.constant dense<0.000000e+00> : vector<8x64xf32>
    %70 = tpu.matmul %67, %69, %cst_86 {dimension_numbers = #tpu.dot_dimension_numbers<[1], [0], [0], [1], [0, 0, 1, 1], [], []>} : vector<8x32xbf16>, vector<32x64xbf16>, vector<8x64xf32> -> vector<8x64xf32>
    %71 = arith.addf %64, %70 : vector<8x64xf32>
    %c1_87 = arith.constant 1 : index
    %c1_88 = arith.constant 1 : index
    %c0_89 = arith.constant 0 : index
    %72 = vector.load %arg6[%c1_87, %c1_88, %c0_89] : memref<9x9x32xf32, #tpu.memory_space<vmem>>, vector<1x8x32xf32>
    %73 = vector.shape_cast %72 : vector<1x8x32xf32> to vector<8x32xf32>
    %74 = arith.truncf %73 : vector<8x32xf32> to vector<8x32xbf16>
    %c1_90 = arith.constant 1 : index
    %c1_91 = arith.constant 1 : index
    %c0_92 = arith.constant 0 : index
    %c0_93 = arith.constant 0 : index
    %75 = vector.load %arg2[%c1_90, %c1_91, %c0_92, %c0_93] : memref<2x2x32x64xbf16, #tpu.memory_space<vmem>>, vector<1x1x32x64xbf16>
    %76 = vector.shape_cast %75 : vector<1x1x32x64xbf16> to vector<32x64xbf16>
    %cst_94 = arith.constant dense<0.000000e+00> : vector<8x64xf32>
    %77 = tpu.matmul %74, %76, %cst_94 {dimension_numbers = #tpu.dot_dimension_numbers<[1], [0], [0], [1], [0, 0, 1, 1], [], []>} : vector<8x32xbf16>, vector<32x64xbf16>, vector<8x64xf32> -> vector<8x64xf32>
    %78 = arith.addf %71, %77 : vector<8x64xf32>
    %79 = vector.broadcast %48 : vector<1x64xf32> to vector<8x64xf32>
    %80 = arith.mulf %78, %79 : vector<8x64xf32>
    %81 = vector.broadcast %49 : vector<1x64xf32> to vector<8x64xf32>
    %82 = arith.addf %80, %81 : vector<8x64xf32>
    %cst_95 = arith.constant 0.000000e+00 : f32
    %83 = vector.broadcast %cst_95 : f32 to vector<8x64xf32>
    %84 = arith.cmpf oge, %82, %83 : vector<8x64xf32>
    %cst_96 = arith.constant 2.000000e-01 : f32
    %85 = vector.broadcast %cst_96 : f32 to vector<8x64xf32>
    %86 = arith.mulf %85, %82 : vector<8x64xf32>
    %87 = arith.select %84, %82, %86 : vector<8x64xi1>, vector<8x64xf32>
    %c0_97 = arith.constant 0 : index
    %c0_98 = arith.constant 0 : index
    %88 = vector.load %arg5[%c0_97, %c0_98] : memref<64x64xf32, #tpu.memory_space<vmem>>, vector<8x64xf32>
    tpu.vector_store %arg5[%c0_97, %c0_98], %87 {strides = array<i32>} : memref<64x64xf32, #tpu.memory_space<vmem>>, vector<8x64xf32>,
    %cst_99 = arith.constant 0.000000e+00 : f32
    %89 = vector.broadcast %cst_99 : f32 to vector<8x64xf32>
    %c1_100 = arith.constant 1 : index
    %c0_101 = arith.constant 0 : index
    %c0_102 = arith.constant 0 : index
    %90 = vector.load %arg6[%c1_100, %c0_101, %c0_102] : memref<9x9x32xf32, #tpu.memory_space<vmem>>, vector<1x8x32xf32>
    %91 = vector.shape_cast %90 : vector<1x8x32xf32> to vector<8x32xf32>
    %92 = arith.truncf %91 : vector<8x32xf32> to vector<8x32xbf16>
    %c0_103 = arith.constant 0 : index
    %c0_104 = arith.constant 0 : index
    %c0_105 = arith.constant 0 : index
    %c0_106 = arith.constant 0 : index
    %93 = vector.load %arg2[%c0_103, %c0_104, %c0_105, %c0_106] : memref<2x2x32x64xbf16, #tpu.memory_space<vmem>>, vector<1x1x32x64xbf16>
    %94 = vector.shape_cast %93 : vector<1x1x32x64xbf16> to vector<32x64xbf16>
    %cst_107 = arith.constant dense<0.000000e+00> : vector<8x64xf32>
    %95 = tpu.matmul %92, %94, %cst_107 {dimension_numbers = #tpu.dot_dimension_numbers<[1], [0], [0], [1], [0, 0, 1, 1], [], []>} : vector<8x32xbf16>, vector<32x64xbf16>, vector<8x64xf32> -> vector<8x64xf32>
    %96 = arith.addf %89, %95 : vector<8x64xf32>
    %c1_108 = arith.constant 1 : index
    %c1_109 = arith.constant 1 : index
    %c0_110 = arith.constant 0 : index
    %97 = vector.load %arg6[%c1_108, %c1_109, %c0_110] : memref<9x9x32xf32, #tpu.memory_space<vmem>>, vector<1x8x32xf32>
    %98 = vector.shape_cast %97 : vector<1x8x32xf32> to vector<8x32xf32>
    %99 = arith.truncf %98 : vector<8x32xf32> to vector<8x32xbf16>
    %c0_111 = arith.constant 0 : index
    %c1_112 = arith.constant 1 : index
    %c0_113 = arith.constant 0 : index
    %c0_114 = arith.constant 0 : index
    %100 = vector.load %arg2[%c0_111, %c1_112, %c0_113, %c0_114] : memref<2x2x32x64xbf16, #tpu.memory_space<vmem>>, vector<1x1x32x64xbf16>
    %101 = vector.shape_cast %100 : vector<1x1x32x64xbf16> to vector<32x64xbf16>
    %cst_115 = arith.constant dense<0.000000e+00> : vector<8x64xf32>
    %102 = tpu.matmul %99, %101, %cst_115 {dimension_numbers = #tpu.dot_dimension_numbers<[1], [0], [0], [1], [0, 0, 1, 1], [], []>} : vector<8x32xbf16>, vector<32x64xbf16>, vector<8x64xf32> -> vector<8x64xf32>
    %103 = arith.addf %96, %102 : vector<8x64xf32>
    %c2 = arith.constant 2 : index
    %c0_116 = arith.constant 0 : index
    %c0_117 = arith.constant 0 : index
    %104 = vector.load %arg6[%c2, %c0_116, %c0_117] : memref<9x9x32xf32, #tpu.memory_space<vmem>>, vector<1x8x32xf32>
    %105 = vector.shape_cast %104 : vector<1x8x32xf32> to vector<8x32xf32>
    %106 = arith.truncf %105 : vector<8x32xf32> to vector<8x32xbf16>
    %c1_118 = arith.constant 1 : index
    %c0_119 = arith.constant 0 : index
    %c0_120 = arith.constant 0 : index
    %c0_121 = arith.constant 0 : index
    %107 = vector.load %arg2[%c1_118, %c0_119, %c0_120, %c0_121] : memref<2x2x32x64xbf16, #tpu.memory_space<vmem>>, vector<1x1x32x64xbf16>
    %108 = vector.shape_cast %107 : vector<1x1x32x64xbf16> to vector<32x64xbf16>
    %cst_122 = arith.constant dense<0.000000e+00> : vector<8x64xf32>
    %109 = tpu.matmul %106, %108, %cst_122 {dimension_numbers = #tpu.dot_dimension_numbers<[1], [0], [0], [1], [0, 0, 1, 1], [], []>} : vector<8x32xbf16>, vector<32x64xbf16>, vector<8x64xf32> -> vector<8x64xf32>
    %110 = arith.addf %103, %109 : vector<8x64xf32>
    %c2_123 = arith.constant 2 : index
    %c1_124 = arith.constant 1 : index
    %c0_125 = arith.constant 0 : index
    %111 = vector.load %arg6[%c2_123, %c1_124, %c0_125] : memref<9x9x32xf32, #tpu.memory_space<vmem>>, vector<1x8x32xf32>
    %112 = vector.shape_cast %111 : vector<1x8x32xf32> to vector<8x32xf32>
    %113 = arith.truncf %112 : vector<8x32xf32> to vector<8x32xbf16>
    %c1_126 = arith.constant 1 : index
    %c1_127 = arith.constant 1 : index
    %c0_128 = arith.constant 0 : index
    %c0_129 = arith.constant 0 : index
    %114 = vector.load %arg2[%c1_126, %c1_127, %c0_128, %c0_129] : memref<2x2x32x64xbf16, #tpu.memory_space<vmem>>, vector<1x1x32x64xbf16>
    %115 = vector.shape_cast %114 : vector<1x1x32x64xbf16> to vector<32x64xbf16>
    %cst_130 = arith.constant dense<0.000000e+00> : vector<8x64xf32>
    %116 = tpu.matmul %113, %115, %cst_130 {dimension_numbers = #tpu.dot_dimension_numbers<[1], [0], [0], [1], [0, 0, 1, 1], [], []>} : vector<8x32xbf16>, vector<32x64xbf16>, vector<8x64xf32> -> vector<8x64xf32>
    %117 = arith.addf %110, %116 : vector<8x64xf32>
    %118 = vector.broadcast %48 : vector<1x64xf32> to vector<8x64xf32>
    %119 = arith.mulf %117, %118 : vector<8x64xf32>
    %120 = vector.broadcast %49 : vector<1x64xf32> to vector<8x64xf32>
    %121 = arith.addf %119, %120 : vector<8x64xf32>
    %cst_131 = arith.constant 0.000000e+00 : f32
    %122 = vector.broadcast %cst_131 : f32 to vector<8x64xf32>
    %123 = arith.cmpf oge, %121, %122 : vector<8x64xf32>
    %cst_132 = arith.constant 2.000000e-01 : f32
    %124 = vector.broadcast %cst_132 : f32 to vector<8x64xf32>
    %125 = arith.mulf %124, %121 : vector<8x64xf32>
    %126 = arith.select %123, %121, %125 : vector<8x64xi1>, vector<8x64xf32>
    %c8_133 = arith.constant 8 : index
    %c0_134 = arith.constant 0 : index
    %127 = vector.load %arg5[%c8_133, %c0_134] : memref<64x64xf32, #tpu.memory_space<vmem>>, vector<8x64xf32>
    tpu.vector_store %arg5[%c8_133, %c0_134], %126 {strides = array<i32>} : memref<64x64xf32, #tpu.memory_space<vmem>>, vector<8x64xf32>,
    %cst_135 = arith.constant 0.000000e+00 : f32
    %128 = vector.broadcast %cst_135 : f32 to vector<8x64xf32>
    %c2_136 = arith.constant 2 : index
    %c0_137 = arith.constant 0 : index
    %c0_138 = arith.constant 0 : index
    %129 = vector.load %arg6[%c2_136, %c0_137, %c0_138] : memref<9x9x32xf32, #tpu.memory_space<vmem>>, vector<1x8x32xf32>
    %130 = vector.shape_cast %129 : vector<1x8x32xf32> to vector<8x32xf32>
    %131 = arith.truncf %130 : vector<8x32xf32> to vector<8x32xbf16>
    %c0_139 = arith.constant 0 : index
    %c0_140 = arith.constant 0 : index
    %c0_141 = arith.constant 0 : index
    %c0_142 = arith.constant 0 : index
    %132 = vector.load %arg2[%c0_139, %c0_140, %c0_141, %c0_142] : memref<2x2x32x64xbf16, #tpu.memory_space<vmem>>, vector<1x1x32x64xbf16>
    %133 = vector.shape_cast %132 : vector<1x1x32x64xbf16> to vector<32x64xbf16>
    %cst_143 = arith.constant dense<0.000000e+00> : vector<8x64xf32>
    %134 = tpu.matmul %131, %133, %cst_143 {dimension_numbers = #tpu.dot_dimension_numbers<[1], [0], [0], [1], [0, 0, 1, 1], [], []>} : vector<8x32xbf16>, vector<32x64xbf16>, vector<8x64xf32> -> vector<8x64xf32>
    %135 = arith.addf %128, %134 : vector<8x64xf32>
    %c2_144 = arith.constant 2 : index
    %c1_145 = arith.constant 1 : index
    %c0_146 = arith.constant 0 : index
    %136 = vector.load %arg6[%c2_144, %c1_145, %c0_146] : memref<9x9x32xf32, #tpu.memory_space<vmem>>, vector<1x8x32xf32>
    %137 = vector.shape_cast %136 : vector<1x8x32xf32> to vector<8x32xf32>
    %138 = arith.truncf %137 : vector<8x32xf32> to vector<8x32xbf16>
    %c0_147 = arith.constant 0 : index
    %c1_148 = arith.constant 1 : index
    %c0_149 = arith.constant 0 : index
    %c0_150 = arith.constant 0 : index
    %139 = vector.load %arg2[%c0_147, %c1_148, %c0_149, %c0_150] : memref<2x2x32x64xbf16, #tpu.memory_space<vmem>>, vector<1x1x32x64xbf16>
    %140 = vector.shape_cast %139 : vector<1x1x32x64xbf16> to vector<32x64xbf16>
    %cst_151 = arith.constant dense<0.000000e+00> : vector<8x64xf32>
    %141 = tpu.matmul %138, %140, %cst_151 {dimension_numbers = #tpu.dot_dimension_numbers<[1], [0], [0], [1], [0, 0, 1, 1], [], []>} : vector<8x32xbf16>, vector<32x64xbf16>, vector<8x64xf32> -> vector<8x64xf32>
    %142 = arith.addf %135, %141 : vector<8x64xf32>
    %c3 = arith.constant 3 : index
    %c0_152 = arith.constant 0 : index
    %c0_153 = arith.constant 0 : index
    %143 = vector.load %arg6[%c3, %c0_152, %c0_153] : memref<9x9x32xf32, #tpu.memory_space<vmem>>, vector<1x8x32xf32>
    %144 = vector.shape_cast %143 : vector<1x8x32xf32> to vector<8x32xf32>
    %145 = arith.truncf %144 : vector<8x32xf32> to vector<8x32xbf16>
    %c1_154 = arith.constant 1 : index
    %c0_155 = arith.constant 0 : index
    %c0_156 = arith.constant 0 : index
    %c0_157 = arith.constant 0 : index
    %146 = vector.load %arg2[%c1_154, %c0_155, %c0_156, %c0_157] : memref<2x2x32x64xbf16, #tpu.memory_space<vmem>>, vector<1x1x32x64xbf16>
    %147 = vector.shape_cast %146 : vector<1x1x32x64xbf16> to vector<32x64xbf16>
    %cst_158 = arith.constant dense<0.000000e+00> : vector<8x64xf32>
    %148 = tpu.matmul %145, %147, %cst_158 {dimension_numbers = #tpu.dot_dimension_numbers<[1], [0], [0], [1], [0, 0, 1, 1], [], []>} : vector<8x32xbf16>, vector<32x64xbf16>, vector<8x64xf32> -> vector<8x64xf32>
    %149 = arith.addf %142, %148 : vector<8x64xf32>
    %c3_159 = arith.constant 3 : index
    %c1_160 = arith.constant 1 : index
    %c0_161 = arith.constant 0 : index
    %150 = vector.load %arg6[%c3_159, %c1_160, %c0_161] : memref<9x9x32xf32, #tpu.memory_space<vmem>>, vector<1x8x32xf32>
    %151 = vector.shape_cast %150 : vector<1x8x32xf32> to vector<8x32xf32>
    %152 = arith.truncf %151 : vector<8x32xf32> to vector<8x32xbf16>
    %c1_162 = arith.constant 1 : index
    %c1_163 = arith.constant 1 : index
    %c0_164 = arith.constant 0 : index
    %c0_165 = arith.constant 0 : index
    %153 = vector.load %arg2[%c1_162, %c1_163, %c0_164, %c0_165] : memref<2x2x32x64xbf16, #tpu.memory_space<vmem>>, vector<1x1x32x64xbf16>
    %154 = vector.shape_cast %153 : vector<1x1x32x64xbf16> to vector<32x64xbf16>
    %cst_166 = arith.constant dense<0.000000e+00> : vector<8x64xf32>
    %155 = tpu.matmul %152, %154, %cst_166 {dimension_numbers = #tpu.dot_dimension_numbers<[1], [0], [0], [1], [0, 0, 1, 1], [], []>} : vector<8x32xbf16>, vector<32x64xbf16>, vector<8x64xf32> -> vector<8x64xf32>
    %156 = arith.addf %149, %155 : vector<8x64xf32>
    %157 = vector.broadcast %48 : vector<1x64xf32> to vector<8x64xf32>
    %158 = arith.mulf %156, %157 : vector<8x64xf32>
    %159 = vector.broadcast %49 : vector<1x64xf32> to vector<8x64xf32>
    %160 = arith.addf %158, %159 : vector<8x64xf32>
    %cst_167 = arith.constant 0.000000e+00 : f32
    %161 = vector.broadcast %cst_167 : f32 to vector<8x64xf32>
    %162 = arith.cmpf oge, %160, %161 : vector<8x64xf32>
    %cst_168 = arith.constant 2.000000e-01 : f32
    %163 = vector.broadcast %cst_168 : f32 to vector<8x64xf32>
    %164 = arith.mulf %163, %160 : vector<8x64xf32>
    %165 = arith.select %162, %160, %164 : vector<8x64xi1>, vector<8x64xf32>
    %c16_169 = arith.constant 16 : index
    %c0_170 = arith.constant 0 : index
    %166 = vector.load %arg5[%c16_169, %c0_170] : memref<64x64xf32, #tpu.memory_space<vmem>>, vector<8x64xf32>
    tpu.vector_store %arg5[%c16_169, %c0_170], %165 {strides = array<i32>} : memref<64x64xf32, #tpu.memory_space<vmem>>, vector<8x64xf32>,
    %cst_171 = arith.constant 0.000000e+00 : f32
    %167 = vector.broadcast %cst_171 : f32 to vector<8x64xf32>
    %c3_172 = arith.constant 3 : index
    %c0_173 = arith.constant 0 : index
    %c0_174 = arith.constant 0 : index
    %168 = vector.load %arg6[%c3_172, %c0_173, %c0_174] : memref<9x9x32xf32, #tpu.memory_space<vmem>>, vector<1x8x32xf32>
    %169 = vector.shape_cast %168 : vector<1x8x32xf32> to vector<8x32xf32>
    %170 = arith.truncf %169 : vector<8x32xf32> to vector<8x32xbf16>
    %c0_175 = arith.constant 0 : index
    %c0_176 = arith.constant 0 : index
    %c0_177 = arith.constant 0 : index
    %c0_178 = arith.constant 0 : index
    %171 = vector.load %arg2[%c0_175, %c0_176, %c0_177, %c0_178] : memref<2x2x32x64xbf16, #tpu.memory_space<vmem>>, vector<1x1x32x64xbf16>
    %172 = vector.shape_cast %171 : vector<1x1x32x64xbf16> to vector<32x64xbf16>
    %cst_179 = arith.constant dense<0.000000e+00> : vector<8x64xf32>
    %173 = tpu.matmul %170, %172, %cst_179 {dimension_numbers = #tpu.dot_dimension_numbers<[1], [0], [0], [1], [0, 0, 1, 1], [], []>} : vector<8x32xbf16>, vector<32x64xbf16>, vector<8x64xf32> -> vector<8x64xf32>
    %174 = arith.addf %167, %173 : vector<8x64xf32>
    %c3_180 = arith.constant 3 : index
    %c1_181 = arith.constant 1 : index
    %c0_182 = arith.constant 0 : index
    %175 = vector.load %arg6[%c3_180, %c1_181, %c0_182] : memref<9x9x32xf32, #tpu.memory_space<vmem>>, vector<1x8x32xf32>
    %176 = vector.shape_cast %175 : vector<1x8x32xf32> to vector<8x32xf32>
    %177 = arith.truncf %176 : vector<8x32xf32> to vector<8x32xbf16>
    %c0_183 = arith.constant 0 : index
    %c1_184 = arith.constant 1 : index
    %c0_185 = arith.constant 0 : index
    %c0_186 = arith.constant 0 : index
    %178 = vector.load %arg2[%c0_183, %c1_184, %c0_185, %c0_186] : memref<2x2x32x64xbf16, #tpu.memory_space<vmem>>, vector<1x1x32x64xbf16>
    %179 = vector.shape_cast %178 : vector<1x1x32x64xbf16> to vector<32x64xbf16>
    %cst_187 = arith.constant dense<0.000000e+00> : vector<8x64xf32>
    %180 = tpu.matmul %177, %179, %cst_187 {dimension_numbers = #tpu.dot_dimension_numbers<[1], [0], [0], [1], [0, 0, 1, 1], [], []>} : vector<8x32xbf16>, vector<32x64xbf16>, vector<8x64xf32> -> vector<8x64xf32>
    %181 = arith.addf %174, %180 : vector<8x64xf32>
    %c4 = arith.constant 4 : index
    %c0_188 = arith.constant 0 : index
    %c0_189 = arith.constant 0 : index
    %182 = vector.load %arg6[%c4, %c0_188, %c0_189] : memref<9x9x32xf32, #tpu.memory_space<vmem>>, vector<1x8x32xf32>
    %183 = vector.shape_cast %182 : vector<1x8x32xf32> to vector<8x32xf32>
    %184 = arith.truncf %183 : vector<8x32xf32> to vector<8x32xbf16>
    %c1_190 = arith.constant 1 : index
    %c0_191 = arith.constant 0 : index
    %c0_192 = arith.constant 0 : index
    %c0_193 = arith.constant 0 : index
    %185 = vector.load %arg2[%c1_190, %c0_191, %c0_192, %c0_193] : memref<2x2x32x64xbf16, #tpu.memory_space<vmem>>, vector<1x1x32x64xbf16>
    %186 = vector.shape_cast %185 : vector<1x1x32x64xbf16> to vector<32x64xbf16>
    %cst_194 = arith.constant dense<0.000000e+00> : vector<8x64xf32>
    %187 = tpu.matmul %184, %186, %cst_194 {dimension_numbers = #tpu.dot_dimension_numbers<[1], [0], [0], [1], [0, 0, 1, 1], [], []>} : vector<8x32xbf16>, vector<32x64xbf16>, vector<8x64xf32> -> vector<8x64xf32>
    %188 = arith.addf %181, %187 : vector<8x64xf32>
    %c4_195 = arith.constant 4 : index
    %c1_196 = arith.constant 1 : index
    %c0_197 = arith.constant 0 : index
    %189 = vector.load %arg6[%c4_195, %c1_196, %c0_197] : memref<9x9x32xf32, #tpu.memory_space<vmem>>, vector<1x8x32xf32>
    %190 = vector.shape_cast %189 : vector<1x8x32xf32> to vector<8x32xf32>
    %191 = arith.truncf %190 : vector<8x32xf32> to vector<8x32xbf16>
    %c1_198 = arith.constant 1 : index
    %c1_199 = arith.constant 1 : index
    %c0_200 = arith.constant 0 : index
    %c0_201 = arith.constant 0 : index
    %192 = vector.load %arg2[%c1_198, %c1_199, %c0_200, %c0_201] : memref<2x2x32x64xbf16, #tpu.memory_space<vmem>>, vector<1x1x32x64xbf16>
    %193 = vector.shape_cast %192 : vector<1x1x32x64xbf16> to vector<32x64xbf16>
    %cst_202 = arith.constant dense<0.000000e+00> : vector<8x64xf32>
    %194 = tpu.matmul %191, %193, %cst_202 {dimension_numbers = #tpu.dot_dimension_numbers<[1], [0], [0], [1], [0, 0, 1, 1], [], []>} : vector<8x32xbf16>, vector<32x64xbf16>, vector<8x64xf32> -> vector<8x64xf32>
    %195 = arith.addf %188, %194 : vector<8x64xf32>
    %196 = vector.broadcast %48 : vector<1x64xf32> to vector<8x64xf32>
    %197 = arith.mulf %195, %196 : vector<8x64xf32>
    %198 = vector.broadcast %49 : vector<1x64xf32> to vector<8x64xf32>
    %199 = arith.addf %197, %198 : vector<8x64xf32>
    %cst_203 = arith.constant 0.000000e+00 : f32
    %200 = vector.broadcast %cst_203 : f32 to vector<8x64xf32>
    %201 = arith.cmpf oge, %199, %200 : vector<8x64xf32>
    %cst_204 = arith.constant 2.000000e-01 : f32
    %202 = vector.broadcast %cst_204 : f32 to vector<8x64xf32>
    %203 = arith.mulf %202, %199 : vector<8x64xf32>
    %204 = arith.select %201, %199, %203 : vector<8x64xi1>, vector<8x64xf32>
    %c24_205 = arith.constant 24 : index
    %c0_206 = arith.constant 0 : index
    %205 = vector.load %arg5[%c24_205, %c0_206] : memref<64x64xf32, #tpu.memory_space<vmem>>, vector<8x64xf32>
    tpu.vector_store %arg5[%c24_205, %c0_206], %204 {strides = array<i32>} : memref<64x64xf32, #tpu.memory_space<vmem>>, vector<8x64xf32>,
    %cst_207 = arith.constant 0.000000e+00 : f32
    %206 = vector.broadcast %cst_207 : f32 to vector<8x64xf32>
    %c4_208 = arith.constant 4 : index
    %c0_209 = arith.constant 0 : index
    %c0_210 = arith.constant 0 : index
    %207 = vector.load %arg6[%c4_208, %c0_209, %c0_210] : memref<9x9x32xf32, #tpu.memory_space<vmem>>, vector<1x8x32xf32>
    %208 = vector.shape_cast %207 : vector<1x8x32xf32> to vector<8x32xf32>
    %209 = arith.truncf %208 : vector<8x32xf32> to vector<8x32xbf16>
    %c0_211 = arith.constant 0 : index
    %c0_212 = arith.constant 0 : index
    %c0_213 = arith.constant 0 : index
    %c0_214 = arith.constant 0 : index
    %210 = vector.load %arg2[%c0_211, %c0_212, %c0_213, %c0_214] : memref<2x2x32x64xbf16, #tpu.memory_space<vmem>>, vector<1x1x32x64xbf16>
    %211 = vector.shape_cast %210 : vector<1x1x32x64xbf16> to vector<32x64xbf16>
    %cst_215 = arith.constant dense<0.000000e+00> : vector<8x64xf32>
    %212 = tpu.matmul %209, %211, %cst_215 {dimension_numbers = #tpu.dot_dimension_numbers<[1], [0], [0], [1], [0, 0, 1, 1], [], []>} : vector<8x32xbf16>, vector<32x64xbf16>, vector<8x64xf32> -> vector<8x64xf32>
    %213 = arith.addf %206, %212 : vector<8x64xf32>
    %c4_216 = arith.constant 4 : index
    %c1_217 = arith.constant 1 : index
    %c0_218 = arith.constant 0 : index
    %214 = vector.load %arg6[%c4_216, %c1_217, %c0_218] : memref<9x9x32xf32, #tpu.memory_space<vmem>>, vector<1x8x32xf32>
    %215 = vector.shape_cast %214 : vector<1x8x32xf32> to vector<8x32xf32>
    %216 = arith.truncf %215 : vector<8x32xf32> to vector<8x32xbf16>
    %c0_219 = arith.constant 0 : index
    %c1_220 = arith.constant 1 : index
    %c0_221 = arith.constant 0 : index
    %c0_222 = arith.constant 0 : index
    %217 = vector.load %arg2[%c0_219, %c1_220, %c0_221, %c0_222] : memref<2x2x32x64xbf16, #tpu.memory_space<vmem>>, vector<1x1x32x64xbf16>
    %218 = vector.shape_cast %217 : vector<1x1x32x64xbf16> to vector<32x64xbf16>
    %cst_223 = arith.constant dense<0.000000e+00> : vector<8x64xf32>
    %219 = tpu.matmul %216, %218, %cst_223 {dimension_numbers = #tpu.dot_dimension_numbers<[1], [0], [0], [1], [0, 0, 1, 1], [], []>} : vector<8x32xbf16>, vector<32x64xbf16>, vector<8x64xf32> -> vector<8x64xf32>
    %220 = arith.addf %213, %219 : vector<8x64xf32>
    %c5 = arith.constant 5 : index
    %c0_224 = arith.constant 0 : index
    %c0_225 = arith.constant 0 : index
    %221 = vector.load %arg6[%c5, %c0_224, %c0_225] : memref<9x9x32xf32, #tpu.memory_space<vmem>>, vector<1x8x32xf32>
    %222 = vector.shape_cast %221 : vector<1x8x32xf32> to vector<8x32xf32>
    %223 = arith.truncf %222 : vector<8x32xf32> to vector<8x32xbf16>
    %c1_226 = arith.constant 1 : index
    %c0_227 = arith.constant 0 : index
    %c0_228 = arith.constant 0 : index
    %c0_229 = arith.constant 0 : index
    %224 = vector.load %arg2[%c1_226, %c0_227, %c0_228, %c0_229] : memref<2x2x32x64xbf16, #tpu.memory_space<vmem>>, vector<1x1x32x64xbf16>
    %225 = vector.shape_cast %224 : vector<1x1x32x64xbf16> to vector<32x64xbf16>
    %cst_230 = arith.constant dense<0.000000e+00> : vector<8x64xf32>
    %226 = tpu.matmul %223, %225, %cst_230 {dimension_numbers = #tpu.dot_dimension_numbers<[1], [0], [0], [1], [0, 0, 1, 1], [], []>} : vector<8x32xbf16>, vector<32x64xbf16>, vector<8x64xf32> -> vector<8x64xf32>
    %227 = arith.addf %220, %226 : vector<8x64xf32>
    %c5_231 = arith.constant 5 : index
    %c1_232 = arith.constant 1 : index
    %c0_233 = arith.constant 0 : index
    %228 = vector.load %arg6[%c5_231, %c1_232, %c0_233] : memref<9x9x32xf32, #tpu.memory_space<vmem>>, vector<1x8x32xf32>
    %229 = vector.shape_cast %228 : vector<1x8x32xf32> to vector<8x32xf32>
    %230 = arith.truncf %229 : vector<8x32xf32> to vector<8x32xbf16>
    %c1_234 = arith.constant 1 : index
    %c1_235 = arith.constant 1 : index
    %c0_236 = arith.constant 0 : index
    %c0_237 = arith.constant 0 : index
    %231 = vector.load %arg2[%c1_234, %c1_235, %c0_236, %c0_237] : memref<2x2x32x64xbf16, #tpu.memory_space<vmem>>, vector<1x1x32x64xbf16>
    %232 = vector.shape_cast %231 : vector<1x1x32x64xbf16> to vector<32x64xbf16>
    %cst_238 = arith.constant dense<0.000000e+00> : vector<8x64xf32>
    %233 = tpu.matmul %230, %232, %cst_238 {dimension_numbers = #tpu.dot_dimension_numbers<[1], [0], [0], [1], [0, 0, 1, 1], [], []>} : vector<8x32xbf16>, vector<32x64xbf16>, vector<8x64xf32> -> vector<8x64xf32>
    %234 = arith.addf %227, %233 : vector<8x64xf32>
    %235 = vector.broadcast %48 : vector<1x64xf32> to vector<8x64xf32>
    %236 = arith.mulf %234, %235 : vector<8x64xf32>
    %237 = vector.broadcast %49 : vector<1x64xf32> to vector<8x64xf32>
    %238 = arith.addf %236, %237 : vector<8x64xf32>
    %cst_239 = arith.constant 0.000000e+00 : f32
    %239 = vector.broadcast %cst_239 : f32 to vector<8x64xf32>
    %240 = arith.cmpf oge, %238, %239 : vector<8x64xf32>
    %cst_240 = arith.constant 2.000000e-01 : f32
    %241 = vector.broadcast %cst_240 : f32 to vector<8x64xf32>
    %242 = arith.mulf %241, %238 : vector<8x64xf32>
    %243 = arith.select %240, %238, %242 : vector<8x64xi1>, vector<8x64xf32>
    %c32_241 = arith.constant 32 : index
    %c0_242 = arith.constant 0 : index
    %244 = vector.load %arg5[%c32_241, %c0_242] : memref<64x64xf32, #tpu.memory_space<vmem>>, vector<8x64xf32>
    tpu.vector_store %arg5[%c32_241, %c0_242], %243 {strides = array<i32>} : memref<64x64xf32, #tpu.memory_space<vmem>>, vector<8x64xf32>,
    %cst_243 = arith.constant 0.000000e+00 : f32
    %245 = vector.broadcast %cst_243 : f32 to vector<8x64xf32>
    %c5_244 = arith.constant 5 : index
    %c0_245 = arith.constant 0 : index
    %c0_246 = arith.constant 0 : index
    %246 = vector.load %arg6[%c5_244, %c0_245, %c0_246] : memref<9x9x32xf32, #tpu.memory_space<vmem>>, vector<1x8x32xf32>
    %247 = vector.shape_cast %246 : vector<1x8x32xf32> to vector<8x32xf32>
    %248 = arith.truncf %247 : vector<8x32xf32> to vector<8x32xbf16>
    %c0_247 = arith.constant 0 : index
    %c0_248 = arith.constant 0 : index
    %c0_249 = arith.constant 0 : index
    %c0_250 = arith.constant 0 : index
    %249 = vector.load %arg2[%c0_247, %c0_248, %c0_249, %c0_250] : memref<2x2x32x64xbf16, #tpu.memory_space<vmem>>, vector<1x1x32x64xbf16>
    %250 = vector.shape_cast %249 : vector<1x1x32x64xbf16> to vector<32x64xbf16>
    %cst_251 = arith.constant dense<0.000000e+00> : vector<8x64xf32>
    %251 = tpu.matmul %248, %250, %cst_251 {dimension_numbers = #tpu.dot_dimension_numbers<[1], [0], [0], [1], [0, 0, 1, 1], [], []>} : vector<8x32xbf16>, vector<32x64xbf16>, vector<8x64xf32> -> vector<8x64xf32>
    %252 = arith.addf %245, %251 : vector<8x64xf32>
    %c5_252 = arith.constant 5 : index
    %c1_253 = arith.constant 1 : index
    %c0_254 = arith.constant 0 : index
    %253 = vector.load %arg6[%c5_252, %c1_253, %c0_254] : memref<9x9x32xf32, #tpu.memory_space<vmem>>, vector<1x8x32xf32>
    %254 = vector.shape_cast %253 : vector<1x8x32xf32> to vector<8x32xf32>
    %255 = arith.truncf %254 : vector<8x32xf32> to vector<8x32xbf16>
    %c0_255 = arith.constant 0 : index
    %c1_256 = arith.constant 1 : index
    %c0_257 = arith.constant 0 : index
    %c0_258 = arith.constant 0 : index
    %256 = vector.load %arg2[%c0_255, %c1_256, %c0_257, %c0_258] : memref<2x2x32x64xbf16, #tpu.memory_space<vmem>>, vector<1x1x32x64xbf16>
    %257 = vector.shape_cast %256 : vector<1x1x32x64xbf16> to vector<32x64xbf16>
    %cst_259 = arith.constant dense<0.000000e+00> : vector<8x64xf32>
    %258 = tpu.matmul %255, %257, %cst_259 {dimension_numbers = #tpu.dot_dimension_numbers<[1], [0], [0], [1], [0, 0, 1, 1], [], []>} : vector<8x32xbf16>, vector<32x64xbf16>, vector<8x64xf32> -> vector<8x64xf32>
    %259 = arith.addf %252, %258 : vector<8x64xf32>
    %c6 = arith.constant 6 : index
    %c0_260 = arith.constant 0 : index
    %c0_261 = arith.constant 0 : index
    %260 = vector.load %arg6[%c6, %c0_260, %c0_261] : memref<9x9x32xf32, #tpu.memory_space<vmem>>, vector<1x8x32xf32>
    %261 = vector.shape_cast %260 : vector<1x8x32xf32> to vector<8x32xf32>
    %262 = arith.truncf %261 : vector<8x32xf32> to vector<8x32xbf16>
    %c1_262 = arith.constant 1 : index
    %c0_263 = arith.constant 0 : index
    %c0_264 = arith.constant 0 : index
    %c0_265 = arith.constant 0 : index
    %263 = vector.load %arg2[%c1_262, %c0_263, %c0_264, %c0_265] : memref<2x2x32x64xbf16, #tpu.memory_space<vmem>>, vector<1x1x32x64xbf16>
    %264 = vector.shape_cast %263 : vector<1x1x32x64xbf16> to vector<32x64xbf16>
    %cst_266 = arith.constant dense<0.000000e+00> : vector<8x64xf32>
    %265 = tpu.matmul %262, %264, %cst_266 {dimension_numbers = #tpu.dot_dimension_numbers<[1], [0], [0], [1], [0, 0, 1, 1], [], []>} : vector<8x32xbf16>, vector<32x64xbf16>, vector<8x64xf32> -> vector<8x64xf32>
    %266 = arith.addf %259, %265 : vector<8x64xf32>
    %c6_267 = arith.constant 6 : index
    %c1_268 = arith.constant 1 : index
    %c0_269 = arith.constant 0 : index
    %267 = vector.load %arg6[%c6_267, %c1_268, %c0_269] : memref<9x9x32xf32, #tpu.memory_space<vmem>>, vector<1x8x32xf32>
    %268 = vector.shape_cast %267 : vector<1x8x32xf32> to vector<8x32xf32>
    %269 = arith.truncf %268 : vector<8x32xf32> to vector<8x32xbf16>
    %c1_270 = arith.constant 1 : index
    %c1_271 = arith.constant 1 : index
    %c0_272 = arith.constant 0 : index
    %c0_273 = arith.constant 0 : index
    %270 = vector.load %arg2[%c1_270, %c1_271, %c0_272, %c0_273] : memref<2x2x32x64xbf16, #tpu.memory_space<vmem>>, vector<1x1x32x64xbf16>
    %271 = vector.shape_cast %270 : vector<1x1x32x64xbf16> to vector<32x64xbf16>
    %cst_274 = arith.constant dense<0.000000e+00> : vector<8x64xf32>
    %272 = tpu.matmul %269, %271, %cst_274 {dimension_numbers = #tpu.dot_dimension_numbers<[1], [0], [0], [1], [0, 0, 1, 1], [], []>} : vector<8x32xbf16>, vector<32x64xbf16>, vector<8x64xf32> -> vector<8x64xf32>
    %273 = arith.addf %266, %272 : vector<8x64xf32>
    %274 = vector.broadcast %48 : vector<1x64xf32> to vector<8x64xf32>
    %275 = arith.mulf %273, %274 : vector<8x64xf32>
    %276 = vector.broadcast %49 : vector<1x64xf32> to vector<8x64xf32>
    %277 = arith.addf %275, %276 : vector<8x64xf32>
    %cst_275 = arith.constant 0.000000e+00 : f32
    %278 = vector.broadcast %cst_275 : f32 to vector<8x64xf32>
    %279 = arith.cmpf oge, %277, %278 : vector<8x64xf32>
    %cst_276 = arith.constant 2.000000e-01 : f32
    %280 = vector.broadcast %cst_276 : f32 to vector<8x64xf32>
    %281 = arith.mulf %280, %277 : vector<8x64xf32>
    %282 = arith.select %279, %277, %281 : vector<8x64xi1>, vector<8x64xf32>
    %c40_277 = arith.constant 40 : index
    %c0_278 = arith.constant 0 : index
    %283 = vector.load %arg5[%c40_277, %c0_278] : memref<64x64xf32, #tpu.memory_space<vmem>>, vector<8x64xf32>
    tpu.vector_store %arg5[%c40_277, %c0_278], %282 {strides = array<i32>} : memref<64x64xf32, #tpu.memory_space<vmem>>, vector<8x64xf32>,
    %cst_279 = arith.constant 0.000000e+00 : f32
    %284 = vector.broadcast %cst_279 : f32 to vector<8x64xf32>
    %c6_280 = arith.constant 6 : index
    %c0_281 = arith.constant 0 : index
    %c0_282 = arith.constant 0 : index
    %285 = vector.load %arg6[%c6_280, %c0_281, %c0_282] : memref<9x9x32xf32, #tpu.memory_space<vmem>>, vector<1x8x32xf32>
    %286 = vector.shape_cast %285 : vector<1x8x32xf32> to vector<8x32xf32>
    %287 = arith.truncf %286 : vector<8x32xf32> to vector<8x32xbf16>
    %c0_283 = arith.constant 0 : index
    %c0_284 = arith.constant 0 : index
    %c0_285 = arith.constant 0 : index
    %c0_286 = arith.constant 0 : index
    %288 = vector.load %arg2[%c0_283, %c0_284, %c0_285, %c0_286] : memref<2x2x32x64xbf16, #tpu.memory_space<vmem>>, vector<1x1x32x64xbf16>
    %289 = vector.shape_cast %288 : vector<1x1x32x64xbf16> to vector<32x64xbf16>
    %cst_287 = arith.constant dense<0.000000e+00> : vector<8x64xf32>
    %290 = tpu.matmul %287, %289, %cst_287 {dimension_numbers = #tpu.dot_dimension_numbers<[1], [0], [0], [1], [0, 0, 1, 1], [], []>} : vector<8x32xbf16>, vector<32x64xbf16>, vector<8x64xf32> -> vector<8x64xf32>
    %291 = arith.addf %284, %290 : vector<8x64xf32>
    %c6_288 = arith.constant 6 : index
    %c1_289 = arith.constant 1 : index
    %c0_290 = arith.constant 0 : index
    %292 = vector.load %arg6[%c6_288, %c1_289, %c0_290] : memref<9x9x32xf32, #tpu.memory_space<vmem>>, vector<1x8x32xf32>
    %293 = vector.shape_cast %292 : vector<1x8x32xf32> to vector<8x32xf32>
    %294 = arith.truncf %293 : vector<8x32xf32> to vector<8x32xbf16>
    %c0_291 = arith.constant 0 : index
    %c1_292 = arith.constant 1 : index
    %c0_293 = arith.constant 0 : index
    %c0_294 = arith.constant 0 : index
    %295 = vector.load %arg2[%c0_291, %c1_292, %c0_293, %c0_294] : memref<2x2x32x64xbf16, #tpu.memory_space<vmem>>, vector<1x1x32x64xbf16>
    %296 = vector.shape_cast %295 : vector<1x1x32x64xbf16> to vector<32x64xbf16>
    %cst_295 = arith.constant dense<0.000000e+00> : vector<8x64xf32>
    %297 = tpu.matmul %294, %296, %cst_295 {dimension_numbers = #tpu.dot_dimension_numbers<[1], [0], [0], [1], [0, 0, 1, 1], [], []>} : vector<8x32xbf16>, vector<32x64xbf16>, vector<8x64xf32> -> vector<8x64xf32>
    %298 = arith.addf %291, %297 : vector<8x64xf32>
    %c7 = arith.constant 7 : index
    %c0_296 = arith.constant 0 : index
    %c0_297 = arith.constant 0 : index
    %299 = vector.load %arg6[%c7, %c0_296, %c0_297] : memref<9x9x32xf32, #tpu.memory_space<vmem>>, vector<1x8x32xf32>
    %300 = vector.shape_cast %299 : vector<1x8x32xf32> to vector<8x32xf32>
    %301 = arith.truncf %300 : vector<8x32xf32> to vector<8x32xbf16>
    %c1_298 = arith.constant 1 : index
    %c0_299 = arith.constant 0 : index
    %c0_300 = arith.constant 0 : index
    %c0_301 = arith.constant 0 : index
    %302 = vector.load %arg2[%c1_298, %c0_299, %c0_300, %c0_301] : memref<2x2x32x64xbf16, #tpu.memory_space<vmem>>, vector<1x1x32x64xbf16>
    %303 = vector.shape_cast %302 : vector<1x1x32x64xbf16> to vector<32x64xbf16>
    %cst_302 = arith.constant dense<0.000000e+00> : vector<8x64xf32>
    %304 = tpu.matmul %301, %303, %cst_302 {dimension_numbers = #tpu.dot_dimension_numbers<[1], [0], [0], [1], [0, 0, 1, 1], [], []>} : vector<8x32xbf16>, vector<32x64xbf16>, vector<8x64xf32> -> vector<8x64xf32>
    %305 = arith.addf %298, %304 : vector<8x64xf32>
    %c7_303 = arith.constant 7 : index
    %c1_304 = arith.constant 1 : index
    %c0_305 = arith.constant 0 : index
    %306 = vector.load %arg6[%c7_303, %c1_304, %c0_305] : memref<9x9x32xf32, #tpu.memory_space<vmem>>, vector<1x8x32xf32>
    %307 = vector.shape_cast %306 : vector<1x8x32xf32> to vector<8x32xf32>
    %308 = arith.truncf %307 : vector<8x32xf32> to vector<8x32xbf16>
    %c1_306 = arith.constant 1 : index
    %c1_307 = arith.constant 1 : index
    %c0_308 = arith.constant 0 : index
    %c0_309 = arith.constant 0 : index
    %309 = vector.load %arg2[%c1_306, %c1_307, %c0_308, %c0_309] : memref<2x2x32x64xbf16, #tpu.memory_space<vmem>>, vector<1x1x32x64xbf16>
    %310 = vector.shape_cast %309 : vector<1x1x32x64xbf16> to vector<32x64xbf16>
    %cst_310 = arith.constant dense<0.000000e+00> : vector<8x64xf32>
    %311 = tpu.matmul %308, %310, %cst_310 {dimension_numbers = #tpu.dot_dimension_numbers<[1], [0], [0], [1], [0, 0, 1, 1], [], []>} : vector<8x32xbf16>, vector<32x64xbf16>, vector<8x64xf32> -> vector<8x64xf32>
    %312 = arith.addf %305, %311 : vector<8x64xf32>
    %313 = vector.broadcast %48 : vector<1x64xf32> to vector<8x64xf32>
    %314 = arith.mulf %312, %313 : vector<8x64xf32>
    %315 = vector.broadcast %49 : vector<1x64xf32> to vector<8x64xf32>
    %316 = arith.addf %314, %315 : vector<8x64xf32>
    %cst_311 = arith.constant 0.000000e+00 : f32
    %317 = vector.broadcast %cst_311 : f32 to vector<8x64xf32>
    %318 = arith.cmpf oge, %316, %317 : vector<8x64xf32>
    %cst_312 = arith.constant 2.000000e-01 : f32
    %319 = vector.broadcast %cst_312 : f32 to vector<8x64xf32>
    %320 = arith.mulf %319, %316 : vector<8x64xf32>
    %321 = arith.select %318, %316, %320 : vector<8x64xi1>, vector<8x64xf32>
    %c48_313 = arith.constant 48 : index
    %c0_314 = arith.constant 0 : index
    %322 = vector.load %arg5[%c48_313, %c0_314] : memref<64x64xf32, #tpu.memory_space<vmem>>, vector<8x64xf32>
    tpu.vector_store %arg5[%c48_313, %c0_314], %321 {strides = array<i32>} : memref<64x64xf32, #tpu.memory_space<vmem>>, vector<8x64xf32>,
    %cst_315 = arith.constant 0.000000e+00 : f32
    %323 = vector.broadcast %cst_315 : f32 to vector<8x64xf32>
    %c7_316 = arith.constant 7 : index
    %c0_317 = arith.constant 0 : index
    %c0_318 = arith.constant 0 : index
    %324 = vector.load %arg6[%c7_316, %c0_317, %c0_318] : memref<9x9x32xf32, #tpu.memory_space<vmem>>, vector<1x8x32xf32>
    %325 = vector.shape_cast %324 : vector<1x8x32xf32> to vector<8x32xf32>
    %326 = arith.truncf %325 : vector<8x32xf32> to vector<8x32xbf16>
    %c0_319 = arith.constant 0 : index
    %c0_320 = arith.constant 0 : index
    %c0_321 = arith.constant 0 : index
    %c0_322 = arith.constant 0 : index
    %327 = vector.load %arg2[%c0_319, %c0_320, %c0_321, %c0_322] : memref<2x2x32x64xbf16, #tpu.memory_space<vmem>>, vector<1x1x32x64xbf16>
    %328 = vector.shape_cast %327 : vector<1x1x32x64xbf16> to vector<32x64xbf16>
    %cst_323 = arith.constant dense<0.000000e+00> : vector<8x64xf32>
    %329 = tpu.matmul %326, %328, %cst_323 {dimension_numbers = #tpu.dot_dimension_numbers<[1], [0], [0], [1], [0, 0, 1, 1], [], []>} : vector<8x32xbf16>, vector<32x64xbf16>, vector<8x64xf32> -> vector<8x64xf32>
    %330 = arith.addf %323, %329 : vector<8x64xf32>
    %c7_324 = arith.constant 7 : index
    %c1_325 = arith.constant 1 : index
    %c0_326 = arith.constant 0 : index
    %331 = vector.load %arg6[%c7_324, %c1_325, %c0_326] : memref<9x9x32xf32, #tpu.memory_space<vmem>>, vector<1x8x32xf32>
    %332 = vector.shape_cast %331 : vector<1x8x32xf32> to vector<8x32xf32>
    %333 = arith.truncf %332 : vector<8x32xf32> to vector<8x32xbf16>
    %c0_327 = arith.constant 0 : index
    %c1_328 = arith.constant 1 : index
    %c0_329 = arith.constant 0 : index
    %c0_330 = arith.constant 0 : index
    %334 = vector.load %arg2[%c0_327, %c1_328, %c0_329, %c0_330] : memref<2x2x32x64xbf16, #tpu.memory_space<vmem>>, vector<1x1x32x64xbf16>
    %335 = vector.shape_cast %334 : vector<1x1x32x64xbf16> to vector<32x64xbf16>
    %cst_331 = arith.constant dense<0.000000e+00> : vector<8x64xf32>
    %336 = tpu.matmul %333, %335, %cst_331 {dimension_numbers = #tpu.dot_dimension_numbers<[1], [0], [0], [1], [0, 0, 1, 1], [], []>} : vector<8x32xbf16>, vector<32x64xbf16>, vector<8x64xf32> -> vector<8x64xf32>
    %337 = arith.addf %330, %336 : vector<8x64xf32>
    %c8_332 = arith.constant 8 : index
    %c0_333 = arith.constant 0 : index
    %c0_334 = arith.constant 0 : index
    %338 = vector.load %arg6[%c8_332, %c0_333, %c0_334] : memref<9x9x32xf32, #tpu.memory_space<vmem>>, vector<1x8x32xf32>
    %339 = vector.shape_cast %338 : vector<1x8x32xf32> to vector<8x32xf32>
    %340 = arith.truncf %339 : vector<8x32xf32> to vector<8x32xbf16>
    %c1_335 = arith.constant 1 : index
    %c0_336 = arith.constant 0 : index
    %c0_337 = arith.constant 0 : index
    %c0_338 = arith.constant 0 : index
    %341 = vector.load %arg2[%c1_335, %c0_336, %c0_337, %c0_338] : memref<2x2x32x64xbf16, #tpu.memory_space<vmem>>, vector<1x1x32x64xbf16>
    %342 = vector.shape_cast %341 : vector<1x1x32x64xbf16> to vector<32x64xbf16>
    %cst_339 = arith.constant dense<0.000000e+00> : vector<8x64xf32>
    %343 = tpu.matmul %340, %342, %cst_339 {dimension_numbers = #tpu.dot_dimension_numbers<[1], [0], [0], [1], [0, 0, 1, 1], [], []>} : vector<8x32xbf16>, vector<32x64xbf16>, vector<8x64xf32> -> vector<8x64xf32>
    %344 = arith.addf %337, %343 : vector<8x64xf32>
    %c8_340 = arith.constant 8 : index
    %c1_341 = arith.constant 1 : index
    %c0_342 = arith.constant 0 : index
    %345 = vector.load %arg6[%c8_340, %c1_341, %c0_342] : memref<9x9x32xf32, #tpu.memory_space<vmem>>, vector<1x8x32xf32>
    %346 = vector.shape_cast %345 : vector<1x8x32xf32> to vector<8x32xf32>
    %347 = arith.truncf %346 : vector<8x32xf32> to vector<8x32xbf16>
    %c1_343 = arith.constant 1 : index
    %c1_344 = arith.constant 1 : index
    %c0_345 = arith.constant 0 : index
    %c0_346 = arith.constant 0 : index
    %348 = vector.load %arg2[%c1_343, %c1_344, %c0_345, %c0_346] : memref<2x2x32x64xbf16, #tpu.memory_space<vmem>>, vector<1x1x32x64xbf16>
    %349 = vector.shape_cast %348 : vector<1x1x32x64xbf16> to vector<32x64xbf16>
    %cst_347 = arith.constant dense<0.000000e+00> : vector<8x64xf32>
    %350 = tpu.matmul %347, %349, %cst_347 {dimension_numbers = #tpu.dot_dimension_numbers<[1], [0], [0], [1], [0, 0, 1, 1], [], []>} : vector<8x32xbf16>, vector<32x64xbf16>, vector<8x64xf32> -> vector<8x64xf32>
    %351 = arith.addf %344, %350 : vector<8x64xf32>
    %352 = vector.broadcast %48 : vector<1x64xf32> to vector<8x64xf32>
    %353 = arith.mulf %351, %352 : vector<8x64xf32>
    %354 = vector.broadcast %49 : vector<1x64xf32> to vector<8x64xf32>
    %355 = arith.addf %353, %354 : vector<8x64xf32>
    %cst_348 = arith.constant 0.000000e+00 : f32
    %356 = vector.broadcast %cst_348 : f32 to vector<8x64xf32>
    %357 = arith.cmpf oge, %355, %356 : vector<8x64xf32>
    %cst_349 = arith.constant 2.000000e-01 : f32
    %358 = vector.broadcast %cst_349 : f32 to vector<8x64xf32>
    %359 = arith.mulf %358, %355 : vector<8x64xf32>
    %360 = arith.select %357, %355, %359 : vector<8x64xi1>, vector<8x64xf32>
    %c56_350 = arith.constant 56 : index
    %c0_351 = arith.constant 0 : index
    %361 = vector.load %arg5[%c56_350, %c0_351] : memref<64x64xf32, #tpu.memory_space<vmem>>, vector<8x64xf32>
    tpu.vector_store %arg5[%c56_350, %c0_351], %360 {strides = array<i32>} : memref<64x64xf32, #tpu.memory_space<vmem>>, vector<8x64xf32>,
    return
  }
  func.func @transform_0(%arg0: i32) -> (i32, i32, i32, i32) {
    %c0_i32 = arith.constant 0 : i32
    %c0_i32_0 = arith.constant 0 : i32
    %c0_i32_1 = arith.constant 0 : i32
    %c0_i32_2 = arith.constant 0 : i32
    return %arg0, %c0_i32, %c0_i32_0, %c0_i32_1 : i32, i32, i32, i32
  }
  func.func @transform_1(%arg0: i32) -> (i32, i32, i32, i32) {
    %c0_i32 = arith.constant 0 : i32
    %c0_i32_0 = arith.constant 0 : i32
    %c0_i32_1 = arith.constant 0 : i32
    %c0_i32_2 = arith.constant 0 : i32
    %c0_i32_3 = arith.constant 0 : i32
    return %c0_i32, %c0_i32_0, %c0_i32_1, %c0_i32_2 : i32, i32, i32, i32
  }
  func.func @transform_2(%arg0: i32) -> (i32, i32) {
    %c0_i32 = arith.constant 0 : i32
    %c0_i32_0 = arith.constant 0 : i32
    %c0_i32_1 = arith.constant 0 : i32
    return %c0_i32, %c0_i32_0 : i32, i32
  }
  func.func @transform_3(%arg0: i32) -> (i32, i32) {
    %c0_i32 = arith.constant 0 : i32
    %c0_i32_0 = arith.constant 0 : i32
    %c0_i32_1 = arith.constant 0 : i32
    return %c0_i32, %c0_i32_0 : i32, i32
  }
  func.func @transform_4(%arg0: i32) -> (i32, i32) {
    %c0_i32 = arith.constant 0 : i32
    %c0_i32_0 = arith.constant 0 : i32
    return %arg0, %c0_i32 : i32, i32
  }
}

module attributes {stable_mosaic.version = 11 : i64} {
  func.func @_stage2_kernel(%arg0: i32, %arg1: memref<1x5x5x256xf32, #tpu.memory_space<vmem>>, %arg2: memref<2x2x256x128xbf16, #tpu.memory_space<vmem>>, %arg3: memref<1x128xf32, #tpu.memory_space<vmem>>, %arg4: memref<1x128xf32, #tpu.memory_space<vmem>>, %arg5: memref<16x128x256xbf16, #tpu.memory_space<vmem>>, %arg6: memref<16x256xf32, #tpu.memory_space<vmem>>, %arg7: memref<1x1xf32, #tpu.memory_space<vmem>>, %arg8: memref<1x2x2x1xf32, #tpu.memory_space<vmem>>, %arg9: memref<6x6x128xf32, #tpu.memory_space<vmem>>, %arg10: memref<5x5x256xf32, #tpu.memory_space<vmem>>) attributes {dimension_semantics = [#tpu.dimension_semantics<parallel>], iteration_bounds = array<i64: 2>, scalar_prefetch = 0 : i64, scratch_operands = 2 : i64, tpu.core_type = #tpu.core_type<tc>, window_params = [{transform_indices = @transform_0, window_bounds = array<i64: 1, 5, 5, 256>}, {pipeline_mode = #tpu.pipeline_mode<synchronous>, transform_indices = @transform_1, window_bounds = array<i64: 2, 2, 256, 128>}, {pipeline_mode = #tpu.pipeline_mode<synchronous>, transform_indices = @transform_2, window_bounds = array<i64: 1, 128>}, {pipeline_mode = #tpu.pipeline_mode<synchronous>, transform_indices = @transform_3, window_bounds = array<i64: 1, 128>}, {pipeline_mode = #tpu.pipeline_mode<synchronous>, transform_indices = @transform_4, window_bounds = array<i64: 16, 128, 256>}, {pipeline_mode = #tpu.pipeline_mode<synchronous>, transform_indices = @transform_5, window_bounds = array<i64: 16, 256>}, {pipeline_mode = #tpu.pipeline_mode<synchronous>, transform_indices = @transform_6, window_bounds = array<i64: 1, 1>}, {transform_indices = @transform_7, window_bounds = array<i64: 1, 2, 2, 1>}]} {
    %cst = arith.constant 0.000000e+00 : f32
    %0 = vector.broadcast %cst : f32 to vector<6x6x128xf32>
    %c0 = arith.constant 0 : index
    %c0_0 = arith.constant 0 : index
    %c0_1 = arith.constant 0 : index
    %1 = vector.load %arg9[%c0, %c0_0, %c0_1] : memref<6x6x128xf32, #tpu.memory_space<vmem>>, vector<6x6x128xf32>
    tpu.vector_store %arg9[%c0, %c0_0, %c0_1], %0 {strides = array<i32>} : memref<6x6x128xf32, #tpu.memory_space<vmem>>, vector<6x6x128xf32>,
    %c0_2 = arith.constant 0 : index
    %c0_3 = arith.constant 0 : index
    %2 = vector.load %arg3[%c0_2, %c0_3] : memref<1x128xf32, #tpu.memory_space<vmem>>, vector<1x128xf32>
    %c0_4 = arith.constant 0 : index
    %c0_5 = arith.constant 0 : index
    %3 = vector.load %arg4[%c0_4, %c0_5] : memref<1x128xf32, #tpu.memory_space<vmem>>, vector<1x128xf32>
    %cst_6 = arith.constant 0.000000e+00 : f32
    %4 = vector.broadcast %cst_6 : f32 to vector<4x128xf32>
    %c0_7 = arith.constant 0 : index
    %c0_8 = arith.constant 0 : index
    %c0_9 = arith.constant 0 : index
    %c0_10 = arith.constant 0 : index
    %5 = vector.load %arg1[%c0_7, %c0_8, %c0_9, %c0_10] : memref<1x5x5x256xf32, #tpu.memory_space<vmem>>, vector<1x1x4x256xf32>
    %6 = vector.shape_cast %5 : vector<1x1x4x256xf32> to vector<4x256xf32>
    %7 = arith.truncf %6 : vector<4x256xf32> to vector<4x256xbf16>
    %c0_11 = arith.constant 0 : index
    %c0_12 = arith.constant 0 : index
    %c0_13 = arith.constant 0 : index
    %c0_14 = arith.constant 0 : index
    %8 = vector.load %arg2[%c0_11, %c0_12, %c0_13, %c0_14] : memref<2x2x256x128xbf16, #tpu.memory_space<vmem>>, vector<1x1x256x128xbf16>
    %9 = vector.shape_cast %8 : vector<1x1x256x128xbf16> to vector<256x128xbf16>
    %cst_15 = arith.constant dense<0.000000e+00> : vector<4x128xf32>
    %10 = tpu.matmul %7, %9, %cst_15 {dimension_numbers = #tpu.dot_dimension_numbers<[1], [0], [0], [1], [0, 0, 1, 1], [], []>} : vector<4x256xbf16>, vector<256x128xbf16>, vector<4x128xf32> -> vector<4x128xf32>
    %11 = arith.addf %4, %10 : vector<4x128xf32>
    %c0_16 = arith.constant 0 : index
    %c0_17 = arith.constant 0 : index
    %c1 = arith.constant 1 : index
    %c0_18 = arith.constant 0 : index
    %12 = vector.load %arg1[%c0_16, %c0_17, %c1, %c0_18] : memref<1x5x5x256xf32, #tpu.memory_space<vmem>>, vector<1x1x4x256xf32>
    %13 = vector.shape_cast %12 : vector<1x1x4x256xf32> to vector<4x256xf32>
    %14 = arith.truncf %13 : vector<4x256xf32> to vector<4x256xbf16>
    %c0_19 = arith.constant 0 : index
    %c1_20 = arith.constant 1 : index
    %c0_21 = arith.constant 0 : index
    %c0_22 = arith.constant 0 : index
    %15 = vector.load %arg2[%c0_19, %c1_20, %c0_21, %c0_22] : memref<2x2x256x128xbf16, #tpu.memory_space<vmem>>, vector<1x1x256x128xbf16>
    %16 = vector.shape_cast %15 : vector<1x1x256x128xbf16> to vector<256x128xbf16>
    %cst_23 = arith.constant dense<0.000000e+00> : vector<4x128xf32>
    %17 = tpu.matmul %14, %16, %cst_23 {dimension_numbers = #tpu.dot_dimension_numbers<[1], [0], [0], [1], [0, 0, 1, 1], [], []>} : vector<4x256xbf16>, vector<256x128xbf16>, vector<4x128xf32> -> vector<4x128xf32>
    %18 = arith.addf %11, %17 : vector<4x128xf32>
    %c0_24 = arith.constant 0 : index
    %c1_25 = arith.constant 1 : index
    %c0_26 = arith.constant 0 : index
    %c0_27 = arith.constant 0 : index
    %19 = vector.load %arg1[%c0_24, %c1_25, %c0_26, %c0_27] : memref<1x5x5x256xf32, #tpu.memory_space<vmem>>, vector<1x1x4x256xf32>
    %20 = vector.shape_cast %19 : vector<1x1x4x256xf32> to vector<4x256xf32>
    %21 = arith.truncf %20 : vector<4x256xf32> to vector<4x256xbf16>
    %c1_28 = arith.constant 1 : index
    %c0_29 = arith.constant 0 : index
    %c0_30 = arith.constant 0 : index
    %c0_31 = arith.constant 0 : index
    %22 = vector.load %arg2[%c1_28, %c0_29, %c0_30, %c0_31] : memref<2x2x256x128xbf16, #tpu.memory_space<vmem>>, vector<1x1x256x128xbf16>
    %23 = vector.shape_cast %22 : vector<1x1x256x128xbf16> to vector<256x128xbf16>
    %cst_32 = arith.constant dense<0.000000e+00> : vector<4x128xf32>
    %24 = tpu.matmul %21, %23, %cst_32 {dimension_numbers = #tpu.dot_dimension_numbers<[1], [0], [0], [1], [0, 0, 1, 1], [], []>} : vector<4x256xbf16>, vector<256x128xbf16>, vector<4x128xf32> -> vector<4x128xf32>
    %25 = arith.addf %18, %24 : vector<4x128xf32>
    %c0_33 = arith.constant 0 : index
    %c1_34 = arith.constant 1 : index
    %c1_35 = arith.constant 1 : index
    %c0_36 = arith.constant 0 : index
    %26 = vector.load %arg1[%c0_33, %c1_34, %c1_35, %c0_36] : memref<1x5x5x256xf32, #tpu.memory_space<vmem>>, vector<1x1x4x256xf32>
    %27 = vector.shape_cast %26 : vector<1x1x4x256xf32> to vector<4x256xf32>
    %28 = arith.truncf %27 : vector<4x256xf32> to vector<4x256xbf16>
    %c1_37 = arith.constant 1 : index
    %c1_38 = arith.constant 1 : index
    %c0_39 = arith.constant 0 : index
    %c0_40 = arith.constant 0 : index
    %29 = vector.load %arg2[%c1_37, %c1_38, %c0_39, %c0_40] : memref<2x2x256x128xbf16, #tpu.memory_space<vmem>>, vector<1x1x256x128xbf16>
    %30 = vector.shape_cast %29 : vector<1x1x256x128xbf16> to vector<256x128xbf16>
    %cst_41 = arith.constant dense<0.000000e+00> : vector<4x128xf32>
    %31 = tpu.matmul %28, %30, %cst_41 {dimension_numbers = #tpu.dot_dimension_numbers<[1], [0], [0], [1], [0, 0, 1, 1], [], []>} : vector<4x256xbf16>, vector<256x128xbf16>, vector<4x128xf32> -> vector<4x128xf32>
    %32 = arith.addf %25, %31 : vector<4x128xf32>
    %33 = vector.broadcast %2 : vector<1x128xf32> to vector<4x128xf32>
    %34 = arith.mulf %32, %33 : vector<4x128xf32>
    %35 = vector.broadcast %3 : vector<1x128xf32> to vector<4x128xf32>
    %36 = arith.addf %34, %35 : vector<4x128xf32>
    %cst_42 = arith.constant 0.000000e+00 : f32
    %37 = vector.broadcast %cst_42 : f32 to vector<4x128xf32>
    %38 = arith.cmpf oge, %36, %37 : vector<4x128xf32>
    %cst_43 = arith.constant 2.000000e-01 : f32
    %39 = vector.broadcast %cst_43 : f32 to vector<4x128xf32>
    %40 = arith.mulf %39, %36 : vector<4x128xf32>
    %41 = arith.select %38, %36, %40 : vector<4x128xi1>, vector<4x128xf32>
    %c1_44 = arith.constant 1 : index
    %c1_45 = arith.constant 1 : index
    %c0_46 = arith.constant 0 : index
    %42 = vector.load %arg9[%c1_44, %c1_45, %c0_46] : memref<6x6x128xf32, #tpu.memory_space<vmem>>, vector<1x4x128xf32>
    %43 = vector.shape_cast %42 : vector<1x4x128xf32> to vector<4x128xf32>
    %44 = vector.shape_cast %41 : vector<4x128xf32> to vector<1x4x128xf32>
    tpu.vector_store %arg9[%c1_44, %c1_45, %c0_46], %44 {strides = array<i32>} : memref<6x6x128xf32, #tpu.memory_space<vmem>>, vector<1x4x128xf32>,
    %cst_47 = arith.constant 0.000000e+00 : f32
    %45 = vector.broadcast %cst_47 : f32 to vector<4x128xf32>
    %c0_48 = arith.constant 0 : index
    %c1_49 = arith.constant 1 : index
    %c0_50 = arith.constant 0 : index
    %c0_51 = arith.constant 0 : index
    %46 = vector.load %arg1[%c0_48, %c1_49, %c0_50, %c0_51] : memref<1x5x5x256xf32, #tpu.memory_space<vmem>>, vector<1x1x4x256xf32>
    %47 = vector.shape_cast %46 : vector<1x1x4x256xf32> to vector<4x256xf32>
    %48 = arith.truncf %47 : vector<4x256xf32> to vector<4x256xbf16>
    %c0_52 = arith.constant 0 : index
    %c0_53 = arith.constant 0 : index
    %c0_54 = arith.constant 0 : index
    %c0_55 = arith.constant 0 : index
    %49 = vector.load %arg2[%c0_52, %c0_53, %c0_54, %c0_55] : memref<2x2x256x128xbf16, #tpu.memory_space<vmem>>, vector<1x1x256x128xbf16>
    %50 = vector.shape_cast %49 : vector<1x1x256x128xbf16> to vector<256x128xbf16>
    %cst_56 = arith.constant dense<0.000000e+00> : vector<4x128xf32>
    %51 = tpu.matmul %48, %50, %cst_56 {dimension_numbers = #tpu.dot_dimension_numbers<[1], [0], [0], [1], [0, 0, 1, 1], [], []>} : vector<4x256xbf16>, vector<256x128xbf16>, vector<4x128xf32> -> vector<4x128xf32>
    %52 = arith.addf %45, %51 : vector<4x128xf32>
    %c0_57 = arith.constant 0 : index
    %c1_58 = arith.constant 1 : index
    %c1_59 = arith.constant 1 : index
    %c0_60 = arith.constant 0 : index
    %53 = vector.load %arg1[%c0_57, %c1_58, %c1_59, %c0_60] : memref<1x5x5x256xf32, #tpu.memory_space<vmem>>, vector<1x1x4x256xf32>
    %54 = vector.shape_cast %53 : vector<1x1x4x256xf32> to vector<4x256xf32>
    %55 = arith.truncf %54 : vector<4x256xf32> to vector<4x256xbf16>
    %c0_61 = arith.constant 0 : index
    %c1_62 = arith.constant 1 : index
    %c0_63 = arith.constant 0 : index
    %c0_64 = arith.constant 0 : index
    %56 = vector.load %arg2[%c0_61, %c1_62, %c0_63, %c0_64] : memref<2x2x256x128xbf16, #tpu.memory_space<vmem>>, vector<1x1x256x128xbf16>
    %57 = vector.shape_cast %56 : vector<1x1x256x128xbf16> to vector<256x128xbf16>
    %cst_65 = arith.constant dense<0.000000e+00> : vector<4x128xf32>
    %58 = tpu.matmul %55, %57, %cst_65 {dimension_numbers = #tpu.dot_dimension_numbers<[1], [0], [0], [1], [0, 0, 1, 1], [], []>} : vector<4x256xbf16>, vector<256x128xbf16>, vector<4x128xf32> -> vector<4x128xf32>
    %59 = arith.addf %52, %58 : vector<4x128xf32>
    %c0_66 = arith.constant 0 : index
    %c2 = arith.constant 2 : index
    %c0_67 = arith.constant 0 : index
    %c0_68 = arith.constant 0 : index
    %60 = vector.load %arg1[%c0_66, %c2, %c0_67, %c0_68] : memref<1x5x5x256xf32, #tpu.memory_space<vmem>>, vector<1x1x4x256xf32>
    %61 = vector.shape_cast %60 : vector<1x1x4x256xf32> to vector<4x256xf32>
    %62 = arith.truncf %61 : vector<4x256xf32> to vector<4x256xbf16>
    %c1_69 = arith.constant 1 : index
    %c0_70 = arith.constant 0 : index
    %c0_71 = arith.constant 0 : index
    %c0_72 = arith.constant 0 : index
    %63 = vector.load %arg2[%c1_69, %c0_70, %c0_71, %c0_72] : memref<2x2x256x128xbf16, #tpu.memory_space<vmem>>, vector<1x1x256x128xbf16>
    %64 = vector.shape_cast %63 : vector<1x1x256x128xbf16> to vector<256x128xbf16>
    %cst_73 = arith.constant dense<0.000000e+00> : vector<4x128xf32>
    %65 = tpu.matmul %62, %64, %cst_73 {dimension_numbers = #tpu.dot_dimension_numbers<[1], [0], [0], [1], [0, 0, 1, 1], [], []>} : vector<4x256xbf16>, vector<256x128xbf16>, vector<4x128xf32> -> vector<4x128xf32>
    %66 = arith.addf %59, %65 : vector<4x128xf32>
    %c0_74 = arith.constant 0 : index
    %c2_75 = arith.constant 2 : index
    %c1_76 = arith.constant 1 : index
    %c0_77 = arith.constant 0 : index
    %67 = vector.load %arg1[%c0_74, %c2_75, %c1_76, %c0_77] : memref<1x5x5x256xf32, #tpu.memory_space<vmem>>, vector<1x1x4x256xf32>
    %68 = vector.shape_cast %67 : vector<1x1x4x256xf32> to vector<4x256xf32>
    %69 = arith.truncf %68 : vector<4x256xf32> to vector<4x256xbf16>
    %c1_78 = arith.constant 1 : index
    %c1_79 = arith.constant 1 : index
    %c0_80 = arith.constant 0 : index
    %c0_81 = arith.constant 0 : index
    %70 = vector.load %arg2[%c1_78, %c1_79, %c0_80, %c0_81] : memref<2x2x256x128xbf16, #tpu.memory_space<vmem>>, vector<1x1x256x128xbf16>
    %71 = vector.shape_cast %70 : vector<1x1x256x128xbf16> to vector<256x128xbf16>
    %cst_82 = arith.constant dense<0.000000e+00> : vector<4x128xf32>
    %72 = tpu.matmul %69, %71, %cst_82 {dimension_numbers = #tpu.dot_dimension_numbers<[1], [0], [0], [1], [0, 0, 1, 1], [], []>} : vector<4x256xbf16>, vector<256x128xbf16>, vector<4x128xf32> -> vector<4x128xf32>
    %73 = arith.addf %66, %72 : vector<4x128xf32>
    %74 = vector.broadcast %2 : vector<1x128xf32> to vector<4x128xf32>
    %75 = arith.mulf %73, %74 : vector<4x128xf32>
    %76 = vector.broadcast %3 : vector<1x128xf32> to vector<4x128xf32>
    %77 = arith.addf %75, %76 : vector<4x128xf32>
    %cst_83 = arith.constant 0.000000e+00 : f32
    %78 = vector.broadcast %cst_83 : f32 to vector<4x128xf32>
    %79 = arith.cmpf oge, %77, %78 : vector<4x128xf32>
    %cst_84 = arith.constant 2.000000e-01 : f32
    %80 = vector.broadcast %cst_84 : f32 to vector<4x128xf32>
    %81 = arith.mulf %80, %77 : vector<4x128xf32>
    %82 = arith.select %79, %77, %81 : vector<4x128xi1>, vector<4x128xf32>
    %c2_85 = arith.constant 2 : index
    %c1_86 = arith.constant 1 : index
    %c0_87 = arith.constant 0 : index
    %83 = vector.load %arg9[%c2_85, %c1_86, %c0_87] : memref<6x6x128xf32, #tpu.memory_space<vmem>>, vector<1x4x128xf32>
    %84 = vector.shape_cast %83 : vector<1x4x128xf32> to vector<4x128xf32>
    %85 = vector.shape_cast %82 : vector<4x128xf32> to vector<1x4x128xf32>
    tpu.vector_store %arg9[%c2_85, %c1_86, %c0_87], %85 {strides = array<i32>} : memref<6x6x128xf32, #tpu.memory_space<vmem>>, vector<1x4x128xf32>,
    %cst_88 = arith.constant 0.000000e+00 : f32
    %86 = vector.broadcast %cst_88 : f32 to vector<4x128xf32>
    %c0_89 = arith.constant 0 : index
    %c2_90 = arith.constant 2 : index
    %c0_91 = arith.constant 0 : index
    %c0_92 = arith.constant 0 : index
    %87 = vector.load %arg1[%c0_89, %c2_90, %c0_91, %c0_92] : memref<1x5x5x256xf32, #tpu.memory_space<vmem>>, vector<1x1x4x256xf32>
    %88 = vector.shape_cast %87 : vector<1x1x4x256xf32> to vector<4x256xf32>
    %89 = arith.truncf %88 : vector<4x256xf32> to vector<4x256xbf16>
    %c0_93 = arith.constant 0 : index
    %c0_94 = arith.constant 0 : index
    %c0_95 = arith.constant 0 : index
    %c0_96 = arith.constant 0 : index
    %90 = vector.load %arg2[%c0_93, %c0_94, %c0_95, %c0_96] : memref<2x2x256x128xbf16, #tpu.memory_space<vmem>>, vector<1x1x256x128xbf16>
    %91 = vector.shape_cast %90 : vector<1x1x256x128xbf16> to vector<256x128xbf16>
    %cst_97 = arith.constant dense<0.000000e+00> : vector<4x128xf32>
    %92 = tpu.matmul %89, %91, %cst_97 {dimension_numbers = #tpu.dot_dimension_numbers<[1], [0], [0], [1], [0, 0, 1, 1], [], []>} : vector<4x256xbf16>, vector<256x128xbf16>, vector<4x128xf32> -> vector<4x128xf32>
    %93 = arith.addf %86, %92 : vector<4x128xf32>
    %c0_98 = arith.constant 0 : index
    %c2_99 = arith.constant 2 : index
    %c1_100 = arith.constant 1 : index
    %c0_101 = arith.constant 0 : index
    %94 = vector.load %arg1[%c0_98, %c2_99, %c1_100, %c0_101] : memref<1x5x5x256xf32, #tpu.memory_space<vmem>>, vector<1x1x4x256xf32>
    %95 = vector.shape_cast %94 : vector<1x1x4x256xf32> to vector<4x256xf32>
    %96 = arith.truncf %95 : vector<4x256xf32> to vector<4x256xbf16>
    %c0_102 = arith.constant 0 : index
    %c1_103 = arith.constant 1 : index
    %c0_104 = arith.constant 0 : index
    %c0_105 = arith.constant 0 : index
    %97 = vector.load %arg2[%c0_102, %c1_103, %c0_104, %c0_105] : memref<2x2x256x128xbf16, #tpu.memory_space<vmem>>, vector<1x1x256x128xbf16>
    %98 = vector.shape_cast %97 : vector<1x1x256x128xbf16> to vector<256x128xbf16>
    %cst_106 = arith.constant dense<0.000000e+00> : vector<4x128xf32>
    %99 = tpu.matmul %96, %98, %cst_106 {dimension_numbers = #tpu.dot_dimension_numbers<[1], [0], [0], [1], [0, 0, 1, 1], [], []>} : vector<4x256xbf16>, vector<256x128xbf16>, vector<4x128xf32> -> vector<4x128xf32>
    %100 = arith.addf %93, %99 : vector<4x128xf32>
    %c0_107 = arith.constant 0 : index
    %c3 = arith.constant 3 : index
    %c0_108 = arith.constant 0 : index
    %c0_109 = arith.constant 0 : index
    %101 = vector.load %arg1[%c0_107, %c3, %c0_108, %c0_109] : memref<1x5x5x256xf32, #tpu.memory_space<vmem>>, vector<1x1x4x256xf32>
    %102 = vector.shape_cast %101 : vector<1x1x4x256xf32> to vector<4x256xf32>
    %103 = arith.truncf %102 : vector<4x256xf32> to vector<4x256xbf16>
    %c1_110 = arith.constant 1 : index
    %c0_111 = arith.constant 0 : index
    %c0_112 = arith.constant 0 : index
    %c0_113 = arith.constant 0 : index
    %104 = vector.load %arg2[%c1_110, %c0_111, %c0_112, %c0_113] : memref<2x2x256x128xbf16, #tpu.memory_space<vmem>>, vector<1x1x256x128xbf16>
    %105 = vector.shape_cast %104 : vector<1x1x256x128xbf16> to vector<256x128xbf16>
    %cst_114 = arith.constant dense<0.000000e+00> : vector<4x128xf32>
    %106 = tpu.matmul %103, %105, %cst_114 {dimension_numbers = #tpu.dot_dimension_numbers<[1], [0], [0], [1], [0, 0, 1, 1], [], []>} : vector<4x256xbf16>, vector<256x128xbf16>, vector<4x128xf32> -> vector<4x128xf32>
    %107 = arith.addf %100, %106 : vector<4x128xf32>
    %c0_115 = arith.constant 0 : index
    %c3_116 = arith.constant 3 : index
    %c1_117 = arith.constant 1 : index
    %c0_118 = arith.constant 0 : index
    %108 = vector.load %arg1[%c0_115, %c3_116, %c1_117, %c0_118] : memref<1x5x5x256xf32, #tpu.memory_space<vmem>>, vector<1x1x4x256xf32>
    %109 = vector.shape_cast %108 : vector<1x1x4x256xf32> to vector<4x256xf32>
    %110 = arith.truncf %109 : vector<4x256xf32> to vector<4x256xbf16>
    %c1_119 = arith.constant 1 : index
    %c1_120 = arith.constant 1 : index
    %c0_121 = arith.constant 0 : index
    %c0_122 = arith.constant 0 : index
    %111 = vector.load %arg2[%c1_119, %c1_120, %c0_121, %c0_122] : memref<2x2x256x128xbf16, #tpu.memory_space<vmem>>, vector<1x1x256x128xbf16>
    %112 = vector.shape_cast %111 : vector<1x1x256x128xbf16> to vector<256x128xbf16>
    %cst_123 = arith.constant dense<0.000000e+00> : vector<4x128xf32>
    %113 = tpu.matmul %110, %112, %cst_123 {dimension_numbers = #tpu.dot_dimension_numbers<[1], [0], [0], [1], [0, 0, 1, 1], [], []>} : vector<4x256xbf16>, vector<256x128xbf16>, vector<4x128xf32> -> vector<4x128xf32>
    %114 = arith.addf %107, %113 : vector<4x128xf32>
    %115 = vector.broadcast %2 : vector<1x128xf32> to vector<4x128xf32>
    %116 = arith.mulf %114, %115 : vector<4x128xf32>
    %117 = vector.broadcast %3 : vector<1x128xf32> to vector<4x128xf32>
    %118 = arith.addf %116, %117 : vector<4x128xf32>
    %cst_124 = arith.constant 0.000000e+00 : f32
    %119 = vector.broadcast %cst_124 : f32 to vector<4x128xf32>
    %120 = arith.cmpf oge, %118, %119 : vector<4x128xf32>
    %cst_125 = arith.constant 2.000000e-01 : f32
    %121 = vector.broadcast %cst_125 : f32 to vector<4x128xf32>
    %122 = arith.mulf %121, %118 : vector<4x128xf32>
    %123 = arith.select %120, %118, %122 : vector<4x128xi1>, vector<4x128xf32>
    %c3_126 = arith.constant 3 : index
    %c1_127 = arith.constant 1 : index
    %c0_128 = arith.constant 0 : index
    %124 = vector.load %arg9[%c3_126, %c1_127, %c0_128] : memref<6x6x128xf32, #tpu.memory_space<vmem>>, vector<1x4x128xf32>
    %125 = vector.shape_cast %124 : vector<1x4x128xf32> to vector<4x128xf32>
    %126 = vector.shape_cast %123 : vector<4x128xf32> to vector<1x4x128xf32>
    tpu.vector_store %arg9[%c3_126, %c1_127, %c0_128], %126 {strides = array<i32>} : memref<6x6x128xf32, #tpu.memory_space<vmem>>, vector<1x4x128xf32>,
    %cst_129 = arith.constant 0.000000e+00 : f32
    %127 = vector.broadcast %cst_129 : f32 to vector<4x128xf32>
    %c0_130 = arith.constant 0 : index
    %c3_131 = arith.constant 3 : index
    %c0_132 = arith.constant 0 : index
    %c0_133 = arith.constant 0 : index
    %128 = vector.load %arg1[%c0_130, %c3_131, %c0_132, %c0_133] : memref<1x5x5x256xf32, #tpu.memory_space<vmem>>, vector<1x1x4x256xf32>
    %129 = vector.shape_cast %128 : vector<1x1x4x256xf32> to vector<4x256xf32>
    %130 = arith.truncf %129 : vector<4x256xf32> to vector<4x256xbf16>
    %c0_134 = arith.constant 0 : index
    %c0_135 = arith.constant 0 : index
    %c0_136 = arith.constant 0 : index
    %c0_137 = arith.constant 0 : index
    %131 = vector.load %arg2[%c0_134, %c0_135, %c0_136, %c0_137] : memref<2x2x256x128xbf16, #tpu.memory_space<vmem>>, vector<1x1x256x128xbf16>
    %132 = vector.shape_cast %131 : vector<1x1x256x128xbf16> to vector<256x128xbf16>
    %cst_138 = arith.constant dense<0.000000e+00> : vector<4x128xf32>
    %133 = tpu.matmul %130, %132, %cst_138 {dimension_numbers = #tpu.dot_dimension_numbers<[1], [0], [0], [1], [0, 0, 1, 1], [], []>} : vector<4x256xbf16>, vector<256x128xbf16>, vector<4x128xf32> -> vector<4x128xf32>
    %134 = arith.addf %127, %133 : vector<4x128xf32>
    %c0_139 = arith.constant 0 : index
    %c3_140 = arith.constant 3 : index
    %c1_141 = arith.constant 1 : index
    %c0_142 = arith.constant 0 : index
    %135 = vector.load %arg1[%c0_139, %c3_140, %c1_141, %c0_142] : memref<1x5x5x256xf32, #tpu.memory_space<vmem>>, vector<1x1x4x256xf32>
    %136 = vector.shape_cast %135 : vector<1x1x4x256xf32> to vector<4x256xf32>
    %137 = arith.truncf %136 : vector<4x256xf32> to vector<4x256xbf16>
    %c0_143 = arith.constant 0 : index
    %c1_144 = arith.constant 1 : index
    %c0_145 = arith.constant 0 : index
    %c0_146 = arith.constant 0 : index
    %138 = vector.load %arg2[%c0_143, %c1_144, %c0_145, %c0_146] : memref<2x2x256x128xbf16, #tpu.memory_space<vmem>>, vector<1x1x256x128xbf16>
    %139 = vector.shape_cast %138 : vector<1x1x256x128xbf16> to vector<256x128xbf16>
    %cst_147 = arith.constant dense<0.000000e+00> : vector<4x128xf32>
    %140 = tpu.matmul %137, %139, %cst_147 {dimension_numbers = #tpu.dot_dimension_numbers<[1], [0], [0], [1], [0, 0, 1, 1], [], []>} : vector<4x256xbf16>, vector<256x128xbf16>, vector<4x128xf32> -> vector<4x128xf32>
    %141 = arith.addf %134, %140 : vector<4x128xf32>
    %c0_148 = arith.constant 0 : index
    %c4 = arith.constant 4 : index
    %c0_149 = arith.constant 0 : index
    %c0_150 = arith.constant 0 : index
    %142 = vector.load %arg1[%c0_148, %c4, %c0_149, %c0_150] : memref<1x5x5x256xf32, #tpu.memory_space<vmem>>, vector<1x1x4x256xf32>
    %143 = vector.shape_cast %142 : vector<1x1x4x256xf32> to vector<4x256xf32>
    %144 = arith.truncf %143 : vector<4x256xf32> to vector<4x256xbf16>
    %c1_151 = arith.constant 1 : index
    %c0_152 = arith.constant 0 : index
    %c0_153 = arith.constant 0 : index
    %c0_154 = arith.constant 0 : index
    %145 = vector.load %arg2[%c1_151, %c0_152, %c0_153, %c0_154] : memref<2x2x256x128xbf16, #tpu.memory_space<vmem>>, vector<1x1x256x128xbf16>
    %146 = vector.shape_cast %145 : vector<1x1x256x128xbf16> to vector<256x128xbf16>
    %cst_155 = arith.constant dense<0.000000e+00> : vector<4x128xf32>
    %147 = tpu.matmul %144, %146, %cst_155 {dimension_numbers = #tpu.dot_dimension_numbers<[1], [0], [0], [1], [0, 0, 1, 1], [], []>} : vector<4x256xbf16>, vector<256x128xbf16>, vector<4x128xf32> -> vector<4x128xf32>
    %148 = arith.addf %141, %147 : vector<4x128xf32>
    %c0_156 = arith.constant 0 : index
    %c4_157 = arith.constant 4 : index
    %c1_158 = arith.constant 1 : index
    %c0_159 = arith.constant 0 : index
    %149 = vector.load %arg1[%c0_156, %c4_157, %c1_158, %c0_159] : memref<1x5x5x256xf32, #tpu.memory_space<vmem>>, vector<1x1x4x256xf32>
    %150 = vector.shape_cast %149 : vector<1x1x4x256xf32> to vector<4x256xf32>
    %151 = arith.truncf %150 : vector<4x256xf32> to vector<4x256xbf16>
    %c1_160 = arith.constant 1 : index
    %c1_161 = arith.constant 1 : index
    %c0_162 = arith.constant 0 : index
    %c0_163 = arith.constant 0 : index
    %152 = vector.load %arg2[%c1_160, %c1_161, %c0_162, %c0_163] : memref<2x2x256x128xbf16, #tpu.memory_space<vmem>>, vector<1x1x256x128xbf16>
    %153 = vector.shape_cast %152 : vector<1x1x256x128xbf16> to vector<256x128xbf16>
    %cst_164 = arith.constant dense<0.000000e+00> : vector<4x128xf32>
    %154 = tpu.matmul %151, %153, %cst_164 {dimension_numbers = #tpu.dot_dimension_numbers<[1], [0], [0], [1], [0, 0, 1, 1], [], []>} : vector<4x256xbf16>, vector<256x128xbf16>, vector<4x128xf32> -> vector<4x128xf32>
    %155 = arith.addf %148, %154 : vector<4x128xf32>
    %156 = vector.broadcast %2 : vector<1x128xf32> to vector<4x128xf32>
    %157 = arith.mulf %155, %156 : vector<4x128xf32>
    %158 = vector.broadcast %3 : vector<1x128xf32> to vector<4x128xf32>
    %159 = arith.addf %157, %158 : vector<4x128xf32>
    %cst_165 = arith.constant 0.000000e+00 : f32
    %160 = vector.broadcast %cst_165 : f32 to vector<4x128xf32>
    %161 = arith.cmpf oge, %159, %160 : vector<4x128xf32>
    %cst_166 = arith.constant 2.000000e-01 : f32
    %162 = vector.broadcast %cst_166 : f32 to vector<4x128xf32>
    %163 = arith.mulf %162, %159 : vector<4x128xf32>
    %164 = arith.select %161, %159, %163 : vector<4x128xi1>, vector<4x128xf32>
    %c4_167 = arith.constant 4 : index
    %c1_168 = arith.constant 1 : index
    %c0_169 = arith.constant 0 : index
    %165 = vector.load %arg9[%c4_167, %c1_168, %c0_169] : memref<6x6x128xf32, #tpu.memory_space<vmem>>, vector<1x4x128xf32>
    %166 = vector.shape_cast %165 : vector<1x4x128xf32> to vector<4x128xf32>
    %167 = vector.shape_cast %164 : vector<4x128xf32> to vector<1x4x128xf32>
    tpu.vector_store %arg9[%c4_167, %c1_168, %c0_169], %167 {strides = array<i32>} : memref<6x6x128xf32, #tpu.memory_space<vmem>>, vector<1x4x128xf32>,
    %cst_170 = arith.constant 0.000000e+00 : f32
    %168 = vector.broadcast %cst_170 : f32 to vector<5x5x256xf32>
    %c0_171 = arith.constant 0 : index
    %c0_172 = arith.constant 0 : index
    %c0_173 = arith.constant 0 : index
    %169 = vector.load %arg10[%c0_171, %c0_172, %c0_173] : memref<5x5x256xf32, #tpu.memory_space<vmem>>, vector<5x5x256xf32>
    tpu.vector_store %arg10[%c0_171, %c0_172, %c0_173], %168 {strides = array<i32>} : memref<5x5x256xf32, #tpu.memory_space<vmem>>, vector<5x5x256xf32>,
    %cst_174 = arith.constant 0.000000e+00 : f32
    %170 = vector.broadcast %cst_174 : f32 to vector<3x256xf32>
    %c0_175 = arith.constant 0 : index
    %c0_176 = arith.constant 0 : index
    %c0_177 = arith.constant 0 : index
    %171 = vector.load %arg9[%c0_175, %c0_176, %c0_177] : memref<6x6x128xf32, #tpu.memory_space<vmem>>, vector<1x3x128xf32>
    %172 = vector.shape_cast %171 : vector<1x3x128xf32> to vector<3x128xf32>
    %173 = arith.truncf %172 : vector<3x128xf32> to vector<3x128xbf16>
    %c0_178 = arith.constant 0 : index
    %c0_179 = arith.constant 0 : index
    %c0_180 = arith.constant 0 : index
    %174 = vector.load %arg5[%c0_178, %c0_179, %c0_180] : memref<16x128x256xbf16, #tpu.memory_space<vmem>>, vector<1x128x256xbf16>
    %175 = vector.shape_cast %174 : vector<1x128x256xbf16> to vector<128x256xbf16>
    %cst_181 = arith.constant dense<0.000000e+00> : vector<3x256xf32>
    %176 = tpu.matmul %173, %175, %cst_181 {dimension_numbers = #tpu.dot_dimension_numbers<[1], [0], [0], [1], [0, 0, 1, 1], [], []>} : vector<3x128xbf16>, vector<128x256xbf16>, vector<3x256xf32> -> vector<3x256xf32>
    %177 = arith.addf %170, %176 : vector<3x256xf32>
    %c0_182 = arith.constant 0 : index
    %c1_183 = arith.constant 1 : index
    %c0_184 = arith.constant 0 : index
    %178 = vector.load %arg9[%c0_182, %c1_183, %c0_184] : memref<6x6x128xf32, #tpu.memory_space<vmem>>, vector<1x3x128xf32>
    %179 = vector.shape_cast %178 : vector<1x3x128xf32> to vector<3x128xf32>
    %180 = arith.truncf %179 : vector<3x128xf32> to vector<3x128xbf16>
    %c1_185 = arith.constant 1 : index
    %c0_186 = arith.constant 0 : index
    %c0_187 = arith.constant 0 : index
    %181 = vector.load %arg5[%c1_185, %c0_186, %c0_187] : memref<16x128x256xbf16, #tpu.memory_space<vmem>>, vector<1x128x256xbf16>
    %182 = vector.shape_cast %181 : vector<1x128x256xbf16> to vector<128x256xbf16>
    %cst_188 = arith.constant dense<0.000000e+00> : vector<3x256xf32>
    %183 = tpu.matmul %180, %182, %cst_188 {dimension_numbers = #tpu.dot_dimension_numbers<[1], [0], [0], [1], [0, 0, 1, 1], [], []>} : vector<3x128xbf16>, vector<128x256xbf16>, vector<3x256xf32> -> vector<3x256xf32>
    %184 = arith.addf %177, %183 : vector<3x256xf32>
    %c0_189 = arith.constant 0 : index
    %c2_190 = arith.constant 2 : index
    %c0_191 = arith.constant 0 : index
    %185 = vector.load %arg9[%c0_189, %c2_190, %c0_191] : memref<6x6x128xf32, #tpu.memory_space<vmem>>, vector<1x3x128xf32>
    %186 = vector.shape_cast %185 : vector<1x3x128xf32> to vector<3x128xf32>
    %187 = arith.truncf %186 : vector<3x128xf32> to vector<3x128xbf16>
    %c2_192 = arith.constant 2 : index
    %c0_193 = arith.constant 0 : index
    %c0_194 = arith.constant 0 : index
    %188 = vector.load %arg5[%c2_192, %c0_193, %c0_194] : memref<16x128x256xbf16, #tpu.memory_space<vmem>>, vector<1x128x256xbf16>
    %189 = vector.shape_cast %188 : vector<1x128x256xbf16> to vector<128x256xbf16>
    %cst_195 = arith.constant dense<0.000000e+00> : vector<3x256xf32>
    %190 = tpu.matmul %187, %189, %cst_195 {dimension_numbers = #tpu.dot_dimension_numbers<[1], [0], [0], [1], [0, 0, 1, 1], [], []>} : vector<3x128xbf16>, vector<128x256xbf16>, vector<3x256xf32> -> vector<3x256xf32>
    %191 = arith.addf %184, %190 : vector<3x256xf32>
    %c0_196 = arith.constant 0 : index
    %c3_197 = arith.constant 3 : index
    %c0_198 = arith.constant 0 : index
    %192 = vector.load %arg9[%c0_196, %c3_197, %c0_198] : memref<6x6x128xf32, #tpu.memory_space<vmem>>, vector<1x3x128xf32>
    %193 = vector.shape_cast %192 : vector<1x3x128xf32> to vector<3x128xf32>
    %194 = arith.truncf %193 : vector<3x128xf32> to vector<3x128xbf16>
    %c3_199 = arith.constant 3 : index
    %c0_200 = arith.constant 0 : index
    %c0_201 = arith.constant 0 : index
    %195 = vector.load %arg5[%c3_199, %c0_200, %c0_201] : memref<16x128x256xbf16, #tpu.memory_space<vmem>>, vector<1x128x256xbf16>
    %196 = vector.shape_cast %195 : vector<1x128x256xbf16> to vector<128x256xbf16>
    %cst_202 = arith.constant dense<0.000000e+00> : vector<3x256xf32>
    %197 = tpu.matmul %194, %196, %cst_202 {dimension_numbers = #tpu.dot_dimension_numbers<[1], [0], [0], [1], [0, 0, 1, 1], [], []>} : vector<3x128xbf16>, vector<128x256xbf16>, vector<3x256xf32> -> vector<3x256xf32>
    %198 = arith.addf %191, %197 : vector<3x256xf32>
    %c1_203 = arith.constant 1 : index
    %c0_204 = arith.constant 0 : index
    %c0_205 = arith.constant 0 : index
    %199 = vector.load %arg9[%c1_203, %c0_204, %c0_205] : memref<6x6x128xf32, #tpu.memory_space<vmem>>, vector<1x3x128xf32>
    %200 = vector.shape_cast %199 : vector<1x3x128xf32> to vector<3x128xf32>
    %201 = arith.truncf %200 : vector<3x128xf32> to vector<3x128xbf16>
    %c4_206 = arith.constant 4 : index
    %c0_207 = arith.constant 0 : index
    %c0_208 = arith.constant 0 : index
    %202 = vector.load %arg5[%c4_206, %c0_207, %c0_208] : memref<16x128x256xbf16, #tpu.memory_space<vmem>>, vector<1x128x256xbf16>
    %203 = vector.shape_cast %202 : vector<1x128x256xbf16> to vector<128x256xbf16>
    %cst_209 = arith.constant dense<0.000000e+00> : vector<3x256xf32>
    %204 = tpu.matmul %201, %203, %cst_209 {dimension_numbers = #tpu.dot_dimension_numbers<[1], [0], [0], [1], [0, 0, 1, 1], [], []>} : vector<3x128xbf16>, vector<128x256xbf16>, vector<3x256xf32> -> vector<3x256xf32>
    %205 = arith.addf %198, %204 : vector<3x256xf32>
    %c1_210 = arith.constant 1 : index
    %c1_211 = arith.constant 1 : index
    %c0_212 = arith.constant 0 : index
    %206 = vector.load %arg9[%c1_210, %c1_211, %c0_212] : memref<6x6x128xf32, #tpu.memory_space<vmem>>, vector<1x3x128xf32>
    %207 = vector.shape_cast %206 : vector<1x3x128xf32> to vector<3x128xf32>
    %208 = arith.truncf %207 : vector<3x128xf32> to vector<3x128xbf16>
    %c5 = arith.constant 5 : index
    %c0_213 = arith.constant 0 : index
    %c0_214 = arith.constant 0 : index
    %209 = vector.load %arg5[%c5, %c0_213, %c0_214] : memref<16x128x256xbf16, #tpu.memory_space<vmem>>, vector<1x128x256xbf16>
    %210 = vector.shape_cast %209 : vector<1x128x256xbf16> to vector<128x256xbf16>
    %cst_215 = arith.constant dense<0.000000e+00> : vector<3x256xf32>
    %211 = tpu.matmul %208, %210, %cst_215 {dimension_numbers = #tpu.dot_dimension_numbers<[1], [0], [0], [1], [0, 0, 1, 1], [], []>} : vector<3x128xbf16>, vector<128x256xbf16>, vector<3x256xf32> -> vector<3x256xf32>
    %212 = arith.addf %205, %211 : vector<3x256xf32>
    %c1_216 = arith.constant 1 : index
    %c2_217 = arith.constant 2 : index
    %c0_218 = arith.constant 0 : index
    %213 = vector.load %arg9[%c1_216, %c2_217, %c0_218] : memref<6x6x128xf32, #tpu.memory_space<vmem>>, vector<1x3x128xf32>
    %214 = vector.shape_cast %213 : vector<1x3x128xf32> to vector<3x128xf32>
    %215 = arith.truncf %214 : vector<3x128xf32> to vector<3x128xbf16>
    %c6 = arith.constant 6 : index
    %c0_219 = arith.constant 0 : index
    %c0_220 = arith.constant 0 : index
    %216 = vector.load %arg5[%c6, %c0_219, %c0_220] : memref<16x128x256xbf16, #tpu.memory_space<vmem>>, vector<1x128x256xbf16>
    %217 = vector.shape_cast %216 : vector<1x128x256xbf16> to vector<128x256xbf16>
    %cst_221 = arith.constant dense<0.000000e+00> : vector<3x256xf32>
    %218 = tpu.matmul %215, %217, %cst_221 {dimension_numbers = #tpu.dot_dimension_numbers<[1], [0], [0], [1], [0, 0, 1, 1], [], []>} : vector<3x128xbf16>, vector<128x256xbf16>, vector<3x256xf32> -> vector<3x256xf32>
    %219 = arith.addf %212, %218 : vector<3x256xf32>
    %c1_222 = arith.constant 1 : index
    %c3_223 = arith.constant 3 : index
    %c0_224 = arith.constant 0 : index
    %220 = vector.load %arg9[%c1_222, %c3_223, %c0_224] : memref<6x6x128xf32, #tpu.memory_space<vmem>>, vector<1x3x128xf32>
    %221 = vector.shape_cast %220 : vector<1x3x128xf32> to vector<3x128xf32>
    %222 = arith.truncf %221 : vector<3x128xf32> to vector<3x128xbf16>
    %c7 = arith.constant 7 : index
    %c0_225 = arith.constant 0 : index
    %c0_226 = arith.constant 0 : index
    %223 = vector.load %arg5[%c7, %c0_225, %c0_226] : memref<16x128x256xbf16, #tpu.memory_space<vmem>>, vector<1x128x256xbf16>
    %224 = vector.shape_cast %223 : vector<1x128x256xbf16> to vector<128x256xbf16>
    %cst_227 = arith.constant dense<0.000000e+00> : vector<3x256xf32>
    %225 = tpu.matmul %222, %224, %cst_227 {dimension_numbers = #tpu.dot_dimension_numbers<[1], [0], [0], [1], [0, 0, 1, 1], [], []>} : vector<3x128xbf16>, vector<128x256xbf16>, vector<3x256xf32> -> vector<3x256xf32>
    %226 = arith.addf %219, %225 : vector<3x256xf32>
    %c2_228 = arith.constant 2 : index
    %c0_229 = arith.constant 0 : index
    %c0_230 = arith.constant 0 : index
    %227 = vector.load %arg9[%c2_228, %c0_229, %c0_230] : memref<6x6x128xf32, #tpu.memory_space<vmem>>, vector<1x3x128xf32>
    %228 = vector.shape_cast %227 : vector<1x3x128xf32> to vector<3x128xf32>
    %229 = arith.truncf %228 : vector<3x128xf32> to vector<3x128xbf16>
    %c8 = arith.constant 8 : index
    %c0_231 = arith.constant 0 : index
    %c0_232 = arith.constant 0 : index
    %230 = vector.load %arg5[%c8, %c0_231, %c0_232] : memref<16x128x256xbf16, #tpu.memory_space<vmem>>, vector<1x128x256xbf16>
    %231 = vector.shape_cast %230 : vector<1x128x256xbf16> to vector<128x256xbf16>
    %cst_233 = arith.constant dense<0.000000e+00> : vector<3x256xf32>
    %232 = tpu.matmul %229, %231, %cst_233 {dimension_numbers = #tpu.dot_dimension_numbers<[1], [0], [0], [1], [0, 0, 1, 1], [], []>} : vector<3x128xbf16>, vector<128x256xbf16>, vector<3x256xf32> -> vector<3x256xf32>
    %233 = arith.addf %226, %232 : vector<3x256xf32>
    %c2_234 = arith.constant 2 : index
    %c1_235 = arith.constant 1 : index
    %c0_236 = arith.constant 0 : index
    %234 = vector.load %arg9[%c2_234, %c1_235, %c0_236] : memref<6x6x128xf32, #tpu.memory_space<vmem>>, vector<1x3x128xf32>
    %235 = vector.shape_cast %234 : vector<1x3x128xf32> to vector<3x128xf32>
    %236 = arith.truncf %235 : vector<3x128xf32> to vector<3x128xbf16>
    %c9 = arith.constant 9 : index
    %c0_237 = arith.constant 0 : index
    %c0_238 = arith.constant 0 : index
    %237 = vector.load %arg5[%c9, %c0_237, %c0_238] : memref<16x128x256xbf16, #tpu.memory_space<vmem>>, vector<1x128x256xbf16>
    %238 = vector.shape_cast %237 : vector<1x128x256xbf16> to vector<128x256xbf16>
    %cst_239 = arith.constant dense<0.000000e+00> : vector<3x256xf32>
    %239 = tpu.matmul %236, %238, %cst_239 {dimension_numbers = #tpu.dot_dimension_numbers<[1], [0], [0], [1], [0, 0, 1, 1], [], []>} : vector<3x128xbf16>, vector<128x256xbf16>, vector<3x256xf32> -> vector<3x256xf32>
    %240 = arith.addf %233, %239 : vector<3x256xf32>
    %c2_240 = arith.constant 2 : index
    %c2_241 = arith.constant 2 : index
    %c0_242 = arith.constant 0 : index
    %241 = vector.load %arg9[%c2_240, %c2_241, %c0_242] : memref<6x6x128xf32, #tpu.memory_space<vmem>>, vector<1x3x128xf32>
    %242 = vector.shape_cast %241 : vector<1x3x128xf32> to vector<3x128xf32>
    %243 = arith.truncf %242 : vector<3x128xf32> to vector<3x128xbf16>
    %c10 = arith.constant 10 : index
    %c0_243 = arith.constant 0 : index
    %c0_244 = arith.constant 0 : index
    %244 = vector.load %arg5[%c10, %c0_243, %c0_244] : memref<16x128x256xbf16, #tpu.memory_space<vmem>>, vector<1x128x256xbf16>
    %245 = vector.shape_cast %244 : vector<1x128x256xbf16> to vector<128x256xbf16>
    %cst_245 = arith.constant dense<0.000000e+00> : vector<3x256xf32>
    %246 = tpu.matmul %243, %245, %cst_245 {dimension_numbers = #tpu.dot_dimension_numbers<[1], [0], [0], [1], [0, 0, 1, 1], [], []>} : vector<3x128xbf16>, vector<128x256xbf16>, vector<3x256xf32> -> vector<3x256xf32>
    %247 = arith.addf %240, %246 : vector<3x256xf32>
    %c2_246 = arith.constant 2 : index
    %c3_247 = arith.constant 3 : index
    %c0_248 = arith.constant 0 : index
    %248 = vector.load %arg9[%c2_246, %c3_247, %c0_248] : memref<6x6x128xf32, #tpu.memory_space<vmem>>, vector<1x3x128xf32>
    %249 = vector.shape_cast %248 : vector<1x3x128xf32> to vector<3x128xf32>
    %250 = arith.truncf %249 : vector<3x128xf32> to vector<3x128xbf16>
    %c11 = arith.constant 11 : index
    %c0_249 = arith.constant 0 : index
    %c0_250 = arith.constant 0 : index
    %251 = vector.load %arg5[%c11, %c0_249, %c0_250] : memref<16x128x256xbf16, #tpu.memory_space<vmem>>, vector<1x128x256xbf16>
    %252 = vector.shape_cast %251 : vector<1x128x256xbf16> to vector<128x256xbf16>
    %cst_251 = arith.constant dense<0.000000e+00> : vector<3x256xf32>
    %253 = tpu.matmul %250, %252, %cst_251 {dimension_numbers = #tpu.dot_dimension_numbers<[1], [0], [0], [1], [0, 0, 1, 1], [], []>} : vector<3x128xbf16>, vector<128x256xbf16>, vector<3x256xf32> -> vector<3x256xf32>
    %254 = arith.addf %247, %253 : vector<3x256xf32>
    %c3_252 = arith.constant 3 : index
    %c0_253 = arith.constant 0 : index
    %c0_254 = arith.constant 0 : index
    %255 = vector.load %arg9[%c3_252, %c0_253, %c0_254] : memref<6x6x128xf32, #tpu.memory_space<vmem>>, vector<1x3x128xf32>
    %256 = vector.shape_cast %255 : vector<1x3x128xf32> to vector<3x128xf32>
    %257 = arith.truncf %256 : vector<3x128xf32> to vector<3x128xbf16>
    %c12 = arith.constant 12 : index
    %c0_255 = arith.constant 0 : index
    %c0_256 = arith.constant 0 : index
    %258 = vector.load %arg5[%c12, %c0_255, %c0_256] : memref<16x128x256xbf16, #tpu.memory_space<vmem>>, vector<1x128x256xbf16>
    %259 = vector.shape_cast %258 : vector<1x128x256xbf16> to vector<128x256xbf16>
    %cst_257 = arith.constant dense<0.000000e+00> : vector<3x256xf32>
    %260 = tpu.matmul %257, %259, %cst_257 {dimension_numbers = #tpu.dot_dimension_numbers<[1], [0], [0], [1], [0, 0, 1, 1], [], []>} : vector<3x128xbf16>, vector<128x256xbf16>, vector<3x256xf32> -> vector<3x256xf32>
    %261 = arith.addf %254, %260 : vector<3x256xf32>
    %c3_258 = arith.constant 3 : index
    %c1_259 = arith.constant 1 : index
    %c0_260 = arith.constant 0 : index
    %262 = vector.load %arg9[%c3_258, %c1_259, %c0_260] : memref<6x6x128xf32, #tpu.memory_space<vmem>>, vector<1x3x128xf32>
    %263 = vector.shape_cast %262 : vector<1x3x128xf32> to vector<3x128xf32>
    %264 = arith.truncf %263 : vector<3x128xf32> to vector<3x128xbf16>
    %c13 = arith.constant 13 : index
    %c0_261 = arith.constant 0 : index
    %c0_262 = arith.constant 0 : index
    %265 = vector.load %arg5[%c13, %c0_261, %c0_262] : memref<16x128x256xbf16, #tpu.memory_space<vmem>>, vector<1x128x256xbf16>
    %266 = vector.shape_cast %265 : vector<1x128x256xbf16> to vector<128x256xbf16>
    %cst_263 = arith.constant dense<0.000000e+00> : vector<3x256xf32>
    %267 = tpu.matmul %264, %266, %cst_263 {dimension_numbers = #tpu.dot_dimension_numbers<[1], [0], [0], [1], [0, 0, 1, 1], [], []>} : vector<3x128xbf16>, vector<128x256xbf16>, vector<3x256xf32> -> vector<3x256xf32>
    %268 = arith.addf %261, %267 : vector<3x256xf32>
    %c3_264 = arith.constant 3 : index
    %c2_265 = arith.constant 2 : index
    %c0_266 = arith.constant 0 : index
    %269 = vector.load %arg9[%c3_264, %c2_265, %c0_266] : memref<6x6x128xf32, #tpu.memory_space<vmem>>, vector<1x3x128xf32>
    %270 = vector.shape_cast %269 : vector<1x3x128xf32> to vector<3x128xf32>
    %271 = arith.truncf %270 : vector<3x128xf32> to vector<3x128xbf16>
    %c14 = arith.constant 14 : index
    %c0_267 = arith.constant 0 : index
    %c0_268 = arith.constant 0 : index
    %272 = vector.load %arg5[%c14, %c0_267, %c0_268] : memref<16x128x256xbf16, #tpu.memory_space<vmem>>, vector<1x128x256xbf16>
    %273 = vector.shape_cast %272 : vector<1x128x256xbf16> to vector<128x256xbf16>
    %cst_269 = arith.constant dense<0.000000e+00> : vector<3x256xf32>
    %274 = tpu.matmul %271, %273, %cst_269 {dimension_numbers = #tpu.dot_dimension_numbers<[1], [0], [0], [1], [0, 0, 1, 1], [], []>} : vector<3x128xbf16>, vector<128x256xbf16>, vector<3x256xf32> -> vector<3x256xf32>
    %275 = arith.addf %268, %274 : vector<3x256xf32>
    %c3_270 = arith.constant 3 : index
    %c3_271 = arith.constant 3 : index
    %c0_272 = arith.constant 0 : index
    %276 = vector.load %arg9[%c3_270, %c3_271, %c0_272] : memref<6x6x128xf32, #tpu.memory_space<vmem>>, vector<1x3x128xf32>
    %277 = vector.shape_cast %276 : vector<1x3x128xf32> to vector<3x128xf32>
    %278 = arith.truncf %277 : vector<3x128xf32> to vector<3x128xbf16>
    %c15 = arith.constant 15 : index
    %c0_273 = arith.constant 0 : index
    %c0_274 = arith.constant 0 : index
    %279 = vector.load %arg5[%c15, %c0_273, %c0_274] : memref<16x128x256xbf16, #tpu.memory_space<vmem>>, vector<1x128x256xbf16>
    %280 = vector.shape_cast %279 : vector<1x128x256xbf16> to vector<128x256xbf16>
    %cst_275 = arith.constant dense<0.000000e+00> : vector<3x256xf32>
    %281 = tpu.matmul %278, %280, %cst_275 {dimension_numbers = #tpu.dot_dimension_numbers<[1], [0], [0], [1], [0, 0, 1, 1], [], []>} : vector<3x128xbf16>, vector<128x256xbf16>, vector<3x256xf32> -> vector<3x256xf32>
    %282 = arith.addf %275, %281 : vector<3x256xf32>
    %cst_276 = arith.constant 0.000000e+00 : f32
    %283 = vector.broadcast %cst_276 : f32 to vector<3x256xf32>
    %284 = arith.cmpf oge, %282, %283 : vector<3x256xf32>
    %cst_277 = arith.constant 2.000000e-01 : f32
    %285 = vector.broadcast %cst_277 : f32 to vector<3x256xf32>
    %286 = arith.mulf %285, %282 : vector<3x256xf32>
    %287 = arith.select %284, %282, %286 : vector<3x256xi1>, vector<3x256xf32>
    %c1_278 = arith.constant 1 : index
    %c1_279 = arith.constant 1 : index
    %c0_280 = arith.constant 0 : index
    %288 = vector.load %arg10[%c1_278, %c1_279, %c0_280] : memref<5x5x256xf32, #tpu.memory_space<vmem>>, vector<1x3x256xf32>
    %289 = vector.shape_cast %288 : vector<1x3x256xf32> to vector<3x256xf32>
    %290 = vector.shape_cast %287 : vector<3x256xf32> to vector<1x3x256xf32>
    tpu.vector_store %arg10[%c1_278, %c1_279, %c0_280], %290 {strides = array<i32>} : memref<5x5x256xf32, #tpu.memory_space<vmem>>, vector<1x3x256xf32>,
    %cst_281 = arith.constant 0.000000e+00 : f32
    %291 = vector.broadcast %cst_281 : f32 to vector<3x256xf32>
    %c1_282 = arith.constant 1 : index
    %c0_283 = arith.constant 0 : index
    %c0_284 = arith.constant 0 : index
    %292 = vector.load %arg9[%c1_282, %c0_283, %c0_284] : memref<6x6x128xf32, #tpu.memory_space<vmem>>, vector<1x3x128xf32>
    %293 = vector.shape_cast %292 : vector<1x3x128xf32> to vector<3x128xf32>
    %294 = arith.truncf %293 : vector<3x128xf32> to vector<3x128xbf16>
    %c0_285 = arith.constant 0 : index
    %c0_286 = arith.constant 0 : index
    %c0_287 = arith.constant 0 : index
    %295 = vector.load %arg5[%c0_285, %c0_286, %c0_287] : memref<16x128x256xbf16, #tpu.memory_space<vmem>>, vector<1x128x256xbf16>
    %296 = vector.shape_cast %295 : vector<1x128x256xbf16> to vector<128x256xbf16>
    %cst_288 = arith.constant dense<0.000000e+00> : vector<3x256xf32>
    %297 = tpu.matmul %294, %296, %cst_288 {dimension_numbers = #tpu.dot_dimension_numbers<[1], [0], [0], [1], [0, 0, 1, 1], [], []>} : vector<3x128xbf16>, vector<128x256xbf16>, vector<3x256xf32> -> vector<3x256xf32>
    %298 = arith.addf %291, %297 : vector<3x256xf32>
    %c1_289 = arith.constant 1 : index
    %c1_290 = arith.constant 1 : index
    %c0_291 = arith.constant 0 : index
    %299 = vector.load %arg9[%c1_289, %c1_290, %c0_291] : memref<6x6x128xf32, #tpu.memory_space<vmem>>, vector<1x3x128xf32>
    %300 = vector.shape_cast %299 : vector<1x3x128xf32> to vector<3x128xf32>
    %301 = arith.truncf %300 : vector<3x128xf32> to vector<3x128xbf16>
    %c1_292 = arith.constant 1 : index
    %c0_293 = arith.constant 0 : index
    %c0_294 = arith.constant 0 : index
    %302 = vector.load %arg5[%c1_292, %c0_293, %c0_294] : memref<16x128x256xbf16, #tpu.memory_space<vmem>>, vector<1x128x256xbf16>
    %303 = vector.shape_cast %302 : vector<1x128x256xbf16> to vector<128x256xbf16>
    %cst_295 = arith.constant dense<0.000000e+00> : vector<3x256xf32>
    %304 = tpu.matmul %301, %303, %cst_295 {dimension_numbers = #tpu.dot_dimension_numbers<[1], [0], [0], [1], [0, 0, 1, 1], [], []>} : vector<3x128xbf16>, vector<128x256xbf16>, vector<3x256xf32> -> vector<3x256xf32>
    %305 = arith.addf %298, %304 : vector<3x256xf32>
    %c1_296 = arith.constant 1 : index
    %c2_297 = arith.constant 2 : index
    %c0_298 = arith.constant 0 : index
    %306 = vector.load %arg9[%c1_296, %c2_297, %c0_298] : memref<6x6x128xf32, #tpu.memory_space<vmem>>, vector<1x3x128xf32>
    %307 = vector.shape_cast %306 : vector<1x3x128xf32> to vector<3x128xf32>
    %308 = arith.truncf %307 : vector<3x128xf32> to vector<3x128xbf16>
    %c2_299 = arith.constant 2 : index
    %c0_300 = arith.constant 0 : index
    %c0_301 = arith.constant 0 : index
    %309 = vector.load %arg5[%c2_299, %c0_300, %c0_301] : memref<16x128x256xbf16, #tpu.memory_space<vmem>>, vector<1x128x256xbf16>
    %310 = vector.shape_cast %309 : vector<1x128x256xbf16> to vector<128x256xbf16>
    %cst_302 = arith.constant dense<0.000000e+00> : vector<3x256xf32>
    %311 = tpu.matmul %308, %310, %cst_302 {dimension_numbers = #tpu.dot_dimension_numbers<[1], [0], [0], [1], [0, 0, 1, 1], [], []>} : vector<3x128xbf16>, vector<128x256xbf16>, vector<3x256xf32> -> vector<3x256xf32>
    %312 = arith.addf %305, %311 : vector<3x256xf32>
    %c1_303 = arith.constant 1 : index
    %c3_304 = arith.constant 3 : index
    %c0_305 = arith.constant 0 : index
    %313 = vector.load %arg9[%c1_303, %c3_304, %c0_305] : memref<6x6x128xf32, #tpu.memory_space<vmem>>, vector<1x3x128xf32>
    %314 = vector.shape_cast %313 : vector<1x3x128xf32> to vector<3x128xf32>
    %315 = arith.truncf %314 : vector<3x128xf32> to vector<3x128xbf16>
    %c3_306 = arith.constant 3 : index
    %c0_307 = arith.constant 0 : index
    %c0_308 = arith.constant 0 : index
    %316 = vector.load %arg5[%c3_306, %c0_307, %c0_308] : memref<16x128x256xbf16, #tpu.memory_space<vmem>>, vector<1x128x256xbf16>
    %317 = vector.shape_cast %316 : vector<1x128x256xbf16> to vector<128x256xbf16>
    %cst_309 = arith.constant dense<0.000000e+00> : vector<3x256xf32>
    %318 = tpu.matmul %315, %317, %cst_309 {dimension_numbers = #tpu.dot_dimension_numbers<[1], [0], [0], [1], [0, 0, 1, 1], [], []>} : vector<3x128xbf16>, vector<128x256xbf16>, vector<3x256xf32> -> vector<3x256xf32>
    %319 = arith.addf %312, %318 : vector<3x256xf32>
    %c2_310 = arith.constant 2 : index
    %c0_311 = arith.constant 0 : index
    %c0_312 = arith.constant 0 : index
    %320 = vector.load %arg9[%c2_310, %c0_311, %c0_312] : memref<6x6x128xf32, #tpu.memory_space<vmem>>, vector<1x3x128xf32>
    %321 = vector.shape_cast %320 : vector<1x3x128xf32> to vector<3x128xf32>
    %322 = arith.truncf %321 : vector<3x128xf32> to vector<3x128xbf16>
    %c4_313 = arith.constant 4 : index
    %c0_314 = arith.constant 0 : index
    %c0_315 = arith.constant 0 : index
    %323 = vector.load %arg5[%c4_313, %c0_314, %c0_315] : memref<16x128x256xbf16, #tpu.memory_space<vmem>>, vector<1x128x256xbf16>
    %324 = vector.shape_cast %323 : vector<1x128x256xbf16> to vector<128x256xbf16>
    %cst_316 = arith.constant dense<0.000000e+00> : vector<3x256xf32>
    %325 = tpu.matmul %322, %324, %cst_316 {dimension_numbers = #tpu.dot_dimension_numbers<[1], [0], [0], [1], [0, 0, 1, 1], [], []>} : vector<3x128xbf16>, vector<128x256xbf16>, vector<3x256xf32> -> vector<3x256xf32>
    %326 = arith.addf %319, %325 : vector<3x256xf32>
    %c2_317 = arith.constant 2 : index
    %c1_318 = arith.constant 1 : index
    %c0_319 = arith.constant 0 : index
    %327 = vector.load %arg9[%c2_317, %c1_318, %c0_319] : memref<6x6x128xf32, #tpu.memory_space<vmem>>, vector<1x3x128xf32>
    %328 = vector.shape_cast %327 : vector<1x3x128xf32> to vector<3x128xf32>
    %329 = arith.truncf %328 : vector<3x128xf32> to vector<3x128xbf16>
    %c5_320 = arith.constant 5 : index
    %c0_321 = arith.constant 0 : index
    %c0_322 = arith.constant 0 : index
    %330 = vector.load %arg5[%c5_320, %c0_321, %c0_322] : memref<16x128x256xbf16, #tpu.memory_space<vmem>>, vector<1x128x256xbf16>
    %331 = vector.shape_cast %330 : vector<1x128x256xbf16> to vector<128x256xbf16>
    %cst_323 = arith.constant dense<0.000000e+00> : vector<3x256xf32>
    %332 = tpu.matmul %329, %331, %cst_323 {dimension_numbers = #tpu.dot_dimension_numbers<[1], [0], [0], [1], [0, 0, 1, 1], [], []>} : vector<3x128xbf16>, vector<128x256xbf16>, vector<3x256xf32> -> vector<3x256xf32>
    %333 = arith.addf %326, %332 : vector<3x256xf32>
    %c2_324 = arith.constant 2 : index
    %c2_325 = arith.constant 2 : index
    %c0_326 = arith.constant 0 : index
    %334 = vector.load %arg9[%c2_324, %c2_325, %c0_326] : memref<6x6x128xf32, #tpu.memory_space<vmem>>, vector<1x3x128xf32>
    %335 = vector.shape_cast %334 : vector<1x3x128xf32> to vector<3x128xf32>
    %336 = arith.truncf %335 : vector<3x128xf32> to vector<3x128xbf16>
    %c6_327 = arith.constant 6 : index
    %c0_328 = arith.constant 0 : index
    %c0_329 = arith.constant 0 : index
    %337 = vector.load %arg5[%c6_327, %c0_328, %c0_329] : memref<16x128x256xbf16, #tpu.memory_space<vmem>>, vector<1x128x256xbf16>
    %338 = vector.shape_cast %337 : vector<1x128x256xbf16> to vector<128x256xbf16>
    %cst_330 = arith.constant dense<0.000000e+00> : vector<3x256xf32>
    %339 = tpu.matmul %336, %338, %cst_330 {dimension_numbers = #tpu.dot_dimension_numbers<[1], [0], [0], [1], [0, 0, 1, 1], [], []>} : vector<3x128xbf16>, vector<128x256xbf16>, vector<3x256xf32> -> vector<3x256xf32>
    %340 = arith.addf %333, %339 : vector<3x256xf32>
    %c2_331 = arith.constant 2 : index
    %c3_332 = arith.constant 3 : index
    %c0_333 = arith.constant 0 : index
    %341 = vector.load %arg9[%c2_331, %c3_332, %c0_333] : memref<6x6x128xf32, #tpu.memory_space<vmem>>, vector<1x3x128xf32>
    %342 = vector.shape_cast %341 : vector<1x3x128xf32> to vector<3x128xf32>
    %343 = arith.truncf %342 : vector<3x128xf32> to vector<3x128xbf16>
    %c7_334 = arith.constant 7 : index
    %c0_335 = arith.constant 0 : index
    %c0_336 = arith.constant 0 : index
    %344 = vector.load %arg5[%c7_334, %c0_335, %c0_336] : memref<16x128x256xbf16, #tpu.memory_space<vmem>>, vector<1x128x256xbf16>
    %345 = vector.shape_cast %344 : vector<1x128x256xbf16> to vector<128x256xbf16>
    %cst_337 = arith.constant dense<0.000000e+00> : vector<3x256xf32>
    %346 = tpu.matmul %343, %345, %cst_337 {dimension_numbers = #tpu.dot_dimension_numbers<[1], [0], [0], [1], [0, 0, 1, 1], [], []>} : vector<3x128xbf16>, vector<128x256xbf16>, vector<3x256xf32> -> vector<3x256xf32>
    %347 = arith.addf %340, %346 : vector<3x256xf32>
    %c3_338 = arith.constant 3 : index
    %c0_339 = arith.constant 0 : index
    %c0_340 = arith.constant 0 : index
    %348 = vector.load %arg9[%c3_338, %c0_339, %c0_340] : memref<6x6x128xf32, #tpu.memory_space<vmem>>, vector<1x3x128xf32>
    %349 = vector.shape_cast %348 : vector<1x3x128xf32> to vector<3x128xf32>
    %350 = arith.truncf %349 : vector<3x128xf32> to vector<3x128xbf16>
    %c8_341 = arith.constant 8 : index
    %c0_342 = arith.constant 0 : index
    %c0_343 = arith.constant 0 : index
    %351 = vector.load %arg5[%c8_341, %c0_342, %c0_343] : memref<16x128x256xbf16, #tpu.memory_space<vmem>>, vector<1x128x256xbf16>
    %352 = vector.shape_cast %351 : vector<1x128x256xbf16> to vector<128x256xbf16>
    %cst_344 = arith.constant dense<0.000000e+00> : vector<3x256xf32>
    %353 = tpu.matmul %350, %352, %cst_344 {dimension_numbers = #tpu.dot_dimension_numbers<[1], [0], [0], [1], [0, 0, 1, 1], [], []>} : vector<3x128xbf16>, vector<128x256xbf16>, vector<3x256xf32> -> vector<3x256xf32>
    %354 = arith.addf %347, %353 : vector<3x256xf32>
    %c3_345 = arith.constant 3 : index
    %c1_346 = arith.constant 1 : index
    %c0_347 = arith.constant 0 : index
    %355 = vector.load %arg9[%c3_345, %c1_346, %c0_347] : memref<6x6x128xf32, #tpu.memory_space<vmem>>, vector<1x3x128xf32>
    %356 = vector.shape_cast %355 : vector<1x3x128xf32> to vector<3x128xf32>
    %357 = arith.truncf %356 : vector<3x128xf32> to vector<3x128xbf16>
    %c9_348 = arith.constant 9 : index
    %c0_349 = arith.constant 0 : index
    %c0_350 = arith.constant 0 : index
    %358 = vector.load %arg5[%c9_348, %c0_349, %c0_350] : memref<16x128x256xbf16, #tpu.memory_space<vmem>>, vector<1x128x256xbf16>
    %359 = vector.shape_cast %358 : vector<1x128x256xbf16> to vector<128x256xbf16>
    %cst_351 = arith.constant dense<0.000000e+00> : vector<3x256xf32>
    %360 = tpu.matmul %357, %359, %cst_351 {dimension_numbers = #tpu.dot_dimension_numbers<[1], [0], [0], [1], [0, 0, 1, 1], [], []>} : vector<3x128xbf16>, vector<128x256xbf16>, vector<3x256xf32> -> vector<3x256xf32>
    %361 = arith.addf %354, %360 : vector<3x256xf32>
    %c3_352 = arith.constant 3 : index
    %c2_353 = arith.constant 2 : index
    %c0_354 = arith.constant 0 : index
    %362 = vector.load %arg9[%c3_352, %c2_353, %c0_354] : memref<6x6x128xf32, #tpu.memory_space<vmem>>, vector<1x3x128xf32>
    %363 = vector.shape_cast %362 : vector<1x3x128xf32> to vector<3x128xf32>
    %364 = arith.truncf %363 : vector<3x128xf32> to vector<3x128xbf16>
    %c10_355 = arith.constant 10 : index
    %c0_356 = arith.constant 0 : index
    %c0_357 = arith.constant 0 : index
    %365 = vector.load %arg5[%c10_355, %c0_356, %c0_357] : memref<16x128x256xbf16, #tpu.memory_space<vmem>>, vector<1x128x256xbf16>
    %366 = vector.shape_cast %365 : vector<1x128x256xbf16> to vector<128x256xbf16>
    %cst_358 = arith.constant dense<0.000000e+00> : vector<3x256xf32>
    %367 = tpu.matmul %364, %366, %cst_358 {dimension_numbers = #tpu.dot_dimension_numbers<[1], [0], [0], [1], [0, 0, 1, 1], [], []>} : vector<3x128xbf16>, vector<128x256xbf16>, vector<3x256xf32> -> vector<3x256xf32>
    %368 = arith.addf %361, %367 : vector<3x256xf32>
    %c3_359 = arith.constant 3 : index
    %c3_360 = arith.constant 3 : index
    %c0_361 = arith.constant 0 : index
    %369 = vector.load %arg9[%c3_359, %c3_360, %c0_361] : memref<6x6x128xf32, #tpu.memory_space<vmem>>, vector<1x3x128xf32>
    %370 = vector.shape_cast %369 : vector<1x3x128xf32> to vector<3x128xf32>
    %371 = arith.truncf %370 : vector<3x128xf32> to vector<3x128xbf16>
    %c11_362 = arith.constant 11 : index
    %c0_363 = arith.constant 0 : index
    %c0_364 = arith.constant 0 : index
    %372 = vector.load %arg5[%c11_362, %c0_363, %c0_364] : memref<16x128x256xbf16, #tpu.memory_space<vmem>>, vector<1x128x256xbf16>
    %373 = vector.shape_cast %372 : vector<1x128x256xbf16> to vector<128x256xbf16>
    %cst_365 = arith.constant dense<0.000000e+00> : vector<3x256xf32>
    %374 = tpu.matmul %371, %373, %cst_365 {dimension_numbers = #tpu.dot_dimension_numbers<[1], [0], [0], [1], [0, 0, 1, 1], [], []>} : vector<3x128xbf16>, vector<128x256xbf16>, vector<3x256xf32> -> vector<3x256xf32>
    %375 = arith.addf %368, %374 : vector<3x256xf32>
    %c4_366 = arith.constant 4 : index
    %c0_367 = arith.constant 0 : index
    %c0_368 = arith.constant 0 : index
    %376 = vector.load %arg9[%c4_366, %c0_367, %c0_368] : memref<6x6x128xf32, #tpu.memory_space<vmem>>, vector<1x3x128xf32>
    %377 = vector.shape_cast %376 : vector<1x3x128xf32> to vector<3x128xf32>
    %378 = arith.truncf %377 : vector<3x128xf32> to vector<3x128xbf16>
    %c12_369 = arith.constant 12 : index
    %c0_370 = arith.constant 0 : index
    %c0_371 = arith.constant 0 : index
    %379 = vector.load %arg5[%c12_369, %c0_370, %c0_371] : memref<16x128x256xbf16, #tpu.memory_space<vmem>>, vector<1x128x256xbf16>
    %380 = vector.shape_cast %379 : vector<1x128x256xbf16> to vector<128x256xbf16>
    %cst_372 = arith.constant dense<0.000000e+00> : vector<3x256xf32>
    %381 = tpu.matmul %378, %380, %cst_372 {dimension_numbers = #tpu.dot_dimension_numbers<[1], [0], [0], [1], [0, 0, 1, 1], [], []>} : vector<3x128xbf16>, vector<128x256xbf16>, vector<3x256xf32> -> vector<3x256xf32>
    %382 = arith.addf %375, %381 : vector<3x256xf32>
    %c4_373 = arith.constant 4 : index
    %c1_374 = arith.constant 1 : index
    %c0_375 = arith.constant 0 : index
    %383 = vector.load %arg9[%c4_373, %c1_374, %c0_375] : memref<6x6x128xf32, #tpu.memory_space<vmem>>, vector<1x3x128xf32>
    %384 = vector.shape_cast %383 : vector<1x3x128xf32> to vector<3x128xf32>
    %385 = arith.truncf %384 : vector<3x128xf32> to vector<3x128xbf16>
    %c13_376 = arith.constant 13 : index
    %c0_377 = arith.constant 0 : index
    %c0_378 = arith.constant 0 : index
    %386 = vector.load %arg5[%c13_376, %c0_377, %c0_378] : memref<16x128x256xbf16, #tpu.memory_space<vmem>>, vector<1x128x256xbf16>
    %387 = vector.shape_cast %386 : vector<1x128x256xbf16> to vector<128x256xbf16>
    %cst_379 = arith.constant dense<0.000000e+00> : vector<3x256xf32>
    %388 = tpu.matmul %385, %387, %cst_379 {dimension_numbers = #tpu.dot_dimension_numbers<[1], [0], [0], [1], [0, 0, 1, 1], [], []>} : vector<3x128xbf16>, vector<128x256xbf16>, vector<3x256xf32> -> vector<3x256xf32>
    %389 = arith.addf %382, %388 : vector<3x256xf32>
    %c4_380 = arith.constant 4 : index
    %c2_381 = arith.constant 2 : index
    %c0_382 = arith.constant 0 : index
    %390 = vector.load %arg9[%c4_380, %c2_381, %c0_382] : memref<6x6x128xf32, #tpu.memory_space<vmem>>, vector<1x3x128xf32>
    %391 = vector.shape_cast %390 : vector<1x3x128xf32> to vector<3x128xf32>
    %392 = arith.truncf %391 : vector<3x128xf32> to vector<3x128xbf16>
    %c14_383 = arith.constant 14 : index
    %c0_384 = arith.constant 0 : index
    %c0_385 = arith.constant 0 : index
    %393 = vector.load %arg5[%c14_383, %c0_384, %c0_385] : memref<16x128x256xbf16, #tpu.memory_space<vmem>>, vector<1x128x256xbf16>
    %394 = vector.shape_cast %393 : vector<1x128x256xbf16> to vector<128x256xbf16>
    %cst_386 = arith.constant dense<0.000000e+00> : vector<3x256xf32>
    %395 = tpu.matmul %392, %394, %cst_386 {dimension_numbers = #tpu.dot_dimension_numbers<[1], [0], [0], [1], [0, 0, 1, 1], [], []>} : vector<3x128xbf16>, vector<128x256xbf16>, vector<3x256xf32> -> vector<3x256xf32>
    %396 = arith.addf %389, %395 : vector<3x256xf32>
    %c4_387 = arith.constant 4 : index
    %c3_388 = arith.constant 3 : index
    %c0_389 = arith.constant 0 : index
    %397 = vector.load %arg9[%c4_387, %c3_388, %c0_389] : memref<6x6x128xf32, #tpu.memory_space<vmem>>, vector<1x3x128xf32>
    %398 = vector.shape_cast %397 : vector<1x3x128xf32> to vector<3x128xf32>
    %399 = arith.truncf %398 : vector<3x128xf32> to vector<3x128xbf16>
    %c15_390 = arith.constant 15 : index
    %c0_391 = arith.constant 0 : index
    %c0_392 = arith.constant 0 : index
    %400 = vector.load %arg5[%c15_390, %c0_391, %c0_392] : memref<16x128x256xbf16, #tpu.memory_space<vmem>>, vector<1x128x256xbf16>
    %401 = vector.shape_cast %400 : vector<1x128x256xbf16> to vector<128x256xbf16>
    %cst_393 = arith.constant dense<0.000000e+00> : vector<3x256xf32>
    %402 = tpu.matmul %399, %401, %cst_393 {dimension_numbers = #tpu.dot_dimension_numbers<[1], [0], [0], [1], [0, 0, 1, 1], [], []>} : vector<3x128xbf16>, vector<128x256xbf16>, vector<3x256xf32> -> vector<3x256xf32>
    %403 = arith.addf %396, %402 : vector<3x256xf32>
    %cst_394 = arith.constant 0.000000e+00 : f32
    %404 = vector.broadcast %cst_394 : f32 to vector<3x256xf32>
    %405 = arith.cmpf oge, %403, %404 : vector<3x256xf32>
    %cst_395 = arith.constant 2.000000e-01 : f32
    %406 = vector.broadcast %cst_395 : f32 to vector<3x256xf32>
    %407 = arith.mulf %406, %403 : vector<3x256xf32>
    %408 = arith.select %405, %403, %407 : vector<3x256xi1>, vector<3x256xf32>
    %c2_396 = arith.constant 2 : index
    %c1_397 = arith.constant 1 : index
    %c0_398 = arith.constant 0 : index
    %409 = vector.load %arg10[%c2_396, %c1_397, %c0_398] : memref<5x5x256xf32, #tpu.memory_space<vmem>>, vector<1x3x256xf32>
    %410 = vector.shape_cast %409 : vector<1x3x256xf32> to vector<3x256xf32>
    %411 = vector.shape_cast %408 : vector<3x256xf32> to vector<1x3x256xf32>
    tpu.vector_store %arg10[%c2_396, %c1_397, %c0_398], %411 {strides = array<i32>} : memref<5x5x256xf32, #tpu.memory_space<vmem>>, vector<1x3x256xf32>,
    %cst_399 = arith.constant 0.000000e+00 : f32
    %412 = vector.broadcast %cst_399 : f32 to vector<3x256xf32>
    %c2_400 = arith.constant 2 : index
    %c0_401 = arith.constant 0 : index
    %c0_402 = arith.constant 0 : index
    %413 = vector.load %arg9[%c2_400, %c0_401, %c0_402] : memref<6x6x128xf32, #tpu.memory_space<vmem>>, vector<1x3x128xf32>
    %414 = vector.shape_cast %413 : vector<1x3x128xf32> to vector<3x128xf32>
    %415 = arith.truncf %414 : vector<3x128xf32> to vector<3x128xbf16>
    %c0_403 = arith.constant 0 : index
    %c0_404 = arith.constant 0 : index
    %c0_405 = arith.constant 0 : index
    %416 = vector.load %arg5[%c0_403, %c0_404, %c0_405] : memref<16x128x256xbf16, #tpu.memory_space<vmem>>, vector<1x128x256xbf16>
    %417 = vector.shape_cast %416 : vector<1x128x256xbf16> to vector<128x256xbf16>
    %cst_406 = arith.constant dense<0.000000e+00> : vector<3x256xf32>
    %418 = tpu.matmul %415, %417, %cst_406 {dimension_numbers = #tpu.dot_dimension_numbers<[1], [0], [0], [1], [0, 0, 1, 1], [], []>} : vector<3x128xbf16>, vector<128x256xbf16>, vector<3x256xf32> -> vector<3x256xf32>
    %419 = arith.addf %412, %418 : vector<3x256xf32>
    %c2_407 = arith.constant 2 : index
    %c1_408 = arith.constant 1 : index
    %c0_409 = arith.constant 0 : index
    %420 = vector.load %arg9[%c2_407, %c1_408, %c0_409] : memref<6x6x128xf32, #tpu.memory_space<vmem>>, vector<1x3x128xf32>
    %421 = vector.shape_cast %420 : vector<1x3x128xf32> to vector<3x128xf32>
    %422 = arith.truncf %421 : vector<3x128xf32> to vector<3x128xbf16>
    %c1_410 = arith.constant 1 : index
    %c0_411 = arith.constant 0 : index
    %c0_412 = arith.constant 0 : index
    %423 = vector.load %arg5[%c1_410, %c0_411, %c0_412] : memref<16x128x256xbf16, #tpu.memory_space<vmem>>, vector<1x128x256xbf16>
    %424 = vector.shape_cast %423 : vector<1x128x256xbf16> to vector<128x256xbf16>
    %cst_413 = arith.constant dense<0.000000e+00> : vector<3x256xf32>
    %425 = tpu.matmul %422, %424, %cst_413 {dimension_numbers = #tpu.dot_dimension_numbers<[1], [0], [0], [1], [0, 0, 1, 1], [], []>} : vector<3x128xbf16>, vector<128x256xbf16>, vector<3x256xf32> -> vector<3x256xf32>
    %426 = arith.addf %419, %425 : vector<3x256xf32>
    %c2_414 = arith.constant 2 : index
    %c2_415 = arith.constant 2 : index
    %c0_416 = arith.constant 0 : index
    %427 = vector.load %arg9[%c2_414, %c2_415, %c0_416] : memref<6x6x128xf32, #tpu.memory_space<vmem>>, vector<1x3x128xf32>
    %428 = vector.shape_cast %427 : vector<1x3x128xf32> to vector<3x128xf32>
    %429 = arith.truncf %428 : vector<3x128xf32> to vector<3x128xbf16>
    %c2_417 = arith.constant 2 : index
    %c0_418 = arith.constant 0 : index
    %c0_419 = arith.constant 0 : index
    %430 = vector.load %arg5[%c2_417, %c0_418, %c0_419] : memref<16x128x256xbf16, #tpu.memory_space<vmem>>, vector<1x128x256xbf16>
    %431 = vector.shape_cast %430 : vector<1x128x256xbf16> to vector<128x256xbf16>
    %cst_420 = arith.constant dense<0.000000e+00> : vector<3x256xf32>
    %432 = tpu.matmul %429, %431, %cst_420 {dimension_numbers = #tpu.dot_dimension_numbers<[1], [0], [0], [1], [0, 0, 1, 1], [], []>} : vector<3x128xbf16>, vector<128x256xbf16>, vector<3x256xf32> -> vector<3x256xf32>
    %433 = arith.addf %426, %432 : vector<3x256xf32>
    %c2_421 = arith.constant 2 : index
    %c3_422 = arith.constant 3 : index
    %c0_423 = arith.constant 0 : index
    %434 = vector.load %arg9[%c2_421, %c3_422, %c0_423] : memref<6x6x128xf32, #tpu.memory_space<vmem>>, vector<1x3x128xf32>
    %435 = vector.shape_cast %434 : vector<1x3x128xf32> to vector<3x128xf32>
    %436 = arith.truncf %435 : vector<3x128xf32> to vector<3x128xbf16>
    %c3_424 = arith.constant 3 : index
    %c0_425 = arith.constant 0 : index
    %c0_426 = arith.constant 0 : index
    %437 = vector.load %arg5[%c3_424, %c0_425, %c0_426] : memref<16x128x256xbf16, #tpu.memory_space<vmem>>, vector<1x128x256xbf16>
    %438 = vector.shape_cast %437 : vector<1x128x256xbf16> to vector<128x256xbf16>
    %cst_427 = arith.constant dense<0.000000e+00> : vector<3x256xf32>
    %439 = tpu.matmul %436, %438, %cst_427 {dimension_numbers = #tpu.dot_dimension_numbers<[1], [0], [0], [1], [0, 0, 1, 1], [], []>} : vector<3x128xbf16>, vector<128x256xbf16>, vector<3x256xf32> -> vector<3x256xf32>
    %440 = arith.addf %433, %439 : vector<3x256xf32>
    %c3_428 = arith.constant 3 : index
    %c0_429 = arith.constant 0 : index
    %c0_430 = arith.constant 0 : index
    %441 = vector.load %arg9[%c3_428, %c0_429, %c0_430] : memref<6x6x128xf32, #tpu.memory_space<vmem>>, vector<1x3x128xf32>
    %442 = vector.shape_cast %441 : vector<1x3x128xf32> to vector<3x128xf32>
    %443 = arith.truncf %442 : vector<3x128xf32> to vector<3x128xbf16>
    %c4_431 = arith.constant 4 : index
    %c0_432 = arith.constant 0 : index
    %c0_433 = arith.constant 0 : index
    %444 = vector.load %arg5[%c4_431, %c0_432, %c0_433] : memref<16x128x256xbf16, #tpu.memory_space<vmem>>, vector<1x128x256xbf16>
    %445 = vector.shape_cast %444 : vector<1x128x256xbf16> to vector<128x256xbf16>
    %cst_434 = arith.constant dense<0.000000e+00> : vector<3x256xf32>
    %446 = tpu.matmul %443, %445, %cst_434 {dimension_numbers = #tpu.dot_dimension_numbers<[1], [0], [0], [1], [0, 0, 1, 1], [], []>} : vector<3x128xbf16>, vector<128x256xbf16>, vector<3x256xf32> -> vector<3x256xf32>
    %447 = arith.addf %440, %446 : vector<3x256xf32>
    %c3_435 = arith.constant 3 : index
    %c1_436 = arith.constant 1 : index
    %c0_437 = arith.constant 0 : index
    %448 = vector.load %arg9[%c3_435, %c1_436, %c0_437] : memref<6x6x128xf32, #tpu.memory_space<vmem>>, vector<1x3x128xf32>
    %449 = vector.shape_cast %448 : vector<1x3x128xf32> to vector<3x128xf32>
    %450 = arith.truncf %449 : vector<3x128xf32> to vector<3x128xbf16>
    %c5_438 = arith.constant 5 : index
    %c0_439 = arith.constant 0 : index
    %c0_440 = arith.constant 0 : index
    %451 = vector.load %arg5[%c5_438, %c0_439, %c0_440] : memref<16x128x256xbf16, #tpu.memory_space<vmem>>, vector<1x128x256xbf16>
    %452 = vector.shape_cast %451 : vector<1x128x256xbf16> to vector<128x256xbf16>
    %cst_441 = arith.constant dense<0.000000e+00> : vector<3x256xf32>
    %453 = tpu.matmul %450, %452, %cst_441 {dimension_numbers = #tpu.dot_dimension_numbers<[1], [0], [0], [1], [0, 0, 1, 1], [], []>} : vector<3x128xbf16>, vector<128x256xbf16>, vector<3x256xf32> -> vector<3x256xf32>
    %454 = arith.addf %447, %453 : vector<3x256xf32>
    %c3_442 = arith.constant 3 : index
    %c2_443 = arith.constant 2 : index
    %c0_444 = arith.constant 0 : index
    %455 = vector.load %arg9[%c3_442, %c2_443, %c0_444] : memref<6x6x128xf32, #tpu.memory_space<vmem>>, vector<1x3x128xf32>
    %456 = vector.shape_cast %455 : vector<1x3x128xf32> to vector<3x128xf32>
    %457 = arith.truncf %456 : vector<3x128xf32> to vector<3x128xbf16>
    %c6_445 = arith.constant 6 : index
    %c0_446 = arith.constant 0 : index
    %c0_447 = arith.constant 0 : index
    %458 = vector.load %arg5[%c6_445, %c0_446, %c0_447] : memref<16x128x256xbf16, #tpu.memory_space<vmem>>, vector<1x128x256xbf16>
    %459 = vector.shape_cast %458 : vector<1x128x256xbf16> to vector<128x256xbf16>
    %cst_448 = arith.constant dense<0.000000e+00> : vector<3x256xf32>
    %460 = tpu.matmul %457, %459, %cst_448 {dimension_numbers = #tpu.dot_dimension_numbers<[1], [0], [0], [1], [0, 0, 1, 1], [], []>} : vector<3x128xbf16>, vector<128x256xbf16>, vector<3x256xf32> -> vector<3x256xf32>
    %461 = arith.addf %454, %460 : vector<3x256xf32>
    %c3_449 = arith.constant 3 : index
    %c3_450 = arith.constant 3 : index
    %c0_451 = arith.constant 0 : index
    %462 = vector.load %arg9[%c3_449, %c3_450, %c0_451] : memref<6x6x128xf32, #tpu.memory_space<vmem>>, vector<1x3x128xf32>
    %463 = vector.shape_cast %462 : vector<1x3x128xf32> to vector<3x128xf32>
    %464 = arith.truncf %463 : vector<3x128xf32> to vector<3x128xbf16>
    %c7_452 = arith.constant 7 : index
    %c0_453 = arith.constant 0 : index
    %c0_454 = arith.constant 0 : index
    %465 = vector.load %arg5[%c7_452, %c0_453, %c0_454] : memref<16x128x256xbf16, #tpu.memory_space<vmem>>, vector<1x128x256xbf16>
    %466 = vector.shape_cast %465 : vector<1x128x256xbf16> to vector<128x256xbf16>
    %cst_455 = arith.constant dense<0.000000e+00> : vector<3x256xf32>
    %467 = tpu.matmul %464, %466, %cst_455 {dimension_numbers = #tpu.dot_dimension_numbers<[1], [0], [0], [1], [0, 0, 1, 1], [], []>} : vector<3x128xbf16>, vector<128x256xbf16>, vector<3x256xf32> -> vector<3x256xf32>
    %468 = arith.addf %461, %467 : vector<3x256xf32>
    %c4_456 = arith.constant 4 : index
    %c0_457 = arith.constant 0 : index
    %c0_458 = arith.constant 0 : index
    %469 = vector.load %arg9[%c4_456, %c0_457, %c0_458] : memref<6x6x128xf32, #tpu.memory_space<vmem>>, vector<1x3x128xf32>
    %470 = vector.shape_cast %469 : vector<1x3x128xf32> to vector<3x128xf32>
    %471 = arith.truncf %470 : vector<3x128xf32> to vector<3x128xbf16>
    %c8_459 = arith.constant 8 : index
    %c0_460 = arith.constant 0 : index
    %c0_461 = arith.constant 0 : index
    %472 = vector.load %arg5[%c8_459, %c0_460, %c0_461] : memref<16x128x256xbf16, #tpu.memory_space<vmem>>, vector<1x128x256xbf16>
    %473 = vector.shape_cast %472 : vector<1x128x256xbf16> to vector<128x256xbf16>
    %cst_462 = arith.constant dense<0.000000e+00> : vector<3x256xf32>
    %474 = tpu.matmul %471, %473, %cst_462 {dimension_numbers = #tpu.dot_dimension_numbers<[1], [0], [0], [1], [0, 0, 1, 1], [], []>} : vector<3x128xbf16>, vector<128x256xbf16>, vector<3x256xf32> -> vector<3x256xf32>
    %475 = arith.addf %468, %474 : vector<3x256xf32>
    %c4_463 = arith.constant 4 : index
    %c1_464 = arith.constant 1 : index
    %c0_465 = arith.constant 0 : index
    %476 = vector.load %arg9[%c4_463, %c1_464, %c0_465] : memref<6x6x128xf32, #tpu.memory_space<vmem>>, vector<1x3x128xf32>
    %477 = vector.shape_cast %476 : vector<1x3x128xf32> to vector<3x128xf32>
    %478 = arith.truncf %477 : vector<3x128xf32> to vector<3x128xbf16>
    %c9_466 = arith.constant 9 : index
    %c0_467 = arith.constant 0 : index
    %c0_468 = arith.constant 0 : index
    %479 = vector.load %arg5[%c9_466, %c0_467, %c0_468] : memref<16x128x256xbf16, #tpu.memory_space<vmem>>, vector<1x128x256xbf16>
    %480 = vector.shape_cast %479 : vector<1x128x256xbf16> to vector<128x256xbf16>
    %cst_469 = arith.constant dense<0.000000e+00> : vector<3x256xf32>
    %481 = tpu.matmul %478, %480, %cst_469 {dimension_numbers = #tpu.dot_dimension_numbers<[1], [0], [0], [1], [0, 0, 1, 1], [], []>} : vector<3x128xbf16>, vector<128x256xbf16>, vector<3x256xf32> -> vector<3x256xf32>
    %482 = arith.addf %475, %481 : vector<3x256xf32>
    %c4_470 = arith.constant 4 : index
    %c2_471 = arith.constant 2 : index
    %c0_472 = arith.constant 0 : index
    %483 = vector.load %arg9[%c4_470, %c2_471, %c0_472] : memref<6x6x128xf32, #tpu.memory_space<vmem>>, vector<1x3x128xf32>
    %484 = vector.shape_cast %483 : vector<1x3x128xf32> to vector<3x128xf32>
    %485 = arith.truncf %484 : vector<3x128xf32> to vector<3x128xbf16>
    %c10_473 = arith.constant 10 : index
    %c0_474 = arith.constant 0 : index
    %c0_475 = arith.constant 0 : index
    %486 = vector.load %arg5[%c10_473, %c0_474, %c0_475] : memref<16x128x256xbf16, #tpu.memory_space<vmem>>, vector<1x128x256xbf16>
    %487 = vector.shape_cast %486 : vector<1x128x256xbf16> to vector<128x256xbf16>
    %cst_476 = arith.constant dense<0.000000e+00> : vector<3x256xf32>
    %488 = tpu.matmul %485, %487, %cst_476 {dimension_numbers = #tpu.dot_dimension_numbers<[1], [0], [0], [1], [0, 0, 1, 1], [], []>} : vector<3x128xbf16>, vector<128x256xbf16>, vector<3x256xf32> -> vector<3x256xf32>
    %489 = arith.addf %482, %488 : vector<3x256xf32>
    %c4_477 = arith.constant 4 : index
    %c3_478 = arith.constant 3 : index
    %c0_479 = arith.constant 0 : index
    %490 = vector.load %arg9[%c4_477, %c3_478, %c0_479] : memref<6x6x128xf32, #tpu.memory_space<vmem>>, vector<1x3x128xf32>
    %491 = vector.shape_cast %490 : vector<1x3x128xf32> to vector<3x128xf32>
    %492 = arith.truncf %491 : vector<3x128xf32> to vector<3x128xbf16>
    %c11_480 = arith.constant 11 : index
    %c0_481 = arith.constant 0 : index
    %c0_482 = arith.constant 0 : index
    %493 = vector.load %arg5[%c11_480, %c0_481, %c0_482] : memref<16x128x256xbf16, #tpu.memory_space<vmem>>, vector<1x128x256xbf16>
    %494 = vector.shape_cast %493 : vector<1x128x256xbf16> to vector<128x256xbf16>
    %cst_483 = arith.constant dense<0.000000e+00> : vector<3x256xf32>
    %495 = tpu.matmul %492, %494, %cst_483 {dimension_numbers = #tpu.dot_dimension_numbers<[1], [0], [0], [1], [0, 0, 1, 1], [], []>} : vector<3x128xbf16>, vector<128x256xbf16>, vector<3x256xf32> -> vector<3x256xf32>
    %496 = arith.addf %489, %495 : vector<3x256xf32>
    %c5_484 = arith.constant 5 : index
    %c0_485 = arith.constant 0 : index
    %c0_486 = arith.constant 0 : index
    %497 = vector.load %arg9[%c5_484, %c0_485, %c0_486] : memref<6x6x128xf32, #tpu.memory_space<vmem>>, vector<1x3x128xf32>
    %498 = vector.shape_cast %497 : vector<1x3x128xf32> to vector<3x128xf32>
    %499 = arith.truncf %498 : vector<3x128xf32> to vector<3x128xbf16>
    %c12_487 = arith.constant 12 : index
    %c0_488 = arith.constant 0 : index
    %c0_489 = arith.constant 0 : index
    %500 = vector.load %arg5[%c12_487, %c0_488, %c0_489] : memref<16x128x256xbf16, #tpu.memory_space<vmem>>, vector<1x128x256xbf16>
    %501 = vector.shape_cast %500 : vector<1x128x256xbf16> to vector<128x256xbf16>
    %cst_490 = arith.constant dense<0.000000e+00> : vector<3x256xf32>
    %502 = tpu.matmul %499, %501, %cst_490 {dimension_numbers = #tpu.dot_dimension_numbers<[1], [0], [0], [1], [0, 0, 1, 1], [], []>} : vector<3x128xbf16>, vector<128x256xbf16>, vector<3x256xf32> -> vector<3x256xf32>
    %503 = arith.addf %496, %502 : vector<3x256xf32>
    %c5_491 = arith.constant 5 : index
    %c1_492 = arith.constant 1 : index
    %c0_493 = arith.constant 0 : index
    %504 = vector.load %arg9[%c5_491, %c1_492, %c0_493] : memref<6x6x128xf32, #tpu.memory_space<vmem>>, vector<1x3x128xf32>
    %505 = vector.shape_cast %504 : vector<1x3x128xf32> to vector<3x128xf32>
    %506 = arith.truncf %505 : vector<3x128xf32> to vector<3x128xbf16>
    %c13_494 = arith.constant 13 : index
    %c0_495 = arith.constant 0 : index
    %c0_496 = arith.constant 0 : index
    %507 = vector.load %arg5[%c13_494, %c0_495, %c0_496] : memref<16x128x256xbf16, #tpu.memory_space<vmem>>, vector<1x128x256xbf16>
    %508 = vector.shape_cast %507 : vector<1x128x256xbf16> to vector<128x256xbf16>
    %cst_497 = arith.constant dense<0.000000e+00> : vector<3x256xf32>
    %509 = tpu.matmul %506, %508, %cst_497 {dimension_numbers = #tpu.dot_dimension_numbers<[1], [0], [0], [1], [0, 0, 1, 1], [], []>} : vector<3x128xbf16>, vector<128x256xbf16>, vector<3x256xf32> -> vector<3x256xf32>
    %510 = arith.addf %503, %509 : vector<3x256xf32>
    %c5_498 = arith.constant 5 : index
    %c2_499 = arith.constant 2 : index
    %c0_500 = arith.constant 0 : index
    %511 = vector.load %arg9[%c5_498, %c2_499, %c0_500] : memref<6x6x128xf32, #tpu.memory_space<vmem>>, vector<1x3x128xf32>
    %512 = vector.shape_cast %511 : vector<1x3x128xf32> to vector<3x128xf32>
    %513 = arith.truncf %512 : vector<3x128xf32> to vector<3x128xbf16>
    %c14_501 = arith.constant 14 : index
    %c0_502 = arith.constant 0 : index
    %c0_503 = arith.constant 0 : index
    %514 = vector.load %arg5[%c14_501, %c0_502, %c0_503] : memref<16x128x256xbf16, #tpu.memory_space<vmem>>, vector<1x128x256xbf16>
    %515 = vector.shape_cast %514 : vector<1x128x256xbf16> to vector<128x256xbf16>
    %cst_504 = arith.constant dense<0.000000e+00> : vector<3x256xf32>
    %516 = tpu.matmul %513, %515, %cst_504 {dimension_numbers = #tpu.dot_dimension_numbers<[1], [0], [0], [1], [0, 0, 1, 1], [], []>} : vector<3x128xbf16>, vector<128x256xbf16>, vector<3x256xf32> -> vector<3x256xf32>
    %517 = arith.addf %510, %516 : vector<3x256xf32>
    %c5_505 = arith.constant 5 : index
    %c3_506 = arith.constant 3 : index
    %c0_507 = arith.constant 0 : index
    %518 = vector.load %arg9[%c5_505, %c3_506, %c0_507] : memref<6x6x128xf32, #tpu.memory_space<vmem>>, vector<1x3x128xf32>
    %519 = vector.shape_cast %518 : vector<1x3x128xf32> to vector<3x128xf32>
    %520 = arith.truncf %519 : vector<3x128xf32> to vector<3x128xbf16>
    %c15_508 = arith.constant 15 : index
    %c0_509 = arith.constant 0 : index
    %c0_510 = arith.constant 0 : index
    %521 = vector.load %arg5[%c15_508, %c0_509, %c0_510] : memref<16x128x256xbf16, #tpu.memory_space<vmem>>, vector<1x128x256xbf16>
    %522 = vector.shape_cast %521 : vector<1x128x256xbf16> to vector<128x256xbf16>
    %cst_511 = arith.constant dense<0.000000e+00> : vector<3x256xf32>
    %523 = tpu.matmul %520, %522, %cst_511 {dimension_numbers = #tpu.dot_dimension_numbers<[1], [0], [0], [1], [0, 0, 1, 1], [], []>} : vector<3x128xbf16>, vector<128x256xbf16>, vector<3x256xf32> -> vector<3x256xf32>
    %524 = arith.addf %517, %523 : vector<3x256xf32>
    %cst_512 = arith.constant 0.000000e+00 : f32
    %525 = vector.broadcast %cst_512 : f32 to vector<3x256xf32>
    %526 = arith.cmpf oge, %524, %525 : vector<3x256xf32>
    %cst_513 = arith.constant 2.000000e-01 : f32
    %527 = vector.broadcast %cst_513 : f32 to vector<3x256xf32>
    %528 = arith.mulf %527, %524 : vector<3x256xf32>
    %529 = arith.select %526, %524, %528 : vector<3x256xi1>, vector<3x256xf32>
    %c3_514 = arith.constant 3 : index
    %c1_515 = arith.constant 1 : index
    %c0_516 = arith.constant 0 : index
    %530 = vector.load %arg10[%c3_514, %c1_515, %c0_516] : memref<5x5x256xf32, #tpu.memory_space<vmem>>, vector<1x3x256xf32>
    %531 = vector.shape_cast %530 : vector<1x3x256xf32> to vector<3x256xf32>
    %532 = vector.shape_cast %529 : vector<3x256xf32> to vector<1x3x256xf32>
    tpu.vector_store %arg10[%c3_514, %c1_515, %c0_516], %532 {strides = array<i32>} : memref<5x5x256xf32, #tpu.memory_space<vmem>>, vector<1x3x256xf32>,
    %c0_517 = arith.constant 0 : index
    %c0_518 = arith.constant 0 : index
    %533 = vector.load %arg7[%c0_517, %c0_518] : memref<1x1xf32, #tpu.memory_space<vmem>>, vector<1x1xf32>
    %cst_519 = arith.constant 0.000000e+00 : f32
    %534 = vector.broadcast %cst_519 : f32 to vector<2x1xf32>
    %c0_520 = arith.constant 0 : index
    %c0_521 = arith.constant 0 : index
    %c0_522 = arith.constant 0 : index
    %535 = vector.load %arg10[%c0_520, %c0_521, %c0_522] : memref<5x5x256xf32, #tpu.memory_space<vmem>>, vector<1x2x256xf32>
    %536 = vector.shape_cast %535 : vector<1x2x256xf32> to vector<2x256xf32>
    %c0_523 = arith.constant 0 : index
    %c0_524 = arith.constant 0 : index
    %537 = vector.load %arg6[%c0_523, %c0_524] : memref<16x256xf32, #tpu.memory_space<vmem>>, vector<1x256xf32>
    %538 = vector.broadcast %537 : vector<1x256xf32> to vector<2x256xf32>
    %539 = arith.mulf %536, %538 : vector<2x256xf32>
    %cst_525 = arith.constant dense<0.000000e+00> : vector<2xf32>
    %540 = vector.multi_reduction <add>, %539, %cst_525 [1] : vector<2x256xf32> to vector<2xf32>
    %541 = vector.shape_cast %540 : vector<2xf32> to vector<2x1xf32>
    %542 = arith.addf %534, %541 : vector<2x1xf32>
    %c0_526 = arith.constant 0 : index
    %c1_527 = arith.constant 1 : index
    %c0_528 = arith.constant 0 : index
    %543 = vector.load %arg10[%c0_526, %c1_527, %c0_528] : memref<5x5x256xf32, #tpu.memory_space<vmem>>, vector<1x2x256xf32>
    %544 = vector.shape_cast %543 : vector<1x2x256xf32> to vector<2x256xf32>
    %c1_529 = arith.constant 1 : index
    %c0_530 = arith.constant 0 : index
    %545 = vector.load %arg6[%c1_529, %c0_530] : memref<16x256xf32, #tpu.memory_space<vmem>>, vector<1x256xf32>
    %546 = vector.broadcast %545 : vector<1x256xf32> to vector<2x256xf32>
    %547 = arith.mulf %544, %546 : vector<2x256xf32>
    %cst_531 = arith.constant dense<0.000000e+00> : vector<2xf32>
    %548 = vector.multi_reduction <add>, %547, %cst_531 [1] : vector<2x256xf32> to vector<2xf32>
    %549 = vector.shape_cast %548 : vector<2xf32> to vector<2x1xf32>
    %550 = arith.addf %542, %549 : vector<2x1xf32>
    %c0_532 = arith.constant 0 : index
    %c2_533 = arith.constant 2 : index
    %c0_534 = arith.constant 0 : index
    %551 = vector.load %arg10[%c0_532, %c2_533, %c0_534] : memref<5x5x256xf32, #tpu.memory_space<vmem>>, vector<1x2x256xf32>
    %552 = vector.shape_cast %551 : vector<1x2x256xf32> to vector<2x256xf32>
    %c2_535 = arith.constant 2 : index
    %c0_536 = arith.constant 0 : index
    %553 = vector.load %arg6[%c2_535, %c0_536] : memref<16x256xf32, #tpu.memory_space<vmem>>, vector<1x256xf32>
    %554 = vector.broadcast %553 : vector<1x256xf32> to vector<2x256xf32>
    %555 = arith.mulf %552, %554 : vector<2x256xf32>
    %cst_537 = arith.constant dense<0.000000e+00> : vector<2xf32>
    %556 = vector.multi_reduction <add>, %555, %cst_537 [1] : vector<2x256xf32> to vector<2xf32>
    %557 = vector.shape_cast %556 : vector<2xf32> to vector<2x1xf32>
    %558 = arith.addf %550, %557 : vector<2x1xf32>
    %c0_538 = arith.constant 0 : index
    %c3_539 = arith.constant 3 : index
    %c0_540 = arith.constant 0 : index
    %559 = vector.load %arg10[%c0_538, %c3_539, %c0_540] : memref<5x5x256xf32, #tpu.memory_space<vmem>>, vector<1x2x256xf32>
    %560 = vector.shape_cast %559 : vector<1x2x256xf32> to vector<2x256xf32>
    %c3_541 = arith.constant 3 : index
    %c0_542 = arith.constant 0 : index
    %561 = vector.load %arg6[%c3_541, %c0_542] : memref<16x256xf32, #tpu.memory_space<vmem>>, vector<1x256xf32>
    %562 = vector.broadcast %561 : vector<1x256xf32> to vector<2x256xf32>
    %563 = arith.mulf %560, %562 : vector<2x256xf32>
    %cst_543 = arith.constant dense<0.000000e+00> : vector<2xf32>
    %564 = vector.multi_reduction <add>, %563, %cst_543 [1] : vector<2x256xf32> to vector<2xf32>
    %565 = vector.shape_cast %564 : vector<2xf32> to vector<2x1xf32>
    %566 = arith.addf %558, %565 : vector<2x1xf32>
    %c1_544 = arith.constant 1 : index
    %c0_545 = arith.constant 0 : index
    %c0_546 = arith.constant 0 : index
    %567 = vector.load %arg10[%c1_544, %c0_545, %c0_546] : memref<5x5x256xf32, #tpu.memory_space<vmem>>, vector<1x2x256xf32>
    %568 = vector.shape_cast %567 : vector<1x2x256xf32> to vector<2x256xf32>
    %c4_547 = arith.constant 4 : index
    %c0_548 = arith.constant 0 : index
    %569 = vector.load %arg6[%c4_547, %c0_548] : memref<16x256xf32, #tpu.memory_space<vmem>>, vector<1x256xf32>
    %570 = vector.broadcast %569 : vector<1x256xf32> to vector<2x256xf32>
    %571 = arith.mulf %568, %570 : vector<2x256xf32>
    %cst_549 = arith.constant dense<0.000000e+00> : vector<2xf32>
    %572 = vector.multi_reduction <add>, %571, %cst_549 [1] : vector<2x256xf32> to vector<2xf32>
    %573 = vector.shape_cast %572 : vector<2xf32> to vector<2x1xf32>
    %574 = arith.addf %566, %573 : vector<2x1xf32>
    %c1_550 = arith.constant 1 : index
    %c1_551 = arith.constant 1 : index
    %c0_552 = arith.constant 0 : index
    %575 = vector.load %arg10[%c1_550, %c1_551, %c0_552] : memref<5x5x256xf32, #tpu.memory_space<vmem>>, vector<1x2x256xf32>
    %576 = vector.shape_cast %575 : vector<1x2x256xf32> to vector<2x256xf32>
    %c5_553 = arith.constant 5 : index
    %c0_554 = arith.constant 0 : index
    %577 = vector.load %arg6[%c5_553, %c0_554] : memref<16x256xf32, #tpu.memory_space<vmem>>, vector<1x256xf32>
    %578 = vector.broadcast %577 : vector<1x256xf32> to vector<2x256xf32>
    %579 = arith.mulf %576, %578 : vector<2x256xf32>
    %cst_555 = arith.constant dense<0.000000e+00> : vector<2xf32>
    %580 = vector.multi_reduction <add>, %579, %cst_555 [1] : vector<2x256xf32> to vector<2xf32>
    %581 = vector.shape_cast %580 : vector<2xf32> to vector<2x1xf32>
    %582 = arith.addf %574, %581 : vector<2x1xf32>
    %c1_556 = arith.constant 1 : index
    %c2_557 = arith.constant 2 : index
    %c0_558 = arith.constant 0 : index
    %583 = vector.load %arg10[%c1_556, %c2_557, %c0_558] : memref<5x5x256xf32, #tpu.memory_space<vmem>>, vector<1x2x256xf32>
    %584 = vector.shape_cast %583 : vector<1x2x256xf32> to vector<2x256xf32>
    %c6_559 = arith.constant 6 : index
    %c0_560 = arith.constant 0 : index
    %585 = vector.load %arg6[%c6_559, %c0_560] : memref<16x256xf32, #tpu.memory_space<vmem>>, vector<1x256xf32>
    %586 = vector.broadcast %585 : vector<1x256xf32> to vector<2x256xf32>
    %587 = arith.mulf %584, %586 : vector<2x256xf32>
    %cst_561 = arith.constant dense<0.000000e+00> : vector<2xf32>
    %588 = vector.multi_reduction <add>, %587, %cst_561 [1] : vector<2x256xf32> to vector<2xf32>
    %589 = vector.shape_cast %588 : vector<2xf32> to vector<2x1xf32>
    %590 = arith.addf %582, %589 : vector<2x1xf32>
    %c1_562 = arith.constant 1 : index
    %c3_563 = arith.constant 3 : index
    %c0_564 = arith.constant 0 : index
    %591 = vector.load %arg10[%c1_562, %c3_563, %c0_564] : memref<5x5x256xf32, #tpu.memory_space<vmem>>, vector<1x2x256xf32>
    %592 = vector.shape_cast %591 : vector<1x2x256xf32> to vector<2x256xf32>
    %c7_565 = arith.constant 7 : index
    %c0_566 = arith.constant 0 : index
    %593 = vector.load %arg6[%c7_565, %c0_566] : memref<16x256xf32, #tpu.memory_space<vmem>>, vector<1x256xf32>
    %594 = vector.broadcast %593 : vector<1x256xf32> to vector<2x256xf32>
    %595 = arith.mulf %592, %594 : vector<2x256xf32>
    %cst_567 = arith.constant dense<0.000000e+00> : vector<2xf32>
    %596 = vector.multi_reduction <add>, %595, %cst_567 [1] : vector<2x256xf32> to vector<2xf32>
    %597 = vector.shape_cast %596 : vector<2xf32> to vector<2x1xf32>
    %598 = arith.addf %590, %597 : vector<2x1xf32>
    %c2_568 = arith.constant 2 : index
    %c0_569 = arith.constant 0 : index
    %c0_570 = arith.constant 0 : index
    %599 = vector.load %arg10[%c2_568, %c0_569, %c0_570] : memref<5x5x256xf32, #tpu.memory_space<vmem>>, vector<1x2x256xf32>
    %600 = vector.shape_cast %599 : vector<1x2x256xf32> to vector<2x256xf32>
    %c8_571 = arith.constant 8 : index
    %c0_572 = arith.constant 0 : index
    %601 = vector.load %arg6[%c8_571, %c0_572] : memref<16x256xf32, #tpu.memory_space<vmem>>, vector<1x256xf32>
    %602 = vector.broadcast %601 : vector<1x256xf32> to vector<2x256xf32>
    %603 = arith.mulf %600, %602 : vector<2x256xf32>
    %cst_573 = arith.constant dense<0.000000e+00> : vector<2xf32>
    %604 = vector.multi_reduction <add>, %603, %cst_573 [1] : vector<2x256xf32> to vector<2xf32>
    %605 = vector.shape_cast %604 : vector<2xf32> to vector<2x1xf32>
    %606 = arith.addf %598, %605 : vector<2x1xf32>
    %c2_574 = arith.constant 2 : index
    %c1_575 = arith.constant 1 : index
    %c0_576 = arith.constant 0 : index
    %607 = vector.load %arg10[%c2_574, %c1_575, %c0_576] : memref<5x5x256xf32, #tpu.memory_space<vmem>>, vector<1x2x256xf32>
    %608 = vector.shape_cast %607 : vector<1x2x256xf32> to vector<2x256xf32>
    %c9_577 = arith.constant 9 : index
    %c0_578 = arith.constant 0 : index
    %609 = vector.load %arg6[%c9_577, %c0_578] : memref<16x256xf32, #tpu.memory_space<vmem>>, vector<1x256xf32>
    %610 = vector.broadcast %609 : vector<1x256xf32> to vector<2x256xf32>
    %611 = arith.mulf %608, %610 : vector<2x256xf32>
    %cst_579 = arith.constant dense<0.000000e+00> : vector<2xf32>
    %612 = vector.multi_reduction <add>, %611, %cst_579 [1] : vector<2x256xf32> to vector<2xf32>
    %613 = vector.shape_cast %612 : vector<2xf32> to vector<2x1xf32>
    %614 = arith.addf %606, %613 : vector<2x1xf32>
    %c2_580 = arith.constant 2 : index
    %c2_581 = arith.constant 2 : index
    %c0_582 = arith.constant 0 : index
    %615 = vector.load %arg10[%c2_580, %c2_581, %c0_582] : memref<5x5x256xf32, #tpu.memory_space<vmem>>, vector<1x2x256xf32>
    %616 = vector.shape_cast %615 : vector<1x2x256xf32> to vector<2x256xf32>
    %c10_583 = arith.constant 10 : index
    %c0_584 = arith.constant 0 : index
    %617 = vector.load %arg6[%c10_583, %c0_584] : memref<16x256xf32, #tpu.memory_space<vmem>>, vector<1x256xf32>
    %618 = vector.broadcast %617 : vector<1x256xf32> to vector<2x256xf32>
    %619 = arith.mulf %616, %618 : vector<2x256xf32>
    %cst_585 = arith.constant dense<0.000000e+00> : vector<2xf32>
    %620 = vector.multi_reduction <add>, %619, %cst_585 [1] : vector<2x256xf32> to vector<2xf32>
    %621 = vector.shape_cast %620 : vector<2xf32> to vector<2x1xf32>
    %622 = arith.addf %614, %621 : vector<2x1xf32>
    %c2_586 = arith.constant 2 : index
    %c3_587 = arith.constant 3 : index
    %c0_588 = arith.constant 0 : index
    %623 = vector.load %arg10[%c2_586, %c3_587, %c0_588] : memref<5x5x256xf32, #tpu.memory_space<vmem>>, vector<1x2x256xf32>
    %624 = vector.shape_cast %623 : vector<1x2x256xf32> to vector<2x256xf32>
    %c11_589 = arith.constant 11 : index
    %c0_590 = arith.constant 0 : index
    %625 = vector.load %arg6[%c11_589, %c0_590] : memref<16x256xf32, #tpu.memory_space<vmem>>, vector<1x256xf32>
    %626 = vector.broadcast %625 : vector<1x256xf32> to vector<2x256xf32>
    %627 = arith.mulf %624, %626 : vector<2x256xf32>
    %cst_591 = arith.constant dense<0.000000e+00> : vector<2xf32>
    %628 = vector.multi_reduction <add>, %627, %cst_591 [1] : vector<2x256xf32> to vector<2xf32>
    %629 = vector.shape_cast %628 : vector<2xf32> to vector<2x1xf32>
    %630 = arith.addf %622, %629 : vector<2x1xf32>
    %c3_592 = arith.constant 3 : index
    %c0_593 = arith.constant 0 : index
    %c0_594 = arith.constant 0 : index
    %631 = vector.load %arg10[%c3_592, %c0_593, %c0_594] : memref<5x5x256xf32, #tpu.memory_space<vmem>>, vector<1x2x256xf32>
    %632 = vector.shape_cast %631 : vector<1x2x256xf32> to vector<2x256xf32>
    %c12_595 = arith.constant 12 : index
    %c0_596 = arith.constant 0 : index
    %633 = vector.load %arg6[%c12_595, %c0_596] : memref<16x256xf32, #tpu.memory_space<vmem>>, vector<1x256xf32>
    %634 = vector.broadcast %633 : vector<1x256xf32> to vector<2x256xf32>
    %635 = arith.mulf %632, %634 : vector<2x256xf32>
    %cst_597 = arith.constant dense<0.000000e+00> : vector<2xf32>
    %636 = vector.multi_reduction <add>, %635, %cst_597 [1] : vector<2x256xf32> to vector<2xf32>
    %637 = vector.shape_cast %636 : vector<2xf32> to vector<2x1xf32>
    %638 = arith.addf %630, %637 : vector<2x1xf32>
    %c3_598 = arith.constant 3 : index
    %c1_599 = arith.constant 1 : index
    %c0_600 = arith.constant 0 : index
    %639 = vector.load %arg10[%c3_598, %c1_599, %c0_600] : memref<5x5x256xf32, #tpu.memory_space<vmem>>, vector<1x2x256xf32>
    %640 = vector.shape_cast %639 : vector<1x2x256xf32> to vector<2x256xf32>
    %c13_601 = arith.constant 13 : index
    %c0_602 = arith.constant 0 : index
    %641 = vector.load %arg6[%c13_601, %c0_602] : memref<16x256xf32, #tpu.memory_space<vmem>>, vector<1x256xf32>
    %642 = vector.broadcast %641 : vector<1x256xf32> to vector<2x256xf32>
    %643 = arith.mulf %640, %642 : vector<2x256xf32>
    %cst_603 = arith.constant dense<0.000000e+00> : vector<2xf32>
    %644 = vector.multi_reduction <add>, %643, %cst_603 [1] : vector<2x256xf32> to vector<2xf32>
    %645 = vector.shape_cast %644 : vector<2xf32> to vector<2x1xf32>
    %646 = arith.addf %638, %645 : vector<2x1xf32>
    %c3_604 = arith.constant 3 : index
    %c2_605 = arith.constant 2 : index
    %c0_606 = arith.constant 0 : index
    %647 = vector.load %arg10[%c3_604, %c2_605, %c0_606] : memref<5x5x256xf32, #tpu.memory_space<vmem>>, vector<1x2x256xf32>
    %648 = vector.shape_cast %647 : vector<1x2x256xf32> to vector<2x256xf32>
    %c14_607 = arith.constant 14 : index
    %c0_608 = arith.constant 0 : index
    %649 = vector.load %arg6[%c14_607, %c0_608] : memref<16x256xf32, #tpu.memory_space<vmem>>, vector<1x256xf32>
    %650 = vector.broadcast %649 : vector<1x256xf32> to vector<2x256xf32>
    %651 = arith.mulf %648, %650 : vector<2x256xf32>
    %cst_609 = arith.constant dense<0.000000e+00> : vector<2xf32>
    %652 = vector.multi_reduction <add>, %651, %cst_609 [1] : vector<2x256xf32> to vector<2xf32>
    %653 = vector.shape_cast %652 : vector<2xf32> to vector<2x1xf32>
    %654 = arith.addf %646, %653 : vector<2x1xf32>
    %c3_610 = arith.constant 3 : index
    %c3_611 = arith.constant 3 : index
    %c0_612 = arith.constant 0 : index
    %655 = vector.load %arg10[%c3_610, %c3_611, %c0_612] : memref<5x5x256xf32, #tpu.memory_space<vmem>>, vector<1x2x256xf32>
    %656 = vector.shape_cast %655 : vector<1x2x256xf32> to vector<2x256xf32>
    %c15_613 = arith.constant 15 : index
    %c0_614 = arith.constant 0 : index
    %657 = vector.load %arg6[%c15_613, %c0_614] : memref<16x256xf32, #tpu.memory_space<vmem>>, vector<1x256xf32>
    %658 = vector.broadcast %657 : vector<1x256xf32> to vector<2x256xf32>
    %659 = arith.mulf %656, %658 : vector<2x256xf32>
    %cst_615 = arith.constant dense<0.000000e+00> : vector<2xf32>
    %660 = vector.multi_reduction <add>, %659, %cst_615 [1] : vector<2x256xf32> to vector<2xf32>
    %661 = vector.shape_cast %660 : vector<2xf32> to vector<2x1xf32>
    %662 = arith.addf %654, %661 : vector<2x1xf32>
    %663 = vector.broadcast %533 : vector<1x1xf32> to vector<2x1xf32>
    %664 = arith.addf %662, %663 : vector<2x1xf32>
    %665 = math.absf %664 : vector<2x1xf32>
    %cst_616 = arith.constant 0.000000e+00 : f32
    %666 = vector.broadcast %cst_616 : f32 to vector<2x1xf32>
    %667 = arith.subf %666, %665 : vector<2x1xf32>
    %668 = math.exp %667 : vector<2x1xf32>
    %cst_617 = arith.constant 0.000000e+00 : f32
    %669 = vector.broadcast %cst_617 : f32 to vector<2x1xf32>
    %670 = arith.cmpf oge, %664, %669 : vector<2x1xf32>
    %cst_618 = arith.constant 1.000000e+00 : f32
    %671 = vector.broadcast %cst_618 : f32 to vector<2x1xf32>
    %672 = arith.addf %671, %668 : vector<2x1xf32>
    %cst_619 = arith.constant 1.000000e+00 : f32
    %673 = vector.broadcast %cst_619 : f32 to vector<2x1xf32>
    %674 = arith.divf %673, %672 : vector<2x1xf32>
    %cst_620 = arith.constant 1.000000e+00 : f32
    %675 = vector.broadcast %cst_620 : f32 to vector<2x1xf32>
    %676 = arith.addf %675, %668 : vector<2x1xf32>
    %677 = arith.divf %668, %676 : vector<2x1xf32>
    %678 = arith.select %670, %674, %677 : vector<2x1xi1>, vector<2x1xf32>
    %c0_621 = arith.constant 0 : index
    %c0_622 = arith.constant 0 : index
    %c0_623 = arith.constant 0 : index
    %c0_624 = arith.constant 0 : index
    %679 = vector.load %arg8[%c0_621, %c0_622, %c0_623, %c0_624] : memref<1x2x2x1xf32, #tpu.memory_space<vmem>>, vector<1x1x2x1xf32>
    %680 = vector.shape_cast %679 : vector<1x1x2x1xf32> to vector<2x1xf32>
    %681 = vector.shape_cast %678 : vector<2x1xf32> to vector<1x1x2x1xf32>
    tpu.vector_store %arg8[%c0_621, %c0_622, %c0_623, %c0_624], %681 {strides = array<i32>} : memref<1x2x2x1xf32, #tpu.memory_space<vmem>>, vector<1x1x2x1xf32>,
    %cst_625 = arith.constant 0.000000e+00 : f32
    %682 = vector.broadcast %cst_625 : f32 to vector<2x1xf32>
    %c1_626 = arith.constant 1 : index
    %c0_627 = arith.constant 0 : index
    %c0_628 = arith.constant 0 : index
    %683 = vector.load %arg10[%c1_626, %c0_627, %c0_628] : memref<5x5x256xf32, #tpu.memory_space<vmem>>, vector<1x2x256xf32>
    %684 = vector.shape_cast %683 : vector<1x2x256xf32> to vector<2x256xf32>
    %c0_629 = arith.constant 0 : index
    %c0_630 = arith.constant 0 : index
    %685 = vector.load %arg6[%c0_629, %c0_630] : memref<16x256xf32, #tpu.memory_space<vmem>>, vector<1x256xf32>
    %686 = vector.broadcast %685 : vector<1x256xf32> to vector<2x256xf32>
    %687 = arith.mulf %684, %686 : vector<2x256xf32>
    %cst_631 = arith.constant dense<0.000000e+00> : vector<2xf32>
    %688 = vector.multi_reduction <add>, %687, %cst_631 [1] : vector<2x256xf32> to vector<2xf32>
    %689 = vector.shape_cast %688 : vector<2xf32> to vector<2x1xf32>
    %690 = arith.addf %682, %689 : vector<2x1xf32>
    %c1_632 = arith.constant 1 : index
    %c1_633 = arith.constant 1 : index
    %c0_634 = arith.constant 0 : index
    %691 = vector.load %arg10[%c1_632, %c1_633, %c0_634] : memref<5x5x256xf32, #tpu.memory_space<vmem>>, vector<1x2x256xf32>
    %692 = vector.shape_cast %691 : vector<1x2x256xf32> to vector<2x256xf32>
    %c1_635 = arith.constant 1 : index
    %c0_636 = arith.constant 0 : index
    %693 = vector.load %arg6[%c1_635, %c0_636] : memref<16x256xf32, #tpu.memory_space<vmem>>, vector<1x256xf32>
    %694 = vector.broadcast %693 : vector<1x256xf32> to vector<2x256xf32>
    %695 = arith.mulf %692, %694 : vector<2x256xf32>
    %cst_637 = arith.constant dense<0.000000e+00> : vector<2xf32>
    %696 = vector.multi_reduction <add>, %695, %cst_637 [1] : vector<2x256xf32> to vector<2xf32>
    %697 = vector.shape_cast %696 : vector<2xf32> to vector<2x1xf32>
    %698 = arith.addf %690, %697 : vector<2x1xf32>
    %c1_638 = arith.constant 1 : index
    %c2_639 = arith.constant 2 : index
    %c0_640 = arith.constant 0 : index
    %699 = vector.load %arg10[%c1_638, %c2_639, %c0_640] : memref<5x5x256xf32, #tpu.memory_space<vmem>>, vector<1x2x256xf32>
    %700 = vector.shape_cast %699 : vector<1x2x256xf32> to vector<2x256xf32>
    %c2_641 = arith.constant 2 : index
    %c0_642 = arith.constant 0 : index
    %701 = vector.load %arg6[%c2_641, %c0_642] : memref<16x256xf32, #tpu.memory_space<vmem>>, vector<1x256xf32>
    %702 = vector.broadcast %701 : vector<1x256xf32> to vector<2x256xf32>
    %703 = arith.mulf %700, %702 : vector<2x256xf32>
    %cst_643 = arith.constant dense<0.000000e+00> : vector<2xf32>
    %704 = vector.multi_reduction <add>, %703, %cst_643 [1] : vector<2x256xf32> to vector<2xf32>
    %705 = vector.shape_cast %704 : vector<2xf32> to vector<2x1xf32>
    %706 = arith.addf %698, %705 : vector<2x1xf32>
    %c1_644 = arith.constant 1 : index
    %c3_645 = arith.constant 3 : index
    %c0_646 = arith.constant 0 : index
    %707 = vector.load %arg10[%c1_644, %c3_645, %c0_646] : memref<5x5x256xf32, #tpu.memory_space<vmem>>, vector<1x2x256xf32>
    %708 = vector.shape_cast %707 : vector<1x2x256xf32> to vector<2x256xf32>
    %c3_647 = arith.constant 3 : index
    %c0_648 = arith.constant 0 : index
    %709 = vector.load %arg6[%c3_647, %c0_648] : memref<16x256xf32, #tpu.memory_space<vmem>>, vector<1x256xf32>
    %710 = vector.broadcast %709 : vector<1x256xf32> to vector<2x256xf32>
    %711 = arith.mulf %708, %710 : vector<2x256xf32>
    %cst_649 = arith.constant dense<0.000000e+00> : vector<2xf32>
    %712 = vector.multi_reduction <add>, %711, %cst_649 [1] : vector<2x256xf32> to vector<2xf32>
    %713 = vector.shape_cast %712 : vector<2xf32> to vector<2x1xf32>
    %714 = arith.addf %706, %713 : vector<2x1xf32>
    %c2_650 = arith.constant 2 : index
    %c0_651 = arith.constant 0 : index
    %c0_652 = arith.constant 0 : index
    %715 = vector.load %arg10[%c2_650, %c0_651, %c0_652] : memref<5x5x256xf32, #tpu.memory_space<vmem>>, vector<1x2x256xf32>
    %716 = vector.shape_cast %715 : vector<1x2x256xf32> to vector<2x256xf32>
    %c4_653 = arith.constant 4 : index
    %c0_654 = arith.constant 0 : index
    %717 = vector.load %arg6[%c4_653, %c0_654] : memref<16x256xf32, #tpu.memory_space<vmem>>, vector<1x256xf32>
    %718 = vector.broadcast %717 : vector<1x256xf32> to vector<2x256xf32>
    %719 = arith.mulf %716, %718 : vector<2x256xf32>
    %cst_655 = arith.constant dense<0.000000e+00> : vector<2xf32>
    %720 = vector.multi_reduction <add>, %719, %cst_655 [1] : vector<2x256xf32> to vector<2xf32>
    %721 = vector.shape_cast %720 : vector<2xf32> to vector<2x1xf32>
    %722 = arith.addf %714, %721 : vector<2x1xf32>
    %c2_656 = arith.constant 2 : index
    %c1_657 = arith.constant 1 : index
    %c0_658 = arith.constant 0 : index
    %723 = vector.load %arg10[%c2_656, %c1_657, %c0_658] : memref<5x5x256xf32, #tpu.memory_space<vmem>>, vector<1x2x256xf32>
    %724 = vector.shape_cast %723 : vector<1x2x256xf32> to vector<2x256xf32>
    %c5_659 = arith.constant 5 : index
    %c0_660 = arith.constant 0 : index
    %725 = vector.load %arg6[%c5_659, %c0_660] : memref<16x256xf32, #tpu.memory_space<vmem>>, vector<1x256xf32>
    %726 = vector.broadcast %725 : vector<1x256xf32> to vector<2x256xf32>
    %727 = arith.mulf %724, %726 : vector<2x256xf32>
    %cst_661 = arith.constant dense<0.000000e+00> : vector<2xf32>
    %728 = vector.multi_reduction <add>, %727, %cst_661 [1] : vector<2x256xf32> to vector<2xf32>
    %729 = vector.shape_cast %728 : vector<2xf32> to vector<2x1xf32>
    %730 = arith.addf %722, %729 : vector<2x1xf32>
    %c2_662 = arith.constant 2 : index
    %c2_663 = arith.constant 2 : index
    %c0_664 = arith.constant 0 : index
    %731 = vector.load %arg10[%c2_662, %c2_663, %c0_664] : memref<5x5x256xf32, #tpu.memory_space<vmem>>, vector<1x2x256xf32>
    %732 = vector.shape_cast %731 : vector<1x2x256xf32> to vector<2x256xf32>
    %c6_665 = arith.constant 6 : index
    %c0_666 = arith.constant 0 : index
    %733 = vector.load %arg6[%c6_665, %c0_666] : memref<16x256xf32, #tpu.memory_space<vmem>>, vector<1x256xf32>
    %734 = vector.broadcast %733 : vector<1x256xf32> to vector<2x256xf32>
    %735 = arith.mulf %732, %734 : vector<2x256xf32>
    %cst_667 = arith.constant dense<0.000000e+00> : vector<2xf32>
    %736 = vector.multi_reduction <add>, %735, %cst_667 [1] : vector<2x256xf32> to vector<2xf32>
    %737 = vector.shape_cast %736 : vector<2xf32> to vector<2x1xf32>
    %738 = arith.addf %730, %737 : vector<2x1xf32>
    %c2_668 = arith.constant 2 : index
    %c3_669 = arith.constant 3 : index
    %c0_670 = arith.constant 0 : index
    %739 = vector.load %arg10[%c2_668, %c3_669, %c0_670] : memref<5x5x256xf32, #tpu.memory_space<vmem>>, vector<1x2x256xf32>
    %740 = vector.shape_cast %739 : vector<1x2x256xf32> to vector<2x256xf32>
    %c7_671 = arith.constant 7 : index
    %c0_672 = arith.constant 0 : index
    %741 = vector.load %arg6[%c7_671, %c0_672] : memref<16x256xf32, #tpu.memory_space<vmem>>, vector<1x256xf32>
    %742 = vector.broadcast %741 : vector<1x256xf32> to vector<2x256xf32>
    %743 = arith.mulf %740, %742 : vector<2x256xf32>
    %cst_673 = arith.constant dense<0.000000e+00> : vector<2xf32>
    %744 = vector.multi_reduction <add>, %743, %cst_673 [1] : vector<2x256xf32> to vector<2xf32>
    %745 = vector.shape_cast %744 : vector<2xf32> to vector<2x1xf32>
    %746 = arith.addf %738, %745 : vector<2x1xf32>
    %c3_674 = arith.constant 3 : index
    %c0_675 = arith.constant 0 : index
    %c0_676 = arith.constant 0 : index
    %747 = vector.load %arg10[%c3_674, %c0_675, %c0_676] : memref<5x5x256xf32, #tpu.memory_space<vmem>>, vector<1x2x256xf32>
    %748 = vector.shape_cast %747 : vector<1x2x256xf32> to vector<2x256xf32>
    %c8_677 = arith.constant 8 : index
    %c0_678 = arith.constant 0 : index
    %749 = vector.load %arg6[%c8_677, %c0_678] : memref<16x256xf32, #tpu.memory_space<vmem>>, vector<1x256xf32>
    %750 = vector.broadcast %749 : vector<1x256xf32> to vector<2x256xf32>
    %751 = arith.mulf %748, %750 : vector<2x256xf32>
    %cst_679 = arith.constant dense<0.000000e+00> : vector<2xf32>
    %752 = vector.multi_reduction <add>, %751, %cst_679 [1] : vector<2x256xf32> to vector<2xf32>
    %753 = vector.shape_cast %752 : vector<2xf32> to vector<2x1xf32>
    %754 = arith.addf %746, %753 : vector<2x1xf32>
    %c3_680 = arith.constant 3 : index
    %c1_681 = arith.constant 1 : index
    %c0_682 = arith.constant 0 : index
    %755 = vector.load %arg10[%c3_680, %c1_681, %c0_682] : memref<5x5x256xf32, #tpu.memory_space<vmem>>, vector<1x2x256xf32>
    %756 = vector.shape_cast %755 : vector<1x2x256xf32> to vector<2x256xf32>
    %c9_683 = arith.constant 9 : index
    %c0_684 = arith.constant 0 : index
    %757 = vector.load %arg6[%c9_683, %c0_684] : memref<16x256xf32, #tpu.memory_space<vmem>>, vector<1x256xf32>
    %758 = vector.broadcast %757 : vector<1x256xf32> to vector<2x256xf32>
    %759 = arith.mulf %756, %758 : vector<2x256xf32>
    %cst_685 = arith.constant dense<0.000000e+00> : vector<2xf32>
    %760 = vector.multi_reduction <add>, %759, %cst_685 [1] : vector<2x256xf32> to vector<2xf32>
    %761 = vector.shape_cast %760 : vector<2xf32> to vector<2x1xf32>
    %762 = arith.addf %754, %761 : vector<2x1xf32>
    %c3_686 = arith.constant 3 : index
    %c2_687 = arith.constant 2 : index
    %c0_688 = arith.constant 0 : index
    %763 = vector.load %arg10[%c3_686, %c2_687, %c0_688] : memref<5x5x256xf32, #tpu.memory_space<vmem>>, vector<1x2x256xf32>
    %764 = vector.shape_cast %763 : vector<1x2x256xf32> to vector<2x256xf32>
    %c10_689 = arith.constant 10 : index
    %c0_690 = arith.constant 0 : index
    %765 = vector.load %arg6[%c10_689, %c0_690] : memref<16x256xf32, #tpu.memory_space<vmem>>, vector<1x256xf32>
    %766 = vector.broadcast %765 : vector<1x256xf32> to vector<2x256xf32>
    %767 = arith.mulf %764, %766 : vector<2x256xf32>
    %cst_691 = arith.constant dense<0.000000e+00> : vector<2xf32>
    %768 = vector.multi_reduction <add>, %767, %cst_691 [1] : vector<2x256xf32> to vector<2xf32>
    %769 = vector.shape_cast %768 : vector<2xf32> to vector<2x1xf32>
    %770 = arith.addf %762, %769 : vector<2x1xf32>
    %c3_692 = arith.constant 3 : index
    %c3_693 = arith.constant 3 : index
    %c0_694 = arith.constant 0 : index
    %771 = vector.load %arg10[%c3_692, %c3_693, %c0_694] : memref<5x5x256xf32, #tpu.memory_space<vmem>>, vector<1x2x256xf32>
    %772 = vector.shape_cast %771 : vector<1x2x256xf32> to vector<2x256xf32>
    %c11_695 = arith.constant 11 : index
    %c0_696 = arith.constant 0 : index
    %773 = vector.load %arg6[%c11_695, %c0_696] : memref<16x256xf32, #tpu.memory_space<vmem>>, vector<1x256xf32>
    %774 = vector.broadcast %773 : vector<1x256xf32> to vector<2x256xf32>
    %775 = arith.mulf %772, %774 : vector<2x256xf32>
    %cst_697 = arith.constant dense<0.000000e+00> : vector<2xf32>
    %776 = vector.multi_reduction <add>, %775, %cst_697 [1] : vector<2x256xf32> to vector<2xf32>
    %777 = vector.shape_cast %776 : vector<2xf32> to vector<2x1xf32>
    %778 = arith.addf %770, %777 : vector<2x1xf32>
    %c4_698 = arith.constant 4 : index
    %c0_699 = arith.constant 0 : index
    %c0_700 = arith.constant 0 : index
    %779 = vector.load %arg10[%c4_698, %c0_699, %c0_700] : memref<5x5x256xf32, #tpu.memory_space<vmem>>, vector<1x2x256xf32>
    %780 = vector.shape_cast %779 : vector<1x2x256xf32> to vector<2x256xf32>
    %c12_701 = arith.constant 12 : index
    %c0_702 = arith.constant 0 : index
    %781 = vector.load %arg6[%c12_701, %c0_702] : memref<16x256xf32, #tpu.memory_space<vmem>>, vector<1x256xf32>
    %782 = vector.broadcast %781 : vector<1x256xf32> to vector<2x256xf32>
    %783 = arith.mulf %780, %782 : vector<2x256xf32>
    %cst_703 = arith.constant dense<0.000000e+00> : vector<2xf32>
    %784 = vector.multi_reduction <add>, %783, %cst_703 [1] : vector<2x256xf32> to vector<2xf32>
    %785 = vector.shape_cast %784 : vector<2xf32> to vector<2x1xf32>
    %786 = arith.addf %778, %785 : vector<2x1xf32>
    %c4_704 = arith.constant 4 : index
    %c1_705 = arith.constant 1 : index
    %c0_706 = arith.constant 0 : index
    %787 = vector.load %arg10[%c4_704, %c1_705, %c0_706] : memref<5x5x256xf32, #tpu.memory_space<vmem>>, vector<1x2x256xf32>
    %788 = vector.shape_cast %787 : vector<1x2x256xf32> to vector<2x256xf32>
    %c13_707 = arith.constant 13 : index
    %c0_708 = arith.constant 0 : index
    %789 = vector.load %arg6[%c13_707, %c0_708] : memref<16x256xf32, #tpu.memory_space<vmem>>, vector<1x256xf32>
    %790 = vector.broadcast %789 : vector<1x256xf32> to vector<2x256xf32>
    %791 = arith.mulf %788, %790 : vector<2x256xf32>
    %cst_709 = arith.constant dense<0.000000e+00> : vector<2xf32>
    %792 = vector.multi_reduction <add>, %791, %cst_709 [1] : vector<2x256xf32> to vector<2xf32>
    %793 = vector.shape_cast %792 : vector<2xf32> to vector<2x1xf32>
    %794 = arith.addf %786, %793 : vector<2x1xf32>
    %c4_710 = arith.constant 4 : index
    %c2_711 = arith.constant 2 : index
    %c0_712 = arith.constant 0 : index
    %795 = vector.load %arg10[%c4_710, %c2_711, %c0_712] : memref<5x5x256xf32, #tpu.memory_space<vmem>>, vector<1x2x256xf32>
    %796 = vector.shape_cast %795 : vector<1x2x256xf32> to vector<2x256xf32>
    %c14_713 = arith.constant 14 : index
    %c0_714 = arith.constant 0 : index
    %797 = vector.load %arg6[%c14_713, %c0_714] : memref<16x256xf32, #tpu.memory_space<vmem>>, vector<1x256xf32>
    %798 = vector.broadcast %797 : vector<1x256xf32> to vector<2x256xf32>
    %799 = arith.mulf %796, %798 : vector<2x256xf32>
    %cst_715 = arith.constant dense<0.000000e+00> : vector<2xf32>
    %800 = vector.multi_reduction <add>, %799, %cst_715 [1] : vector<2x256xf32> to vector<2xf32>
    %801 = vector.shape_cast %800 : vector<2xf32> to vector<2x1xf32>
    %802 = arith.addf %794, %801 : vector<2x1xf32>
    %c4_716 = arith.constant 4 : index
    %c3_717 = arith.constant 3 : index
    %c0_718 = arith.constant 0 : index
    %803 = vector.load %arg10[%c4_716, %c3_717, %c0_718] : memref<5x5x256xf32, #tpu.memory_space<vmem>>, vector<1x2x256xf32>
    %804 = vector.shape_cast %803 : vector<1x2x256xf32> to vector<2x256xf32>
    %c15_719 = arith.constant 15 : index
    %c0_720 = arith.constant 0 : index
    %805 = vector.load %arg6[%c15_719, %c0_720] : memref<16x256xf32, #tpu.memory_space<vmem>>, vector<1x256xf32>
    %806 = vector.broadcast %805 : vector<1x256xf32> to vector<2x256xf32>
    %807 = arith.mulf %804, %806 : vector<2x256xf32>
    %cst_721 = arith.constant dense<0.000000e+00> : vector<2xf32>
    %808 = vector.multi_reduction <add>, %807, %cst_721 [1] : vector<2x256xf32> to vector<2xf32>
    %809 = vector.shape_cast %808 : vector<2xf32> to vector<2x1xf32>
    %810 = arith.addf %802, %809 : vector<2x1xf32>
    %811 = vector.broadcast %533 : vector<1x1xf32> to vector<2x1xf32>
    %812 = arith.addf %810, %811 : vector<2x1xf32>
    %813 = math.absf %812 : vector<2x1xf32>
    %cst_722 = arith.constant 0.000000e+00 : f32
    %814 = vector.broadcast %cst_722 : f32 to vector<2x1xf32>
    %815 = arith.subf %814, %813 : vector<2x1xf32>
    %816 = math.exp %815 : vector<2x1xf32>
    %cst_723 = arith.constant 0.000000e+00 : f32
    %817 = vector.broadcast %cst_723 : f32 to vector<2x1xf32>
    %818 = arith.cmpf oge, %812, %817 : vector<2x1xf32>
    %cst_724 = arith.constant 1.000000e+00 : f32
    %819 = vector.broadcast %cst_724 : f32 to vector<2x1xf32>
    %820 = arith.addf %819, %816 : vector<2x1xf32>
    %cst_725 = arith.constant 1.000000e+00 : f32
    %821 = vector.broadcast %cst_725 : f32 to vector<2x1xf32>
    %822 = arith.divf %821, %820 : vector<2x1xf32>
    %cst_726 = arith.constant 1.000000e+00 : f32
    %823 = vector.broadcast %cst_726 : f32 to vector<2x1xf32>
    %824 = arith.addf %823, %816 : vector<2x1xf32>
    %825 = arith.divf %816, %824 : vector<2x1xf32>
    %826 = arith.select %818, %822, %825 : vector<2x1xi1>, vector<2x1xf32>
    %c0_727 = arith.constant 0 : index
    %c1_728 = arith.constant 1 : index
    %c0_729 = arith.constant 0 : index
    %c0_730 = arith.constant 0 : index
    %827 = vector.load %arg8[%c0_727, %c1_728, %c0_729, %c0_730] : memref<1x2x2x1xf32, #tpu.memory_space<vmem>>, vector<1x1x2x1xf32>
    %828 = vector.shape_cast %827 : vector<1x1x2x1xf32> to vector<2x1xf32>
    %829 = vector.shape_cast %826 : vector<2x1xf32> to vector<1x1x2x1xf32>
    tpu.vector_store %arg8[%c0_727, %c1_728, %c0_729, %c0_730], %829 {strides = array<i32>} : memref<1x2x2x1xf32, #tpu.memory_space<vmem>>, vector<1x1x2x1xf32>,
    return
  }
  func.func @transform_0(%arg0: i32) -> (i32, i32, i32, i32) {
    %c0_i32 = arith.constant 0 : i32
    %c0_i32_0 = arith.constant 0 : i32
    %c0_i32_1 = arith.constant 0 : i32
    %c0_i32_2 = arith.constant 0 : i32
    return %arg0, %c0_i32, %c0_i32_0, %c0_i32_1 : i32, i32, i32, i32
  }
  func.func @transform_1(%arg0: i32) -> (i32, i32, i32, i32) {
    %c0_i32 = arith.constant 0 : i32
    %c0_i32_0 = arith.constant 0 : i32
    %c0_i32_1 = arith.constant 0 : i32
    %c0_i32_2 = arith.constant 0 : i32
    %c0_i32_3 = arith.constant 0 : i32
    return %c0_i32, %c0_i32_0, %c0_i32_1, %c0_i32_2 : i32, i32, i32, i32
  }
  func.func @transform_2(%arg0: i32) -> (i32, i32) {
    %c0_i32 = arith.constant 0 : i32
    %c0_i32_0 = arith.constant 0 : i32
    %c0_i32_1 = arith.constant 0 : i32
    return %c0_i32, %c0_i32_0 : i32, i32
  }
  func.func @transform_3(%arg0: i32) -> (i32, i32) {
    %c0_i32 = arith.constant 0 : i32
    %c0_i32_0 = arith.constant 0 : i32
    %c0_i32_1 = arith.constant 0 : i32
    return %c0_i32, %c0_i32_0 : i32, i32
  }
  func.func @transform_4(%arg0: i32) -> (i32, i32, i32) {
    %c0_i32 = arith.constant 0 : i32
    %c0_i32_0 = arith.constant 0 : i32
    %c0_i32_1 = arith.constant 0 : i32
    %c0_i32_2 = arith.constant 0 : i32
    return %c0_i32, %c0_i32_0, %c0_i32_1 : i32, i32, i32
  }
  func.func @transform_5(%arg0: i32) -> (i32, i32) {
    %c0_i32 = arith.constant 0 : i32
    %c0_i32_0 = arith.constant 0 : i32
    %c0_i32_1 = arith.constant 0 : i32
    return %c0_i32, %c0_i32_0 : i32, i32
  }
  func.func @transform_6(%arg0: i32) -> (i32, i32) {
    %c0_i32 = arith.constant 0 : i32
    %c0_i32_0 = arith.constant 0 : i32
    %c0_i32_1 = arith.constant 0 : i32
    return %c0_i32, %c0_i32_0 : i32, i32
  }
  func.func @transform_7(%arg0: i32) -> (i32, i32, i32, i32) {
    %c0_i32 = arith.constant 0 : i32
    %c0_i32_0 = arith.constant 0 : i32
    %c0_i32_1 = arith.constant 0 : i32
    %c0_i32_2 = arith.constant 0 : i32
    return %arg0, %c0_i32, %c0_i32_0, %c0_i32_1 : i32, i32, i32, i32
  }
}

</mosaic_0001>

<bundles_post_ra>
// kernel: discriminator2_forward.2
= control target key start
LH: loop header
LB: loop body
LE: loop exit
PB: predicated region body
PF: predicated region fallthrough
CT: control target
= control target key end

     0   :  { %s4384_s15 = smov 0   ;;  %s5864_s0 = inlined_call_operand.vmem [shape: f32[2,9,9,128], index: 0, kind: input, shape index: {}]   ;;  %s5865_s1 = inlined_call_operand.vmem [shape: bf16[2,2,32,64], index: 1, kind: input, shape index: {}]   ;;  %s5866_s2 = inlined_call_operand.vmem [shape: f32[1,64], index: 2, kind: input, shape index: {}]   ;;  %s5867_s3 = inlined_call_operand.vmem [shape: f32[1,64], index: 3, kind: input, shape index: {}]   ;;  %s5868_s4 = inlined_call_operand.vmem [shape: f32[128,64], index: 4, kind: output, shape index: {}]  }
   0x1 LB: > { %s4390_s16 = sadd.s32 4294967295, %s4350_s15   ;;  %p3607_p0 = scmp.ge.s32.totalorder %s4350_s15, 1  ;;  %s4350_s15 = sphi %s4384_s15, %s14_s15  }
   0x2   : > { %p162_p1 = scmp.lt.s32.totalorder %s4350_s15, 3 }
   0x4   : > { %p163_p2 = pnand %p3607_p0, %p162_p1 }
   0x6   : > { %166 = sbr.rel (%p163_p2) target bundleno = 962 (0x3c2), region = 36 }
   0xd   : > { %p188_p3 = scmp.lt.s32.totalorder %s4390_s16, 1  ;;  %s4352_s22 = smov 120   ;;  %vm4357_vm0 = vmmov 0   ;;  %vm454_vm1 = vcmask 57344   ;;  %vm452_vm2 = vcmask 64512   ;;  %vm798_vm3 = vcmask 122944  }
   0xe   : > { %s4353_s23 = smov 96   ;;  %s4354_s24 = smov 88   ;;  %vm796_vm4 = vcmask 130112   ;;  %vm1142_vm5 = vcmask 188544   ;;  %vm1140_vm6 = vcmask 195712   ;;  %vm1486_vm7 = vcmask 254144  }
   0xf   : > { %s189_s17 = scalar_select %p188_p3, %s4390_s16, 1  ;;  %vm1484_vm8 = vcmask 261312   ;;  %vm1531_vm9 = vcmask 261120   ;;  %vm1774_vm11 = vcmask 523264  }
  0x10   : > { %s4356_s27 = smov 80   ;;  %s4358_s8 = smov 72  }
  0x11   : > { %s4255_s18 = smul.u32 144, %s189_s17  ;;  %s3609_s19 = sshll.u32 %s4390_s16, 3 }
  0x12   : > { %p194_p4 = scmp.lt.s32.totalorder %s3609_s19, 15 }
  0x13   : > { %s4399_s21 = scalar_lea.vmem %s5864_s0, %s4255_s18 }
  0x14   : > { %v4402_v0 = vld [vmem:[%s4399_s21 + $0x10] sm:$0xff]  ;;  %v4405_v1 = vld [vmem:[%s4399_s21] sm:$0xff]  ;;  %v4412_v2 = vld [vmem:[%s4399_s21 + $0x18] sm:$0x1]  ;;  %s5880_s19 = smov (!%p194_p4, %s3609_s19), 15 }
  0x15   : > { %240 = vrot.lane.b32.xlu1 %v4402_v0, %s4352_s22  ;;  %236 = vrot.lane.b32.xlu0 %v4405_v1, %s4352_s22  ;;  %v4415_v3 = vld [vmem:[%s4399_s21 + $0x8] sm:$0x1]  ;;  %v4425_v5 = vld [vmem:[%s4399_s21 + $0x20] sm:$0xff]  ;;  %s3610_s9 = sshll.u32 %s5880_s19, 3 }
  0x16   : > { %v4422_v4 = vld [vmem:[%s4399_s21 + $0x28] sm:$0x1]  ;;  %v4428_v6 = vld [vmem:[%s4399_s21 + $0x38] sm:$0x1]  ;;  %v4431_v7 = vld [vmem:[%s4399_s21 + $0x30] sm:$0xff]  ;;  %s5698_s13 = scalar_lea.vmem %s5868_s4, %s3610_s9 }
  0x17   : > { %v209_v8 = vld [vmem:[%s4399_s21 + $0x48] sm:$0x1]  ;;  %v4439_v9 = vld [vmem:[%s4399_s21 + $0x40] sm:$0xff]  ;;  %v4452_v11 = vld [vmem:[%s4399_s21 + $0x18] sm:$0x1] }
  0x18   : > { %v4446_v10 = vld [vmem:[%s4399_s21 + $0x8] sm:$0x1]  ;;  %v4466_v13 = vld [vmem:[%s4399_s21 + $0x18] sm:$0x1] }
  0x19   : > { %242 = vrot.lane.b32.xlu1 %v4412_v2, %s4352_s22  ;;  %238 = vrot.lane.b32.xlu0 %v4415_v3, %s4352_s22  ;;  %v4459_v12 = vld [vmem:[%s4399_s21 + $0x8] sm:$0x1]  ;;  %v4488_v15 = vld [vmem:[%s4399_s21 + $0x18] sm:$0x1] }
  0x1a   : > { %v4481_v14 = vld [vmem:[%s4399_s21 + $0x8] sm:$0x1]  ;;  %v4596_v25 = vld [vmem:[%s4399_s21 + $0x38] sm:$0x1] }
  0x1b   : > { %v4555_v16 = vld [vmem:[%s4399_s21 + $0x28] sm:$0x1]  ;;  %v4607_v28 = vld [vmem:[%s4399_s21 + $0x38] sm:$0x1] }
  0x1c   : > { %v4562_v17 = vld [vmem:[%s4399_s21 + $0x28] sm:$0x1]  ;;  %v4622_v33 = vld [vmem:[%s4399_s21 + $0x38] sm:$0x1] }
  0x1d   : > { %246 = vrot.lane.b32.xlu1 %v4422_v4, %s4352_s22  ;;  %244 = vrot.lane.b32.xlu0 %v4425_v5, %s4352_s22  ;;  %v4569_v18 = vld [vmem:[%s4399_s21 + $0x28] sm:$0x1] }
  0x21   : > { %250 = vrot.lane.b32.xlu1 %v4428_v6, %s4352_s22  ;;  %248 = vrot.lane.b32.xlu0 %v4431_v7, %s4352_s22 }
  0x25   : > { %254 = vrot.lane.b32.xlu1 %v209_v8, %s4352_s22  ;;  %252 = vrot.lane.b32.xlu0 %v4439_v9, %s4352_s22 }
  0x29   : > { %510 = vrot.lane.b32.xlu1 %v4446_v10, %s4352_s22  ;;  %508 = vrot.lane.b32.xlu0 %v4405_v1, %s4352_s22 }
  0x2d   : > { %514 = vrot.lane.b32.xlu1 %v4452_v11, %s4352_s22  ;;  %512 = vrot.lane.b32.xlu0 %v4402_v0, %s4352_s22 }
  0x31   : > { %854 = vrot.lane.b32.xlu1 %v4459_v12, %s4352_s22  ;;  %852 = vrot.lane.b32.xlu0 %v4405_v1, %s4352_s22 }
  0x35   : > { %858 = vrot.lane.b32.xlu1 %v4466_v13, %s4352_s22  ;;  %856 = vrot.lane.b32.xlu0 %v4402_v0, %s4352_s22 }
  0x39   : > { %582 = vrot.lane.b32.xlu1 %v4446_v10, %s4353_s23  ;;  %580 = vrot.lane.b32.xlu0 %v4405_v1, %s4353_s23 }
  0x3d   : > { %586 = vrot.lane.b32.xlu1 %v4452_v11, %s4353_s23  ;;  %584 = vrot.lane.b32.xlu0 %v4402_v0, %s4353_s23 }
  0x41   : > { %1198 = vrot.lane.b32.xlu1 %v4481_v14, %s4352_s22  ;;  %1196 = vrot.lane.b32.xlu0 %v4405_v1, %s4352_s22 }
  0x45   : > { %1202 = vrot.lane.b32.xlu1 %v4488_v15, %s4352_s22  ;;  %1200 = vrot.lane.b32.xlu0 %v4402_v0, %s4352_s22 }
  0x49   : > { %926 = vrot.lane.b32.xlu1 %v4459_v12, %s4353_s23  ;;  %924 = vrot.lane.b32.xlu0 %v4405_v1, %s4353_s23 }
  0x4d   : > { %930 = vrot.lane.b32.xlu1 %v4466_v13, %s4353_s23  ;;  %928 = vrot.lane.b32.xlu0 %v4402_v0, %s4353_s23 }
  0x51   : > { %654 = vrot.lane.b32.xlu1 %v4446_v10, %s4354_s24  ;;  %652 = vrot.lane.b32.xlu0 %v4405_v1, %s4354_s24 }
  0x55   : > { %658 = vrot.lane.b32.xlu1 %v4452_v11, %s4354_s24  ;;  %656 = vrot.lane.b32.xlu0 %v4402_v0, %s4354_s24 }
  0x59   : > { %1270 = vrot.lane.b32.xlu1 %v4481_v14, %s4353_s23  ;;  %1268 = vrot.lane.b32.xlu0 %v4405_v1, %s4353_s23 }
  0x5d   : > { %1274 = vrot.lane.b32.xlu1 %v4488_v15, %s4353_s23  ;;  %1272 = vrot.lane.b32.xlu0 %v4402_v0, %s4353_s23 }
  0x61   : > { %998 = vrot.lane.b32.xlu1 %v4459_v12, %s4354_s24  ;;  %996 = vrot.lane.b32.xlu0 %v4405_v1, %s4354_s24 }
  0x65   : > { %1002 = vrot.lane.b32.xlu1 %v4466_v13, %s4354_s24  ;;  %1000 = vrot.lane.b32.xlu0 %v4402_v0, %s4354_s24 }
  0x69   : > { %1342 = vrot.lane.b32.xlu1 %v4481_v14, %s4354_s24  ;;  %1340 = vrot.lane.b32.xlu0 %v4405_v1, %s4354_s24 }
  0x6d   : > { %1346 = vrot.lane.b32.xlu1 %v4488_v15, %s4354_s24  ;;  %1344 = vrot.lane.b32.xlu0 %v4402_v0, %s4354_s24 }
  0x71   : > { %860 = vrot.lane.b32.xlu1 %v4425_v5, %s4352_s22  ;;  %516 = vrot.lane.b32.xlu0 %v4425_v5, %s4352_s22 }
  0x75   : > { %1204 = vrot.lane.b32.xlu1 %v4425_v5, %s4352_s22  ;;  %588 = vrot.lane.b32.xlu0 %v4425_v5, %s4353_s23 }
  0x79   : > { %660 = vrot.lane.b32.xlu1 %v4425_v5, %s4354_s24  ;;  %932 = vrot.lane.b32.xlu0 %v4425_v5, %s4353_s23 }
  0x7d   : > { %1004 = vrot.lane.b32.xlu1 %v4425_v5, %s4354_s24  ;;  %1276 = vrot.lane.b32.xlu0 %v4425_v5, %s4353_s23 }
  0x81   : > { %518 = vrot.lane.b32.xlu1 %v4555_v16, %s4352_s22  ;;  %1348 = vrot.lane.b32.xlu0 %v4425_v5, %s4354_s24 }
  0x85   : > { %590 = vrot.lane.b32.xlu1 %v4555_v16, %s4353_s23  ;;  %862 = vrot.lane.b32.xlu0 %v4562_v17, %s4352_s22 }
  0x87   : > { %v4571_v19 = vpop.permute.xlu1 %240  ;;  %v4573_v20 = vpop.permute.xlu0 %236 }
  0x89   : > { %934 = vrot.lane.b32.xlu1 %v4562_v17, %s4353_s23  ;;  %1206 = vrot.lane.b32.xlu0 %v4569_v18, %s4352_s22 }
  0x8b   : > { %v4579_v21 = vpop.permute.xlu1 %242  ;;  %v4581_v22 = vpop.permute.xlu0 %238 }
  0x8d   : > { %1278 = vrot.lane.b32.xlu1 %v4569_v18, %s4353_s23  ;;  %662 = vrot.lane.b32.xlu0 %v4555_v16, %s4354_s24 }
  0x8f   : > { %v4587_v23 = vpop.permute.xlu1 %246  ;;  %v4589_v24 = vpop.permute.xlu0 %244 }
  0x91   : > { %1350 = vrot.lane.b32.xlu1 %v4569_v18, %s4354_s24  ;;  %1006 = vrot.lane.b32.xlu0 %v4562_v17, %s4354_s24 }
  0x93   : > { %v4598_v26 = vpop.permute.xlu1 %250  ;;  %v4600_v27 = vpop.permute.xlu0 %248 }
  0x95   : > { %522 = vrot.lane.b32.xlu1 %v4596_v25, %s4352_s22  ;;  %520 = vrot.lane.b32.xlu0 %v4431_v7, %s4352_s22 }
  0x97   : > { %v4609_v29 = vpop.permute.xlu1 %254  ;;  %v4611_v30 = vpop.permute.xlu0 %252 }
  0x98   : > { %5872 = vst [vmem:[#allocation3_spill] sm:$0xff] %v4609_v29  ;;  %5873 = vst [vmem:[#allocation4_spill] sm:$0xff] %v4611_v30 }
  0x99   : > { %866 = vrot.lane.b32.xlu1 %v4607_v28, %s4352_s22  ;;  %864 = vrot.lane.b32.xlu0 %v4431_v7, %s4352_s22 }
  0x9b   : > { %v511_v31 = vpop.permute.xlu1 %510  ;;  %v509_v32 = vpop.permute.xlu0 %508 }
  0x9c   : > { %v563_v52 = vmax.f32 %v4446_v10, %v511_v31  ;;  %v562_v53 = vmax.f32 %v4405_v1, %v509_v32 }
  0x9d   : > { %594 = vrot.lane.b32.xlu1 %v4596_v25, %s4353_s23  ;;  %592 = vrot.lane.b32.xlu0 %v4431_v7, %s4353_s23 }
  0x9f   : > { %v515_v34 = vpop.permute.xlu1 %514  ;;  %v513_v35 = vpop.permute.xlu0 %512 }
  0xa0   : > { %v565_v58 = vmax.f32 %v4452_v11, %v515_v34  ;;  %v564_v59 = vmax.f32 %v4402_v0, %v513_v35 }
  0xa1   : > { %1210 = vrot.lane.b32.xlu1 %v4622_v33, %s4352_s22  ;;  %1208 = vrot.lane.b32.xlu0 %v4431_v7, %s4352_s22 }
  0xa3   : > { %v855_v36 = vpop.permute.xlu1 %854  ;;  %v853_v37 = vpop.permute.xlu0 %852 }
  0xa4   : > { %v907_v35 = vmax.f32 %v4459_v12, %v855_v36 }
  0xa5   : > { %938 = vrot.lane.b32.xlu1 %v4607_v28, %s4353_s23  ;;  %936 = vrot.lane.b32.xlu0 %v4431_v7, %s4353_s23 }
  0xa7   : > { %v4632_v38 = vpop.permute.xlu1 %858  ;;  %v4634_v39 = vpop.permute.xlu0 %856 }
  0xa8   : > { %v908_v12 = vmax.f32 %v4402_v0, %v4634_v39 }
  0xa9   : > { %666 = vrot.lane.b32.xlu1 %v4596_v25, %s4354_s24  ;;  %664 = vrot.lane.b32.xlu0 %v4431_v7, %s4354_s24 }
  0xab   : > { %v583_v40 = vpop.permute.xlu1 %582  ;;  %v581_v41 = vpop.permute.xlu0 %580 }
  0xac   : > { %v635_v56 = vmax.f32 %v563_v52, %v583_v40  ;;  %v634_v57 = vmax.f32 %v562_v53, %v581_v41  ;;  %v906_v52 = vmax.f32 %v4405_v1, %v853_v37  ;;  %v4271_v53 = vld [vmem:[%s5865_s1 + $0x10] sm:$0xff]  }
  0xad   : > { %1282 = vrot.lane.b32.xlu1 %v4622_v33, %s4353_s23  ;;  %1280 = vrot.lane.b32.xlu0 %v4431_v7, %s4353_s23 }
  0xaf   : > { %v587_v42 = vpop.permute.xlu1 %586  ;;  %v585_v43 = vpop.permute.xlu0 %584 }
  0xb0   : > { %v637_v8 = vmax.f32 %v565_v58, %v587_v42  ;;  %v636_v10 = vmax.f32 %v564_v59, %v585_v43  ;;  %v4272_v58 = vld [vmem:[%s5865_s1 + $0x18] sm:$0xff]  }
  0xb1   : > { %1010 = vrot.lane.b32.xlu1 %v4607_v28, %s4354_s24  ;;  %1008 = vrot.lane.b32.xlu0 %v4431_v7, %s4354_s24 }
  0xb3   : > { %v4648_v44 = vpop.permute.xlu1 %1198  ;;  %v4650_v45 = vpop.permute.xlu0 %1196 }
  0xb5   : > { %1354 = vrot.lane.b32.xlu1 %v4622_v33, %s4354_s24  ;;  %1352 = vrot.lane.b32.xlu0 %v4431_v7, %s4354_s24 }
  0xb7   : > { %v4656_v46 = vpop.permute.xlu1 %1202  ;;  %v4658_v47 = vpop.permute.xlu0 %1200 }
  0xb9   : > { %310 = vrot.lane.b32.xlu1 %v4415_v3, %s4353_s23  ;;  %308 = vrot.lane.b32.xlu0 %v4405_v1, %s4353_s23 }
  0xbb   : > { %v927_v48 = vpop.permute.xlu1 %926  ;;  %v925_v49 = vpop.permute.xlu0 %924 }
  0xbc   : > { %v979_v42 = vmax.f32 %v907_v35, %v927_v48  ;;  %v978_v43 = vmax.f32 %v906_v52, %v925_v49 }
  0xbd   : > { %314 = vrot.lane.b32.xlu1 %v4412_v2, %s4353_s23  ;;  %312 = vrot.lane.b32.xlu0 %v4402_v0, %s4353_s23 }
  0xbf   : > { %v931_v50 = vpop.permute.xlu1 %930  ;;  %v929_v51 = vpop.permute.xlu0 %928 }
  0xc0   : > { %v980_v49 = vmax.f32 %v908_v12, %v929_v51  ;;  %v4749_v12 = vld [vmem:[%s4399_s21 + $0x48] sm:$0x1] }
  0xc1   : > { %382 = vrot.lane.b32.xlu1 %v4415_v3, %s4354_s24  ;;  %380 = vrot.lane.b32.xlu0 %v4405_v1, %s4354_s24 }
  0xc3   : > { %v655_v54 = vpop.permute.xlu1 %654  ;;  %v653_v55 = vpop.permute.xlu0 %652 }
  0xc4   : > { %v707_v60 = vmax.f32 %v635_v56, %v655_v54  ;;  %v706_v61 = vmax.f32 %v634_v57, %v653_v55  ;;  %v5869_v56 = vmov 0.0   ;;  %v909_v57 = vmax.f32 %v4466_v13, %v4632_v38  ;;  %v4273_v13 = vld [vmem:[%s5865_s1 + $0x10] sm:$0xff]  }
  0xc5   : > { %386 = vrot.lane.b32.xlu1 %v4412_v2, %s4354_s24  ;;  %384 = vrot.lane.b32.xlu0 %v4402_v0, %s4354_s24  ;;  %v1251_v38 = vmax.f32 %v4481_v14, %v4648_v44  ;;  %v4274_v14 = vld [vmem:[%s5865_s1 + $0x18] sm:$0xff]  }
  0xc6   : > { %3903 = vmatprep.subr.bf16.mxu0 %v5869_v56  ;;  %3935 = vmatprep.subr.bf16.mxu1 %v5869_v56  ;;  %v981_v48 = vmax.f32 %v909_v57, %v931_v50  ;;  %v1250_v50 = vmax.f32 %v4405_v1, %v4650_v45 }
  0xc7   : > { %v659_v62 = vpop.permute.xlu1 %658  ;;  %v657_v63 = vpop.permute.xlu0 %656  ;;  %3904 = vmatpush3.bf16.msra.mxu0 %v4271_v53  ;;  %3936 = vmatpush3.bf16.msra.mxu1 %v4273_v13  ;;  %v4771_v13 = vld [vmem:[%s4399_s21 + $0x48] sm:$0x1] }
  0xc8   : > { %v709_v31 = vmax.f32 %v637_v8, %v659_v62  ;;  %v708_v32 = vmax.f32 %v636_v10, %v657_v63  ;;  %3905 = vmatprep.subr.bf16.mxu0 %v5869_v56  ;;  %3937 = vmatprep.subr.bf16.mxu1 %v5869_v56  ;;  %v1253_v63 = vmax.f32 %v4488_v15, %v4656_v46 }
  0xc9   : > { %744 = vrot.lane.b32.xlu1 %v707_v60, %s4352_s22  ;;  %742 = vrot.lane.b32.xlu0 %v706_v61, %s4352_s22  ;;  %v1252_v8 = vmax.f32 %v4402_v0, %v4658_v47 }
  0xca   : > { %3907 = vmatprep.mubr.msk.bf16.mxu0 %vm4357_vm0, %v5869_v56  ;;  %3939 = vmatprep.mubr.msk.bf16.mxu1 %vm4357_vm0, %v5869_v56 }
  0xcb   : > { %v1271_v40 = vpop.permute.xlu1 %1270  ;;  %v1269_v41 = vpop.permute.xlu0 %1268  ;;  %3906 = vmatpush3.bf16.msra.mxu0 %v4272_v58  ;;  %3938 = vmatpush3.bf16.msra.mxu1 %v4274_v14  ;;  %v4807_v14 = vld [vmem:[%s4399_s21 + $0x58] sm:$0x1] }
  0xcc   : > { %3911 = vmatprep.subr.bf16.mxu0 %v5869_v56  ;;  %v1323_v61 = vmax.f32 %v1251_v38, %v1271_v40  ;;  %v1322_v62 = vmax.f32 %v1250_v50, %v1269_v41  ;;  %3943 = vmatprep.subr.bf16.mxu1 %v5869_v56  ;;  %5874 = vst [vmem:[#allocation5_spill] sm:$0xff] %v4807_v14 }
  0xcd   : > { %748 = vrot.lane.b32.xlu1 %v709_v31, %s4352_s22  ;;  %746 = vrot.lane.b32.xlu0 %v708_v32, %s4352_s22 }
  0xcf   : > { %v1275_v11 = vpop.permute.xlu1 %1274  ;;  %v1273_v34 = vpop.permute.xlu0 %1272 }
  0xd0   : > { %v1325_v32 = vmax.f32 %v1253_v63, %v1275_v11  ;;  %v1324_v40 = vmax.f32 %v1252_v8, %v1273_v34 }
  0xd3   : > { %v999_v54 = vpop.permute.xlu1 %998  ;;  %v997_v55 = vpop.permute.xlu0 %996 }
  0xd4   : > { %v1051_v36 = vmax.f32 %v979_v42, %v999_v54  ;;  %v1050_v37 = vmax.f32 %v978_v43, %v997_v55 }
  0xd6   : > { %1088 = vrot.lane.b32.xlu1 %v1051_v36, %s4356_s27  ;;  %1086 = vrot.lane.b32.xlu0 %v1050_v37, %s4356_s27 }
  0xd7   : > { %v1003_v39 = vpop.permute.xlu1 %1002  ;;  %v1001_v59 = vpop.permute.xlu0 %1000 }
  0xd8   : > { %v1053_v51 = vmax.f32 %v981_v48, %v1003_v39  ;;  %v1052_v60 = vmax.f32 %v980_v49, %v1001_v59  ;;  %v4760_v48 = vld [vmem:[%s4399_s21 + $0x48] sm:$0x1] }
  0xda   : > { %1092 = vrot.lane.b32.xlu1 %v1053_v51, %s4356_s27  ;;  %1090 = vrot.lane.b32.xlu0 %v1052_v60, %s4356_s27 }
  0xdb   : > { %v1343_v44 = vpop.permute.xlu1 %1342  ;;  %v1341_v45 = vpop.permute.xlu0 %1340 }
  0xdc   : > { %v1395_v10 = vmax.f32 %v1323_v61, %v1343_v44  ;;  %v1394_v31 = vmax.f32 %v1322_v62, %v1341_v45  ;;  %v4810_v44 = vld [vmem:[%s4399_s21 + $0x50] sm:$0xff] }
  0xde   : > { %1432 = vrot.lane.b32.xlu1 %v1395_v10, %s4358_s8  ;;  %1430 = vrot.lane.b32.xlu0 %v1394_v31, %s4358_s8 }
  0xdf   : > { %v1347_v41 = vpop.permute.xlu1 %1346  ;;  %v1345_v35 = vpop.permute.xlu0 %1344 }
  0xe0   : > { %v1397_v52 = vmax.f32 %v1325_v32, %v1347_v41  ;;  %v1396_v42 = vmax.f32 %v1324_v40, %v1345_v35  ;;  %v4829_v35 = vld [vmem:[%s4399_s21 + $0x58] sm:$0x1] }
  0xe2   : > { %1436 = vrot.lane.b32.xlu1 %v1397_v52, %s4358_s8  ;;  %1434 = vrot.lane.b32.xlu0 %v1396_v42, %s4358_s8 }
  0xe3   : > { %v861_v15 = vpop.permute.xlu1 %860  ;;  %v517_v46 = vpop.permute.xlu0 %516 }
  0xe4   : > { %v566_v60 = vmax.f32 %v4425_v5, %v517_v46  ;;  %v910_v45 = vmax.f32 %v4425_v5, %v861_v15 }
  0xe6   : > { %868 = vrot.lane.b32.xlu1 %v4439_v9, %s4352_s22  ;;  %524 = vrot.lane.b32.xlu0 %v4439_v9, %s4352_s22 }
  0xe7   : > { %v4732_v47 = vpop.permute.xlu1 %1204  ;;  %v589_v11 = vpop.permute.xlu0 %588 }
  0xe8   : > { %v638_v63 = vmax.f32 %v566_v60, %v589_v11  ;;  %v1254_v46 = vmax.f32 %v4425_v5, %v4732_v47 }
  0xea   : > { %1212 = vrot.lane.b32.xlu1 %v4439_v9, %s4352_s22  ;;  %596 = vrot.lane.b32.xlu0 %v4439_v9, %s4353_s23 }
  0xeb   : > { %v661_v34 = vpop.permute.xlu1 %660  ;;  %v933_v43 = vpop.permute.xlu0 %932 }
  0xec   : > { %v710_v31 = vmax.f32 %v638_v63, %v661_v34  ;;  %v982_v32 = vmax.f32 %v910_v45, %v933_v43  ;;  %v4849_v43 = vld [vmem:[%s4399_s21 + $0x58] sm:$0x1] }
  0xee   : > { %668 = vrot.lane.b32.xlu1 %v4439_v9, %s4354_s24  ;;  %940 = vrot.lane.b32.xlu0 %v4439_v9, %s4353_s23 }
  0xef   : > { %v1005_v53 = vpop.permute.xlu1 %1004  ;;  %v1277_v54 = vpop.permute.xlu0 %1276 }
  0xf0   : > { %v1054_v52 = vmax.f32 %v982_v32, %v1005_v53  ;;  %v1326_v53 = vmax.f32 %v1254_v46, %v1277_v54 }
  0xf2   : > { %1012 = vrot.lane.b32.xlu1 %v4439_v9, %s4354_s24  ;;  %1284 = vrot.lane.b32.xlu0 %v4439_v9, %s4353_s23 }
  0xf3   : > { %v4746_v55 = vpop.permute.xlu1 %518  ;;  %v1349_v57 = vpop.permute.xlu0 %1348 }
  0xf4   : > { %v1398_v60 = vmax.f32 %v1326_v53, %v1349_v57  ;;  %v290_v53 = vmax.f32 %v4405_v1, %v4573_v20  ;;  %v567_v56 = vmax.f32 %v4555_v16, %v4746_v55  ;;  %v293_v1 = vmax.f32 %v4412_v2, %v4579_v21 }
  0xf6   : > { %526 = vrot.lane.b32.xlu1 %v4749_v12, %s4352_s22  ;;  %1356 = vrot.lane.b32.xlu0 %v4439_v9, %s4354_s24 }
  0xf7   : > { %v4755_v36 = vpop.permute.xlu1 %590  ;;  %v4757_v37 = vpop.permute.xlu0 %862 }
  0xf8   : > { %v639_v16 = vmax.f32 %v567_v56, %v4755_v36 }
  0xfa   : > { %598 = vrot.lane.b32.xlu1 %v4749_v12, %s4353_s23  ;;  %870 = vrot.lane.b32.xlu0 %v4760_v48, %s4352_s22 }
  0xfb   : > { %v4766_v49 = vpop.permute.xlu1 %934  ;;  %v4768_v58 = vpop.permute.xlu0 %1206 }
  0xfe   : > { %316 = vrot.lane.b32.xlu1 %v4425_v5, %s4353_s23  ;;  %1214 = vrot.lane.b32.xlu0 %v4771_v13, %s4352_s22 }
  0xff   : > { %v4777_v9 = vpop.permute.xlu1 %1278  ;;  %v4779_v38 = vpop.permute.xlu0 %662 }
 0x102   : > { %670 = vrot.lane.b32.xlu1 %v4749_v12, %s4354_s24  ;;  %942 = vrot.lane.b32.xlu0 %v4760_v48, %s4353_s23 }
 0x103   : > { %v4785_v39 = vpop.permute.xlu1 %1350  ;;  %v4787_v59 = vpop.permute.xlu0 %1006 }
 0x106   : > { %388 = vrot.lane.b32.xlu1 %v4425_v5, %s4354_s24  ;;  %1286 = vrot.lane.b32.xlu0 %v4771_v13, %s4353_s23 }
 0x107   : > { %v4793_v50 = vpop.permute.xlu1 %522  ;;  %v4795_v51 = vpop.permute.xlu0 %520 }
 0x10a   : > { %1358 = vrot.lane.b32.xlu1 %v4771_v13, %s4354_s24  ;;  %1014 = vrot.lane.b32.xlu0 %v4760_v48, %s4354_s24 }
 0x10b   : > { %v4802_v61 = vpop.permute.xlu1 %866  ;;  %v4804_v62 = vpop.permute.xlu0 %864 }
 0x10e   : > { %530 = vrot.lane.b32.xlu1 %v4807_v14, %s4352_s22  ;;  %528 = vrot.lane.b32.xlu0 %v4810_v44, %s4352_s22 }
 0x10f   : > { %v4817_v8 = vpop.permute.xlu1 %594  ;;  %v4819_v10 = vpop.permute.xlu0 %592 }
 0x112   : > { %872 = vrot.lane.b32.xlu1 %v4810_v44, %s4352_s22  ;;  %750 = vrot.lane.b32.xlu0 %v710_v31, %s4352_s22 }
 0x113   : > { %v4824_v40 = vpop.permute.xlu1 %1210  ;;  %v4826_v41 = vpop.permute.xlu0 %1208 }
 0x116   : > { %874 = vrot.lane.b32.xlu0 %v4829_v35, %s4352_s22  ;;  %1094 = vrot.lane.b32.xlu1 %v1054_v52, %s4356_s27 }
 0x117   : > { %v4834_v42 = vpop.permute.xlu1 %938  ;;  %v4836_v15 = vpop.permute.xlu0 %936 }
 0x11a   : > { %600 = vrot.lane.b32.xlu0 %v4810_v44, %s4353_s23  ;;  %602 = vrot.lane.b32.xlu1 %v4807_v14, %s4353_s23 }
 0x11b   : > { %v4844_v11 = vpop.permute.xlu1 %666  ;;  %v4846_v34 = vpop.permute.xlu0 %664 }
 0x11e   : > { %1216 = vrot.lane.b32.xlu0 %v4810_v44, %s4352_s22  ;;  %1218 = vrot.lane.b32.xlu1 %v4849_v43, %s4352_s22 }
 0x11f   : > { %v4855_v5 = vpop.permute.xlu1 %1282  ;;  %v4857_v47 = vpop.permute.xlu0 %1280 }
 0x122   : > { %944 = vrot.lane.b32.xlu1 %v4810_v44, %s4353_s23  ;;  %1438 = vrot.lane.b32.xlu0 %v1398_v60, %s4358_s8  ;;  %v291_v60 = vmax.f32 %v4415_v3, %v4581_v22  ;;  %v1255_v22 = vmax.f32 %v4569_v18, %v4768_v58 }
 0x123   : > { %v4862_v45 = vpop.permute.xlu1 %1010  ;;  %v4864_v63 = vpop.permute.xlu0 %1008 }
 0x124   : > { %v1327_v18 = vmax.f32 %v1255_v22, %v4777_v9  ;;  %v568_v9 = vmax.f32 %v4431_v7, %v4795_v51  ;;  %v4276_v22 = vld [vmem:[%s5865_s1 + $0x8] sm:$0xff]  }
 0x126   : > { %672 = vrot.lane.b32.xlu1 %v4810_v44, %s4354_s24  ;;  %946 = vrot.lane.b32.xlu0 %v4829_v35, %s4353_s23  ;;  %v1399_v36 = vmax.f32 %v1327_v18, %v4785_v39  ;;  %v640_v39 = vmax.f32 %v568_v9, %v4819_v10  ;;  %v5024_v18 = vld [vmem:[%s4399_s21 + $0x68] sm:$0x1] }
 0x127   : > { %v4870_v54 = vpop.permute.xlu1 %1354  ;;  %v4872_v31 = vpop.permute.xlu0 %1352  ;;  %v5062_v9 = vld [vmem:[%s4399_s21 + $0x68] sm:$0x1] }
 0x128   : > { %v712_v51 = vmax.f32 %v640_v39, %v4846_v34 }
 0x12a   : > { %1288 = vrot.lane.b32.xlu1 %v4810_v44, %s4353_s23  ;;  %674 = vrot.lane.b32.xlu0 %v4807_v14, %s4354_s24  ;;  %v292_v14 = vmax.f32 %v4402_v0, %v4571_v19  ;;  %v711_v19 = vmax.f32 %v639_v16, %v4779_v38 }
 0x12b   : > { %v311_v57 = vpop.permute.xlu1 %310  ;;  %v309_v32 = vpop.permute.xlu0 %308 }
 0x12c   : > { %v363_v29 = vmax.f32 %v291_v60, %v311_v57  ;;  %v362_v30 = vmax.f32 %v290_v53, %v309_v32  ;;  %v911_v32 = vmax.f32 %v4562_v17, %v4757_v37 }
 0x12e   : > { %1016 = vrot.lane.b32.xlu1 %v4810_v44, %s4354_s24  ;;  %1290 = vrot.lane.b32.xlu0 %v4849_v43, %s4353_s23 }
 0x12f   : > { %v315_v52 = vpop.permute.xlu1 %314  ;;  %v313_v46 = vpop.permute.xlu0 %312 }
 0x130   : > { %v365_v53 = vmax.f32 %v293_v1, %v315_v52  ;;  %v364_v60 = vmax.f32 %v292_v14, %v313_v46  ;;  %v4275_v46 = vld [vmem:[%s5865_s1] sm:$0xff]  }
 0x132   : > { %1360 = vrot.lane.b32.xlu1 %v4810_v44, %s4354_s24  ;;  %1018 = vrot.lane.b32.xlu0 %v4829_v35, %s4354_s24 }
 0x133   : > { %v383_v20 = vpop.permute.xlu1 %382  ;;  %v381_v3 = vpop.permute.xlu0 %380 }
 0x134   : > { %v435_v55 = vmax.f32 %v363_v29, %v383_v20  ;;  %v434_v57 = vmax.f32 %v362_v30, %v381_v3  ;;  %v983_v29 = vmax.f32 %v911_v32, %v4766_v49 }
 0x136   : > { %455 = vst.msk [vmem:[#allocation2 + $0x8] sm:$0x1] %vm454_vm1, %v435_v55  ;;  %318 = vrot.lane.b32.xlu1 %v4422_v4, %s4353_s23  ;;  %1362 = vrot.lane.b32.xlu0 %v4849_v43, %s4354_s24  ;;  %v1055_v37 = vmax.f32 %v983_v29, %v4787_v59  ;;  %v912_v59 = vmax.f32 %v4431_v7, %v4804_v62  ;;  %v4277_v55 = vld [vmem:[%s5865_s1] sm:$0xff]  }
 0x137   : > { %453 = vst.msk [vmem:[#allocation2] sm:$0xff] %vm452_vm2, %v434_v57  ;;  %v387_v0 = vpop.permute.xlu1 %386  ;;  %v385_v2 = vpop.permute.xlu0 %384  ;;  %v5875_v57 = vmov 0.0  }
 0x138   : > { %v437_v21 = vmax.f32 %v365_v53, %v387_v0  ;;  %v436_v17 = vmax.f32 %v364_v60, %v385_v2  ;;  %v984_v10 = vmax.f32 %v912_v59, %v4836_v15  ;;  %v4278_v0 = vld [vmem:[%s5865_s1 + $0x8] sm:$0xff]   ;;  %v5074_v59 = vld [vmem:[%s4399_s21 + $0x40] sm:$0xff] }
 0x13a   : > { %457 = vst.msk [vmem:[#allocation2 + $0x18] sm:$0x1] %vm454_vm1, %v437_v21  ;;  %390 = vrot.lane.b32.xlu0 %v4422_v4, %s4354_s24  ;;  %752 = vrot.lane.b32.xlu1 %v711_v19, %s4352_s22  ;;  %v569_v4 = vmax.f32 %v4596_v25, %v4793_v50  ;;  %v913_v25 = vmax.f32 %v4607_v28, %v4802_v61 }
 0x13b   : > { %456 = vst.msk [vmem:[#allocation2 + $0x10] sm:$0xff] %vm452_vm2, %v436_v17  ;;  %v745_v30 = vpop.permute.xlu1 %744  ;;  %v743_v56 = vpop.permute.xlu0 %742  ;;  %v1257_v28 = vmax.f32 %v4622_v33, %v4824_v40  ;;  %v1256_v61 = vmax.f32 %v4431_v7, %v4826_v41  ;;  %v4279_v17 = vld [vmem:[%s5865_s1 + $0x20] sm:$0xff]  }
 0x13c   : > { %799 = vst.msk [vmem:[#allocation2 + $0x8] sm:$0x1] %vm798_vm3, %v745_v30  ;;  %v641_v38 = vmax.f32 %v569_v4, %v4817_v8 }
 0x13d   : > { %797 = vst.msk [vmem:[#allocation2] sm:$0xff] %vm796_vm4, %v743_v56  ;;  %v1328_v15 = vmax.f32 %v1256_v61, %v4857_v47  ;;  %v5041_v56 = vld [vmem:[%s4399_s21 + $0x68] sm:$0x1] }
 0x13e   : > { %1440 = vrot.lane.b32.xlu1 %v1399_v36, %s4358_s8  ;;  %1096 = vrot.lane.b32.xlu0 %v1055_v37, %s4356_s27  ;;  %v713_v50 = vmax.f32 %v641_v38, %v4844_v11  ;;  %v1056_v11 = vmax.f32 %v984_v10, %v4864_v63  ;;  %v4282_v10 = vld [vmem:[%s5865_s1 + $0x38] sm:$0xff]  }
 0x13f   : > { %v749_v49 = vpop.permute.xlu1 %748  ;;  %v747_v58 = vpop.permute.xlu0 %746  ;;  %v1400_v33 = vmax.f32 %v1328_v15, %v4872_v31 }
 0x140   : > { %801 = vst.msk [vmem:[#allocation2 + $0x18] sm:$0x1] %vm798_vm3, %v749_v49  ;;  %v4280_v49 = vld [vmem:[%s5865_s1 + $0x28] sm:$0xff]  }
 0x141   : > { %800 = vst.msk [vmem:[#allocation2 + $0x10] sm:$0xff] %vm796_vm4, %v747_v58  ;;  %v4283_v58 = vld [vmem:[%s5865_s1 + $0x20] sm:$0xff]  }
 0x142   : > { %322 = vrot.lane.b32.xlu1 %v4428_v6, %s4353_s23  ;;  %320 = vrot.lane.b32.xlu0 %v4431_v7, %s4353_s23 }
 0x146   : > { %394 = vrot.lane.b32.xlu1 %v4428_v6, %s4354_s24  ;;  %392 = vrot.lane.b32.xlu0 %v4431_v7, %s4354_s24  ;;  %v985_v6 = vmax.f32 %v913_v25, %v4834_v42  ;;  %v1329_v42 = vmax.f32 %v1257_v28, %v4855_v5  ;;  %v4968_v5 = vld [vmem:[%s4399_s21 + $0x60] sm:$0xff]  ;;  %v4284_v25 = vld [vmem:[%s5865_s1 + $0x28] sm:$0xff]  }
 0x147   : > { %v4336_v28 = vld [vmem:[%s4399_s21 + $0x20] sm:$0xff] }
 0x148   : > { %v1089_v14 = vpop.permute.xlu1 %1088  ;;  %v1087_v8 = vpop.permute.xlu0 %1086  ;;  %v1057_v62 = vmax.f32 %v985_v6, %v4862_v45  ;;  %v1401_v7 = vmax.f32 %v1329_v42, %v4870_v54  ;;  %v294_v61 = vmax.f32 %v4336_v28, %v4589_v24  ;;  %v5118_v24 = vld [vmem:[%s4399_s21 + $0x78] sm:$0x1]  ;;  %v5121_v42 = vld [vmem:[%s4399_s21 + $0x70] sm:$0xff] }
 0x149   : > { %1143 = vst.msk [vmem:[#allocation2 + $0x8] sm:$0x1] %vm1142_vm5, %v1089_v14  ;;  %v4281_v14 = vld [vmem:[%s5865_s1 + $0x30] sm:$0xff]  }
 0x14a   : > { %1141 = vst.msk [vmem:[#allocation2] sm:$0xff] %vm1140_vm6, %v1087_v8  ;;  %756 = vrot.lane.b32.xlu1 %v713_v50, %s4352_s22  ;;  %754 = vrot.lane.b32.xlu0 %v712_v51, %s4352_s22 }
 0x14c   : > { %v1093_v34 = vpop.permute.xlu1 %1092  ;;  %v1091_v52 = vpop.permute.xlu0 %1090 }
 0x14d   : > { %1145 = vst.msk [vmem:[#allocation2 + $0x18] sm:$0x1] %vm1142_vm5, %v1093_v34 }
 0x14e   : > { %1144 = vst.msk [vmem:[#allocation2 + $0x10] sm:$0xff] %vm1140_vm6, %v1091_v52  ;;  %1100 = vrot.lane.b32.xlu1 %v1057_v62, %s4356_s27  ;;  %1098 = vrot.lane.b32.xlu0 %v1056_v11, %s4356_s27 }
 0x150   : > { %v1433_v40 = vpop.permute.xlu1 %1432  ;;  %v1431_v41 = vpop.permute.xlu0 %1430 }
 0x151   : > { %1487 = vst.msk [vmem:[#allocation2 + $0x8] sm:$0x1] %vm1486_vm7, %v1433_v40  ;;  %v4286_v40 = vld [vmem:[%s5865_s1 + $0x10] sm:$0xff]  }
 0x152   : > { %1485 = vst.msk [vmem:[#allocation2] sm:$0xff] %vm1484_vm8, %v1431_v41  ;;  %1444 = vrot.lane.b32.xlu1 %v1401_v7, %s4358_s8  ;;  %1442 = vrot.lane.b32.xlu0 %v1400_v33, %s4358_s8 }
 0x154   : > { %v1437_v47 = vpop.permute.xlu1 %1436  ;;  %v1435_v45 = vpop.permute.xlu0 %1434 }
 0x155   : > { %1489 = vst.msk [vmem:[#allocation2 + $0x18] sm:$0x1] %vm1486_vm7, %v1437_v47 }
 0x156   : > { %1488 = vst.msk [vmem:[#allocation2 + $0x10] sm:$0xff] %vm1484_vm8, %v1435_v45  ;;  %876 = vrot.lane.b32.xlu1 %v4968_v5, %s4352_s22  ;;  %532 = vrot.lane.b32.xlu0 %v4968_v5, %s4352_s22 }
 0x158   : > { %v4976_v63 = vpop.permute.xlu1 %868  ;;  %v4978_v54 = vpop.permute.xlu0 %524 }
 0x159   : > { %v1512_v31 = vld [vmem:[#allocation2 + $0x1] sm:$0xff]  ;;  %v570_v15 = vmax.f32 %v5074_v59, %v4978_v54  ;;  %v914_v47 = vmax.f32 %v5074_v59, %v4976_v63  ;;  %v5157_v63 = vld [vmem:[%s4399_s21 + $0x78] sm:$0x1] }
 0x15a   : > { %v1513_v1 = vpack.c.bf16 %v1512_v31, %v1512_v31  ;;  %1220 = vrot.lane.b32.xlu1 %v4968_v5, %s4352_s22  ;;  %604 = vrot.lane.b32.xlu0 %v4968_v5, %s4353_s23  ;;  %v1506_v2 = vld [vmem:[#allocation2] sm:$0xff] }
 0x15b   : > { %v1507_v29 = vpack.c.bf16 %v1506_v2, %v1506_v2 }
 0x15c   : > { %3908 = vmatmul.mubr.msk.bf16.vlgmr.msra.gmra.mrb[0].mxu0 %vm1531_vm9, %v1513_v1  ;;  %v4988_v20 = vpop.permute.xlu1 %1212  ;;  %v4990_v3 = vpop.permute.xlu0 %596 }
 0x15d   : > { %v1782_v16 = vld [vmem:[#allocation2 + $0x11] sm:$0xff]  ;;  %3912 = vmatpush3.bf16.msra.mxu0 %v4275_v46  ;;  %3915 = vmatprep.mubr.msk.bf16.mxu0 %vm4357_vm0, %v5875_v57  ;;  %v642_v41 = vmax.f32 %v570_v15, %v4990_v3 }
 0x15e   : > { %v5000_v32 = vpack.c.bf16 %v1782_v16, %v1782_v16  ;;  %3913 = vmatprep.subr.bf16.mxu0 %v5875_v57  ;;  %676 = vrot.lane.b32.xlu1 %v4968_v5, %s4354_s24  ;;  %v1776_v30 = vld [vmem:[#allocation2 + $0x10] sm:$0xff]  ;;  %v4288_v46 = vld [vmem:[%s5865_s1 + $0x18] sm:$0xff]  }
 0x15f   : > { %948 = vrot.lane.b32.xlu0 %v4968_v5, %s4353_s23  ;;  %v1777_v4 = vpack.c.bf16 %v1776_v30, %v1776_v30 }
 0x160   : > { %3940 = vmatmul.mubr.msk.bf16.vlgmr.msra.gmra.mrb[0].mxu1 %vm1531_vm9, %v5000_v32  ;;  %v5009_v53 = vpop.permute.xlu1 %668  ;;  %v5011_v60 = vpop.permute.xlu0 %940 }
 0x161   : > { %3914 = vmatpush3.bf16.msra.mxu0 %v4276_v22  ;;  %3944 = vmatpush3.bf16.msra.mxu1 %v4277_v55  ;;  %v714_v45 = vmax.f32 %v642_v41, %v5009_v53  ;;  %v986_v1 = vmax.f32 %v914_v47, %v5011_v60  ;;  %v5175_v53 = vld [vmem:[%s4399_s21 + $0x78] sm:$0x1]  ;;  %v1258_v60 = vmax.f32 %v5074_v59, %v4988_v20  ;;  %v4338_v47 = vld [vmem:[%s4399_s21 + $0x28] sm:$0x1] }
 0x162   : > { %3945 = vmatprep.subr.bf16.mxu1 %v5875_v57  ;;  %3947 = vmatprep.mubr.msk.bf16.mxu1 %vm4357_vm0, %v5875_v57 }
 0x163   : > { %1020 = vrot.lane.b32.xlu1 %v4968_v5, %s4354_s24  ;;  %1292 = vrot.lane.b32.xlu0 %v4968_v5, %s4353_s23 }
 0x164   : > { %3919 = vmatprep.subr.bf16.mxu0 %v5875_v57  ;;  %v5027_v19 = vpop.permute.xlu1 %1012  ;;  %v5029_v21 = vpop.permute.xlu0 %1284 }
 0x165   : > { %3946 = vmatpush3.bf16.msra.mxu1 %v4278_v0  ;;  %v1058_v3 = vmax.f32 %v986_v1, %v5027_v19  ;;  %v1330_v19 = vmax.f32 %v1258_v60, %v5029_v21 }
 0x166   : > { %3951 = vmatprep.subr.bf16.mxu1 %v5875_v57 }
 0x167   : > { %534 = vrot.lane.b32.xlu1 %v5024_v18, %s4352_s22  ;;  %1364 = vrot.lane.b32.xlu0 %v4968_v5, %s4354_s24 }
 0x168   : > { %3916 = vmatmul.mubr.msk.bf16.vlgmr.msra.gmra.mrb[0].mxu0 %vm1531_vm9, %v1507_v29  ;;  %v5043_v36 = vpop.permute.xlu1 %526  ;;  %v5045_v37 = vpop.permute.xlu0 %1356 }
 0x169   : > { %3920 = vmatpush3.bf16.msra.mxu0 %v4279_v17  ;;  %3923 = vmatprep.mubr.msk.bf16.mxu0 %vm4357_vm0, %v5875_v57  ;;  %v1402_v17 = vmax.f32 %v1330_v19, %v5045_v37  ;;  %v4339_v19 = vld [vmem:[%s4399_s21 + $0x38] sm:$0x1] }
 0x16a   : > { %3921 = vmatprep.subr.bf16.mxu0 %v5875_v57 }
 0x16b   : > { %606 = vrot.lane.b32.xlu1 %v5024_v18, %s4353_s23  ;;  %878 = vrot.lane.b32.xlu0 %v5041_v56, %s4352_s22 }
 0x16c   : > { %3948 = vmatmul.mubr.msk.bf16.vlgmr.msra.gmra.mrb[0].mxu1 %vm1531_vm9, %v1777_v4  ;;  %v5064_v38 = vpop.permute.xlu1 %598  ;;  %v5066_v39 = vpop.permute.xlu0 %870 }
 0x16d   : > { %3922 = vmatpush3.bf16.msra.mxu0 %v4280_v49  ;;  %3952 = vmatpush3.bf16.msra.mxu1 %v4283_v58  ;;  %v915_v1 = vmax.f32 %v4760_v48, %v5066_v39 }
 0x16e   : > { %3927 = vmatprep.subr.bf16.mxu0 %v5875_v57  ;;  %3953 = vmatprep.subr.bf16.mxu1 %v5875_v57 }
 0x16f   : > { %324 = vrot.lane.b32.xlu1 %v5074_v59, %s4353_s23  ;;  %1222 = vrot.lane.b32.xlu0 %v5062_v9, %s4352_s22 }
 0x170   : > { %3955 = vmatprep.mubr.msk.bf16.mxu1 %vm4357_vm0, %v5875_v57  ;;  %v317_v50 = vpop.permute.xlu1 %316  ;;  %v5082_v51 = vpop.permute.xlu0 %1214 }
 0x171   : > { %3954 = vmatpush3.bf16.msra.mxu1 %v4284_v25  ;;  %v366_v62 = vmax.f32 %v294_v61, %v317_v50  ;;  %v4285_v50 = vld [vmem:[%s5865_s1 + $0x30] sm:$0xff]   ;;  %v4287_v61 = vld [vmem:[%s5865_s1 + $0x38] sm:$0xff]  }
 0x172   : > { %3959 = vmatprep.subr.bf16.mxu1 %v5875_v57 }
 0x173   : > { %678 = vrot.lane.b32.xlu1 %v5024_v18, %s4354_s24  ;;  %950 = vrot.lane.b32.xlu0 %v5041_v56, %s4353_s23 }
 0x174   : > { %3924 = vmatmul.mubr.msk.bf16.vlgmr.msra.gmra.mrb[0].mxu0 %vm1531_vm9, %v1777_v4  ;;  %v5093_v8 = vpop.permute.xlu1 %670  ;;  %v5095_v6 = vpop.permute.xlu0 %942 }
 0x175   : > { %3928 = vmatpush3.bf16.msra.mxu0 %v4281_v14  ;;  %3931 = vmatprep.mubr.msk.bf16.mxu0 %vm4357_vm0, %v5875_v57  ;;  %v987_v60 = vmax.f32 %v915_v1, %v5095_v6 }
 0x176   : > { %3929 = vmatprep.subr.bf16.mxu0 %v5875_v57 }
 0x177   : > { %396 = vrot.lane.b32.xlu1 %v5074_v59, %s4354_s24  ;;  %1294 = vrot.lane.b32.xlu0 %v5062_v9, %s4353_s23 }
 0x178   : > { %v389_v11 = vpop.permute.xlu1 %388  ;;  %v5109_v34 = vpop.permute.xlu0 %1286 }
 0x179   : > { %3930 = vmatpush3.bf16.msra.mxu0 %v4282_v10  ;;  %v438_v52 = vmax.f32 %v366_v62, %v389_v11  ;;  %v571_v62 = vmax.f32 %v4749_v12, %v5043_v36 }
 0x17a   : > { %3967 = vmatprep.subr.bf16.mxu0 %v5875_v57 }
 0x17b   : > { %1366 = vrot.lane.b32.xlu1 %v5062_v9, %s4354_s24  ;;  %1022 = vrot.lane.b32.xlu0 %v5041_v56, %s4354_s24  ;;  %458 = vst.msk [vmem:[#allocation2 + $0x20] sm:$0xff] %vm452_vm2, %v438_v52  ;;  %v643_v15 = vmax.f32 %v571_v62, %v5064_v38 }
 0x17c   : > { %v5125_v7 = vpop.permute.xlu1 %1358  ;;  %v5127_v33 = vpop.permute.xlu0 %1014 }
 0x17d   : > { %v715_v12 = vmax.f32 %v643_v15, %v5093_v8  ;;  %v1259_v8 = vmax.f32 %v4771_v13, %v5082_v51  ;;  %v1059_v13 = vmax.f32 %v987_v60, %v5127_v33 }
 0x17f   : > { %538 = vrot.lane.b32.xlu1 %v5118_v24, %s4352_s22  ;;  %536 = vrot.lane.b32.xlu0 %v5121_v42, %s4352_s22 }
 0x180   : > { %3932 = vmatmul.mubr.msk.bf16.vlgmr.msra.gmra.mrb[0].mxu0 %vm1531_vm9, %v5000_v32  ;;  %v5142_v54 = vpop.permute.xlu1 %530  ;;  %v5144_v31 = vpop.permute.xlu0 %528 }
 0x181   : > { %3968 = vmatpush3.bf16.msra.mxu0 %v4286_v40  ;;  %3971 = vmatprep.mubr.msk.bf16.mxu0 %vm4357_vm0, %v5875_v57  ;;  %v5249_v40 = vld [vmem:[%s4399_s21 + $0x48] sm:$0x1]  ;;  %v572_v62 = vmax.f32 %v4810_v44, %v5144_v31 }
 0x182   : > { %3969 = vmatprep.subr.bf16.mxu0 %v5875_v57 }
 0x183   : > { %880 = vrot.lane.b32.xlu1 %v5121_v42, %s4352_s22  ;;  %758 = vrot.lane.b32.xlu0 %v714_v45, %s4352_s22  ;;  %v295_v45 = vmax.f32 %v4338_v47, %v4587_v23  ;;  %v1331_v23 = vmax.f32 %v1259_v8, %v5109_v34 }
 0x184   : > { %v5160_v16 = vpop.permute.xlu1 %872  ;;  %v751_v22 = vpop.permute.xlu0 %750 }
 0x185   : > { %3970 = vmatpush3.bf16.msra.mxu0 %v4288_v46  ;;  %802 = vst.msk [vmem:[#allocation2 + $0x20] sm:$0xff] %vm796_vm4, %v751_v22  ;;  %v5264_v46 = vld [vmem:[%s4399_s21 + $0x58] sm:$0x1]  ;;  %v1403_v48 = vmax.f32 %v1331_v23, %v5125_v7  ;;  %v4340_v7 = vld [vmem:[%s4399_s21 + $0x30] sm:$0xff]  ;;  %v916_v31 = vmax.f32 %v4810_v44, %v5160_v16 }
 0x186   : > { %3975 = vmatprep.subr.bf16.mxu0 %v5875_v57  ;;  %v296_v33 = vmax.f32 %v4340_v7, %v4600_v27  ;;  %v4289_v27 = vld [vmem:[%s5865_s1] sm:$0xff]   ;;  %v4296_v7 = vld [vmem:[%s5865_s1 + $0x8] sm:$0xff]  }
 0x187   : > { %882 = vrot.lane.b32.xlu0 %v5157_v63, %s4352_s22  ;;  %1102 = vrot.lane.b32.xlu1 %v1058_v3, %s4356_s27 }
 0x188   : > { %v1095_v55 = vpop.permute.xlu1 %1094  ;;  %v5167_v32 = vpop.permute.xlu0 %874 }
 0x189   : > { %1146 = vst.msk [vmem:[#allocation2 + $0x20] sm:$0xff] %vm1140_vm6, %v1095_v55 }
 0x18b   : > { %608 = vrot.lane.b32.xlu0 %v5121_v42, %s4353_s23  ;;  %610 = vrot.lane.b32.xlu1 %v5118_v24, %s4353_s23 }
 0x18c   : > { %v5179_v0 = vpop.permute.xlu1 %602  ;;  %v5181_v2 = vpop.permute.xlu0 %600 }
 0x18f   : > { %1224 = vrot.lane.b32.xlu0 %v5121_v42, %s4352_s22  ;;  %1226 = vrot.lane.b32.xlu1 %v5175_v53, %s4352_s22 }
 0x190   : > { %v5189_v29 = vpop.permute.xlu1 %1218  ;;  %v5191_v30 = vpop.permute.xlu0 %1216 }
 0x193   : > { %952 = vrot.lane.b32.xlu1 %v5121_v42, %s4353_s23  ;;  %1446 = vrot.lane.b32.xlu0 %v1402_v17, %s4358_s8  ;;  %v297_v17 = vmax.f32 %v4339_v19, %v4598_v26 }
 0x194   : > { %v5196_v20 = vpop.permute.xlu1 %944  ;;  %v1439_v21 = vpop.permute.xlu0 %1438 }
 0x195   : > { %1490 = vst.msk [vmem:[#allocation2 + $0x20] sm:$0xff] %vm1484_vm8, %v1439_v21 }
 0x197   : > { %680 = vrot.lane.b32.xlu1 %v5121_v42, %s4354_s24  ;;  %954 = vrot.lane.b32.xlu0 %v5157_v63, %s4353_s23 }
 0x198   : > { %v5203_v37 = vpop.permute.xlu1 %672  ;;  %v5205_v49 = vpop.permute.xlu0 %946 }
 0x19b   : > { %1296 = vrot.lane.b32.xlu1 %v5121_v42, %s4353_s23  ;;  %682 = vrot.lane.b32.xlu0 %v5118_v24, %s4354_s24 }
 0x19c   : > { %v5211_v58 = vpop.permute.xlu1 %1288  ;;  %v5213_v4 = vpop.permute.xlu0 %674  ;;  %v1899_v25 = vld [vmem:[#allocation2 + $0x20] sm:$0xff] }
 0x19d   : > { %v5218_v14 = vpack.c.bf16 %v1899_v25, %v1899_v25 }
 0x19f   : > { %1024 = vrot.lane.b32.xlu1 %v5121_v42, %s4354_s24  ;;  %1298 = vrot.lane.b32.xlu0 %v5175_v53, %s4353_s23 }
 0x1a0   : > { %3956 = vmatmul.mubr.msk.bf16.vlgmr.msra.gmra.mrb[0].mxu1 %vm1531_vm9, %v5218_v14  ;;  %v5226_v10 = vpop.permute.xlu1 %1016  ;;  %v5228_v28 = vpop.permute.xlu0 %1290 }
 0x1a1   : > { %3960 = vmatpush3.bf16.msra.mxu1 %v4285_v50  ;;  %3963 = vmatprep.mubr.msk.bf16.mxu1 %vm4357_vm0, %v5875_v57  ;;  %v5876_v50 = vld [vmem:[#allocation5_spill] sm:$0xff] }
 0x1a2   : > { %3961 = vmatprep.subr.bf16.mxu1 %v5875_v57 }
 0x1a3   : > { %1368 = vrot.lane.b32.xlu1 %v5121_v42, %s4354_s24  ;;  %1026 = vrot.lane.b32.xlu0 %v5157_v63, %s4354_s24 }
 0x1a4   : > { %v5242_v11 = vpop.permute.xlu1 %1360  ;;  %v5244_v52 = vpop.permute.xlu0 %1018 }
 0x1a5   : > { %3962 = vmatpush3.bf16.msra.mxu1 %v4287_v61  ;;  %v573_v61 = vmax.f32 %v5876_v50, %v5142_v54 }
 0x1a6   : > { %3999 = vmatprep.subr.bf16.mxu1 %v5875_v57 }
 0x1a7   : > { %326 = vrot.lane.b32.xlu1 %v5249_v40, %s4353_s23  ;;  %1370 = vrot.lane.b32.xlu0 %v5175_v53, %s4354_s24 }
 0x1a8   : > { %v319_v36 = vpop.permute.xlu1 %318  ;;  %v5256_v41 = vpop.permute.xlu0 %1362 }
 0x1a9   : > { %v367_v38 = vmax.f32 %v295_v45, %v319_v36  ;;  %v645_v45 = vmax.f32 %v573_v61, %v5179_v0  ;;  %v4291_v0 = vld [vmem:[%s5865_s1 + $0x10] sm:$0xff]   ;;  %v4298_v61 = vld [vmem:[%s5865_s1 + $0x38] sm:$0xff]  }
 0x1ab   : > { %760 = vrot.lane.b32.xlu1 %v715_v12, %s4352_s22  ;;  %398 = vrot.lane.b32.xlu0 %v5249_v40, %s4354_s24  ;;  %v717_v8 = vmax.f32 %v645_v45, %v5213_v4  ;;  %v4292_v4 = vld [vmem:[%s5865_s1 + $0x18] sm:$0xff]   ;;  %v4300_v45 = vld [vmem:[%s5865_s1 + $0x28] sm:$0xff]  }
 0x1ac   : > { %v753_v3 = vpop.permute.xlu1 %752  ;;  %v391_v22 = vpop.permute.xlu0 %390 }
 0x1ad   : > { %v439_v55 = vmax.f32 %v367_v38, %v391_v22  ;;  %v644_v38 = vmax.f32 %v572_v62, %v5181_v2  ;;  %v917_v2 = vmax.f32 %v4829_v35, %v5167_v32  ;;  %v4290_v22 = vld [vmem:[%s5865_s1 + $0x8] sm:$0xff]   ;;  %v988_v35 = vmax.f32 %v916_v31, %v5196_v20 }
 0x1ae   : > { %v5423_v62 = vld [vmem:[%s4399_s21 + $0x88] sm:$0x1] }
 0x1af   : > { %258 = vrot.lane.b32.xlu1 %v5264_v46, %s4352_s22  ;;  %256 = vrot.lane.b32.xlu0 %v4810_v44, %s4352_s22  ;;  %459 = vst.msk [vmem:[#allocation2 + $0x28] sm:$0x1] %vm454_vm1, %v439_v55  ;;  %v716_v1 = vmax.f32 %v644_v38, %v5203_v37  ;;  %v989_v32 = vmax.f32 %v917_v2, %v5205_v49  ;;  %v4302_v38 = vld [vmem:[%s5865_s1 + $0x10] sm:$0xff]   ;;  %v4304_v2 = vld [vmem:[%s5865_s1 + $0x18] sm:$0xff]  }
 0x1b0   : > { %803 = vst.msk [vmem:[#allocation2 + $0x28] sm:$0x1] %vm798_vm3, %v753_v3  ;;  %v1441_v39 = vpop.permute.xlu1 %1440  ;;  %v1097_v51 = vpop.permute.xlu0 %1096  ;;  %v1261_v37 = vmax.f32 %v4849_v43, %v5189_v29  ;;  %v1260_v55 = vmax.f32 %v4810_v44, %v5191_v30  ;;  %v1060_v20 = vmax.f32 %v988_v35, %v5226_v10 }
 0x1b1   : > { %1147 = vst.msk [vmem:[#allocation2 + $0x28] sm:$0x1] %vm1142_vm5, %v1097_v51  ;;  %v1061_v49 = vmax.f32 %v989_v32, %v5244_v52  ;;  %v4295_v51 = vld [vmem:[%s5865_s1] sm:$0xff]  }
 0x1b2   : > { %1491 = vst.msk [vmem:[#allocation2 + $0x28] sm:$0x1] %vm1486_vm7, %v1441_v39  ;;  %v1332_v43 = vmax.f32 %v1260_v55, %v5211_v58  ;;  %v4293_v58 = vld [vmem:[%s5865_s1 + $0x20] sm:$0xff]  }
 0x1b3   : > { %1448 = vrot.lane.b32.xlu1 %v1403_v48, %s4358_s8  ;;  %1104 = vrot.lane.b32.xlu0 %v1059_v13, %s4356_s27  ;;  %v4294_v48 = vld [vmem:[%s5865_s1 + $0x28] sm:$0xff]  }
 0x1b4   : > { %v323_v6 = vpop.permute.xlu1 %322  ;;  %v321_v34 = vpop.permute.xlu0 %320  ;;  %v1404_v29 = vmax.f32 %v1332_v43, %v5242_v11 }
 0x1b5   : > { %v369_v21 = vmax.f32 %v297_v17, %v323_v6  ;;  %v368_v25 = vmax.f32 %v296_v33, %v321_v34  ;;  %v4297_v33 = vld [vmem:[%s5865_s1 + $0x30] sm:$0xff]  }
 0x1b7   : > { %330 = vrot.lane.b32.xlu1 %v5264_v46, %s4353_s23  ;;  %328 = vrot.lane.b32.xlu0 %v4810_v44, %s4353_s23 }
 0x1b8   : > { %v395_v15 = vpop.permute.xlu1 %394  ;;  %v393_v12 = vpop.permute.xlu0 %392 }
 0x1b9   : > { %v441_v26 = vmax.f32 %v369_v21, %v395_v15  ;;  %v440_v36 = vmax.f32 %v368_v25, %v393_v12  ;;  %v1961_v47 = vld [vmem:[#allocation2 + $0x21] sm:$0xff] }
 0x1ba   : > { %v1962_v54 = vpack.c.bf16 %v1961_v47, %v1961_v47 }
 0x1bb   : > { %402 = vrot.lane.b32.xlu1 %v5264_v46, %s4354_s24  ;;  %400 = vrot.lane.b32.xlu0 %v4810_v44, %s4354_s24  ;;  %461 = vst.msk [vmem:[#allocation2 + $0x38] sm:$0x1] %vm454_vm1, %v441_v26  ;;  %v1333_v44 = vmax.f32 %v1261_v37, %v5228_v28  ;;  %v5360_v28 = vld [vmem:[%s4399_s21 + $0x80] sm:$0xff] }
 0x1bc   : > { %460 = vst.msk [vmem:[#allocation2 + $0x30] sm:$0xff] %vm452_vm2, %v440_v36  ;;  %v757_v3 = vpop.permute.xlu1 %756  ;;  %3964 = vmatmul.mubr.msk.bf16.vlgmr.msra.gmra.mrb[0].mxu1 %vm1531_vm9, %v1962_v54  ;;  %3972 = vmatmul.mubr.msk.bf16.vlgmr.msra.gmra.mrb[4].mxu0 %vm1531_vm9, %v1962_v54  ;;  %v755_v16 = vpop.permute.xlu0 %754  ;;  %v4299_v26 = vld [vmem:[%s5865_s1 + $0x20] sm:$0xff]   ;;  %v5440_v36 = vld [vmem:[%s4399_s21 + $0x88] sm:$0x1] }
 0x1bd   : > { %805 = vst.msk [vmem:[#allocation2 + $0x38] sm:$0x1] %vm798_vm3, %v757_v3  ;;  %3976 = vmatpush3.bf16.msra.mxu0 %v4289_v27  ;;  %3979 = vmatprep.mubr.msk.bf16.mxu0 %vm4357_vm0, %v5875_v57  ;;  %v1405_v30 = vmax.f32 %v1333_v44, %v5256_v41  ;;  %v5459_v54 = vld [vmem:[%s4399_s21 + $0x88] sm:$0x1]  ;;  %v5877_v3 = vld [vmem:[#allocation4_spill] sm:$0xff] }
 0x1be   : > { %804 = vst.msk [vmem:[#allocation2 + $0x30] sm:$0xff] %vm796_vm4, %v755_v16  ;;  %3977 = vmatprep.subr.bf16.mxu0 %v5875_v57  ;;  %4000 = vmatpush3.bf16.msra.mxu1 %v4291_v0  ;;  %v298_v16 = vmax.f32 %v5074_v59, %v5877_v3 }
 0x1bf   : > { %762 = vrot.lane.b32.xlu0 %v716_v1, %s4352_s22  ;;  %764 = vrot.lane.b32.xlu1 %v717_v8, %s4352_s22 }
 0x1c0   : > { %v1101_v60 = vpop.permute.xlu1 %1100  ;;  %v1099_v23 = vpop.permute.xlu0 %1098  ;;  %4001 = vmatprep.subr.bf16.mxu1 %v5875_v57  ;;  %4003 = vmatprep.mubr.msk.bf16.mxu1 %vm4357_vm0, %v5875_v57 }
 0x1c1   : > { %1149 = vst.msk [vmem:[#allocation2 + $0x38] sm:$0x1] %vm1142_vm5, %v1101_v60  ;;  %3978 = vmatpush3.bf16.msra.mxu0 %v4290_v22 }
 0x1c2   : > { %1148 = vst.msk [vmem:[#allocation2 + $0x30] sm:$0xff] %vm1140_vm6, %v1099_v23  ;;  %3983 = vmatprep.subr.bf16.mxu0 %v5875_v57  ;;  %4002 = vmatpush3.bf16.msra.mxu1 %v4292_v4 }
 0x1c3   : > { %1106 = vrot.lane.b32.xlu0 %v1060_v20, %s4356_s27  ;;  %1108 = vrot.lane.b32.xlu1 %v1061_v49, %s4356_s27 }
 0x1c4   : > { %v1445_v10 = vpop.permute.xlu1 %1444  ;;  %v1443_v52 = vpop.permute.xlu0 %1442  ;;  %4007 = vmatprep.subr.bf16.mxu1 %v5875_v57 }
 0x1c5   : > { %1493 = vst.msk [vmem:[#allocation2 + $0x38] sm:$0x1] %vm1486_vm7, %v1445_v10 }
 0x1c6   : > { %1492 = vst.msk [vmem:[#allocation2 + $0x30] sm:$0xff] %vm1484_vm8, %v1443_v52 }
 0x1c7   : > { %1450 = vrot.lane.b32.xlu0 %v1404_v29, %s4358_s8  ;;  %1452 = vrot.lane.b32.xlu1 %v1405_v30, %s4358_s8 }
 0x1c8   : > { %v5362_v11 = vpop.permute.xlu1 %876  ;;  %3980 = vmatmul.mubr.msk.bf16.vlgmr.msra.gmra.mrb[4].mxu0 %vm1531_vm9, %v5218_v14  ;;  %v5366_v41 = vpop.permute.xlu0 %532 }
 0x1c9   : > { %3984 = vmatpush3.bf16.msra.mxu0 %v4293_v58  ;;  %3987 = vmatprep.mubr.msk.bf16.mxu0 %vm4357_vm0, %v5875_v57  ;;  %v574_v59 = vmax.f32 %v4968_v5, %v5366_v41  ;;  %v918_v49 = vmax.f32 %v4968_v5, %v5362_v11  ;;  %v5512_v41 = vld [vmem:[%s4399_s21 + $0x68] sm:$0x1] }
 0x1ca   : > { %3985 = vmatprep.subr.bf16.mxu0 %v5875_v57 }
 0x1cb   : > { %540 = vrot.lane.b32.xlu0 %v5360_v28, %s4352_s22  ;;  %884 = vrot.lane.b32.xlu1 %v5360_v28, %s4352_s22 }
 0x1cc   : > { %v5378_v13 = vpop.permute.xlu1 %1220  ;;  %v5380_v14 = vpop.permute.xlu0 %604 }
 0x1cd   : > { %v2288_v39 = vld [vmem:[#allocation2 + $0x31] sm:$0xff]  ;;  %3986 = vmatpush3.bf16.msra.mxu0 %v4294_v48  ;;  %v646_v20 = vmax.f32 %v574_v59, %v5380_v14  ;;  %v1262_v60 = vmax.f32 %v4968_v5, %v5378_v13 }
 0x1ce   : > { %v2289_v6 = vpack.c.bf16 %v2288_v39, %v2288_v39  ;;  %v2152_v34 = vld [vmem:[#allocation2 + $0x30] sm:$0xff]  ;;  %3991 = vmatprep.subr.bf16.mxu0 %v5875_v57 }
 0x1cf   : > { %612 = vrot.lane.b32.xlu0 %v5360_v28, %s4353_s23  ;;  %1228 = vrot.lane.b32.xlu1 %v5360_v28, %s4352_s22  ;;  %v2153_v21 = vpack.c.bf16 %v2152_v34, %v2152_v34 }
 0x1d0   : > { %4004 = vmatmul.mubr.msk.bf16.vlgmr.msra.gmra.mrb[4].mxu1 %vm1531_vm9, %v2289_v6  ;;  %v5391_v19 = vpop.permute.xlu1 %676 }
 0x1d1   : > { %v5393_v17 = vpop.permute.xlu0 %948  ;;  %4008 = vmatpush3.bf16.msra.mxu1 %v4295_v51  ;;  %4011 = vmatprep.mubr.msk.bf16.mxu1 %vm4357_vm0, %v5875_v57  ;;  %v718_v23 = vmax.f32 %v646_v20, %v5391_v19 }
 0x1d2   : > { %4009 = vmatprep.subr.bf16.mxu1 %v5875_v57  ;;  %v990_v29 = vmax.f32 %v918_v49, %v5393_v17 }
 0x1d3   : > { %956 = vrot.lane.b32.xlu0 %v5360_v28, %s4353_s23  ;;  %684 = vrot.lane.b32.xlu1 %v5360_v28, %s4354_s24 }
 0x1d4   : > { %3988 = vmatmul.mubr.msk.bf16.vlgmr.msra.gmra.mrb[4].mxu0 %vm1531_vm9, %v2153_v21 }
 0x1d5   : > { %v5408_v25 = vpop.permute.xlu1 %1020  ;;  %v5411_v50 = vpop.permute.xlu0 %1292  ;;  %4010 = vmatpush3.bf16.msra.mxu1 %v4296_v7  ;;  %3992 = vmatpush3.bf16.msra.mxu0 %v4297_v33 }
 0x1d6   : > { %3995 = vmatprep.mubr.msk.bf16.mxu0 %vm4357_vm0, %v5875_v57  ;;  %3993 = vmatprep.subr.bf16.mxu0 %v5875_v57  ;;  %v1334_v30 = vmax.f32 %v1262_v60, %v5411_v50  ;;  %v1062_v10 = vmax.f32 %v990_v29, %v5408_v25 }
 0x1d7   : > { %1300 = vrot.lane.b32.xlu0 %v5360_v28, %s4353_s23  ;;  %1028 = vrot.lane.b32.xlu1 %v5360_v28, %s4354_s24 }
 0x1d8   : > { %4015 = vmatprep.subr.bf16.mxu1 %v5875_v57 }
 0x1d9   : > { %v5427_v15 = vpop.permute.xlu1 %534  ;;  %v5429_v12 = vpop.permute.xlu0 %1364  ;;  %3994 = vmatpush3.bf16.msra.mxu0 %v4298_v61 }
 0x1da   : > { %4031 = vmatprep.subr.bf16.mxu0 %v5875_v57  ;;  %v1406_v52 = vmax.f32 %v1334_v30, %v5429_v12  ;;  %v575_v11 = vmax.f32 %v5024_v18, %v5427_v15  ;;  %v5878_v30 = vld [vmem:[#allocation3_spill] sm:$0xff] }
 0x1db   : > { %1372 = vrot.lane.b32.xlu0 %v5360_v28, %s4354_s24  ;;  %542 = vrot.lane.b32.xlu1 %v5423_v62, %s4352_s22 }
 0x1dc   : > { %4012 = vmatmul.mubr.msk.bf16.vlgmr.msra.gmra.mrb[4].mxu1 %vm1531_vm9, %v2153_v21 }
 0x1dd   : > { %v607_v47 = vpop.permute.xlu1 %606  ;;  %v5443_v27 = vpop.permute.xlu0 %878  ;;  %4016 = vmatpush3.bf16.msra.mxu1 %v4299_v26  ;;  %4019 = vmatprep.mubr.msk.bf16.mxu1 %vm4357_vm0, %v5875_v57 }
 0x1de   : > { %4017 = vmatprep.subr.bf16.mxu1 %v5875_v57  ;;  %v647_v14 = vmax.f32 %v575_v11, %v607_v47  ;;  %v919_v34 = vmax.f32 %v5041_v56, %v5443_v27 }
 0x1df   : > { %260 = vrot.lane.b32.xlu0 %v4968_v5, %s4352_s22  ;;  %886 = vrot.lane.b32.xlu1 %v5440_v36, %s4352_s22 }
 0x1e0   : > { %3996 = vmatmul.mubr.msk.bf16.vlgmr.msra.gmra.mrb[4].mxu0 %vm1531_vm9, %v2289_v6  ;;  %v5523_v6 = vld [vmem:[%s4399_s21 + $0x78] sm:$0x1] }
 0x1e1   : > { %v325_v31 = vpop.permute.xlu1 %324  ;;  %v5462_v0 = vpop.permute.xlu0 %1222  ;;  %4018 = vmatpush3.bf16.msra.mxu1 %v4300_v45  ;;  %4032 = vmatpush3.bf16.msra.mxu0 %v4302_v38  ;;  %v4301_v38 = vld [vmem:[%s5865_s1 + $0x30] sm:$0xff]  }
 0x1e2   : > { %4023 = vmatprep.subr.bf16.mxu1 %v5875_v57  ;;  %4033 = vmatprep.subr.bf16.mxu0 %v5875_v57  ;;  %v370_v22 = vmax.f32 %v298_v16, %v325_v31  ;;  %v1263_v19 = vmax.f32 %v5062_v9, %v5462_v0 }
 0x1e3   : > { %614 = vrot.lane.b32.xlu0 %v5423_v62, %s4353_s23  ;;  %1230 = vrot.lane.b32.xlu1 %v5459_v54, %s4352_s22 }
 0x1e4   : > { %4035 = vmatprep.mubr.msk.bf16.mxu0 %vm4357_vm0, %v5875_v57 }
 0x1e5   : > { %v679_v1 = vpop.permute.xlu1 %678  ;;  %v951_v8 = vpop.permute.xlu0 %950  ;;  %4034 = vmatpush3.bf16.msra.mxu0 %v4304_v2 }
 0x1e6   : > { %4039 = vmatprep.subr.bf16.mxu0 %v5875_v57  ;;  %v719_v39 = vmax.f32 %v647_v14, %v679_v1  ;;  %v991_v33 = vmax.f32 %v919_v34, %v951_v8 }
 0x1e7   : > { %332 = vrot.lane.b32.xlu0 %v4968_v5, %s4353_s23  ;;  %958 = vrot.lane.b32.xlu1 %v5440_v36, %s4353_s23 }
 0x1e9   : > { %v397_v35 = vpop.permute.xlu1 %396  ;;  %v1295_v32 = vpop.permute.xlu0 %1294 }
 0x1ea   : > { %v442_v37 = vmax.f32 %v370_v22, %v397_v35  ;;  %v1335_v21 = vmax.f32 %v1263_v19, %v1295_v32  ;;  %v4303_v22 = vld [vmem:[%s5865_s1 + $0x38] sm:$0xff]  }
 0x1eb   : > { %686 = vrot.lane.b32.xlu0 %v5423_v62, %s4354_s24  ;;  %1302 = vrot.lane.b32.xlu1 %v5459_v54, %s4353_s23 }
 0x1ec   : > { %462 = vst.msk [vmem:[#allocation2 + $0x40] sm:$0xff] %vm452_vm2, %v442_v37 }
 0x1ed   : > { %v1367_v4 = vpop.permute.xlu1 %1366  ;;  %v1023_v55 = vpop.permute.xlu0 %1022 }
 0x1ee   : > { %v1407_v25 = vmax.f32 %v1335_v21, %v1367_v4  ;;  %v1063_v50 = vmax.f32 %v991_v33, %v1023_v55 }
 0x1ef   : > { %404 = vrot.lane.b32.xlu0 %v4968_v5, %s4354_s24  ;;  %1030 = vrot.lane.b32.xlu1 %v5440_v36, %s4354_s24 }
 0x1f1   : > { %v539_v43 = vpop.permute.xlu1 %538  ;;  %v537_v44 = vpop.permute.xlu0 %536 }
 0x1f2   : > { %v577_v12 = vmax.f32 %v5118_v24, %v539_v43  ;;  %v576_v26 = vmax.f32 %v5121_v42, %v537_v44 }
 0x1f3   : > { %1374 = vrot.lane.b32.xlu0 %v5459_v54, %s4354_s24  ;;  %766 = vrot.lane.b32.xlu1 %v718_v23, %s4352_s22 }
 0x1f5   : > { %v881_v58 = vpop.permute.xlu1 %880  ;;  %v759_v5 = vpop.permute.xlu0 %758 }
 0x1f6   : > { %806 = vst.msk [vmem:[#allocation2 + $0x40] sm:$0xff] %vm796_vm4, %v759_v5  ;;  %v920_v24 = vmax.f32 %v5121_v42, %v881_v58 }
 0x1f7   : > { %1110 = vrot.lane.b32.xlu0 %v1062_v10, %s4356_s27  ;;  %1454 = vrot.lane.b32.xlu1 %v1406_v52, %s4358_s8 }
 0x1f9   : > { %v1103_v48 = vpop.permute.xlu1 %1102  ;;  %v883_v13 = vpop.permute.xlu0 %882 }
 0x1fa   : > { %1150 = vst.msk [vmem:[#allocation2 + $0x40] sm:$0xff] %vm1140_vm6, %v1103_v48  ;;  %v921_v35 = vmax.f32 %v5157_v63, %v883_v13 }
 0x1fb   : > { %262 = vrot.lane.b32.xlu0 %v5512_v41, %s4352_s22  ;;  %334 = vrot.lane.b32.xlu1 %v5512_v41, %s4353_s23 }
 0x1fd   : > { %v611_v51 = vpop.permute.xlu1 %610  ;;  %v609_v18 = vpop.permute.xlu0 %608 }
 0x1fe   : > { %v649_v0 = vmax.f32 %v577_v12, %v611_v51  ;;  %v648_v2 = vmax.f32 %v576_v26, %v609_v18  ;;  %v4341_v18 = vld [vmem:[%s4399_s21 + $0x50] sm:$0xff]  ;;  %v4306_v12 = vld [vmem:[%s5865_s1 + $0x8] sm:$0xff]   ;;  %v4308_v26 = vld [vmem:[%s5865_s1 + $0x18] sm:$0xff]  }
 0x1ff   : > { %406 = vrot.lane.b32.xlu0 %v5512_v41, %s4354_s24  ;;  %768 = vrot.lane.b32.xlu1 %v719_v39, %s4352_s22 }
 0x201   : > { %v1227_v17 = vpop.permute.xlu1 %1226  ;;  %v1225_v7 = vpop.permute.xlu0 %1224 }
 0x202   : > { %v1264_v59 = vmax.f32 %v5121_v42, %v1225_v7  ;;  %v1265_v49 = vmax.f32 %v5175_v53, %v1227_v17 }
 0x203   : > { %264 = vrot.lane.b32.xlu0 %v5121_v42, %s4352_s22  ;;  %266 = vrot.lane.b32.xlu1 %v5523_v6, %s4352_s22 }
 0x205   : > { %v953_v61 = vpop.permute.xlu1 %952  ;;  %v1447_v15 = vpop.permute.xlu0 %1446 }
 0x206   : > { %1494 = vst.msk [vmem:[#allocation2 + $0x40] sm:$0xff] %vm1484_vm8, %v1447_v15  ;;  %v992_v32 = vmax.f32 %v920_v24, %v953_v61  ;;  %v4305_v61 = vld [vmem:[%s5865_s1] sm:$0xff]  }
 0x207   : > { %1456 = vrot.lane.b32.xlu1 %v1407_v25, %s4358_s8  ;;  %1112 = vrot.lane.b32.xlu0 %v1063_v50, %s4356_s27 }
 0x209   : > { %v681_v56 = vpop.permute.xlu1 %680  ;;  %v955_v9 = vpop.permute.xlu0 %954 }
 0x20a   : > { %v720_v1 = vmax.f32 %v648_v2, %v681_v56  ;;  %v993_v37 = vmax.f32 %v921_v35, %v955_v9  ;;  %v4307_v56 = vld [vmem:[%s5865_s1 + $0x10] sm:$0xff]  }
 0x20b   : > { %338 = vrot.lane.b32.xlu1 %v5523_v6, %s4353_s23  ;;  %336 = vrot.lane.b32.xlu0 %v5121_v42, %s4353_s23 }
 0x20d   : > { %v1297_v47 = vpop.permute.xlu1 %1296  ;;  %v683_v27 = vpop.permute.xlu0 %682  ;;  %v2405_v45 = vld [vmem:[#allocation2 + $0x40] sm:$0xff] }
 0x20e   : > { %v5545_v31 = vpack.c.bf16 %v2405_v45, %v2405_v45  ;;  %v721_v8 = vmax.f32 %v649_v0, %v683_v27  ;;  %v1336_v63 = vmax.f32 %v1264_v59, %v1297_v47  ;;  %v4309_v0 = vld [vmem:[%s5865_s1 + $0x20] sm:$0xff]  }
 0x20f   : > { %410 = vrot.lane.b32.xlu1 %v5523_v6, %s4354_s24  ;;  %408 = vrot.lane.b32.xlu0 %v5121_v42, %s4354_s24  ;;  %v299_v42 = vmax.f32 %v5249_v40, %v5878_v30 }
 0x210   : > { %4020 = vmatmul.mubr.msk.bf16.vlgmr.msra.gmra.mrb[4].mxu1 %vm1531_vm9, %v5545_v31 }
 0x211   : > { %v1025_v3 = vpop.permute.xlu1 %1024  ;;  %v1299_v16 = vpop.permute.xlu0 %1298  ;;  %4024 = vmatpush3.bf16.msra.mxu1 %v4301_v38  ;;  %4027 = vmatprep.mubr.msk.bf16.mxu1 %vm4357_vm0, %v5875_v57 }
 0x212   : > { %4025 = vmatprep.subr.bf16.mxu1 %v5875_v57  ;;  %v1064_v4 = vmax.f32 %v992_v32, %v1025_v3  ;;  %v1337_v23 = vmax.f32 %v1265_v49, %v1299_v16 }
 0x213   : > { %770 = vrot.lane.b32.xlu0 %v720_v1, %s4352_s22  ;;  %772 = vrot.lane.b32.xlu1 %v721_v8, %s4352_s22  ;;  %v4310_v1 = vld [vmem:[%s5865_s1 + $0x28] sm:$0xff]  }
 0x215   : > { %v1369_v55 = vpop.permute.xlu1 %1368  ;;  %v1027_v20 = vpop.permute.xlu0 %1026  ;;  %4026 = vmatpush3.bf16.msra.mxu1 %v4303_v22  ;;  %v4311_v22 = vld [vmem:[%s5865_s1] sm:$0xff]  }
 0x216   : > { %v1065_v60 = vmax.f32 %v993_v37, %v1027_v20  ;;  %4063 = vmatprep.subr.bf16.mxu1 %v5875_v57  ;;  %v1408_v43 = vmax.f32 %v1336_v63, %v1369_v55  ;;  %v4312_v55 = vld [vmem:[%s5865_s1 + $0x8] sm:$0xff]  }
 0x217   : > { %1114 = vrot.lane.b32.xlu0 %v1064_v4, %s4356_s27 }
 0x218   : > { %1116 = vrot.lane.b32.xlu1 %v1065_v60, %s4356_s27  ;;  %v4313_v60 = vld [vmem:[%s5865_s1 + $0x30] sm:$0xff]  }
 0x219   : > { %v327_v44 = vpop.permute.xlu1 %326  ;;  %v1371_v29 = vpop.permute.xlu0 %1370 }
 0x21a   : > { %v1409_v10 = vmax.f32 %v1337_v23, %v1371_v29  ;;  %v371_v52 = vmax.f32 %v299_v42, %v327_v44  ;;  %v4314_v42 = vld [vmem:[%s5865_s1 + $0x38] sm:$0xff]  }
 0x21b   : > { %1458 = vrot.lane.b32.xlu0 %v1408_v43, %s4358_s8 }
 0x21c   : > { %1460 = vrot.lane.b32.xlu1 %v1409_v10, %s4358_s8 }
 0x21d   : > { %v761_v53 = vpop.permute.xlu1 %760  ;;  %v399_v58 = vpop.permute.xlu0 %398 }
 0x21e   : > { %v443_v5 = vmax.f32 %v371_v52, %v399_v58  ;;  %v4315_v58 = vld [vmem:[%s5865_s1 + $0x20] sm:$0xff]  }
 0x21f   : > { %268 = vrot.lane.b32.xlu0 %v5360_v28, %s4352_s22 }
 0x220   : > { %463 = vst.msk [vmem:[#allocation2 + $0x48] sm:$0x1] %vm454_vm1, %v443_v5  ;;  %340 = vrot.lane.b32.xlu1 %v5360_v28, %s4353_s23 }
 0x221   : > { %807 = vst.msk [vmem:[#allocation2 + $0x48] sm:$0x1] %vm798_vm3, %v761_v53  ;;  %v259_v40 = vpop.permute.xlu1 %258  ;;  %v257_v11 = vpop.permute.xlu0 %256 }
 0x222   : > { %v301_v51 = vmax.f32 %v5264_v46, %v259_v40  ;;  %v300_v34 = vmax.f32 %v4341_v18, %v257_v11  ;;  %v5657_v40 = vld [vmem:[%s4399_s21 + $0x88] sm:$0x1] }
 0x223   : > { %412 = vrot.lane.b32.xlu0 %v5360_v28, %s4354_s24 }
 0x225   : > { %v1449_v48 = vpop.permute.xlu1 %1448  ;;  %v1105_v13 = vpop.permute.xlu0 %1104 }
 0x226   : > { %1151 = vst.msk [vmem:[#allocation2 + $0x48] sm:$0x1] %vm1142_vm5, %v1105_v13  ;;  %v5665_v13 = vld [vmem:[%s5866_s2] ss:$0 sm:$0xff] }
 0x227   : > { %1495 = vst.msk [vmem:[#allocation2 + $0x48] sm:$0x1] %vm1486_vm7, %v1449_v48 }
 0x229   : > { %v331_v14 = vpop.permute.xlu1 %330  ;;  %v329_v39 = vpop.permute.xlu0 %328 }
 0x22a   : > { %v373_v19 = vmax.f32 %v301_v51, %v331_v14  ;;  %v372_v17 = vmax.f32 %v300_v34, %v329_v39  ;;  %v4316_v14 = vld [vmem:[%s5865_s1 + $0x28] sm:$0xff]   ;;  %v4318_v39 = vld [vmem:[%s5865_s1 + $0x10] sm:$0xff]   ;;  %v5681_v51 = vld [vmem:[%s5867_s3] ss:$0 sm:$0xff] }
 0x22d   : > { %v403_v7 = vpop.permute.xlu1 %402  ;;  %v401_v33 = vpop.permute.xlu0 %400 }
 0x22e   : > { %v445_v21 = vmax.f32 %v373_v19, %v403_v7  ;;  %v444_v25 = vmax.f32 %v372_v17, %v401_v33  ;;  %v2467_v50 = vld [vmem:[#allocation2 + $0x41] sm:$0xff] }
 0x22f   : > { %v2468_v15 = vpack.c.bf16 %v2467_v50, %v2467_v50  ;;  %v4320_v50 = vld [vmem:[%s5865_s1 + $0x18] sm:$0xff]  }
 0x230   : > { %465 = vst.msk [vmem:[#allocation2 + $0x58] sm:$0x1] %vm454_vm1, %v445_v21 }
 0x231   : > { %464 = vst.msk [vmem:[#allocation2 + $0x50] sm:$0xff] %vm452_vm2, %v444_v25  ;;  %v765_v46 = vpop.permute.xlu1 %764  ;;  %4028 = vmatmul.mubr.msk.bf16.vlgmr.msra.gmra.mrb[4].mxu1 %vm1531_vm9, %v2468_v15  ;;  %4036 = vmatmul.mubr.msk.bf16.vlgmr.msra.gmra.mrb[8].mxu0 %vm1531_vm9, %v2468_v15  ;;  %v763_v9 = vpop.permute.xlu0 %762 }
 0x232   : > { %809 = vst.msk [vmem:[#allocation2 + $0x58] sm:$0x1] %vm798_vm3, %v765_v46  ;;  %4040 = vmatpush3.bf16.msra.mxu0 %v4305_v61  ;;  %4043 = vmatprep.mubr.msk.bf16.mxu0 %vm4357_vm0, %v5875_v57 }
 0x233   : > { %808 = vst.msk [vmem:[#allocation2 + $0x50] sm:$0xff] %vm796_vm4, %v763_v9  ;;  %4041 = vmatprep.subr.bf16.mxu0 %v5875_v57  ;;  %4064 = vmatpush3.bf16.msra.mxu1 %v4307_v56 }
 0x234   : > { %4065 = vmatprep.subr.bf16.mxu1 %v5875_v57  ;;  %4067 = vmatprep.mubr.msk.bf16.mxu1 %vm4357_vm0, %v5875_v57 }
 0x235   : > { %v1109_v47 = vpop.permute.xlu1 %1108  ;;  %v1107_v27 = vpop.permute.xlu0 %1106 }
 0x236   : > { %1153 = vst.msk [vmem:[#allocation2 + $0x58] sm:$0x1] %vm1142_vm5, %v1109_v47  ;;  %4042 = vmatpush3.bf16.msra.mxu0 %v4306_v12 }
 0x237   : > { %1152 = vst.msk [vmem:[#allocation2 + $0x50] sm:$0xff] %vm1140_vm6, %v1107_v27  ;;  %4047 = vmatprep.subr.bf16.mxu0 %v5875_v57  ;;  %4066 = vmatpush3.bf16.msra.mxu1 %v4308_v26 }
 0x238   : > { %4071 = vmatprep.subr.bf16.mxu1 %v5875_v57 }
 0x239   : > { %v1453_v45 = vpop.permute.xlu1 %1452  ;;  %v1451_v38 = vpop.permute.xlu0 %1450 }
 0x23a   : > { %1497 = vst.msk [vmem:[#allocation2 + $0x58] sm:$0x1] %vm1486_vm7, %v1453_v45  ;;  %v4342_v45 = vld [vmem:[%s4399_s21 + $0x60] sm:$0xff] }
 0x23b   : > { %1496 = vst.msk [vmem:[#allocation2 + $0x50] sm:$0xff] %vm1484_vm8, %v1451_v38 }
 0x23d   : > { %v885_v2 = vpop.permute.xlu1 %884  ;;  %4044 = vmatmul.mubr.msk.bf16.vlgmr.msra.gmra.mrb[8].mxu0 %vm1531_vm9, %v5545_v31  ;;  %v541_v24 = vpop.permute.xlu0 %540 }
 0x23e   : > { %4048 = vmatpush3.bf16.msra.mxu0 %v4309_v0  ;;  %4051 = vmatprep.mubr.msk.bf16.mxu0 %vm4357_vm0, %v5875_v57  ;;  %v578_v31 = vmax.f32 %v5360_v28, %v541_v24  ;;  %v922_v20 = vmax.f32 %v5360_v28, %v885_v2 }
 0x23f   : > { %4049 = vmatprep.subr.bf16.mxu0 %v5875_v57 }
 0x241   : > { %v1229_v8 = vpop.permute.xlu1 %1228  ;;  %v613_v3 = vpop.permute.xlu0 %612 }
 0x242   : > { %v2794_v16 = vld [vmem:[#allocation2 + $0x51] sm:$0xff]  ;;  %4050 = vmatpush3.bf16.msra.mxu0 %v4310_v1  ;;  %v650_v32 = vmax.f32 %v578_v31, %v613_v3  ;;  %v1266_v29 = vmax.f32 %v5360_v28, %v1229_v8 }
 0x243   : > { %v2795_v35 = vpack.c.bf16 %v2794_v16, %v2794_v16  ;;  %4055 = vmatprep.subr.bf16.mxu0 %v5875_v57  ;;  %v2658_v37 = vld [vmem:[#allocation2 + $0x50] sm:$0xff] }
 0x244   : > { %v2659_v63 = vpack.c.bf16 %v2658_v37, %v2658_v37 }
 0x245   : > { %4068 = vmatmul.mubr.msk.bf16.vlgmr.msra.gmra.mrb[8].mxu1 %vm1531_vm9, %v2795_v35  ;;  %v685_v59 = vpop.permute.xlu1 %684  ;;  %v957_v4 = vpop.permute.xlu0 %956 }
 0x246   : > { %4072 = vmatpush3.bf16.msra.mxu1 %v4311_v22  ;;  %4075 = vmatprep.mubr.msk.bf16.mxu1 %vm4357_vm0, %v5875_v57  ;;  %v722_v49 = vmax.f32 %v650_v32, %v685_v59  ;;  %v994_v23 = vmax.f32 %v922_v20, %v957_v4 }
 0x247   : > { %4073 = vmatprep.subr.bf16.mxu1 %v5875_v57 }
 0x248   : > { %774 = vrot.lane.b32.xlu1 %v722_v49, %s4352_s22 }
 0x249   : > { %v1029_v43 = vpop.permute.xlu1 %1028  ;;  %4052 = vmatmul.mubr.msk.bf16.vlgmr.msra.gmra.mrb[8].mxu0 %vm1531_vm9, %v2659_v63  ;;  %v1301_v44 = vpop.permute.xlu0 %1300 }
 0x24a   : > { %4074 = vmatpush3.bf16.msra.mxu1 %v4312_v55  ;;  %v1066_v30 = vmax.f32 %v994_v23, %v1029_v43  ;;  %4056 = vmatpush3.bf16.msra.mxu0 %v4313_v60  ;;  %v1338_v10 = vmax.f32 %v1266_v29, %v1301_v44  ;;  %v4317_v23 = vld [vmem:[%s5865_s1 + $0x30] sm:$0xff]   ;;  %v4319_v29 = vld [vmem:[%s5865_s1 + $0x38] sm:$0xff]  }
 0x24b   : > { %4059 = vmatprep.mubr.msk.bf16.mxu0 %vm4357_vm0, %v5875_v57  ;;  %4057 = vmatprep.subr.bf16.mxu0 %v5875_v57 }
 0x24c   : > { %4079 = vmatprep.subr.bf16.mxu1 %v5875_v57  ;;  %1118 = vrot.lane.b32.xlu0 %v1066_v30, %s4356_s27 }
 0x24d   : > { %v543_v52 = vpop.permute.xlu1 %542  ;;  %v1373_v53 = vpop.permute.xlu0 %1372 }
 0x24e   : > { %v1410_v5 = vmax.f32 %v1338_v10, %v1373_v53  ;;  %4058 = vmatpush3.bf16.msra.mxu0 %v4314_v42  ;;  %v579_v9 = vmax.f32 %v5423_v62, %v543_v52  ;;  %v4343_v52 = vld [vmem:[%s4399_s21 + $0x70] sm:$0xff] }
 0x24f   : > { %4095 = vmatprep.subr.bf16.mxu0 %v5875_v57 }
 0x250   : > { %1462 = vrot.lane.b32.xlu1 %v1410_v5, %s4358_s8  ;;  %270 = vrot.lane.b32.xlu0 %v5657_v40, %s4352_s22 }
 0x251   : > { %4076 = vmatmul.mubr.msk.bf16.vlgmr.msra.gmra.mrb[8].mxu1 %vm1531_vm9, %v2659_v63  ;;  %v887_v11 = vpop.permute.xlu1 %886  ;;  %v261_v48 = vpop.permute.xlu0 %260 }
 0x252   : > { %4080 = vmatpush3.bf16.msra.mxu1 %v4315_v58  ;;  %4083 = vmatprep.mubr.msk.bf16.mxu1 %vm4357_vm0, %v5875_v57  ;;  %v923_v47 = vmax.f32 %v5440_v36, %v887_v11  ;;  %v302_v38 = vmax.f32 %v4342_v45, %v261_v48 }
 0x253   : > { %4081 = vmatprep.subr.bf16.mxu1 %v5875_v57  ;;  %v1750_v18 = vpop.f32.mrb[0].mxu0 }
 0x254   : > { %v1763_v34 = vmul.f32 %v5665_v13, %v1750_v18  ;;  %v3933_v19 = vpop.f32.mrb[1].mxu0  ;;  %342 = vrot.lane.b32.xlu1 %v5657_v40, %s4353_s23  ;;  %414 = vrot.lane.b32.xlu0 %v5657_v40, %s4354_s24 }
 0x255   : > { %v1753_v17 = vpop.f32.mrb[2].mxu0  ;;  %v1231_v7 = vpop.permute.xlu1 %1230  ;;  %4060 = vmatmul.mubr.msk.bf16.vlgmr.msra.gmra.mrb[8].mxu0 %vm1531_vm9, %v2795_v35 }
 0x256   : > { %v1770_v33 = vadd.f32 %v5681_v51, %v1763_v34  ;;  %v615_v21 = vpop.permute.xlu0 %614  ;;  %v3934_v25 = vpop.f32.mrb[3].mxu0  ;;  %4082 = vmatpush3.bf16.msra.mxu1 %v4316_v14  ;;  %4096 = vmatpush3.bf16.msra.mxu0 %v4318_v39  ;;  %v1267_v62 = vmax.f32 %v5459_v54, %v1231_v7  ;;  %v4323_v7 = vld [vmem:[%s5865_s1 + $0x10] sm:$0xff]  }
 0x257   : > { %4087 = vmatprep.subr.bf16.mxu1 %v5875_v57  ;;  %4097 = vmatprep.subr.bf16.mxu0 %v5875_v57  ;;  %v651_v12 = vmax.f32 %v579_v9, %v615_v21  ;;  %v4322_v25 = vld [vmem:[%s5865_s1 + $0x8] sm:$0xff]   ;;  %v4324_v9 = vld [vmem:[%s5865_s1 + $0x20] sm:$0xff]  }
 0x258   : > { %vm1771_vm10 = vcmp.ge.f32.partialorder %v1770_v33, 0.0  ;;  %v1772_v61 = vmul.f32 0.2, %v1770_v33  ;;  %4099 = vmatprep.mubr.msk.bf16.mxu0 %vm4357_vm0, %v5875_v57 }
 0x259   : > { %v959_v15 = vpop.permute.xlu1 %958 }
 0x25a   : > { %v1773_v56 = vsel %vm1771_vm10, %v1770_v33, %v1772_v61  ;;  %v333_v46 = vpop.permute.xlu0 %332  ;;  %4098 = vmatpush3.bf16.msra.mxu0 %v4320_v50  ;;  %v995_v2 = vmax.f32 %v923_v47, %v959_v15  ;;  %v4325_v50 = vld [vmem:[%s5865_s1 + $0x18] sm:$0xff]  }
 0x25b   : > { %1775 = vst.msk [vmem:[%s5698_s13] sm:$0xff] %vm1774_vm11, %v1773_v56  ;;  %4103 = vmatprep.subr.bf16.mxu0 %v5875_v57  ;;  %v374_v24 = vmax.f32 %v302_v38, %v333_v46 }
 0x25d   : > { %v1303_v26 = vpop.permute.xlu1 %1302 }
 0x25e   : > { %v687_v27 = vpop.permute.xlu0 %686  ;;  %v1339_v22 = vmax.f32 %v1267_v62, %v1303_v26 }
 0x25f   : > { %v723_v0 = vmax.f32 %v651_v12, %v687_v27 }
 0x261   : > { %776 = vrot.lane.b32.xlu1 %v723_v0, %s4352_s22  ;;  %v1031_v1 = vpop.permute.xlu1 %1030 }
 0x262   : > { %v1067_v8 = vmax.f32 %v995_v2, %v1031_v1  ;;  %v405_v3 = vpop.permute.xlu0 %404  ;;  %v4326_v2 = vld [vmem:[%s5865_s1 + $0x28] sm:$0xff]  }
 0x263   : > { %v446_v16 = vmax.f32 %v374_v24, %v405_v3 }
 0x264   : > { %1120 = vrot.lane.b32.xlu0 %v1067_v8, %s4356_s27 }
 0x265   : > { %466 = vst.msk [vmem:[#allocation2 + $0x60] sm:$0xff] %vm452_vm2, %v446_v16  ;;  %v767_v36 = vpop.permute.xlu1 %766  ;;  %v4327_v16 = vld [vmem:[%s5865_s1] sm:$0xff]  }
 0x266   : > { %810 = vst.msk [vmem:[#allocation2 + $0x60] sm:$0xff] %vm796_vm4, %v767_v36  ;;  %v1375_v31 = vpop.permute.xlu0 %1374 }
 0x267   : > { %v1411_v35 = vmax.f32 %v1339_v22, %v1375_v31 }
 0x269   : > { %1464 = vrot.lane.b32.xlu1 %v1411_v35, %s4358_s8  ;;  %v1455_v32 = vpop.permute.xlu1 %1454 }
 0x26a   : > { %v1111_v37 = vpop.permute.xlu0 %1110 }
 0x26b   : > { %1154 = vst.msk [vmem:[#allocation2 + $0x60] sm:$0xff] %vm1140_vm6, %v1111_v37  ;;  %v4328_v37 = vld [vmem:[%s5865_s1 + $0x30] sm:$0xff]  }
 0x26c   : > { %1498 = vst.msk [vmem:[#allocation2 + $0x60] sm:$0xff] %vm1484_vm8, %v1455_v32  ;;  %v4329_v32 = vld [vmem:[%s5865_s1 + $0x8] sm:$0xff]  }
 0x26d   : > { %v335_v54 = vpop.permute.xlu1 %334 }
 0x26e   : > { %v263_v59 = vpop.permute.xlu0 %262 }
 0x26f   : > { %v303_v4 = vmax.f32 %v5512_v41, %v263_v59  ;;  %v4330_v59 = vld [vmem:[%s5865_s1 + $0x38] sm:$0xff]  }
 0x271   : > { %v769_v55 = vpop.permute.xlu1 %768  ;;  %v375_v20 = vmax.f32 %v303_v4, %v335_v54  ;;  %v4331_v4 = vld [vmem:[%s5865_s1 + $0x20] sm:$0xff]  }
 0x272   : > { %v407_v49 = vpop.permute.xlu0 %406 }
 0x273   : > { %v447_v60 = vmax.f32 %v375_v20, %v407_v49  ;;  %v2911_v63 = vld [vmem:[#allocation2 + $0x60] sm:$0xff] }
 0x274   : > { %v5720_v43 = vpack.c.bf16 %v2911_v63, %v2911_v63 }
 0x275   : > { %467 = vst.msk [vmem:[#allocation2 + $0x68] sm:$0x1] %vm454_vm1, %v447_v60  ;;  %v267_v44 = vpop.permute.xlu1 %266 }
 0x276   : > { %811 = vst.msk [vmem:[#allocation2 + $0x68] sm:$0x1] %vm798_vm3, %v769_v55  ;;  %4084 = vmatmul.mubr.msk.bf16.vlgmr.msra.gmra.mrb[8].mxu1 %vm1531_vm9, %v5720_v43  ;;  %v265_v41 = vpop.permute.xlu0 %264  ;;  %v305_v42 = vmax.f32 %v5523_v6, %v267_v44  ;;  %v4321_v6 = vld [vmem:[%s5865_s1] sm:$0xff]   ;;  %v4332_v55 = vld [vmem:[%s5865_s1 + $0x28] sm:$0xff]  }
 0x277   : > { %4088 = vmatpush3.bf16.msra.mxu1 %v4317_v23  ;;  %4091 = vmatprep.mubr.msk.bf16.mxu1 %vm4357_vm0, %v5875_v57  ;;  %v304_v53 = vmax.f32 %v4343_v52, %v265_v41 }
 0x278   : > { %4089 = vmatprep.subr.bf16.mxu1 %v5875_v57 }
 0x279   : > { %v1457_v30 = vpop.permute.xlu1 %1456 }
 0x27a   : > { %v1113_v10 = vpop.permute.xlu0 %1112 }
 0x27b   : > { %1155 = vst.msk [vmem:[#allocation2 + $0x68] sm:$0x1] %vm1142_vm5, %v1113_v10  ;;  %4090 = vmatpush3.bf16.msra.mxu1 %v4319_v29 }
 0x27c   : > { %1499 = vst.msk [vmem:[#allocation2 + $0x68] sm:$0x1] %vm1486_vm7, %v1457_v30  ;;  %4127 = vmatprep.subr.bf16.mxu1 %v5875_v57 }
 0x27d   : > { %v339_v58 = vpop.permute.xlu1 %338 }
 0x27e   : > { %v377_v5 = vmax.f32 %v305_v42, %v339_v58  ;;  %v337_v11 = vpop.permute.xlu0 %336 }
 0x27f   : > { %v376_v48 = vmax.f32 %v304_v53, %v337_v11 }
 0x281   : > { %v411_v14 = vpop.permute.xlu1 %410 }
 0x282   : > { %v449_v39 = vmax.f32 %v377_v5, %v411_v14  ;;  %v409_v18 = vpop.permute.xlu0 %408  ;;  %v4333_v14 = vld [vmem:[%s5865_s1 + $0x30] sm:$0xff]  }
 0x283   : > { %v448_v34 = vmax.f32 %v376_v48, %v409_v18  ;;  %v2973_v19 = vld [vmem:[#allocation2 + $0x61] sm:$0xff]  ;;  %v4334_v18 = vld [vmem:[%s5865_s1 + $0x38] sm:$0xff]  }
 0x284   : > { %469 = vst.msk [vmem:[#allocation2 + $0x78] sm:$0x1] %vm454_vm1, %v449_v39  ;;  %v2974_v17 = vpack.c.bf16 %v2973_v19, %v2973_v19 }
 0x285   : > { %468 = vst.msk [vmem:[#allocation2 + $0x70] sm:$0xff] %vm452_vm2, %v448_v34  ;;  %v773_v33 = vpop.permute.xlu1 %772 }
 0x286   : > { %813 = vst.msk [vmem:[#allocation2 + $0x78] sm:$0x1] %vm798_vm3, %v773_v33  ;;  %4092 = vmatmul.mubr.msk.bf16.vlgmr.msra.gmra.mrb[8].mxu1 %vm1531_vm9, %v2974_v17  ;;  %4100 = vmatmul.mubr.msk.bf16.vlgmr.msra.gmra.mrb[12].mxu0 %vm1531_vm9, %v2974_v17  ;;  %v771_v21 = vpop.permute.xlu0 %770 }
 0x287   : > { %812 = vst.msk [vmem:[#allocation2 + $0x70] sm:$0xff] %vm796_vm4, %v771_v21  ;;  %4104 = vmatpush3.bf16.msra.mxu0 %v4321_v6  ;;  %4107 = vmatprep.mubr.msk.bf16.mxu0 %vm4357_vm0, %v5875_v57 }
 0x288   : > { %4105 = vmatprep.subr.bf16.mxu0 %v5875_v57  ;;  %4128 = vmatpush3.bf16.msra.mxu1 %v4323_v7 }
 0x289   : > { %4129 = vmatprep.subr.bf16.mxu1 %v5875_v57  ;;  %4131 = vmatprep.mubr.msk.bf16.mxu1 %vm4357_vm0, %v5875_v57 }
 0x28a   : > { %v1115_v61 = vpop.permute.xlu0 %1114  ;;  %v1117_v15 = vpop.permute.xlu1 %1116 }
 0x28b   : > { %1156 = vst.msk [vmem:[#allocation2 + $0x70] sm:$0xff] %vm1140_vm6, %v1115_v61  ;;  %4106 = vmatpush3.bf16.msra.mxu0 %v4322_v25 }
 0x28c   : > { %1157 = vst.msk [vmem:[#allocation2 + $0x78] sm:$0x1] %vm1142_vm5, %v1117_v15  ;;  %4111 = vmatprep.subr.bf16.mxu0 %v5875_v57  ;;  %4130 = vmatpush3.bf16.msra.mxu1 %v4325_v50 }
 0x28d   : > { %4135 = vmatprep.subr.bf16.mxu1 %v5875_v57 }
 0x28e   : > { %v1459_v56 = vpop.permute.xlu0 %1458  ;;  %v1461_v46 = vpop.permute.xlu1 %1460 }
 0x28f   : > { %1500 = vst.msk [vmem:[#allocation2 + $0x70] sm:$0xff] %vm1484_vm8, %v1459_v56  ;;  %v2016_v12 = vpop.f32.mrb[0].mxu1 }
 0x290   : > { %1501 = vst.msk [vmem:[#allocation2 + $0x78] sm:$0x1] %vm1486_vm7, %v1461_v46  ;;  %v2023_v26 = vmul.f32 %v5665_v13, %v2016_v12  ;;  %v3965_v47 = vpop.f32.mrb[1].mxu1 }
 0x291   : > { %v2019_v27 = vpop.f32.mrb[2].mxu1 }
 0x292   : > { %4108 = vmatmul.mubr.msk.bf16.vlgmr.msra.gmra.mrb[12].mxu0 %vm1531_vm9, %v5720_v43  ;;  %v269_v45 = vpop.permute.xlu0 %268  ;;  %v2024_v38 = vadd.f32 %v5681_v51, %v2023_v26  ;;  %v3966_v0 = vpop.f32.mrb[3].mxu1 }
 0x293   : > { %4112 = vmatpush3.bf16.msra.mxu0 %v4324_v9  ;;  %4115 = vmatprep.mubr.msk.bf16.mxu0 %vm4357_vm0, %v5875_v57  ;;  %v306_v24 = vmax.f32 %v5360_v28, %v269_v45  ;;  %v341_v1 = vpop.permute.xlu1 %340 }
 0x294   : > { %4113 = vmatprep.subr.bf16.mxu0 %v5875_v57  ;;  %vm2025_vm12 = vcmp.ge.f32.partialorder %v2024_v38, 0.0  ;;  %v2026_v8 = vmul.f32 0.2, %v2024_v38 }
 0x295   : > { %v378_v3 = vmax.f32 %v306_v24, %v341_v1 }
 0x296   : > { %v413_v22 = vpop.permute.xlu0 %412  ;;  %v2027_v36 = vsel %vm2025_vm12, %v2024_v38, %v2026_v8  ;;  %v3164_v28 = vld [vmem:[#allocation2 + $0x70] sm:$0xff] }
 0x297   : > { %v3300_v62 = vld [vmem:[#allocation2 + $0x71] sm:$0xff]  ;;  %4114 = vmatpush3.bf16.msra.mxu0 %v4326_v2  ;;  %v450_v35 = vmax.f32 %v378_v3, %v413_v22  ;;  %2028 = vst.msk [vmem:[%s5698_s13 + $0x8] sm:$0xff] %vm1774_vm11, %v2027_v36  ;;  %v3165_v54 = vpack.c.bf16 %v3164_v28, %v3164_v28 }
 0x298   : > { %v3301_v31 = vpack.c.bf16 %v3300_v62, %v3300_v62  ;;  %4119 = vmatprep.subr.bf16.mxu0 %v5875_v57 }
 0x299   : > { %470 = vst.msk [vmem:[#allocation2 + $0x80] sm:$0xff] %vm452_vm2, %v450_v35 }
 0x29a   : > { %4132 = vmatmul.mubr.msk.bf16.vlgmr.msra.gmra.mrb[12].mxu1 %vm1531_vm9, %v3301_v31 }
 0x29b   : > { %4136 = vmatpush3.bf16.msra.mxu1 %v4327_v16  ;;  %4139 = vmatprep.mubr.msk.bf16.mxu1 %vm4357_vm0, %v5875_v57 }
 0x29c   : > { %4137 = vmatprep.subr.bf16.mxu1 %v5875_v57 }
 0x29e   : > { %4116 = vmatmul.mubr.msk.bf16.vlgmr.msra.gmra.mrb[12].mxu0 %vm1531_vm9, %v3165_v54 }
 0x29f   : > { %4138 = vmatpush3.bf16.msra.mxu1 %v4329_v32  ;;  %4120 = vmatpush3.bf16.msra.mxu0 %v4328_v37 }
 0x2a0   : > { %4123 = vmatprep.mubr.msk.bf16.mxu0 %vm4357_vm0, %v5875_v57  ;;  %4121 = vmatprep.subr.bf16.mxu0 %v5875_v57 }
 0x2a1   : > { %4143 = vmatprep.subr.bf16.mxu1 %v5875_v57 }
 0x2a3   : > { %4122 = vmatpush3.bf16.msra.mxu0 %v4330_v59 }
 0x2a6   : > { %4140 = vmatmul.mubr.msk.bf16.vlgmr.msra.gmra.mrb[12].mxu1 %vm1531_vm9, %v3165_v54 }
 0x2a7   : > { %4144 = vmatpush3.bf16.msra.mxu1 %v4331_v4  ;;  %4147 = vmatprep.mubr.msk.bf16.mxu1 %vm4357_vm0, %v5875_v57 }
 0x2a8   : > { %4145 = vmatprep.subr.bf16.mxu1 %v5875_v57 }
 0x2aa   : > { %4124 = vmatmul.mubr.msk.bf16.vlgmr.msra.gmra.mrb[12].mxu0 %vm1531_vm9, %v3301_v31 }
 0x2ab   : > { %4146 = vmatpush3.bf16.msra.mxu1 %v4332_v55 }
 0x2ac   : > { %4151 = vmatprep.subr.bf16.mxu1 %v5875_v57 }
 0x2b3   : > { %v2269_v20 = vpop.f32.mrb[4].mxu0 }
 0x2b4   : > { %v2276_v49 = vmul.f32 %v5665_v13, %v2269_v20  ;;  %v3997_v60 = vpop.f32.mrb[5].mxu0 }
 0x2b5   : > { %v2272_v63 = vpop.f32.mrb[6].mxu0 }
 0x2b6   : > { %v2277_v23 = vadd.f32 %v5681_v51, %v2276_v49  ;;  %v3998_v43 = vpop.f32.mrb[7].mxu0 }
 0x2b8   : > { %vm2278_vm13 = vcmp.ge.f32.partialorder %v2277_v23, 0.0  ;;  %v2279_v44 = vmul.f32 0.2, %v2277_v23 }
 0x2ba   : > { %v775_v41 = vpop.permute.xlu1 %774  ;;  %v2280_v29 = vsel %vm2278_vm13, %v2277_v23, %v2279_v44 }
 0x2bb   : > { %814 = vst.msk [vmem:[#allocation2 + $0x80] sm:$0xff] %vm796_vm4, %v775_v41 }
 0x2bc   : > { %2281 = vst.msk [vmem:[%s5698_s13 + $0x10] sm:$0xff] %vm1774_vm11, %v2280_v29 }
 0x2be   : > { %v1119_v30 = vpop.permute.xlu0 %1118 }
 0x2bf   : > { %1158 = vst.msk [vmem:[#allocation2 + $0x80] sm:$0xff] %vm1140_vm6, %v1119_v30 }
 0x2c2   : > { %v1463_v42 = vpop.permute.xlu1 %1462  ;;  %v271_v10 = vpop.permute.xlu0 %270 }
 0x2c3   : > { %1502 = vst.msk [vmem:[#allocation2 + $0x80] sm:$0xff] %vm1484_vm8, %v1463_v42  ;;  %v307_v52 = vmax.f32 %v5657_v40, %v271_v10 }
 0x2c6   : > { %v343_v53 = vpop.permute.xlu1 %342  ;;  %v415_v5 = vpop.permute.xlu0 %414 }
 0x2c7   : > { %v379_v58 = vmax.f32 %v307_v52, %v343_v53 }
 0x2c9   : > { %v451_v11 = vmax.f32 %v379_v58, %v415_v5 }
 0x2ca   : > { %v3417_v48 = vld [vmem:[#allocation2 + $0x80] sm:$0xff] }
 0x2cb   : > { %v3418_v39 = vpack.c.bf16 %v3417_v48, %v3417_v48  ;;  %471 = vst.msk [vmem:[#allocation2 + $0x88] sm:$0x1] %vm454_vm1, %v451_v11 }
 0x2cd   : > { %4148 = vmatmul.mubr.msk.bf16.vlgmr.msra.gmra.mrb[12].mxu1 %vm1531_vm9, %v3418_v39 }
 0x2ce   : > { %4152 = vmatpush3.bf16.msra.mxu1 %v4333_v14  ;;  %4155 = vmatprep.mubr.msk.bf16.mxu1 %vm4357_vm0, %v5875_v57 }
 0x2cf   : > { %4153 = vmatprep.subr.bf16.mxu1 %v5875_v57 }
 0x2d2   : > { %4154 = vmatpush3.bf16.msra.mxu1 %v4334_v18 }
 0x2d3   : > { %v777_v40 = vpop.permute.xlu1 %776 }
 0x2d4   : > { %815 = vst.msk [vmem:[#allocation2 + $0x88] sm:$0x1] %vm798_vm3, %v777_v40 }
 0x2d6   : > { %v1121_v34 = vpop.permute.xlu0 %1120 }
 0x2d7   : > { %1159 = vst.msk [vmem:[#allocation2 + $0x88] sm:$0x1] %vm1142_vm5, %v1121_v34 }
 0x2db   : > { %v1465_v19 = vpop.permute.xlu1 %1464 }
 0x2dc   : > { %1503 = vst.msk [vmem:[#allocation2 + $0x88] sm:$0x1] %vm1486_vm7, %v1465_v19 }
 0x2e3   : > { %v3479_v6 = vld [vmem:[#allocation2 + $0x81] sm:$0xff] }
 0x2e4   : > { %v3480_v17 = vpack.c.bf16 %v3479_v6, %v3479_v6 }
 0x2e6   : > { %4156 = vmatmul.mubr.msk.bf16.vlgmr.msra.gmra.mrb[12].mxu1 %vm1531_vm9, %v3480_v17 }
 0x304   : > { %v2522_v7 = vpop.f32.mrb[4].mxu1 }
 0x305   : > { %v2529_v33 = vmul.f32 %v5665_v13, %v2522_v7  ;;  %v4029_v21 = vpop.f32.mrb[5].mxu1 }
 0x306   : > { %v2525_v57 = vpop.f32.mrb[6].mxu1 }
 0x307   : > { %v2530_v25 = vadd.f32 %v5681_v51, %v2529_v33  ;;  %v4030_v50 = vpop.f32.mrb[7].mxu1 }
 0x309   : > { %vm2531_vm14 = vcmp.ge.f32.partialorder %v2530_v25, 0.0  ;;  %v2532_v61 = vmul.f32 0.2, %v2530_v25 }
 0x30b   : > { %v2533_v15 = vsel %vm2531_vm14, %v2530_v25, %v2532_v61 }
 0x30c   : > { %2534 = vst.msk [vmem:[%s5698_s13 + $0x18] sm:$0xff] %vm1774_vm11, %v2533_v15 }
 0x328   : > { %v2775_v56 = vpop.f32.mrb[8].mxu0 }
 0x329   : > { %v2782_v46 = vmul.f32 %v5665_v13, %v2775_v56  ;;  %v4061_v9 = vpop.f32.mrb[9].mxu0 }
 0x32a   : > { %v2778_v12 = vpop.f32.mrb[10].mxu0 }
 0x32b   : > { %v2783_v26 = vadd.f32 %v5681_v51, %v2782_v46  ;;  %v4062_v47 = vpop.f32.mrb[11].mxu0 }
 0x32d   : > { %vm2784_vm15 = vcmp.ge.f32.partialorder %v2783_v26, 0.0  ;;  %v2785_v27 = vmul.f32 0.2, %v2783_v26 }
 0x32f   : > { %v2786_v45 = vsel %vm2784_vm15, %v2783_v26, %v2785_v27 }
 0x330   : > { %2787 = vst.msk [vmem:[%s5698_s13 + $0x20] sm:$0xff] %vm1774_vm11, %v2786_v45 }
 0x359   : > { %v3028_v38 = vpop.f32.mrb[8].mxu1 }
 0x35a   : > { %v3035_v0 = vmul.f32 %v5665_v13, %v3028_v38  ;;  %v4093_v2 = vpop.f32.mrb[9].mxu1 }
 0x35b   : > { %v3031_v24 = vpop.f32.mrb[10].mxu1 }
 0x35c   : > { %v3036_v1 = vadd.f32 %v5681_v51, %v3035_v0  ;;  %v4094_v8 = vpop.f32.mrb[11].mxu1 }
 0x35e   : > { %vm3037_vm0 = vcmp.ge.f32.partialorder %v3036_v1, 0.0  ;;  %v3038_v3 = vmul.f32 0.2, %v3036_v1 }
 0x360   : > { %v3039_v62 = vsel %vm3037_vm0, %v3036_v1, %v3038_v3 }
 0x361   : > { %3040 = vst.msk [vmem:[%s5698_s13 + $0x28] sm:$0xff] %vm1774_vm11, %v3039_v62 }
 0x37d   : > { %v3281_v16 = vpop.f32.mrb[12].mxu0 }
 0x37e   : > { %v3288_v22 = vmul.f32 %v5665_v13, %v3281_v16  ;;  %v4125_v36 = vpop.f32.mrb[13].mxu0 }
 0x37f   : > { %v3284_v31 = vpop.f32.mrb[14].mxu0 }
 0x380   : > { %v3289_v35 = vadd.f32 %v5681_v51, %v3288_v22  ;;  %v4126_v28 = vpop.f32.mrb[15].mxu0 }
 0x382   : > { %vm3290_vm1 = vcmp.ge.f32.partialorder %v3289_v35, 0.0  ;;  %v3291_v32 = vmul.f32 0.2, %v3289_v35 }
 0x384   : > { %v3292_v37 = vsel %vm3290_vm1, %v3289_v35, %v3291_v32 }
 0x385   : > { %3293 = vst.msk [vmem:[%s5698_s13 + $0x30] sm:$0xff] %vm1774_vm11, %v3292_v37 }
 0x3b9   : > { %v3534_v54 = vpop.f32.mrb[12].mxu1 }
 0x3ba   : > { %v3541_v59 = vmul.f32 %v5665_v13, %v3534_v54  ;;  %v4157_v4 = vpop.f32.mrb[13].mxu1 }
 0x3bb   : > { %v3537_v55 = vpop.f32.mrb[14].mxu1 }
 0x3bc   : > { %v3542_v20 = vadd.f32 %v5681_v51, %v3541_v59  ;;  %v4158_v49 = vpop.f32.mrb[15].mxu1 }
 0x3be   : > { %vm3543_vm2 = vcmp.ge.f32.partialorder %v3542_v20, 0.0  ;;  %v3544_v60 = vmul.f32 0.2, %v3542_v20 }
 0x3c0   : > { %v3545_v63 = vsel %vm3543_vm2, %v3542_v20, %v3544_v60 }
 0x3c1   : > { %3546 = vst.msk [vmem:[%s5698_s13 + $0x38] sm:$0xff] %vm1774_vm11, %v3545_v63 }
 0x3c2 PF: > { %s14_s15 = sadd.s32 1, %s4350_s15  }
 0x3c3   : > { %p11_p5 = scmp.ge.s32.totalorder %s14_s15, 4  }
 0x3c5   :  { %13 = sbr.rel (!%p11_p5) target bundleno = 1 (0x1), region = 77 }

// kernel: discriminator2_forward.3
= control target key start
LH: loop header
LB: loop body
LE: loop exit
PB: predicated region body
PF: predicated region fallthrough
CT: control target
= control target key end

     0   :  { %s15102_s26 = smov 0   ;;  %s18622_s0 = inlined_call_operand.vmem [shape: f32[2,5,5,256], index: 0, kind: input, shape index: {}]   ;;  %s18623_s1 = inlined_call_operand.vmem [shape: bf16[2,2,256,128], index: 1, kind: input, shape index: {}]   ;;  %s18624_s2 = inlined_call_operand.vmem [shape: f32[1,128], index: 2, kind: input, shape index: {}]   ;;  %s18625_s3 = inlined_call_operand.vmem [shape: f32[1,128], index: 3, kind: input, shape index: {}]   ;;  %s18626_s4 = inlined_call_operand.vmem [shape: bf16[16,128,256], index: 4, kind: input, shape index: {}]   ;;  %s18627_s5 = inlined_call_operand.vmem [shape: f32[16,256], index: 5, kind: input, shape index: {}]   ;;  %s18628_s6 = inlined_call_operand.<no memory space> [shape: f32[1,1], index: 6, kind: input, shape index: {}]   ;;  %s18629_s7 = inlined_call_operand.vmem [shape: f32[2,2,2,1], index: 7, kind: output, shape index: {}]  }
   0x1   :  { %v12_v0 = vstv %s18628_s6 }
   0x2   :  { %13 = vst [vmem:[#allocation4] sm:$0x1] %v12_v0 }
   0x3 LB: > { %s10936_s27 = sadd.s32 4294967295, %s15055_s26   ;;  %p10940_p0 = scmp.ge.s32.totalorder %s15055_s26, 1  ;;  %s15055_s26 = sphi %s15102_s26, %s19_s26  }
   0x4   : > { %p239_p1 = scmp.lt.s32.totalorder %s15055_s26, 3 }
   0x6   : > { %p240_p2 = pnand %p10940_p0, %p239_p1 }
   0x7   : > { %v13680_v1 = vld [vmem:[%s18623_s1 + $0xc0] sm:$0xff] (!%p240_p2)   ;;  %p271_p3 = scmp.lt.s32.totalorder (!%p240_p2), %s10936_s27, 1  ;;  %v13682_v3 = vld [vmem:[%s18623_s1 + $0xc8] sm:$0xff] (!%p240_p2)   ;;  %v13684_v5 = vld [vmem:[%s18623_s1 + $0xd0] sm:$0xff] (!%p240_p2)   ;;  %vm10069_vm4 = vcmask (!%p240_p2), 1041408   ;;  %vm10093_vm5 = vcmask (!%p240_p2), 1042433  }
   0x8   : > { %243 = sbr.rel (%p240_p2) target bundleno = 1664 (0x680), region = 48  ;;  %v13681_v2 = vld [vmem:[%s18623_s1 + $0x80] sm:$0xff] (!%p240_p2)   ;;  %13137 = vmatprep.subr.bf16.mxu1 (!%p240_p2), %v13680_v1  ;;  %v13683_v4 = vld [vmem:[%s18623_s1 + $0x88] sm:$0xff] (!%p240_p2)   ;;  %v13685_v6 = vld [vmem:[%s18623_s1 + $0x90] sm:$0xff] (!%p240_p2)   ;;  %vm10120_vm6 = vcmask (!%p240_p2), 1043458   ;;  %vm10147_vm7 = vcmask (!%p240_p2), 1044483  }
   0x9   : > { %13138 = vmatpush3.bf16.msra.mxu1 (!%p240_p2), %v13681_v2  ;;  %v13686_v7 = vld [vmem:[%s18623_s1 + $0xd8] sm:$0xff] (!%p240_p2)   ;;  %v13688_v9 = vld [vmem:[%s18623_s1 + $0xe0] sm:$0xff] (!%p240_p2)   ;;  %v13690_v11 = vld [vmem:[%s18623_s1 + $0xe8] sm:$0xff] (!%p240_p2)   ;;  %vm10477_vm14 = vcmask (!%p240_p2), 1024  }
   0xa   : > { %13139 = vmatprep.subr.bf16.mxu1 (!%p240_p2), %v13682_v3  ;;  %v13687_v8 = vld [vmem:[%s18623_s1 + $0x98] sm:$0xff] (!%p240_p2)   ;;  %v13689_v10 = vld [vmem:[%s18623_s1 + $0xa0] sm:$0xff] (!%p240_p2)   ;;  %v13691_v16 = vld [vmem:[%s18623_s1 + $0xa8] sm:$0xff] (!%p240_p2)  }
   0xb   : > { %v13692_v19 = vld [vmem:[%s18623_s1 + $0xf0] sm:$0xff] (!%p240_p2)   ;;  %v13694_v24 = vld [vmem:[%s18623_s1 + $0xf8] sm:$0xff] (!%p240_p2)   ;;  %v13696_v28 = vld [vmem:[%s18623_s1 + $0x40] sm:$0xff] (!%p240_p2)  }
   0xc   : > { %v13693_v22 = vld [vmem:[%s18623_s1 + $0xb0] sm:$0xff] (!%p240_p2)   ;;  %v13695_v27 = vld [vmem:[%s18623_s1 + $0xb8] sm:$0xff] (!%p240_p2)   ;;  %v13697_v30 = vld [vmem:[%s18623_s1] sm:$0xff] (!%p240_p2)  }
   0xd   : > { %13140 = vmatpush3.bf16.msra.mxu1 (!%p240_p2), %v13683_v4  ;;  %v13698_v31 = vld [vmem:[%s18623_s1 + $0x48] sm:$0xff] (!%p240_p2)   ;;  %v13700_v35 = vld [vmem:[%s18623_s1 + $0x50] sm:$0xff] (!%p240_p2)   ;;  %v13702_v37 = vld [vmem:[%s18623_s1 + $0x58] sm:$0xff] (!%p240_p2)  }
   0xe   : > { %13141 = vmatprep.subr.bf16.mxu1 (!%p240_p2), %v13684_v5  ;;  %v13699_v34 = vld [vmem:[%s18623_s1 + $0x8] sm:$0xff] (!%p240_p2)   ;;  %v13701_v36 = vld [vmem:[%s18623_s1 + $0x10] sm:$0xff] (!%p240_p2)   ;;  %v13703_v38 = vld [vmem:[%s18623_s1 + $0x18] sm:$0xff] (!%p240_p2)  }
   0xf   : > { %s18631_s27 = smov (!%p271_p3, %s10936_s27), 1  ;;  %v13704_v39 = vld [vmem:[%s18623_s1 + $0x60] sm:$0xff]   ;;  %v13706_v41 = vld [vmem:[%s18623_s1 + $0x68] sm:$0xff]   ;;  %v13708_v43 = vld [vmem:[%s18623_s1 + $0x70] sm:$0xff]  }
  0x10   : > { %s13669_s18 = smul.u32 80, %s18631_s27  ;;  %v13705_v40 = vld [vmem:[%s18623_s1 + $0x20] sm:$0xff]   ;;  %v13707_v42 = vld [vmem:[%s18623_s1 + $0x28] sm:$0xff]   ;;  %v13709_v44 = vld [vmem:[%s18623_s1 + $0x30] sm:$0xff]   ;;  %s13136_s11 = sshll.u32 %s18631_s27, 2 }
  0x11   : > { %13142 = vmatpush3.bf16.msra.mxu1 %v13685_v6  ;;  %v13710_v45 = vld [vmem:[%s18623_s1 + $0x78] sm:$0xff]   ;;  %v13712_v48 = vld [vmem:[%s18623_s1 + $0x140] sm:$0xff]   ;;  %v13714_v53 = vld [vmem:[%s18623_s1 + $0x148] sm:$0xff]   ;;  %s280_s14 = scalar_lea.vmem %s18629_s7, %s13136_s11 }
  0x12   : > { %13143 = vmatprep.subr.bf16.mxu1 %v13686_v7  ;;  %s15143_s25 = scalar_lea.vmem %s18622_s0, %s13669_s18  ;;  %v13711_v46 = vld [vmem:[%s18623_s1 + $0x38] sm:$0xff]   ;;  %v13713_v51 = vld [vmem:[%s18623_s1 + $0x100] sm:$0xff]   ;;  %v13715_v54 = vld [vmem:[%s18623_s1 + $0x108] sm:$0xff]  }
  0x13   : > { %v327_v12 = vld [vmem:[%s15143_s25 + $0x8] sm:$0x1e]  ;;  %v326_v13 = vld [vmem:[%s15143_s25] sm:$0x1e]  ;;  %v11009_v49 = vld [vmem:[%s15143_s25 + $0x18] sm:$0xf] }
  0x14   : > { %v329_v14 = vpack.c.bf16 %v327_v12, %v327_v12  ;;  %v328_v15 = vpack.c.bf16 %v326_v13, %v326_v13  ;;  %v291_v32 = vld [vmem:[%s15143_s25 + $0x8] sm:$0xf]  ;;  %v290_v47 = vld [vmem:[%s15143_s25] sm:$0xf]  ;;  %v655_v52 = vpack.c.bf16 %v11009_v49, %v11009_v49  ;;  %v13716_v55 = vld [vmem:[%s18623_s1 + $0x150] sm:$0xff]  }
  0x15   : > { %13144 = vmatpush3.bf16.msra.mxu1 %v13687_v8  ;;  %v293_v33 = vpack.c.bf16 %v291_v32, %v291_v32  ;;  %v292_v50 = vpack.c.bf16 %v290_v47, %v290_v47  ;;  %v13717_v56 = vld [vmem:[%s18623_s1 + $0x110] sm:$0xff]   ;;  %v13718_v57 = vld [vmem:[%s18623_s1 + $0x158] sm:$0xff]   ;;  %v13720_v59 = vld [vmem:[%s18623_s1 + $0x160] sm:$0xff]  }
  0x16   : > { %13145 = vmatprep.subr.bf16.mxu1 %v13688_v9  ;;  %v371_v17 = vshrl.u32 %v329_v14, 16  ;;  %v373_v18 = vshll.u32 %v329_v14, 16  ;;  %v366_v21 = vshll.u32 %v328_v15, 16  ;;  %v364_v25 = vshrl.u32 %v328_v15, 16  ;;  %v13719_v58 = vld [vmem:[%s18623_s1 + $0x118] sm:$0xff]   ;;  %v13721_v60 = vld [vmem:[%s18623_s1 + $0x120] sm:$0xff]  }
  0x17   : > { %v13722_v61 = vld [vmem:[%s18623_s1 + $0x168] sm:$0xff]   ;;  %v11059_v62 = vld [vmem:[%s15143_s25 + $0x18] sm:$0x1e]  ;;  %v13724_v1 = vld [vmem:[%s18623_s1 + $0x170] sm:$0xff]   ;;  %v15057_v14 = vmov 0.0  }
  0x18   : > { %v375_v20 = vrot.slane %v373_v18, 1  ;;  %v368_v26 = vrot.slane %v366_v21, 1  ;;  %v13723_v63 = vld [vmem:[%s18623_s1 + $0x128] sm:$0xff]   ;;  %v829_v0 = vpack.c.bf16 %v11059_v62, %v11059_v62  ;;  %v13725_v2 = vld [vmem:[%s18623_s1 + $0x130] sm:$0xff]   ;;  %v13726_v4 = vld [vmem:[%s18623_s1 + $0x178] sm:$0xff]   ;;  %v15058_v21 = vmov 0  }
  0x19   : > { %13146 = vmatpush3.bf16.msra.mxu1 %v13689_v10  ;;  %v13727_v5 = vld [vmem:[%s18623_s1 + $0x138] sm:$0xff]   ;;  %v11008_v6 = vld [vmem:[%s15143_s25 + $0x10] sm:$0xf]  ;;  %v13728_v9 = vld [vmem:[%s18623_s1 + $0x1c0] sm:$0xff]   ;;  %282 = vst [vmem:[#allocation2] sm:$0x3f] %v15057_v14  ;;  %3384 = vmatprep.mubr.bf16.mxu0 %v15058_v21 }
  0x1a   : > { %13147 = vmatprep.subr.bf16.mxu1 %v13690_v11  ;;  %v376_v23 = vor.u32 %v375_v20, %v371_v17  ;;  %v369_v29 = vor.u32 %v368_v26, %v364_v25  ;;  %v873_v3 = vshll.u32 %v829_v0, 16  ;;  %v871_v7 = vshrl.u32 %v829_v0, 16  ;;  %v13729_v11 = vld [vmem:[%s18623_s1 + $0x180] sm:$0xff]   ;;  %v13730_v13 = vld [vmem:[%s18623_s1 + $0x1c8] sm:$0xff]   ;;  %283 = vst [vmem:[#allocation2 + $0x8] sm:$0x3f] %v15057_v14 }
  0x1b   : > { %v654_v10 = vpack.c.bf16 %v11008_v6, %v11008_v6  ;;  %284 = vst [vmem:[#allocation2 + $0x10] sm:$0x3f] %v15057_v14  ;;  %285 = vst [vmem:[#allocation2 + $0x18] sm:$0x3f] %v15057_v14  ;;  %v13731_v15 = vld [vmem:[%s18623_s1 + $0x188] sm:$0xff]   ;;  %v13733_v17 = vld [vmem:[%s18623_s1 + $0x190] sm:$0xff]  }
  0x1c   : > { %507 = vmatprep.mubr.bf16.mxu1 %v376_v23  ;;  %v875_v8 = vrot.slane %v873_v3, 1  ;;  %286 = vst [vmem:[#allocation2 + $0x20] sm:$0x3f] %v15057_v14  ;;  %287 = vst [vmem:[#allocation2 + $0x28] sm:$0x3f] %v15057_v14  ;;  %v13734_v18 = vld [vmem:[%s18623_s1 + $0x1d8] sm:$0xff]  }
  0x1d   : > { %13148 = vmatpush3.bf16.msra.mxu1 %v13691_v16  ;;  %3225 = vst [vmem:[#allocation3] sm:$0x1f] %v15057_v14  ;;  %3226 = vst [vmem:[#allocation3 + $0x8] sm:$0x1f] %v15057_v14  ;;  %v13732_v16 = vld [vmem:[%s18623_s1 + $0x1d0] sm:$0xff]   ;;  %v13736_v20 = vld [vmem:[%s18623_s1 + $0x1e0] sm:$0xff]  }
  0x1e   : > { %13149 = vmatprep.subr.bf16.mxu1 %v13692_v19  ;;  %v876_v12 = vor.u32 %v875_v8, %v871_v7  ;;  %3227 = vst [vmem:[#allocation3 + $0x10] sm:$0x1f] %v15057_v14  ;;  %3228 = vst [vmem:[#allocation3 + $0x18] sm:$0x1f] %v15057_v14  ;;  %v13735_v19 = vld [vmem:[%s18623_s1 + $0x198] sm:$0xff]   ;;  %v13752_v3 = vld [vmem:[%s18623_s1 + $0xe0] sm:$0xff]  }
  0x1f   : > { %3229 = vst [vmem:[#allocation3 + $0x20] sm:$0x1f] %v15057_v14  ;;  %3230 = vst [vmem:[#allocation3 + $0x28] sm:$0x1f] %v15057_v14  ;;  %v13784_v23 = vld [vmem:[%s18626_s4 + $0x80] ss:$8 sps:$4 sm:$0xff]  }
  0x20   : > { %3231 = vst [vmem:[#allocation3 + $0x30] sm:$0x1f] %v15057_v14  ;;  %3232 = vst [vmem:[#allocation3 + $0x38] sm:$0x1f] %v15057_v14  ;;  %v11058_v25 = vld [vmem:[%s15143_s25 + $0x10] sm:$0x1e] }
  0x21   : > { %13150 = vmatpush3.bf16.msra.mxu1 %v13693_v22  ;;  %3233 = vst [vmem:[#allocation3 + $0x40] sm:$0x1f] %v15057_v14  ;;  %3234 = vst [vmem:[#allocation3 + $0x48] sm:$0x1f] %v15057_v14  ;;  %v13782_v22 = vld [vmem:[%s18626_s4 + $0x84] ss:$8 sps:$4 sm:$0xff]  }
  0x22   : > { %13151 = vmatprep.subr.bf16.mxu1 %v13694_v24  ;;  %v13737_v24 = vld [vmem:[%s18623_s1 + $0x1a0] sm:$0xff]   ;;  %v11113_v26 = vld [vmem:[%s15143_s25 + $0x18] sm:$0x1e]  ;;  %3352 = vmatprep.subr.bf16.mxu0 %v13782_v22  ;;  %v13754_v8 = vld [vmem:[%s18623_s1 + $0xe8] sm:$0xff]  }
  0x23   : > { %3353 = vmatpush1.bf16.msra.mxu0 %v13784_v23  ;;  %v1074_v32 = vpack.c.bf16 %v11113_v26, %v11113_v26  ;;  %v13804_v49 = vld [vmem:[%s18626_s4 + $0xc0] ss:$8 sps:$4 sm:$0xff]   ;;  %v13750_v62 = vld [vmem:[%s18623_s1 + $0xd8] sm:$0xff]   ;;  %v13756_v14 = vld [vmem:[%s18623_s1 + $0xf0] sm:$0xff]  }
  0x24   : > { %v3253_v0 = vld [vmem:[#allocation2 + $0x1] sm:$0x7]  ;;  %v13829_v6 = vld [vmem:[%s18626_s4 + $0x14] ss:$8 sps:$4 sm:$0xff]   ;;  %v13844_v23 = vld [vmem:[%s18626_s4 + $0x44] ss:$8 sps:$4 sm:$0xff]  }
  0x25   : > { %13152 = vmatpush3.bf16.msra.mxu1 %v13695_v27  ;;  %v13787_v27 = vld [vmem:[%s18626_s4 + $0x94] ss:$8 sps:$4 sm:$0xff]   ;;  %v1115_v47 = vshrl.u32 %v1074_v32, 16  ;;  %v13753_v7 = vld [vmem:[%s18623_s1 + $0xa0] sm:$0xff]  }
  0x26   : > { %13159 = vmatprep.subr.bf16.mxu1 %v13696_v28  ;;  %v13789_v28 = vld [vmem:[%s18626_s4 + $0x90] ss:$8 sps:$4 sm:$0xff]   ;;  %3354 = vmatprep.subr.bf16.mxu0 %v13787_v27  ;;  %v13760_v26 = vld [vmem:[%s18623_s1 + $0x40] sm:$0xff]  }
  0x27   : > { %3355 = vmatpush1.bf16.msra.mxu0 %v13789_v28  ;;  %v13759_v22 = vld [vmem:[%s18623_s1 + $0xb8] sm:$0xff]   ;;  %v13842_v28 = vld [vmem:[%s18626_s4 + $0x40] ss:$8 sps:$4 sm:$0xff]  }
  0x28   : > { %508 = vmatmul.mubr.bf16.vlgmr.msra.gmra.mrb[0].mxu1 %v369_v29  ;;  %v13738_v29 = vld [vmem:[%s18623_s1 + $0x1e8] sm:$0xff]   ;;  %v11111_v27 = vld [vmem:[%s15143_s25 + $0x18] sm:$0xf] }
  0x29   : > { %13160 = vmatpush3.bf16.msra.mxu1 %v13697_v30  ;;  %643 = vmatprep.mubr.bf16.mxu1 %v293_v33  ;;  %v13739_v30 = vld [vmem:[%s18623_s1 + $0x1a8] sm:$0xff]  }
  0x2a   : > { %13161 = vmatprep.subr.bf16.mxu1 %v13698_v31  ;;  %v828_v31 = vpack.c.bf16 %v11058_v25, %v11058_v25  ;;  %v13792_v33 = vld [vmem:[%s18626_s4 + $0xa4] ss:$8 sps:$4 sm:$0xff]  }
  0x2b   : > { %3356 = vmatprep.subr.bf16.mxu0 %v13792_v33  ;;  %v13762_v33 = vld [vmem:[%s18623_s1 + $0x48] sm:$0xff]  }
  0x2d   : > { %13162 = vmatpush3.bf16.msra.mxu1 %v13699_v34  ;;  %v13794_v34 = vld [vmem:[%s18626_s4 + $0xa0] ss:$8 sps:$4 sm:$0xff]  }
  0x2e   : > { %13163 = vmatprep.subr.bf16.mxu1 %v13700_v35  ;;  %v13740_v35 = vld [vmem:[%s18623_s1 + $0x1f0] sm:$0xff]   ;;  %3357 = vmatpush1.bf16.msra.mxu0 %v13794_v34 }
  0x2f   : > { %v13847_v34 = vld [vmem:[%s18626_s4 + $0x50] ss:$8 sps:$4 sm:$0xff]  }
  0x31   : > { %13164 = vmatpush3.bf16.msra.mxu1 %v13701_v36  ;;  %v866_v36 = vshll.u32 %v828_v31, 16 }
  0x32   : > { %13165 = vmatprep.subr.bf16.mxu1 %v13702_v37  ;;  %v13741_v37 = vld [vmem:[%s18623_s1 + $0x1b0] sm:$0xff]  }
  0x35   : > { %13166 = vmatpush3.bf16.msra.mxu1 %v13703_v38  ;;  %v1117_v38 = vshll.u32 %v1074_v32, 16  ;;  %v1038_v32 = vpack.c.bf16 %v11111_v27, %v11111_v27  ;;  %v11229_v27 = vld [vmem:[%s15143_s25 + $0x28] sm:$0x1e] }
  0x36   : > { %13167 = vmatprep.subr.bf16.mxu1 %v13704_v39  ;;  %v13797_v39 = vld [vmem:[%s18626_s4 + $0xb4] ss:$8 sps:$4 sm:$0xff]  }
  0x37   : > { %3358 = vmatprep.subr.bf16.mxu0 %v13797_v39  ;;  %v13859_v39 = vld [vmem:[%s18626_s4 + $0x74] ss:$8 sps:$4 sm:$0xff]  }
  0x39   : > { %13168 = vmatpush3.bf16.msra.mxu1 %v13705_v40  ;;  %v13799_v40 = vld [vmem:[%s18626_s4 + $0xb0] ss:$8 sps:$4 sm:$0xff]  }
  0x3a   : > { %13169 = vmatprep.subr.bf16.mxu1 %v13706_v41  ;;  %v13742_v41 = vld [vmem:[%s18623_s1 + $0x1f8] sm:$0xff]   ;;  %3359 = vmatpush1.bf16.msra.mxu0 %v13799_v40  ;;  %v13765_v40 = vld [vmem:[%s18623_s1 + $0x10] sm:$0xff]  }
  0x3d   : > { %13170 = vmatpush3.bf16.msra.mxu1 %v13707_v42  ;;  %v13743_v42 = vld [vmem:[%s18623_s1 + $0x1b8] sm:$0xff]  }
  0x3e   : > { %13171 = vmatprep.subr.bf16.mxu1 %v13708_v43  ;;  %v864_v43 = vshrl.u32 %v828_v31, 16  ;;  %v13761_v31 = vld [vmem:[%s18623_s1] sm:$0xff]  }
  0x41   : > { %13172 = vmatpush3.bf16.msra.mxu1 %v13709_v44  ;;  %v868_v44 = vrot.slane %v866_v36, 1  ;;  %v13763_v36 = vld [vmem:[%s18623_s1 + $0x8] sm:$0xff]  }
  0x42   : > { %13173 = vmatprep.subr.bf16.mxu1 %v13710_v45  ;;  %v13802_v45 = vld [vmem:[%s18626_s4 + $0xc4] ss:$8 sps:$4 sm:$0xff]  }
  0x43   : > { %3360 = vmatprep.subr.bf16.mxu0 %v13802_v45  ;;  %v13767_v45 = vld [vmem:[%s18623_s1 + $0x18] sm:$0xff]  }
  0x44   : > { %3361 = vmatpush1.bf16.msra.mxu0 %v13804_v49  ;;  %v13869_v49 = vld [vmem:[%s18626_s4 + $0x114] ss:$8 sps:$4 sm:$0xff]  }
  0x45   : > { %13174 = vmatpush3.bf16.msra.mxu1 %v13711_v46  ;;  %v13744_v46 = vld [vmem:[%s18623_s1 + $0xc0] sm:$0xff]  }
  0x46   : > { %13181 = vmatprep.subr.bf16.mxu1 %v13712_v48  ;;  %v1119_v48 = vrot.slane %v1117_v38, 1  ;;  %v13852_v38 = vld [vmem:[%s18626_s4 + $0x60] ss:$8 sps:$4 sm:$0xff]  }
  0x48   : > { %644 = vmatmul.mubr.bf16.vlgmr.msra.gmra.mrb[4].mxu1 %v292_v50  ;;  %v13807_v50 = vld [vmem:[%s18626_s4 + $0xd4] ss:$8 sps:$4 sm:$0xff]  }
  0x49   : > { %13182 = vmatpush3.bf16.msra.mxu1 %v13713_v51  ;;  %817 = vmatprep.mubr.bf16.mxu1 %v655_v52  ;;  %v869_v51 = vor.u32 %v868_v44, %v864_v43  ;;  %v13745_v52 = vld [vmem:[%s18623_s1 + $0x80] sm:$0xff]  }
  0x4a   : > { %13183 = vmatprep.subr.bf16.mxu1 %v13714_v53  ;;  %v13746_v53 = vld [vmem:[%s18623_s1 + $0xc8] sm:$0xff]   ;;  %3362 = vmatprep.subr.bf16.mxu0 %v13807_v50  ;;  %v3235_v43 = vld [vmem:[#allocation2] sm:$0x7] }
  0x4b   : > { %v13864_v44 = vld [vmem:[%s18626_s4 + $0x104] ss:$8 sps:$4 sm:$0xff]  }
  0x4c   : > { %v13769_v50 = vld [vmem:[%s18623_s1 + $0x20] sm:$0xff]  }
  0x4d   : > { %13184 = vmatpush3.bf16.msra.mxu1 %v13715_v54  ;;  %v1120_v54 = vor.u32 %v1119_v48, %v1115_v47  ;;  %v3236_v47 = vpack.c.bf16 %v3235_v43, %v3235_v43  ;;  %v13862_v48 = vld [vmem:[%s18626_s4 + $0x100] ss:$8 sps:$4 sm:$0xff]  }
  0x4e   : > { %13185 = vmatprep.subr.bf16.mxu1 %v13716_v55  ;;  %v13809_v55 = vld [vmem:[%s18626_s4 + $0xd0] ss:$8 sps:$4 sm:$0xff]  }
  0x4f   : > { %3363 = vmatpush1.bf16.msra.mxu0 %v13809_v55  ;;  %v13772_v55 = vld [vmem:[%s18623_s1 + $0x70] sm:$0xff]  }
  0x51   : > { %13186 = vmatpush3.bf16.msra.mxu1 %v13717_v56  ;;  %v13812_v56 = vld [vmem:[%s18626_s4 + $0xe4] ss:$8 sps:$4 sm:$0xff]  }
  0x52   : > { %13187 = vmatprep.subr.bf16.mxu1 %v13718_v57  ;;  %v13747_v57 = vld [vmem:[%s18623_s1 + $0x88] sm:$0xff]   ;;  %3364 = vmatprep.subr.bf16.mxu0 %v13812_v56 }
  0x53   : > { %v13872_v56 = vld [vmem:[%s18626_s4 + $0x120] ss:$8 sps:$4 sm:$0xff]  }
  0x55   : > { %13188 = vmatpush3.bf16.msra.mxu1 %v13719_v58  ;;  %v13748_v58 = vld [vmem:[%s18623_s1 + $0xd0] sm:$0xff]  }
  0x56   : > { %13189 = vmatprep.subr.bf16.mxu1 %v13720_v59  ;;  %v13814_v59 = vld [vmem:[%s18626_s4 + $0xe0] ss:$8 sps:$4 sm:$0xff]  }
  0x57   : > { %3365 = vmatpush1.bf16.msra.mxu0 %v13814_v59  ;;  %v13774_v59 = vld [vmem:[%s18623_s1 + $0x78] sm:$0xff]  }
  0x59   : > { %13190 = vmatpush3.bf16.msra.mxu1 %v13721_v60  ;;  %v13817_v60 = vld [vmem:[%s18626_s4 + $0xf4] ss:$8 sps:$4 sm:$0xff]  }
  0x5a   : > { %13191 = vmatprep.subr.bf16.mxu1 %v13722_v61  ;;  %v13749_v61 = vld [vmem:[%s18623_s1 + $0x90] sm:$0xff]   ;;  %3366 = vmatprep.subr.bf16.mxu0 %v13817_v60 }
  0x5b   : > { %v13877_v60 = vld [vmem:[%s18626_s4 + $0x130] ss:$8 sps:$4 sm:$0xff]  }
  0x5d   : > { %13192 = vmatpush3.bf16.msra.mxu1 %v13723_v63  ;;  %v13819_v63 = vld [vmem:[%s18626_s4 + $0xf0] ss:$8 sps:$4 sm:$0xff]  }
  0x5e   : > { %13193 = vmatprep.subr.bf16.mxu1 %v13724_v1  ;;  %v13824_v1 = vld [vmem:[%s18626_s4 + $0x4] ss:$8 sps:$4 sm:$0xff]   ;;  %3367 = vmatpush1.bf16.msra.mxu0 %v13819_v63  ;;  %v11110_v63 = vld [vmem:[%s15143_s25 + $0x10] sm:$0xf] }
  0x5f   : > { %3473 = vmatprep.subr.bf16.mxu0 %v13824_v1  ;;  %v11179_v1 = vld [vmem:[%s15143_s25 + $0x28] sm:$0xf] }
  0x61   : > { %13194 = vmatpush3.bf16.msra.mxu1 %v13725_v2  ;;  %v13751_v2 = vld [vmem:[%s18623_s1 + $0x98] sm:$0xff]  }
  0x62   : > { %13195 = vmatprep.subr.bf16.mxu1 %v13726_v4  ;;  %v3254_v4 = vpack.c.bf16 %v3253_v0, %v3253_v0  ;;  %v13776_v0 = vld [vmem:[%s18623_s1 + $0x140] sm:$0xff]  }
  0x64   : > { %3385 = vmatmul.mubr.bf16.vlgmr.msra.gmra.mrb[0].mxu0 %v3254_v4  ;;  %v1037_v4 = vpack.c.bf16 %v11110_v63, %v11110_v63  ;;  %v13830_v63 = vld [vmem:[%s18623_s1 + $0x1e0] sm:$0xff]  }
  0x65   : > { %13196 = vmatpush3.bf16.msra.mxu1 %v13727_v5  ;;  %v13822_v5 = vld [vmem:[%s18626_s4] ss:$8 sps:$4 sm:$0xff]   ;;  %3505 = vmatprep.mubr.bf16.mxu0 %v15058_v21 }
  0x66   : > { %13203 = vmatprep.subr.bf16.mxu1 %v13728_v9  ;;  %v11112_v9 = vld [vmem:[%s15143_s25 + $0x10] sm:$0x1e]  ;;  %3474 = vmatpush1.bf16.msra.mxu0 %v13822_v5  ;;  %v13777_v5 = vld [vmem:[%s18623_s1 + $0x100] sm:$0xff]  }
  0x67   : > { %3475 = vmatprep.subr.bf16.mxu0 %v13829_v6  ;;  %v1399_v6 = vpack.c.bf16 %v11179_v1, %v11179_v1  ;;  %v13942_v1 = vld [vmem:[%s18626_s4 + $0x200] ss:$8 sps:$4 sm:$0xff]  }
  0x68   : > { %818 = vmatmul.mubr.bf16.vlgmr.msra.gmra.mrb[8].mxu1 %v654_v10  ;;  %v13827_v10 = vld [vmem:[%s18626_s4 + $0x10] ss:$8 sps:$4 sm:$0xff]  }
  0x69   : > { %13204 = vmatpush3.bf16.msra.mxu1 %v13729_v11  ;;  %1007 = vmatprep.mubr.bf16.mxu1 %v876_v12  ;;  %v13834_v11 = vld [vmem:[%s18626_s4 + $0x24] ss:$8 sps:$4 sm:$0xff]  }
  0x6a   : > { %13205 = vmatprep.subr.bf16.mxu1 %v13730_v13  ;;  %v13755_v12 = vld [vmem:[%s18623_s1 + $0xa8] sm:$0xff]   ;;  %v1073_v13 = vpack.c.bf16 %v11112_v9, %v11112_v9  ;;  %3476 = vmatpush1.bf16.msra.mxu0 %v13827_v10 }
  0x6b   : > { %3477 = vmatprep.subr.bf16.mxu0 %v13834_v11  ;;  %v13894_v9 = vld [vmem:[%s18626_s4 + $0x164] ss:$8 sps:$4 sm:$0xff]   ;;  %v13780_v11 = vld [vmem:[%s18623_s1 + $0x150] sm:$0xff]  }
  0x6c   : > { %v13779_v10 = vld [vmem:[%s18623_s1 + $0x108] sm:$0xff]  }
  0x6d   : > { %13206 = vmatpush3.bf16.msra.mxu1 %v13731_v15  ;;  %v13832_v15 = vld [vmem:[%s18626_s4 + $0x20] ss:$8 sps:$4 sm:$0xff]  }
  0x6e   : > { %13207 = vmatprep.subr.bf16.mxu1 %v13732_v16  ;;  %v13839_v16 = vld [vmem:[%s18626_s4 + $0x34] ss:$8 sps:$4 sm:$0xff]   ;;  %3478 = vmatpush1.bf16.msra.mxu0 %v13832_v15 }
  0x6f   : > { %3479 = vmatprep.subr.bf16.mxu0 %v13839_v16  ;;  %v13785_v15 = vld [vmem:[%s18623_s1 + $0x158] sm:$0xff]  }
  0x70   : > { %v13897_v16 = vld [vmem:[%s18626_s4 + $0x170] ss:$8 sps:$4 sm:$0xff]  }
  0x71   : > { %13208 = vmatpush3.bf16.msra.mxu1 %v13733_v17  ;;  %v1110_v17 = vshll.u32 %v1073_v13, 16 }
  0x72   : > { %13209 = vmatprep.subr.bf16.mxu1 %v13734_v18  ;;  %v13757_v18 = vld [vmem:[%s18623_s1 + $0xb0] sm:$0xff]  }
  0x73   : > { %v1112_v25 = vrot.slane %v1110_v17, 1  ;;  %v3514_v17 = vld [vmem:[#allocation2 + $0x2] sm:$0x7] }
  0x75   : > { %13210 = vmatpush3.bf16.msra.mxu1 %v13735_v19  ;;  %v13758_v19 = vld [vmem:[%s18623_s1 + $0xf8] sm:$0xff]  }
  0x76   : > { %13211 = vmatprep.subr.bf16.mxu1 %v13736_v20  ;;  %v13837_v20 = vld [vmem:[%s18626_s4 + $0x30] ss:$8 sps:$4 sm:$0xff]  }
  0x77   : > { %3480 = vmatpush1.bf16.msra.mxu0 %v13837_v20  ;;  %v13790_v20 = vld [vmem:[%s18623_s1 + $0x160] sm:$0xff]  }
  0x78   : > { %3481 = vmatprep.subr.bf16.mxu0 %v13844_v23  ;;  %v13902_v23 = vld [vmem:[%s18626_s4 + $0x180] ss:$8 sps:$4 sm:$0xff]  }
  0x79   : > { %13212 = vmatpush3.bf16.msra.mxu1 %v13737_v24  ;;  %v1108_v24 = vshrl.u32 %v1073_v13, 16  ;;  %v13781_v13 = vld [vmem:[%s18623_s1 + $0x110] sm:$0xff]  }
  0x7a   : > { %13213 = vmatprep.subr.bf16.mxu1 %v13738_v29  ;;  %v13849_v29 = vld [vmem:[%s18626_s4 + $0x54] ss:$8 sps:$4 sm:$0xff]  }
  0x7b   : > { %3482 = vmatpush1.bf16.msra.mxu0 %v13842_v28  ;;  %v13907_v28 = vld [vmem:[%s18626_s4 + $0x190] ss:$8 sps:$4 sm:$0xff]  }
  0x7c   : > { %3483 = vmatprep.subr.bf16.mxu0 %v13849_v29  ;;  %v13914_v29 = vld [vmem:[%s18626_s4 + $0x1a4] ss:$8 sps:$4 sm:$0xff]  }
  0x7d   : > { %13214 = vmatpush3.bf16.msra.mxu1 %v13739_v30  ;;  %v1113_v30 = vor.u32 %v1112_v25, %v1108_v24  ;;  %v13791_v24 = vld [vmem:[%s18623_s1 + $0x120] sm:$0xff]   ;;  %v13909_v25 = vld [vmem:[%s18626_s4 + $0x194] ss:$8 sps:$4 sm:$0xff]  }
  0x7e   : > { %13215 = vmatprep.subr.bf16.mxu1 %v13740_v35  ;;  %v13854_v35 = vld [vmem:[%s18626_s4 + $0x64] ss:$8 sps:$4 sm:$0xff]  }
  0x7f   : > { %3484 = vmatpush1.bf16.msra.mxu0 %v13847_v34  ;;  %v13919_v34 = vld [vmem:[%s18626_s4 + $0x1b4] ss:$8 sps:$4 sm:$0xff]  }
  0x80   : > { %3485 = vmatprep.subr.bf16.mxu0 %v13854_v35  ;;  %v13801_v35 = vld [vmem:[%s18623_s1 + $0x130] sm:$0xff]  }
  0x81   : > { %13216 = vmatpush3.bf16.msra.mxu1 %v13741_v37  ;;  %v13764_v37 = vld [vmem:[%s18623_s1 + $0x50] sm:$0xff]  }
  0x82   : > { %13217 = vmatprep.subr.bf16.mxu1 %v13742_v41  ;;  %v13766_v41 = vld [vmem:[%s18623_s1 + $0x58] sm:$0xff]  }
  0x83   : > { %3486 = vmatpush1.bf16.msra.mxu0 %v13852_v38  ;;  %v13917_v38 = vld [vmem:[%s18626_s4 + $0x1b0] ss:$8 sps:$4 sm:$0xff]  }
  0x84   : > { %3487 = vmatprep.subr.bf16.mxu0 %v13859_v39  ;;  %v13924_v39 = vld [vmem:[%s18626_s4 + $0x1c4] ss:$8 sps:$4 sm:$0xff]  }
  0x85   : > { %13218 = vmatpush3.bf16.msra.mxu1 %v13743_v42  ;;  %v13857_v42 = vld [vmem:[%s18626_s4 + $0x70] ss:$8 sps:$4 sm:$0xff]  }
  0x86   : > { %13225 = vmatprep.subr.bf16.mxu1 %v13744_v46  ;;  %v13768_v46 = vld [vmem:[%s18623_s1 + $0x60] sm:$0xff]  }
  0x87   : > { %3488 = vmatpush1.bf16.msra.mxu0 %v13857_v42  ;;  %v13810_v42 = vld [vmem:[%s18623_s1 + $0x1c0] sm:$0xff]  }
  0x88   : > { %1008 = vmatmul.mubr.bf16.vlgmr.msra.gmra.mrb[12].mxu1 %v869_v51  ;;  %3613 = vmatprep.subr.bf16.mxu0 %v13864_v44  ;;  %v13770_v51 = vld [vmem:[%s18623_s1 + $0x68] sm:$0xff]  }
  0x89   : > { %13226 = vmatpush3.bf16.msra.mxu1 %v13745_v52  ;;  %1251 = vmatprep.mubr.bf16.mxu1 %v1120_v54  ;;  %v13867_v52 = vld [vmem:[%s18626_s4 + $0x110] ss:$8 sps:$4 sm:$0xff]   ;;  %v13771_v54 = vld [vmem:[%s18623_s1 + $0x28] sm:$0xff]  }
  0x8a   : > { %13227 = vmatprep.subr.bf16.mxu1 %v13746_v53  ;;  %3506 = vmatmul.mubr.bf16.vlgmr.msra.gmra.mrb[0].mxu0 %v3236_v47  ;;  %v13874_v53 = vld [vmem:[%s18626_s4 + $0x124] ss:$8 sps:$4 sm:$0xff]  }
  0x8b   : > { %3614 = vmatpush1.bf16.msra.mxu0 %v13862_v48  ;;  %3645 = vmatprep.mubr.bf16.mxu0 %v15058_v21  ;;  %v13811_v48 = vld [vmem:[%s18623_s1 + $0x180] sm:$0xff]  }
  0x8c   : > { %3615 = vmatprep.subr.bf16.mxu0 %v13869_v49  ;;  %v13815_v49 = vld [vmem:[%s18623_s1 + $0x1c8] sm:$0xff]  }
  0x8d   : > { %13228 = vmatpush3.bf16.msra.mxu1 %v13747_v57  ;;  %v13879_v57 = vld [vmem:[%s18626_s4 + $0x134] ss:$8 sps:$4 sm:$0xff]  }
  0x8e   : > { %13229 = vmatprep.subr.bf16.mxu1 %v13748_v58  ;;  %v13773_v58 = vld [vmem:[%s18623_s1 + $0x30] sm:$0xff]  }
  0x8f   : > { %3616 = vmatpush1.bf16.msra.mxu0 %v13867_v52  ;;  %v13934_v52 = vld [vmem:[%s18626_s4 + $0x1e4] ss:$8 sps:$4 sm:$0xff]  }
  0x90   : > { %3617 = vmatprep.subr.bf16.mxu0 %v13874_v53  ;;  %v13816_v53 = vld [vmem:[%s18623_s1 + $0x188] sm:$0xff]  }
  0x91   : > { %13230 = vmatpush3.bf16.msra.mxu1 %v13749_v61  ;;  %v13775_v61 = vld [vmem:[%s18623_s1 + $0x38] sm:$0xff]  }
  0x92   : > { %13231 = vmatprep.subr.bf16.mxu1 %v13750_v62  ;;  %v13884_v62 = vld [vmem:[%s18626_s4 + $0x144] ss:$8 sps:$4 sm:$0xff]  }
  0x93   : > { %3618 = vmatpush1.bf16.msra.mxu0 %v13872_v56  ;;  %v13939_v56 = vld [vmem:[%s18626_s4 + $0x1f4] ss:$8 sps:$4 sm:$0xff]  }
  0x94   : > { %3619 = vmatprep.subr.bf16.mxu0 %v13879_v57  ;;  %v13821_v57 = vld [vmem:[%s18623_s1 + $0x190] sm:$0xff]  }
  0x95   : > { %13232 = vmatpush3.bf16.msra.mxu1 %v13751_v2  ;;  %v13882_v2 = vld [vmem:[%s18626_s4 + $0x140] ss:$8 sps:$4 sm:$0xff]  }
  0x96   : > { %13233 = vmatprep.subr.bf16.mxu1 %v13752_v3  ;;  %v13889_v3 = vld [vmem:[%s18626_s4 + $0x154] ss:$8 sps:$4 sm:$0xff]  }
  0x97   : > { %3620 = vmatpush1.bf16.msra.mxu0 %v13877_v60  ;;  %v3656_v60 = vld [vmem:[#allocation2 + $0x3] sm:$0x7] }
  0x98   : > { %3621 = vmatprep.subr.bf16.mxu0 %v13884_v62  ;;  %v13826_v62 = vld [vmem:[%s18623_s1 + $0x198] sm:$0xff]  }
  0x99   : > { %13234 = vmatpush3.bf16.msra.mxu1 %v13753_v7  ;;  %v13778_v7 = vld [vmem:[%s18623_s1 + $0x148] sm:$0xff]  }
  0x9a   : > { %13235 = vmatprep.subr.bf16.mxu1 %v13754_v8  ;;  %v13887_v8 = vld [vmem:[%s18626_s4 + $0x150] ss:$8 sps:$4 sm:$0xff]  }
  0x9b   : > { %3622 = vmatpush1.bf16.msra.mxu0 %v13882_v2  ;;  %v13831_v2 = vld [vmem:[%s18623_s1 + $0x1a0] sm:$0xff]  }
  0x9c   : > { %3623 = vmatprep.subr.bf16.mxu0 %v13889_v3  ;;  %v13949_v3 = vld [vmem:[%s18626_s4 + $0x214] ss:$8 sps:$4 sm:$0xff]  }
  0x9d   : > { %13236 = vmatpush3.bf16.msra.mxu1 %v13755_v12  ;;  %v13892_v12 = vld [vmem:[%s18626_s4 + $0x160] ss:$8 sps:$4 sm:$0xff]  }
  0x9e   : > { %13237 = vmatprep.subr.bf16.mxu1 %v13756_v14  ;;  %v13899_v14 = vld [vmem:[%s18626_s4 + $0x174] ss:$8 sps:$4 sm:$0xff]  }
  0x9f   : > { %3624 = vmatpush1.bf16.msra.mxu0 %v13887_v8  ;;  %v13954_v8 = vld [vmem:[%s18626_s4 + $0x224] ss:$8 sps:$4 sm:$0xff]  }
  0xa0   : > { %3625 = vmatprep.subr.bf16.mxu0 %v13894_v9  ;;  %v13836_v9 = vld [vmem:[%s18623_s1 + $0x1a8] sm:$0xff]  }
  0xa1   : > { %13238 = vmatpush3.bf16.msra.mxu1 %v13757_v18  ;;  %v13904_v18 = vld [vmem:[%s18626_s4 + $0x184] ss:$8 sps:$4 sm:$0xff]  }
  0xa2   : > { %13239 = vmatprep.subr.bf16.mxu1 %v13758_v19  ;;  %v13786_v19 = vld [vmem:[%s18623_s1 + $0x118] sm:$0xff]  }
  0xa3   : > { %3626 = vmatpush1.bf16.msra.mxu0 %v13892_v12 }
  0xa4   : > { %3627 = vmatprep.subr.bf16.mxu0 %v13899_v14  ;;  %v13959_v14 = vld [vmem:[%s18626_s4 + $0x234] ss:$8 sps:$4 sm:$0xff]  }
  0xa5   : > { %13240 = vmatpush3.bf16.msra.mxu1 %v13759_v22  ;;  %v3515_v22 = vpack.c.bf16 %v3514_v17, %v3514_v17 }
  0xa6   : > { %13247 = vmatprep.subr.bf16.mxu1 %v13760_v26  ;;  %v13795_v26 = vld [vmem:[%s18623_s1 + $0x168] sm:$0xff]  }
  0xa7   : > { %3628 = vmatpush1.bf16.msra.mxu0 %v13897_v16  ;;  %v13841_v16 = vld [vmem:[%s18623_s1 + $0x1b0] sm:$0xff]  }
  0xa8   : > { %1252 = vmatmul.mubr.bf16.vlgmr.msra.gmra.mrb[16].mxu1 %v1113_v30  ;;  %3755 = vmatprep.subr.bf16.mxu0 %v13904_v18  ;;  %v13796_v30 = vld [vmem:[%s18623_s1 + $0x128] sm:$0xff]  }
  0xa9   : > { %13248 = vmatpush3.bf16.msra.mxu1 %v13761_v31  ;;  %1387 = vmatprep.mubr.bf16.mxu1 %v1038_v32  ;;  %v13800_v31 = vld [vmem:[%s18623_s1 + $0x170] sm:$0xff]   ;;  %v1572_v32 = vpack.c.bf16 %v11229_v27, %v11229_v27 }
  0xaa   : > { %13249 = vmatprep.subr.bf16.mxu1 %v13762_v33  ;;  %3646 = vmatmul.mubr.bf16.vlgmr.msra.gmra.mrb[0].mxu0 %v3515_v22  ;;  %v13912_v33 = vld [vmem:[%s18626_s4 + $0x1a0] ss:$8 sps:$4 sm:$0xff]  }
  0xab   : > { %3756 = vmatpush1.bf16.msra.mxu0 %v13902_v23  ;;  %3787 = vmatprep.mubr.bf16.mxu0 %v15058_v21  ;;  %v1613_v43 = vshrl.u32 %v1572_v32, 16  ;;  %v13957_v23 = vld [vmem:[%s18626_s4 + $0x230] ss:$8 sps:$4 sm:$0xff]  }
  0xac   : > { %3757 = vmatprep.subr.bf16.mxu0 %v13909_v25  ;;  %v13845_v25 = vld [vmem:[%s18623_s1 + $0x1f8] sm:$0xff]  }
  0xad   : > { %13250 = vmatpush3.bf16.msra.mxu1 %v13763_v36  ;;  %v1615_v36 = vshll.u32 %v1572_v32, 16 }
  0xae   : > { %13251 = vmatprep.subr.bf16.mxu1 %v13764_v37  ;;  %v13805_v37 = vld [vmem:[%s18623_s1 + $0x178] sm:$0xff]  }
  0xaf   : > { %3758 = vmatpush1.bf16.msra.mxu0 %v13907_v28  ;;  %v1617_v44 = vrot.slane %v1615_v36, 1  ;;  %v13851_v36 = vld [vmem:[%s18623_s1 + $0x80] sm:$0xff]  }
  0xb0   : > { %3759 = vmatprep.subr.bf16.mxu0 %v13914_v29  ;;  %v13846_v29 = vld [vmem:[%s18623_s1 + $0x1b8] sm:$0xff]  }
  0xb1   : > { %13252 = vmatpush3.bf16.msra.mxu1 %v13765_v40  ;;  %v13806_v40 = vld [vmem:[%s18623_s1 + $0x138] sm:$0xff]  }
  0xb2   : > { %13253 = vmatprep.subr.bf16.mxu1 %v13766_v41  ;;  %v11178_v41 = vld [vmem:[%s15143_s25 + $0x20] sm:$0xf] }
  0xb3   : > { %3760 = vmatpush1.bf16.msra.mxu0 %v13912_v33  ;;  %v1398_v47 = vpack.c.bf16 %v11178_v41, %v11178_v41  ;;  %v13962_v33 = vld [vmem:[%s18626_s4 + $0x240] ss:$8 sps:$4 sm:$0xff]  }
  0xb4   : > { %3761 = vmatprep.subr.bf16.mxu0 %v13919_v34  ;;  %v13969_v34 = vld [vmem:[%s18626_s4 + $0x254] ss:$8 sps:$4 sm:$0xff]   ;;  %v13856_v41 = vld [vmem:[%s18623_s1 + $0x88] sm:$0xff]  }
  0xb5   : > { %13254 = vmatpush3.bf16.msra.mxu1 %v13767_v45  ;;  %v13922_v45 = vld [vmem:[%s18626_s4 + $0x1c0] ss:$8 sps:$4 sm:$0xff]  }
  0xb6   : > { %13255 = vmatprep.subr.bf16.mxu1 %v13768_v46  ;;  %v13929_v46 = vld [vmem:[%s18626_s4 + $0x1d4] ss:$8 sps:$4 sm:$0xff]  }
  0xb7   : > { %3762 = vmatpush1.bf16.msra.mxu0 %v13917_v38 }
  0xb8   : > { %3763 = vmatprep.subr.bf16.mxu0 %v13924_v39  ;;  %v13967_v39 = vld [vmem:[%s18626_s4 + $0x250] ss:$8 sps:$4 sm:$0xff]  }
  0xb9   : > { %13256 = vmatpush3.bf16.msra.mxu1 %v13769_v50  ;;  %v1618_v50 = vor.u32 %v1617_v44, %v1613_v43  ;;  %v13972_v43 = vld [vmem:[%s18626_s4 + $0x260] ss:$8 sps:$4 sm:$0xff]   ;;  %v13979_v44 = vld [vmem:[%s18626_s4 + $0x274] ss:$8 sps:$4 sm:$0xff]  }
  0xba   : > { %13257 = vmatprep.subr.bf16.mxu1 %v13770_v51  ;;  %v13927_v51 = vld [vmem:[%s18626_s4 + $0x1d0] ss:$8 sps:$4 sm:$0xff]  }
  0xbb   : > { %3764 = vmatpush1.bf16.msra.mxu0 %v13922_v45  ;;  %v13861_v45 = vld [vmem:[%s18623_s1 + $0x90] sm:$0xff]  }
  0xbc   : > { %3765 = vmatprep.subr.bf16.mxu0 %v13929_v46  ;;  %v13865_v46 = vld [vmem:[%s18623_s1 + $0xd8] sm:$0xff]  }
  0xbd   : > { %13258 = vmatpush3.bf16.msra.mxu1 %v13771_v54  ;;  %v13820_v54 = vld [vmem:[%s18623_s1 + $0x1d0] sm:$0xff]  }
  0xbe   : > { %13259 = vmatprep.subr.bf16.mxu1 %v13772_v55  ;;  %v13932_v55 = vld [vmem:[%s18626_s4 + $0x1e0] ss:$8 sps:$4 sm:$0xff]  }
  0xbf   : > { %3766 = vmatpush1.bf16.msra.mxu0 %v13927_v51  ;;  %v13871_v51 = vld [vmem:[%s18623_s1 + $0xa0] sm:$0xff]  }
  0xc0   : > { %3767 = vmatprep.subr.bf16.mxu0 %v13934_v52  ;;  %v11280_v52 = vld [vmem:[%s15143_s25 + $0x20] sm:$0x1e] }
  0xc1   : > { %13260 = vmatpush3.bf16.msra.mxu1 %v13773_v58  ;;  %v13825_v58 = vld [vmem:[%s18623_s1 + $0x1d8] sm:$0xff]  }
  0xc2   : > { %13261 = vmatprep.subr.bf16.mxu1 %v13774_v59  ;;  %v13937_v59 = vld [vmem:[%s18626_s4 + $0x1f0] ss:$8 sps:$4 sm:$0xff]  }
  0xc3   : > { %3768 = vmatpush1.bf16.msra.mxu0 %v13932_v55  ;;  %v13876_v55 = vld [vmem:[%s18623_s1 + $0xa8] sm:$0xff]  }
  0xc4   : > { %3769 = vmatprep.subr.bf16.mxu0 %v13939_v56  ;;  %v13880_v56 = vld [vmem:[%s18623_s1 + $0xf0] sm:$0xff]  }
  0xc5   : > { %13262 = vmatpush3.bf16.msra.mxu1 %v13775_v61  ;;  %v13944_v61 = vld [vmem:[%s18626_s4 + $0x204] ss:$8 sps:$4 sm:$0xff]  }
  0xc6   : > { %13269 = vmatprep.subr.bf16.mxu1 %v13776_v0  ;;  %v3657_v0 = vpack.c.bf16 %v3656_v60, %v3656_v60 }
  0xc7   : > { %3770 = vmatpush1.bf16.msra.mxu0 %v13937_v59 }
  0xc8   : > { %1388 = vmatmul.mubr.bf16.vlgmr.msra.gmra.mrb[20].mxu1 %v1037_v4  ;;  %3897 = vmatprep.subr.bf16.mxu0 %v13944_v61  ;;  %v13835_v4 = vld [vmem:[%s18623_s1 + $0x1e8] sm:$0xff]  }
  0xc9   : > { %13270 = vmatpush3.bf16.msra.mxu1 %v13777_v5  ;;  %1560 = vmatprep.mubr.bf16.mxu1 %v1399_v6  ;;  %v11228_v5 = vld [vmem:[%s15143_s25 + $0x20] sm:$0x1e]  ;;  %v11281_v6 = vld [vmem:[%s15143_s25 + $0x28] sm:$0x1e] }
  0xca   : > { %13271 = vmatprep.subr.bf16.mxu1 %v13778_v7  ;;  %3788 = vmatmul.mubr.bf16.vlgmr.msra.gmra.mrb[0].mxu0 %v3657_v0  ;;  %v13947_v7 = vld [vmem:[%s18626_s4 + $0x210] ss:$8 sps:$4 sm:$0xff]   ;;  %v1804_v12 = vpack.c.bf16 %v11281_v6, %v11281_v6  ;;  %v11279_v6 = vld [vmem:[%s15143_s25 + $0x28] sm:$0xf] }
  0xcb   : > { %3898 = vmatpush1.bf16.msra.mxu0 %v13942_v1  ;;  %3929 = vmatprep.mubr.bf16.mxu0 %v15058_v21  ;;  %v13885_v0 = vld [vmem:[%s18623_s1 + $0xf8] sm:$0xff]  }
  0xcc   : > { %3899 = vmatprep.subr.bf16.mxu0 %v13949_v3  ;;  %v1847_v22 = vshll.u32 %v1804_v12, 16 }
  0xcd   : > { %13272 = vmatpush3.bf16.msra.mxu1 %v13779_v10  ;;  %v1571_v10 = vpack.c.bf16 %v11228_v5, %v11228_v5  ;;  %v13890_v5 = vld [vmem:[%s18623_s1 + $0x40] sm:$0xff]  }
  0xce   : > { %13273 = vmatprep.subr.bf16.mxu1 %v13780_v11  ;;  %v13840_v11 = vld [vmem:[%s18623_s1 + $0x1f0] sm:$0xff]   ;;  %v1849_v32 = vrot.slane %v1847_v22, 1 }
  0xcf   : > { %3900 = vmatpush1.bf16.msra.mxu0 %v13947_v7  ;;  %v1608_v18 = vshll.u32 %v1571_v10, 16  ;;  %v1606_v27 = vshrl.u32 %v1571_v10, 16  ;;  %v13895_v10 = vld [vmem:[%s18623_s1 + $0x48] sm:$0xff]  }
  0xd0   : > { %3901 = vmatprep.subr.bf16.mxu0 %v13954_v8  ;;  %v13891_v8 = vld [vmem:[%s18623_s1] sm:$0xff]  }
  0xd1   : > { %13274 = vmatpush3.bf16.msra.mxu1 %v13781_v13  ;;  %v13952_v13 = vld [vmem:[%s18626_s4 + $0x220] ss:$8 sps:$4 sm:$0xff]   ;;  %v1610_v28 = vrot.slane %v1608_v18, 1 }
  0xd2   : > { %13275 = vmatprep.subr.bf16.mxu1 %v13785_v15  ;;  %v13915_v18 = vld [vmem:[%s18623_s1 + $0x68] sm:$0xff]  }
  0xd3   : > { %3902 = vmatpush1.bf16.msra.mxu0 %v13952_v13  ;;  %v13901_v13 = vld [vmem:[%s18623_s1 + $0x10] sm:$0xff]  }
  0xd4   : > { %3903 = vmatprep.subr.bf16.mxu0 %v13959_v14  ;;  %v13905_v14 = vld [vmem:[%s18623_s1 + $0x58] sm:$0xff]  }
  0xd5   : > { %13276 = vmatpush3.bf16.msra.mxu1 %v13786_v19 }
  0xd6   : > { %13277 = vmatprep.subr.bf16.mxu1 %v13790_v20 }
  0xd7   : > { %3904 = vmatpush1.bf16.msra.mxu0 %v13957_v23 }
  0xd9   : > { %13278 = vmatpush3.bf16.msra.mxu1 %v13791_v24 }
  0xda   : > { %13279 = vmatprep.subr.bf16.mxu1 %v13795_v26  ;;  %v13964_v26 = vld [vmem:[%s18626_s4 + $0x244] ss:$8 sps:$4 sm:$0xff]  }
  0xdb   : > { %3905 = vmatprep.subr.bf16.mxu0 %v13964_v26 }
  0xdc   : > { %3906 = vmatpush1.bf16.msra.mxu0 %v13962_v33  ;;  %v11347_v33 = vld [vmem:[%s15143_s25 + $0x38] sm:$0xf] }
  0xdd   : > { %13280 = vmatpush3.bf16.msra.mxu1 %v13796_v30  ;;  %v13850_v30 = vld [vmem:[%s18623_s1 + $0xc0] sm:$0xff]   ;;  %3907 = vmatprep.subr.bf16.mxu0 %v13969_v34 }
  0xde   : > { %13281 = vmatprep.subr.bf16.mxu1 %v13800_v31  ;;  %v1845_v31 = vshrl.u32 %v1804_v12, 16  ;;  %v13900_v12 = vld [vmem:[%s18623_s1 + $0x50] sm:$0xff]  }
  0xe0   : > { %v1850_v38 = vor.u32 %v1849_v32, %v1845_v31  ;;  %3908 = vmatpush1.bf16.msra.mxu0 %v13967_v39  ;;  %v11278_v31 = vld [vmem:[%s15143_s25 + $0x20] sm:$0xf]  ;;  %v13940_v39 = vld [vmem:[%s18623_s1 + $0x150] sm:$0xff]  }
  0xe1   : > { %13282 = vmatpush3.bf16.msra.mxu1 %v13801_v35  ;;  %v1611_v35 = vor.u32 %v1610_v28, %v1606_v27  ;;  %v13925_v27 = vld [vmem:[%s18623_s1 + $0x78] sm:$0xff]   ;;  %v13930_v32 = vld [vmem:[%s18623_s1 + $0x140] sm:$0xff]   ;;  %v1767_v34 = vpack.c.bf16 %v11278_v31, %v11278_v31  ;;  %v14000_v31 = vld [vmem:[%s18623_s1 + $0x1f0] sm:$0xff]  }
  0xe2   : > { %13283 = vmatprep.subr.bf16.mxu1 %v13805_v37  ;;  %v13855_v37 = vld [vmem:[%s18623_s1 + $0xc8] sm:$0xff]  }
  0xe5   : > { %13284 = vmatpush3.bf16.msra.mxu1 %v13806_v40  ;;  %v13974_v40 = vld [vmem:[%s18626_s4 + $0x264] ss:$8 sps:$4 sm:$0xff]  }
  0xe6   : > { %13291 = vmatprep.subr.bf16.mxu1 %v13810_v42  ;;  %v13860_v42 = vld [vmem:[%s18623_s1 + $0xd0] sm:$0xff]   ;;  %3909 = vmatprep.subr.bf16.mxu0 %v13974_v40 }
  0xe7   : > { %3910 = vmatpush1.bf16.msra.mxu0 %v13972_v43  ;;  %v13941_v40 = vld [vmem:[%s18623_s1 + $0x110] sm:$0xff]   ;;  %v13950_v43 = vld [vmem:[%s18623_s1 + $0x160] sm:$0xff]  }
  0xe8   : > { %1561 = vmatmul.mubr.bf16.vlgmr.msra.gmra.mrb[24].mxu1 %v1398_v47  ;;  %v13977_v47 = vld [vmem:[%s18626_s4 + $0x270] ss:$8 sps:$4 sm:$0xff]   ;;  %3911 = vmatprep.subr.bf16.mxu0 %v13979_v44  ;;  %v13951_v44 = vld [vmem:[%s18623_s1 + $0x120] sm:$0xff]  }
  0xe9   : > { %13292 = vmatpush3.bf16.msra.mxu1 %v13811_v48  ;;  %1749 = vmatprep.mubr.bf16.mxu1 %v1618_v50  ;;  %v13984_v48 = vld [vmem:[%s18626_s4 + $0x284] ss:$8 sps:$4 sm:$0xff]  }
  0xea   : > { %13293 = vmatprep.subr.bf16.mxu1 %v13815_v49  ;;  %v13866_v49 = vld [vmem:[%s18623_s1 + $0x98] sm:$0xff]   ;;  %v13870_v50 = vld [vmem:[%s18623_s1 + $0xe0] sm:$0xff]  }
  0xeb   : > { %3912 = vmatpush1.bf16.msra.mxu0 %v13977_v47  ;;  %v13956_v47 = vld [vmem:[%s18623_s1 + $0x128] sm:$0xff]  }
  0xec   : > { %4039 = vmatprep.subr.bf16.mxu0 %v13984_v48  ;;  %v13960_v48 = vld [vmem:[%s18623_s1 + $0x170] sm:$0xff]  }
  0xed   : > { %13294 = vmatpush3.bf16.msra.mxu1 %v13816_v53  ;;  %v13875_v53 = vld [vmem:[%s18623_s1 + $0xe8] sm:$0xff]  }
  0xee   : > { %13295 = vmatprep.subr.bf16.mxu1 %v13820_v54  ;;  %v1803_v54 = vpack.c.bf16 %v11280_v52, %v11280_v52 }
  0xf0   : > { %v1840_v59 = vshll.u32 %v1803_v54, 16  ;;  %v1838_v3 = vshrl.u32 %v1803_v54, 16 }
  0xf1   : > { %13296 = vmatpush3.bf16.msra.mxu1 %v13821_v57 }
  0xf2   : > { %13297 = vmatprep.subr.bf16.mxu1 %v13825_v58 }
  0xf5   : > { %13298 = vmatpush3.bf16.msra.mxu1 %v13826_v62  ;;  %v13881_v62 = vld [vmem:[%s18623_s1 + $0xb0] sm:$0xff]  }
  0xf6   : > { %13299 = vmatprep.subr.bf16.mxu1 %v13830_v63 }
  0xf9   : > { %13300 = vmatpush3.bf16.msra.mxu1 %v13831_v2  ;;  %v13886_v2 = vld [vmem:[%s18623_s1 + $0xb8] sm:$0xff]  }
  0xfa   : > { %13301 = vmatprep.subr.bf16.mxu1 %v13835_v4  ;;  %v1842_v4 = vrot.slane %v1840_v59, 1 }
  0xfb   : > { %v13153_v15 = vpop.f32.mrb[0].mxu1 }
  0xfc   : > { %v13154_v17 = vpop.f32.mrb[1].mxu1  ;;  %v1843_v7 = vor.u32 %v1842_v4, %v1838_v3 }
  0xfd   : > { %v15731_v19 = vadd.f32 %v13154_v17, %v13153_v15  ;;  %v13156_v20 = vpop.f32.mrb[2].mxu1  ;;  %13302 = vmatpush3.bf16.msra.mxu1 %v13836_v9  ;;  %v1768_v9 = vpack.c.bf16 %v11279_v6, %v11279_v6  ;;  %v13906_v15 = vld [vmem:[%s18623_s1 + $0x18] sm:$0xff]   ;;  %v13911_v17 = vld [vmem:[%s18623_s1 + $0x20] sm:$0xff]  }
  0xfe   : > { %v13157_v24 = vpop.f32.mrb[3].mxu1  ;;  %13303 = vmatprep.subr.bf16.mxu1 %v13840_v11  ;;  %v13896_v11 = vld [vmem:[%s18623_s1 + $0x8] sm:$0xff]   ;;  %v13920_v20 = vld [vmem:[%s18623_s1 + $0x70] sm:$0xff]   ;;  %v13971_v6 = vld [vmem:[%s18623_s1 + $0x180] sm:$0xff]  }
  0xff   : > { %v13921_v24 = vld [vmem:[%s18623_s1 + $0x30] sm:$0xff]  }
 0x101   : > { %13304 = vmatpush3.bf16.msra.mxu1 %v13841_v16  ;;  %v13910_v16 = vld [vmem:[%s18623_s1 + $0x60] sm:$0xff]  }
 0x102   : > { %13305 = vmatprep.subr.bf16.mxu1 %v13845_v25 }
 0x105   : > { %13306 = vmatpush3.bf16.msra.mxu1 %v13846_v29 }
 0x106   : > { %13313 = vmatprep.subr.bf16.mxu1 %v13850_v30  ;;  %v13926_v30 = vld [vmem:[%s18623_s1 + $0x38] sm:$0xff]  }
 0x108   : > { %1750 = vmatmul.mubr.bf16.vlgmr.msra.gmra.mrb[28].mxu1 %v1611_v35  ;;  %v13931_v35 = vld [vmem:[%s18623_s1 + $0x100] sm:$0xff]  }
 0x109   : > { %13314 = vmatpush3.bf16.msra.mxu1 %v13851_v36  ;;  %1981 = vmatprep.mubr.bf16.mxu1 %v1850_v38  ;;  %v2129_v36 = vpack.c.bf16 %v11347_v33, %v11347_v33  ;;  %v13936_v38 = vld [vmem:[%s18623_s1 + $0x108] sm:$0xff]  }
 0x10a   : > { %13315 = vmatprep.subr.bf16.mxu1 %v13855_v37  ;;  %v13935_v37 = vld [vmem:[%s18623_s1 + $0x148] sm:$0xff]  }
 0x10d   : > { %13316 = vmatpush3.bf16.msra.mxu1 %v13856_v41  ;;  %v13945_v41 = vld [vmem:[%s18623_s1 + $0x158] sm:$0xff]  }
 0x10e   : > { %13317 = vmatprep.subr.bf16.mxu1 %v13860_v42  ;;  %v13946_v42 = vld [vmem:[%s18623_s1 + $0x118] sm:$0xff]  }
 0x111   : > { %13318 = vmatpush3.bf16.msra.mxu1 %v13861_v45  ;;  %v13955_v45 = vld [vmem:[%s18623_s1 + $0x168] sm:$0xff]  }
 0x112   : > { %13319 = vmatprep.subr.bf16.mxu1 %v13865_v46  ;;  %v11397_v46 = vld [vmem:[%s15143_s25 + $0x38] sm:$0x1e] }
 0x115   : > { %13320 = vmatpush3.bf16.msra.mxu1 %v13866_v49  ;;  %v2302_v49 = vpack.c.bf16 %v11397_v46, %v11397_v46 }
 0x116   : > { %13321 = vmatprep.subr.bf16.mxu1 %v13870_v50 }
 0x119   : > { %13322 = vmatpush3.bf16.msra.mxu1 %v13871_v51  ;;  %v11108_v51 = vld [vmem:[%s18624_s2] ss:$0 sm:$0xff] }
 0x11a   : > { %13323 = vmatprep.subr.bf16.mxu1 %v13875_v53  ;;  %v13961_v53 = vld [vmem:[%s18623_s1 + $0x130] sm:$0xff]  }
 0x11b   : > { %v13175_v57 = vpop.f32.mrb[4].mxu1 }
 0x11c   : > { %v13176_v58 = vpop.f32.mrb[5].mxu1 }
 0x11d   : > { %v13177_v60 = vadd.f32 %v13176_v58, %v13175_v57  ;;  %v13178_v61 = vpop.f32.mrb[6].mxu1  ;;  %13324 = vmatpush3.bf16.msra.mxu1 %v13876_v55  ;;  %v2345_v57 = vshll.u32 %v2302_v49, 16  ;;  %v11109_v58 = vld [vmem:[%s18625_s3] ss:$0 sm:$0xff] }
 0x11e   : > { %v13179_v63 = vpop.f32.mrb[7].mxu1  ;;  %13325 = vmatprep.subr.bf16.mxu1 %v13880_v56  ;;  %v13965_v56 = vld [vmem:[%s18623_s1 + $0x178] sm:$0xff]  }
 0x11f   : > { %v646_v1 = vadd.f32 %v13177_v60, %v15731_v19  ;;  %v13916_v19 = vld [vmem:[%s18623_s1 + $0x28] sm:$0xff]   ;;  %v13966_v61 = vld [vmem:[%s18623_s1 + $0x138] sm:$0xff]   ;;  %v13970_v63 = vld [vmem:[%s18623_s1 + $0x1c0] sm:$0xff]  }
 0x121   : > { %13326 = vmatpush3.bf16.msra.mxu1 %v13881_v62  ;;  %v11346_v62 = vld [vmem:[%s15143_s25 + $0x30] sm:$0xf] }
 0x122   : > { %13327 = vmatprep.subr.bf16.mxu1 %v13885_v0  ;;  %v2128_v4 = vpack.c.bf16 %v11346_v62, %v11346_v62  ;;  %v14017_v62 = vld [vmem:[%s18626_s4 + $0x2f0] ss:$8 sps:$4 sm:$0xff]  }
 0x125   : > { %13328 = vmatpush3.bf16.msra.mxu1 %v13886_v2  ;;  %v2347_v2 = vrot.slane %v2345_v57, 1 }
 0x126   : > { %13335 = vmatprep.subr.bf16.mxu1 %v13890_v5 }
 0x128   : > { %1982 = vmatmul.mubr.bf16.vlgmr.msra.gmra.mrb[32].mxu1 %v1843_v7 }
 0x129   : > { %13336 = vmatpush3.bf16.msra.mxu1 %v13891_v8  ;;  %2117 = vmatprep.mubr.bf16.mxu1 %v1768_v9  ;;  %v13975_v8 = vld [vmem:[%s18623_s1 + $0x1c8] sm:$0xff]  }
 0x12a   : > { %13337 = vmatprep.subr.bf16.mxu1 %v13895_v10  ;;  %v13976_v10 = vld [vmem:[%s18623_s1 + $0x188] sm:$0xff]  }
 0x12d   : > { %13338 = vmatpush3.bf16.msra.mxu1 %v13896_v11  ;;  %v13980_v11 = vld [vmem:[%s18623_s1 + $0x1d0] sm:$0xff]  }
 0x12e   : > { %13339 = vmatprep.subr.bf16.mxu1 %v13900_v12  ;;  %v13981_v12 = vld [vmem:[%s18623_s1 + $0x190] sm:$0xff]  }
 0x131   : > { %13340 = vmatpush3.bf16.msra.mxu1 %v13901_v13  ;;  %v13985_v13 = vld [vmem:[%s18623_s1 + $0x1d8] sm:$0xff]  }
 0x132   : > { %13341 = vmatprep.subr.bf16.mxu1 %v13905_v14  ;;  %v13982_v14 = vld [vmem:[%s18626_s4 + $0x280] ss:$8 sps:$4 sm:$0xff]  }
 0x135   : > { %13342 = vmatpush3.bf16.msra.mxu1 %v13906_v15 }
 0x136   : > { %13343 = vmatprep.subr.bf16.mxu1 %v13910_v16 }
 0x139   : > { %13344 = vmatpush3.bf16.msra.mxu1 %v13911_v17  ;;  %v13986_v17 = vld [vmem:[%s18623_s1 + $0x198] sm:$0xff]  }
 0x13a   : > { %13345 = vmatprep.subr.bf16.mxu1 %v13915_v18  ;;  %v13989_v18 = vld [vmem:[%s18626_s4 + $0x294] ss:$8 sps:$4 sm:$0xff]  }
 0x13b   : > { %v13197_v22 = vpop.f32.mrb[8].mxu1 }
 0x13c   : > { %v13198_v23 = vpop.f32.mrb[9].mxu1 }
 0x13d   : > { %v13199_v25 = vadd.f32 %v13198_v23, %v13197_v22  ;;  %v13200_v26 = vpop.f32.mrb[10].mxu1  ;;  %13346 = vmatpush3.bf16.msra.mxu1 %v13916_v19  ;;  %v13987_v19 = vld [vmem:[%s18626_s4 + $0x290] ss:$8 sps:$4 sm:$0xff]   ;;  %v13991_v22 = vld [vmem:[%s18623_s1 + $0x1a0] sm:$0xff]  }
 0x13e   : > { %v13201_v28 = vpop.f32.mrb[11].mxu1  ;;  %13347 = vmatprep.subr.bf16.mxu1 %v13920_v20  ;;  %v13990_v20 = vld [vmem:[%s18623_s1 + $0x1e0] sm:$0xff]   ;;  %v11449_v26 = vld [vmem:[%s15143_s25 + $0x38] sm:$0x1e] }
 0x13f   : > { %v825_v29 = vadd.f32 %v13199_v25, %v646_v1  ;;  %v2343_v1 = vshrl.u32 %v2302_v49, 16  ;;  %v13994_v23 = vld [vmem:[%s18626_s4 + $0x2a4] ss:$8 sps:$4 sm:$0xff]   ;;  %v11396_v25 = vld [vmem:[%s15143_s25 + $0x30] sm:$0x1e] }
 0x140   : > { %v13996_v28 = vld [vmem:[%s18623_s1 + $0x1a8] sm:$0xff]   ;;  %v14010_v49 = vld [vmem:[%s18623_s1 + $0xc0] sm:$0xff]  }
 0x141   : > { %13348 = vmatpush3.bf16.msra.mxu1 %v13921_v24  ;;  %v2348_v7 = vor.u32 %v2347_v2, %v2343_v1  ;;  %v13995_v24 = vld [vmem:[%s18623_s1 + $0x1e8] sm:$0xff]   ;;  %v14025_v1 = vld [vmem:[%s18623_s1 + $0xd8] sm:$0xff]  }
 0x142   : > { %13349 = vmatprep.subr.bf16.mxu1 %v13925_v27  ;;  %v13992_v27 = vld [vmem:[%s18626_s4 + $0x2a0] ss:$8 sps:$4 sm:$0xff]  }
 0x145   : > { %13350 = vmatpush3.bf16.msra.mxu1 %v13926_v30  ;;  %v2301_v30 = vpack.c.bf16 %v11396_v25, %v11396_v25 }
 0x146   : > { %13357 = vmatprep.subr.bf16.mxu1 %v13930_v32  ;;  %v2534_v32 = vpack.c.bf16 %v11449_v26, %v11449_v26  ;;  %v14041_v26 = vld [vmem:[%s18623_s1 + $0xb0] sm:$0xff]  }
 0x147   : > { %v2336_v46 = vshrl.u32 %v2301_v30, 16 }
 0x148   : > { %2118 = vmatmul.mubr.bf16.vlgmr.msra.gmra.mrb[36].mxu1 %v1767_v34  ;;  %v13997_v34 = vld [vmem:[%s18626_s4 + $0x2b0] ss:$8 sps:$4 sm:$0xff]  }
 0x149   : > { %13358 = vmatpush3.bf16.msra.mxu1 %v13931_v35  ;;  %2290 = vmatprep.mubr.bf16.mxu1 %v2129_v36  ;;  %v14001_v36 = vld [vmem:[%s18623_s1 + $0x1b0] sm:$0xff]  }
 0x14a   : > { %13359 = vmatprep.subr.bf16.mxu1 %v13935_v37  ;;  %v14004_v37 = vld [vmem:[%s18626_s4 + $0x2c4] ss:$8 sps:$4 sm:$0xff]  }
 0x14d   : > { %13360 = vmatpush3.bf16.msra.mxu1 %v13936_v38  ;;  %v2338_v38 = vshll.u32 %v2301_v30, 16  ;;  %v14042_v30 = vld [vmem:[%s18626_s4 + $0x340] ss:$8 sps:$4 sm:$0xff]  }
 0x14e   : > { %13361 = vmatprep.subr.bf16.mxu1 %v13940_v39 }
 0x151   : > { %13362 = vmatpush3.bf16.msra.mxu1 %v13941_v40 }
 0x152   : > { %13363 = vmatprep.subr.bf16.mxu1 %v13945_v41  ;;  %v14005_v41 = vld [vmem:[%s18623_s1 + $0x1f8] sm:$0xff]  }
 0x155   : > { %13364 = vmatpush3.bf16.msra.mxu1 %v13946_v42  ;;  %v2577_v42 = vshll.u32 %v2534_v32, 16 }
 0x156   : > { %13365 = vmatprep.subr.bf16.mxu1 %v13950_v43 }
 0x159   : > { %13366 = vmatpush3.bf16.msra.mxu1 %v13951_v44  ;;  %v14002_v44 = vld [vmem:[%s18626_s4 + $0x2c0] ss:$8 sps:$4 sm:$0xff]  }
 0x15a   : > { %13367 = vmatprep.subr.bf16.mxu1 %v13955_v45  ;;  %v14009_v45 = vld [vmem:[%s18626_s4 + $0x2d4] ss:$8 sps:$4 sm:$0xff]  }
 0x15b   : > { %v13219_v50 = vpop.f32.mrb[12].mxu1 }
 0x15c   : > { %v13220_v52 = vpop.f32.mrb[13].mxu1 }
 0x15d   : > { %v13221_v54 = vadd.f32 %v13220_v52, %v13219_v50  ;;  %v13222_v55 = vpop.f32.mrb[14].mxu1  ;;  %13368 = vmatpush3.bf16.msra.mxu1 %v13956_v47  ;;  %v2340_v47 = vrot.slane %v2338_v38, 1  ;;  %v2575_v50 = vshrl.u32 %v2534_v32, 16  ;;  %v14007_v52 = vld [vmem:[%s18626_s4 + $0x2d0] ss:$8 sps:$4 sm:$0xff]   ;;  %v14051_v38 = vld [vmem:[%s18623_s1] sm:$0xff]  }
 0x15e   : > { %v13223_v59 = vpop.f32.mrb[15].mxu1  ;;  %13369 = vmatprep.subr.bf16.mxu1 %v13960_v48  ;;  %v14006_v48 = vld [vmem:[%s18623_s1 + $0x1b8] sm:$0xff]   ;;  %v14014_v55 = vld [vmem:[%s18626_s4 + $0x2e4] ss:$8 sps:$4 sm:$0xff]  }
 0x15f   : > { %v1015_v60 = vadd.f32 %v13221_v54, %v825_v29  ;;  %v13999_v29 = vld [vmem:[%s18626_s4 + $0x2b4] ss:$8 sps:$4 sm:$0xff]   ;;  %v2341_v54 = vor.u32 %v2340_v47, %v2336_v46  ;;  %v14016_v59 = vld [vmem:[%s18623_s1 + $0x88] sm:$0xff]   ;;  %v14057_v47 = vld [vmem:[%s18626_s4 + $0x370] ss:$8 sps:$4 sm:$0xff]  }
 0x160   : > { %v14049_v32 = vld [vmem:[%s18626_s4 + $0x354] ss:$8 sps:$4 sm:$0xff]  }
 0x161   : > { %v1022_v0 = vmul.f32 %v11108_v51, %v1015_v60  ;;  %13370 = vmatpush3.bf16.msra.mxu1 %v13961_v53  ;;  %v2579_v51 = vrot.slane %v2577_v42, 1  ;;  %v14011_v53 = vld [vmem:[%s18623_s1 + $0x80] sm:$0xff]   ;;  %v14019_v60 = vld [vmem:[%s18626_s4 + $0x2f4] ss:$8 sps:$4 sm:$0xff]  }
 0x162   : > { %13371 = vmatprep.subr.bf16.mxu1 %v13965_v56  ;;  %v14015_v56 = vld [vmem:[%s18623_s1 + $0xc8] sm:$0xff]   ;;  %v14060_v46 = vld [vmem:[%s18623_s1 + $0x50] sm:$0xff]  }
 0x163   : > { %v1029_v3 = vadd.f32 %v11109_v58, %v1022_v0  ;;  %v2580_v57 = vor.u32 %v2579_v51, %v2575_v50  ;;  %v14012_v58 = vld [vmem:[%s18626_s4 + $0x2e0] ss:$8 sps:$4 sm:$0xff]   ;;  %v14024_v0 = vld [vmem:[%s18626_s4 + $0x304] ss:$8 sps:$4 sm:$0xff]   ;;  %v14065_v50 = vld [vmem:[%s18623_s1 + $0x58] sm:$0xff]  }
 0x164   : > { %v14052_v42 = vld [vmem:[%s18626_s4 + $0x360] ss:$8 sps:$4 sm:$0xff]  }
 0x165   : > { %vm1030_vm0 = vcmp.ge.f32.partialorder %v1029_v3, 0.0  ;;  %v1031_v5 = vmul.f32 0.2, %v1029_v3  ;;  %13372 = vmatpush3.bf16.msra.mxu1 %v13966_v61  ;;  %v14020_v61 = vld [vmem:[%s18623_s1 + $0xd0] sm:$0xff]  }
 0x166   : > { %13379 = vmatprep.subr.bf16.mxu1 %v13970_v63  ;;  %v14021_v63 = vld [vmem:[%s18623_s1 + $0x90] sm:$0xff]  }
 0x167   : > { %v1032_v9 = vsel %vm1030_vm0, %v1029_v3, %v1031_v5  ;;  %v14022_v3 = vld [vmem:[%s18626_s4 + $0x300] ss:$8 sps:$4 sm:$0xff]  }
 0x168   : > { %1034 = vst [vmem:[#allocation2 + $0x9] sm:$0xf] %v1032_v9  ;;  %2291 = vmatmul.mubr.bf16.vlgmr.msra.gmra.mrb[40].mxu1 %v2128_v4  ;;  %v14026_v4 = vld [vmem:[%s18623_s1 + $0x98] sm:$0xff]   ;;  %v14031_v9 = vld [vmem:[%s18623_s1 + $0xa0] sm:$0xff]  }
 0x169   : > { %13380 = vmatpush3.bf16.msra.mxu1 %v13971_v6  ;;  %2479 = vmatprep.mubr.bf16.mxu1 %v2348_v7  ;;  %v14029_v6 = vld [vmem:[%s18626_s4 + $0x314] ss:$8 sps:$4 sm:$0xff]   ;;  %v14030_v7 = vld [vmem:[%s18623_s1 + $0xe0] sm:$0xff]  }
 0x16a   : > { %13381 = vmatprep.subr.bf16.mxu1 %v13975_v8  ;;  %v14027_v8 = vld [vmem:[%s18626_s4 + $0x310] ss:$8 sps:$4 sm:$0xff]  }
 0x16d   : > { %13382 = vmatpush3.bf16.msra.mxu1 %v13976_v10  ;;  %v14034_v10 = vld [vmem:[%s18626_s4 + $0x324] ss:$8 sps:$4 sm:$0xff]  }
 0x16e   : > { %13383 = vmatprep.subr.bf16.mxu1 %v13980_v11  ;;  %v14035_v11 = vld [vmem:[%s18623_s1 + $0xe8] sm:$0xff]  }
 0x16f   : > { %v3798_v15 = vld [vmem:[#allocation2 + $0x8] sm:$0x7] }
 0x170   : > { %v3799_v16 = vpack.c.bf16 %v3798_v15, %v3798_v15  ;;  %v3940_v2 = vld [vmem:[#allocation2 + $0x9] sm:$0x7]  ;;  %v14039_v15 = vld [vmem:[%s18626_s4 + $0x334] ss:$8 sps:$4 sm:$0xff]  }
 0x171   : > { %13384 = vmatpush3.bf16.msra.mxu1 %v13981_v12  ;;  %v3941_v5 = vpack.c.bf16 %v3940_v2, %v3940_v2  ;;  %v11448_v12 = vld [vmem:[%s15143_s25 + $0x30] sm:$0x1e]  ;;  %v4082_v51 = vld [vmem:[#allocation2 + $0xa] sm:$0x7] }
 0x172   : > { %3930 = vmatmul.mubr.bf16.vlgmr.msra.gmra.mrb[0].mxu0 %v3799_v16  ;;  %13385 = vmatprep.subr.bf16.mxu1 %v13985_v13  ;;  %v14032_v13 = vld [vmem:[%s18626_s4 + $0x320] ss:$8 sps:$4 sm:$0xff]   ;;  %v14040_v16 = vld [vmem:[%s18623_s1 + $0xf0] sm:$0xff]   ;;  %v14084_v2 = vld [vmem:[%s18626_s4 + $0x3c4] ss:$8 sps:$4 sm:$0xff]  }
 0x173   : > { %4040 = vmatpush1.bf16.msra.mxu0 %v13982_v14  ;;  %4071 = vmatprep.mubr.bf16.mxu0 %v15058_v21  ;;  %v14036_v14 = vld [vmem:[%s18623_s1 + $0xa8] sm:$0xff]  }
 0x174   : > { %4041 = vmatprep.subr.bf16.mxu0 %v13989_v18 }
 0x175   : > { %13386 = vmatpush3.bf16.msra.mxu1 %v13986_v17  ;;  %v2533_v17 = vpack.c.bf16 %v11448_v12, %v11448_v12  ;;  %v14086_v12 = vld [vmem:[%s18623_s1 + $0x38] sm:$0xff]  }
 0x176   : > { %13387 = vmatprep.subr.bf16.mxu1 %v13990_v20 }
 0x177   : > { %4042 = vmatpush1.bf16.msra.mxu0 %v13987_v19  ;;  %v14037_v19 = vld [vmem:[%s18626_s4 + $0x330] ss:$8 sps:$4 sm:$0xff]  }
 0x178   : > { %4043 = vmatprep.subr.bf16.mxu0 %v13994_v23  ;;  %v2570_v23 = vshll.u32 %v2533_v17, 16 }
 0x179   : > { %13388 = vmatpush3.bf16.msra.mxu1 %v13991_v22  ;;  %v14044_v22 = vld [vmem:[%s18626_s4 + $0x344] ss:$8 sps:$4 sm:$0xff]  }
 0x17a   : > { %13389 = vmatprep.subr.bf16.mxu1 %v13995_v24 }
 0x17b   : > { %4044 = vmatpush1.bf16.msra.mxu0 %v13992_v27  ;;  %v13241_v33 = vpop.f32.mrb[16].mxu1  ;;  %v14045_v27 = vld [vmem:[%s18623_s1 + $0xf8] sm:$0xff]  }
 0x17c   : > { %v13242_v35 = vpop.f32.mrb[17].mxu1  ;;  %4045 = vmatprep.subr.bf16.mxu0 %v13999_v29 }
 0x17d   : > { %v15995_v39 = vadd.f32 %v13242_v35, %v13241_v33  ;;  %v13244_v40 = vpop.f32.mrb[18].mxu1  ;;  %13390 = vmatpush3.bf16.msra.mxu1 %v13996_v28  ;;  %v14050_v33 = vld [vmem:[%s18623_s1 + $0x40] sm:$0xff]   ;;  %v2572_v35 = vrot.slane %v2570_v23, 1 }
 0x17e   : > { %v13245_v43 = vpop.f32.mrb[19].mxu1  ;;  %13391 = vmatprep.subr.bf16.mxu1 %v14000_v31  ;;  %v14046_v31 = vld [vmem:[%s18623_s1 + $0xb8] sm:$0xff]   ;;  %v14054_v40 = vld [vmem:[%s18626_s4 + $0x364] ss:$8 sps:$4 sm:$0xff]   ;;  %v14092_v23 = vld [vmem:[%s18626_s4 + $0x3e0] ss:$8 sps:$4 sm:$0xff]  }
 0x17f   : > { %4046 = vmatpush1.bf16.msra.mxu0 %v13997_v34  ;;  %v2568_v34 = vshrl.u32 %v2533_v17, 16  ;;  %v14087_v17 = vld [vmem:[%s18626_s4 + $0x3d0] ss:$8 sps:$4 sm:$0xff]  }
 0x180   : > { %4047 = vmatprep.subr.bf16.mxu0 %v14004_v37  ;;  %v14047_v37 = vld [vmem:[%s18626_s4 + $0x350] ss:$8 sps:$4 sm:$0xff]  }
 0x181   : > { %13392 = vmatpush3.bf16.msra.mxu1 %v14001_v36  ;;  %v11447_v36 = vld [vmem:[%s15143_s25 + $0x38] sm:$0xf] }
 0x182   : > { %13393 = vmatprep.subr.bf16.mxu1 %v14005_v41  ;;  %v14055_v41 = vld [vmem:[%s18623_s1 + $0x48] sm:$0xff]   ;;  %v2498_v43 = vpack.c.bf16 %v11447_v36, %v11447_v36 }
 0x183   : > { %4048 = vmatpush1.bf16.msra.mxu0 %v14002_v44  ;;  %v14056_v44 = vld [vmem:[%s18623_s1 + $0x8] sm:$0xff]  }
 0x184   : > { %4049 = vmatprep.subr.bf16.mxu0 %v14009_v45  ;;  %v14059_v45 = vld [vmem:[%s18626_s4 + $0x374] ss:$8 sps:$4 sm:$0xff]  }
 0x185   : > { %13394 = vmatpush3.bf16.msra.mxu1 %v14006_v48  ;;  %v14061_v48 = vld [vmem:[%s18623_s1 + $0x10] sm:$0xff]  }
 0x186   : > { %13401 = vmatprep.subr.bf16.mxu1 %v14010_v49  ;;  %v14064_v49 = vld [vmem:[%s18626_s4 + $0x384] ss:$8 sps:$4 sm:$0xff]  }
 0x187   : > { %4050 = vmatpush1.bf16.msra.mxu0 %v14007_v52  ;;  %v14062_v52 = vld [vmem:[%s18626_s4 + $0x380] ss:$8 sps:$4 sm:$0xff]  }
 0x188   : > { %2480 = vmatmul.mubr.bf16.vlgmr.msra.gmra.mrb[44].mxu1 %v2341_v54  ;;  %4051 = vmatprep.subr.bf16.mxu0 %v14014_v55  ;;  %v14069_v54 = vld [vmem:[%s18626_s4 + $0x394] ss:$8 sps:$4 sm:$0xff]   ;;  %v4083_v55 = vpack.c.bf16 %v4082_v51, %v4082_v51 }
 0x189   : > { %13402 = vmatpush3.bf16.msra.mxu1 %v14011_v53  ;;  %2711 = vmatprep.mubr.bf16.mxu1 %v2580_v57  ;;  %v14066_v53 = vld [vmem:[%s18623_s1 + $0x18] sm:$0xff]   ;;  %v14121_v51 = vld [vmem:[%s18623_s1 + $0x130] sm:$0xff]  }
 0x18a   : > { %13403 = vmatprep.subr.bf16.mxu1 %v14015_v56  ;;  %v14070_v56 = vld [vmem:[%s18623_s1 + $0x60] sm:$0xff]   ;;  %v14067_v57 = vld [vmem:[%s18626_s4 + $0x390] ss:$8 sps:$4 sm:$0xff]  }
 0x18b   : > { %4052 = vmatpush1.bf16.msra.mxu0 %v14012_v58  ;;  %v14071_v58 = vld [vmem:[%s18623_s1 + $0x20] sm:$0xff]  }
 0x18c   : > { %4053 = vmatprep.subr.bf16.mxu0 %v14019_v60  ;;  %v14075_v60 = vld [vmem:[%s18623_s1 + $0x68] sm:$0xff]  }
 0x18d   : > { %13404 = vmatpush3.bf16.msra.mxu1 %v14016_v59  ;;  %v14074_v59 = vld [vmem:[%s18626_s4 + $0x3a4] ss:$8 sps:$4 sm:$0xff]  }
 0x18e   : > { %13405 = vmatprep.subr.bf16.mxu1 %v14020_v61  ;;  %v14072_v61 = vld [vmem:[%s18626_s4 + $0x3a0] ss:$8 sps:$4 sm:$0xff]  }
 0x18f   : > { %4054 = vmatpush1.bf16.msra.mxu0 %v14017_v62  ;;  %v14076_v62 = vld [vmem:[%s18623_s1 + $0x28] sm:$0xff]  }
 0x190   : > { %4181 = vmatprep.subr.bf16.mxu0 %v14024_v0  ;;  %v14080_v0 = vld [vmem:[%s18623_s1 + $0x70] sm:$0xff]  }
 0x191   : > { %13406 = vmatpush3.bf16.msra.mxu1 %v14021_v63  ;;  %v14079_v63 = vld [vmem:[%s18626_s4 + $0x3b4] ss:$8 sps:$4 sm:$0xff]  }
 0x192   : > { %4072 = vmatmul.mubr.bf16.vlgmr.msra.gmra.mrb[0].mxu0 %v3941_v5  ;;  %13407 = vmatprep.subr.bf16.mxu1 %v14025_v1  ;;  %v14077_v1 = vld [vmem:[%s18626_s4 + $0x3b0] ss:$8 sps:$4 sm:$0xff]  }
 0x193   : > { %4182 = vmatpush1.bf16.msra.mxu0 %v14022_v3  ;;  %4213 = vmatprep.mubr.bf16.mxu0 %v15058_v21 }
 0x194   : > { %4183 = vmatprep.subr.bf16.mxu0 %v14029_v6  ;;  %v14085_v6 = vld [vmem:[%s18623_s1 + $0x78] sm:$0xff]  }
 0x195   : > { %13408 = vmatpush3.bf16.msra.mxu1 %v14026_v4  ;;  %v14081_v4 = vld [vmem:[%s18623_s1 + $0x30] sm:$0xff]  }
 0x196   : > { %13409 = vmatprep.subr.bf16.mxu1 %v14030_v7 }
 0x197   : > { %4184 = vmatpush1.bf16.msra.mxu0 %v14027_v8 }
 0x198   : > { %4185 = vmatprep.subr.bf16.mxu0 %v14034_v10 }
 0x199   : > { %13410 = vmatpush3.bf16.msra.mxu1 %v14031_v9 }
 0x19a   : > { %13411 = vmatprep.subr.bf16.mxu1 %v14035_v11  ;;  %v14082_v11 = vld [vmem:[%s18626_s4 + $0x3c0] ss:$8 sps:$4 sm:$0xff]  }
 0x19b   : > { %4186 = vmatpush1.bf16.msra.mxu0 %v14032_v13  ;;  %v13263_v18 = vpop.f32.mrb[20].mxu1  ;;  %v14089_v13 = vld [vmem:[%s18626_s4 + $0x3d4] ss:$8 sps:$4 sm:$0xff]  }
 0x19c   : > { %v13264_v20 = vpop.f32.mrb[21].mxu1  ;;  %4187 = vmatprep.subr.bf16.mxu0 %v14039_v15  ;;  %v11446_v15 = vld [vmem:[%s15143_s25 + $0x30] sm:$0xf] }
 0x19d   : > { %v13265_v24 = vadd.f32 %v13264_v20, %v13263_v18  ;;  %v13266_v25 = vpop.f32.mrb[22].mxu1  ;;  %13412 = vmatpush3.bf16.msra.mxu1 %v14036_v14  ;;  %v14090_v14 = vld [vmem:[%s18623_s1 + $0x140] sm:$0xff]   ;;  %v2497_v20 = vpack.c.bf16 %v11446_v15, %v11446_v15  ;;  %v14139_v15 = vld [vmem:[%s18626_s4 + $0x474] ss:$8 sps:$4 sm:$0xff]  }
 0x19e   : > { %v13267_v28 = vpop.f32.mrb[23].mxu1  ;;  %13413 = vmatprep.subr.bf16.mxu1 %v14040_v16  ;;  %v11515_v16 = vld [vmem:[%s15143_s25 + $0x48] sm:$0xf]  ;;  %v14091_v18 = vld [vmem:[%s18623_s1 + $0x100] sm:$0xff]  }
 0x19f   : > { %v16099_v29 = vadd.f32 %v13265_v24, %v15995_v39  ;;  %4188 = vmatpush1.bf16.msra.mxu0 %v14037_v19  ;;  %v2573_v39 = vor.u32 %v2572_v35, %v2568_v34  ;;  %v14094_v19 = vld [vmem:[%s18626_s4 + $0x3e4] ss:$8 sps:$4 sm:$0xff]   ;;  %v2859_v24 = vpack.c.bf16 %v11515_v16, %v11515_v16  ;;  %v14097_v28 = vld [vmem:[%s18626_s4 + $0x3f0] ss:$8 sps:$4 sm:$0xff]   ;;  %v14109_v35 = vld [vmem:[%s18626_s4 + $0x414] ss:$8 sps:$4 sm:$0xff]  }
 0x1a0   : > { %4189 = vmatprep.subr.bf16.mxu0 %v14044_v22  ;;  %v14095_v22 = vld [vmem:[%s18623_s1 + $0x148] sm:$0xff]   ;;  %v14106_v34 = vld [vmem:[%s18623_s1 + $0x118] sm:$0xff]  }
 0x1a1   : > { %13414 = vmatpush3.bf16.msra.mxu1 %v14041_v26  ;;  %v14096_v25 = vld [vmem:[%s18623_s1 + $0x108] sm:$0xff]   ;;  %v14099_v26 = vld [vmem:[%s18626_s4 + $0x3f4] ss:$8 sps:$4 sm:$0xff]  }
 0x1a2   : > { %13415 = vmatprep.subr.bf16.mxu1 %v14045_v27  ;;  %v14100_v27 = vld [vmem:[%s18623_s1 + $0x150] sm:$0xff]   ;;  %v14136_v16 = vld [vmem:[%s18623_s1 + $0x188] sm:$0xff]  }
 0x1a3   : > { %4190 = vmatpush1.bf16.msra.mxu0 %v14042_v30  ;;  %v14104_v30 = vld [vmem:[%s18626_s4 + $0x404] ss:$8 sps:$4 sm:$0xff]  }
 0x1a4   : > { %4191 = vmatprep.subr.bf16.mxu0 %v14049_v32  ;;  %v14105_v32 = vld [vmem:[%s18623_s1 + $0x158] sm:$0xff]  }
 0x1a5   : > { %13416 = vmatpush3.bf16.msra.mxu1 %v14046_v31  ;;  %v4224_v31 = vld [vmem:[#allocation2 + $0xb] sm:$0x7] }
 0x1a6   : > { %13423 = vmatprep.subr.bf16.mxu1 %v14050_v33  ;;  %v14102_v33 = vld [vmem:[%s18626_s4 + $0x400] ss:$8 sps:$4 sm:$0xff]   ;;  %v4225_v36 = vpack.c.bf16 %v4224_v31, %v4224_v31  ;;  %v14154_v31 = vld [vmem:[%s18626_s4 + $0x4a4] ss:$8 sps:$4 sm:$0xff]  }
 0x1a7   : > { %4192 = vmatpush1.bf16.msra.mxu0 %v14047_v37  ;;  %v14110_v37 = vld [vmem:[%s18623_s1 + $0x160] sm:$0xff]  }
 0x1a8   : > { %2712 = vmatmul.mubr.bf16.vlgmr.msra.gmra.mrb[48].mxu1 %v2573_v39  ;;  %4193 = vmatprep.subr.bf16.mxu0 %v14054_v40  ;;  %v14111_v39 = vld [vmem:[%s18623_s1 + $0x120] sm:$0xff]  }
 0x1a9   : > { %13424 = vmatpush3.bf16.msra.mxu1 %v14051_v38  ;;  %2847 = vmatprep.mubr.bf16.mxu1 %v2498_v43  ;;  %v14107_v38 = vld [vmem:[%s18626_s4 + $0x410] ss:$8 sps:$4 sm:$0xff]   ;;  %v14114_v40 = vld [vmem:[%s18626_s4 + $0x424] ss:$8 sps:$4 sm:$0xff]   ;;  %v14112_v43 = vld [vmem:[%s18626_s4 + $0x420] ss:$8 sps:$4 sm:$0xff]  }
 0x1aa   : > { %13425 = vmatprep.subr.bf16.mxu1 %v14055_v41  ;;  %v14115_v41 = vld [vmem:[%s18623_s1 + $0x168] sm:$0xff]  }
 0x1ab   : > { %4194 = vmatpush1.bf16.msra.mxu0 %v14052_v42  ;;  %v11565_v42 = vld [vmem:[%s15143_s25 + $0x48] sm:$0x1e] }
 0x1ac   : > { %4195 = vmatprep.subr.bf16.mxu0 %v14059_v45  ;;  %v14119_v45 = vld [vmem:[%s18626_s4 + $0x434] ss:$8 sps:$4 sm:$0xff]  }
 0x1ad   : > { %13426 = vmatpush3.bf16.msra.mxu1 %v14056_v44  ;;  %v14116_v44 = vld [vmem:[%s18623_s1 + $0x128] sm:$0xff]  }
 0x1ae   : > { %13427 = vmatprep.subr.bf16.mxu1 %v14060_v46  ;;  %v14120_v46 = vld [vmem:[%s18623_s1 + $0x170] sm:$0xff]  }
 0x1af   : > { %4196 = vmatpush1.bf16.msra.mxu0 %v14057_v47  ;;  %v14117_v47 = vld [vmem:[%s18626_s4 + $0x430] ss:$8 sps:$4 sm:$0xff]  }
 0x1b0   : > { %4323 = vmatprep.subr.bf16.mxu0 %v14064_v49  ;;  %v14124_v49 = vld [vmem:[%s18626_s4 + $0x444] ss:$8 sps:$4 sm:$0xff]  }
 0x1b1   : > { %13428 = vmatpush3.bf16.msra.mxu1 %v14061_v48  ;;  %v3032_v48 = vpack.c.bf16 %v11565_v42, %v11565_v42 }
 0x1b2   : > { %4214 = vmatmul.mubr.bf16.vlgmr.msra.gmra.mrb[0].mxu0 %v4083_v55  ;;  %13429 = vmatprep.subr.bf16.mxu1 %v14065_v50 }
 0x1b3   : > { %4324 = vmatpush1.bf16.msra.mxu0 %v14062_v52  ;;  %4355 = vmatprep.mubr.bf16.mxu0 %v15058_v21 }
 0x1b4   : > { %4325 = vmatprep.subr.bf16.mxu0 %v14069_v54 }
 0x1b5   : > { %13430 = vmatpush3.bf16.msra.mxu1 %v14066_v53  ;;  %v14125_v53 = vld [vmem:[%s18623_s1 + $0x178] sm:$0xff]  }
 0x1b6   : > { %13431 = vmatprep.subr.bf16.mxu1 %v14070_v56  ;;  %v14122_v56 = vld [vmem:[%s18626_s4 + $0x440] ss:$8 sps:$4 sm:$0xff]  }
 0x1b7   : > { %4326 = vmatpush1.bf16.msra.mxu0 %v14067_v57  ;;  %v3075_v57 = vshll.u32 %v3032_v48, 16 }
 0x1b8   : > { %4327 = vmatprep.subr.bf16.mxu0 %v14074_v59  ;;  %v14129_v59 = vld [vmem:[%s18626_s4 + $0x454] ss:$8 sps:$4 sm:$0xff]  }
 0x1b9   : > { %13432 = vmatpush3.bf16.msra.mxu1 %v14071_v58 }
 0x1ba   : > { %13433 = vmatprep.subr.bf16.mxu1 %v14075_v60 }
 0x1bb   : > { %4328 = vmatpush1.bf16.msra.mxu0 %v14072_v61  ;;  %v13285_v3 = vpop.f32.mrb[24].mxu1  ;;  %v14126_v61 = vld [vmem:[%s18623_s1 + $0x138] sm:$0xff]  }
 0x1bc   : > { %v13286_v5 = vpop.f32.mrb[25].mxu1  ;;  %4329 = vmatprep.subr.bf16.mxu0 %v14079_v63  ;;  %v14130_v63 = vld [vmem:[%s18623_s1 + $0x1c0] sm:$0xff]  }
 0x1bd   : > { %v13287_v7 = vadd.f32 %v13286_v5, %v13285_v3  ;;  %v13288_v8 = vpop.f32.mrb[26].mxu1  ;;  %13434 = vmatpush3.bf16.msra.mxu1 %v14076_v62  ;;  %v11514_v62 = vld [vmem:[%s15143_s25 + $0x40] sm:$0xf]  ;;  %v3073_v3 = vshrl.u32 %v3032_v48, 16  ;;  %v14134_v5 = vld [vmem:[%s18626_s4 + $0x464] ss:$8 sps:$4 sm:$0xff]  }
 0x1be   : > { %v13289_v9 = vpop.f32.mrb[27].mxu1  ;;  %13435 = vmatprep.subr.bf16.mxu1 %v14080_v0  ;;  %v15045_v0 = vld [vmem:[%s18624_s2] ss:$0 sm:$0xff] }
 0x1bf   : > { %v16200_v10 = vadd.f32 %v13287_v7, %v16099_v29  ;;  %4330 = vmatpush1.bf16.msra.mxu0 %v14077_v1  ;;  %v14101_v29 = vld [vmem:[%s18623_s1 + $0x110] sm:$0xff]   ;;  %v14131_v8 = vld [vmem:[%s18623_s1 + $0x180] sm:$0xff]   ;;  %v2858_v9 = vpack.c.bf16 %v11514_v62, %v11514_v62 }
 0x1c0   : > { %4331 = vmatprep.subr.bf16.mxu0 %v14084_v2  ;;  %v14127_v2 = vld [vmem:[%s18626_s4 + $0x450] ss:$8 sps:$4 sm:$0xff]   ;;  %v14181_v62 = vld [vmem:[%s18626_s4 + $0x4f4] ss:$8 sps:$4 sm:$0xff]  }
 0x1c1   : > { %13436 = vmatpush3.bf16.msra.mxu1 %v14081_v4  ;;  %v3077_v4 = vrot.slane %v3075_v57, 1  ;;  %v14175_v57 = vld [vmem:[%s18626_s4 + $0x4e4] ss:$8 sps:$4 sm:$0xff]  }
 0x1c2   : > { %13437 = vmatprep.subr.bf16.mxu1 %v14085_v6  ;;  %v15046_v6 = vld [vmem:[%s18625_s3] ss:$0 sm:$0xff] }
 0x1c3   : > { %4332 = vmatpush1.bf16.msra.mxu0 %v14082_v11 }
 0x1c4   : > { %4333 = vmatprep.subr.bf16.mxu0 %v14089_v13  ;;  %v3078_v13 = vor.u32 %v3077_v4, %v3073_v3  ;;  %v14190_v4 = vld [vmem:[%s18626_s4 + $0xb4] ss:$8 sps:$4 sm:$0xff]  }
 0x1c5   : > { %13438 = vmatpush3.bf16.msra.mxu1 %v14086_v12  ;;  %v14132_v12 = vld [vmem:[%s18626_s4 + $0x460] ss:$8 sps:$4 sm:$0xff]  }
 0x1c6   : > { %13445 = vmatprep.subr.bf16.mxu1 %v14090_v14 }
 0x1c7   : > { %4334 = vmatpush1.bf16.msra.mxu0 %v14087_v17  ;;  %v14140_v17 = vld [vmem:[%s18623_s1 + $0x1d0] sm:$0xff]  }
 0x1c8   : > { %2848 = vmatmul.mubr.bf16.vlgmr.msra.gmra.mrb[52].mxu1 %v2497_v20  ;;  %4335 = vmatprep.subr.bf16.mxu0 %v14094_v19  ;;  %v14144_v19 = vld [vmem:[%s18626_s4 + $0x484] ss:$8 sps:$4 sm:$0xff]   ;;  %v14141_v20 = vld [vmem:[%s18623_s1 + $0x190] sm:$0xff]  }
 0x1c9   : > { %13446 = vmatpush3.bf16.msra.mxu1 %v14091_v18  ;;  %3020 = vmatprep.mubr.bf16.mxu1 %v2859_v24  ;;  %v14137_v18 = vld [vmem:[%s18626_s4 + $0x470] ss:$8 sps:$4 sm:$0xff]  }
 0x1ca   : > { %13447 = vmatprep.subr.bf16.mxu1 %v14095_v22  ;;  %v14145_v22 = vld [vmem:[%s18623_s1 + $0x1d8] sm:$0xff]  }
 0x1cb   : > { %4336 = vmatpush1.bf16.msra.mxu0 %v14092_v23  ;;  %v14142_v23 = vld [vmem:[%s18626_s4 + $0x480] ss:$8 sps:$4 sm:$0xff]  }
 0x1cc   : > { %4337 = vmatprep.subr.bf16.mxu0 %v14099_v26  ;;  %v14149_v26 = vld [vmem:[%s18626_s4 + $0x494] ss:$8 sps:$4 sm:$0xff]  }
 0x1cd   : > { %13448 = vmatpush3.bf16.msra.mxu1 %v14096_v25 }
 0x1ce   : > { %13449 = vmatprep.subr.bf16.mxu1 %v14100_v27  ;;  %v14146_v27 = vld [vmem:[%s18623_s1 + $0x198] sm:$0xff]  }
 0x1cf   : > { %4338 = vmatpush1.bf16.msra.mxu0 %v14097_v28  ;;  %v14150_v28 = vld [vmem:[%s18623_s1 + $0x1e0] sm:$0xff]  }
 0x1d0   : > { %4465 = vmatprep.subr.bf16.mxu0 %v14104_v30  ;;  %v14151_v30 = vld [vmem:[%s18623_s1 + $0x1a0] sm:$0xff]  }
 0x1d1   : > { %13450 = vmatpush3.bf16.msra.mxu1 %v14101_v29  ;;  %v14147_v29 = vld [vmem:[%s18626_s4 + $0x490] ss:$8 sps:$4 sm:$0xff]  }
 0x1d2   : > { %4356 = vmatmul.mubr.bf16.vlgmr.msra.gmra.mrb[0].mxu0 %v4225_v36  ;;  %13451 = vmatprep.subr.bf16.mxu1 %v14105_v32  ;;  %v11564_v32 = vld [vmem:[%s15143_s25 + $0x40] sm:$0x1e]  ;;  %v14159_v36 = vld [vmem:[%s18626_s4 + $0x4b4] ss:$8 sps:$4 sm:$0xff]  }
 0x1d3   : > { %4466 = vmatpush1.bf16.msra.mxu0 %v14102_v33  ;;  %4497 = vmatprep.mubr.bf16.mxu0 %v15058_v21  ;;  %v14155_v33 = vld [vmem:[%s18623_s1 + $0x1e8] sm:$0xff]  }
 0x1d4   : > { %4467 = vmatprep.subr.bf16.mxu0 %v14109_v35  ;;  %v14156_v35 = vld [vmem:[%s18623_s1 + $0x1a8] sm:$0xff]  }
 0x1d5   : > { %13452 = vmatpush3.bf16.msra.mxu1 %v14106_v34  ;;  %v14152_v34 = vld [vmem:[%s18626_s4 + $0x4a0] ss:$8 sps:$4 sm:$0xff]  }
 0x1d6   : > { %13453 = vmatprep.subr.bf16.mxu1 %v14110_v37  ;;  %v14160_v37 = vld [vmem:[%s18623_s1 + $0x1f0] sm:$0xff]  }
 0x1d7   : > { %4468 = vmatpush1.bf16.msra.mxu0 %v14107_v38  ;;  %v3031_v38 = vpack.c.bf16 %v11564_v32, %v11564_v32  ;;  %v14220_v32 = vld [vmem:[%s18626_s4 + $0x4] ss:$8 sps:$4 sm:$0xff]  }
 0x1d8   : > { %4469 = vmatprep.subr.bf16.mxu0 %v14114_v40  ;;  %v14157_v40 = vld [vmem:[%s18626_s4 + $0x4b0] ss:$8 sps:$4 sm:$0xff]  }
 0x1d9   : > { %13454 = vmatpush3.bf16.msra.mxu1 %v14111_v39 }
 0x1da   : > { %13455 = vmatprep.subr.bf16.mxu1 %v14115_v41  ;;  %v14161_v41 = vld [vmem:[%s18623_s1 + $0x1b0] sm:$0xff]  }
 0x1db   : > { %4470 = vmatpush1.bf16.msra.mxu0 %v14112_v43  ;;  %v13307_v50 = vpop.f32.mrb[28].mxu1  ;;  %v14164_v43 = vld [vmem:[%s18626_s4 + $0x4c4] ss:$8 sps:$4 sm:$0xff]  }
 0x1dc   : > { %v13308_v52 = vpop.f32.mrb[29].mxu1  ;;  %4471 = vmatprep.subr.bf16.mxu0 %v14119_v45  ;;  %v3068_v45 = vshll.u32 %v3031_v38, 16 }
 0x1dd   : > { %v13309_v54 = vadd.f32 %v13308_v52, %v13307_v50  ;;  %v13310_v55 = vpop.f32.mrb[30].mxu1  ;;  %13456 = vmatpush3.bf16.msra.mxu1 %v14116_v44  ;;  %v14165_v44 = vld [vmem:[%s18623_s1 + $0x1f8] sm:$0xff]   ;;  %v3066_v52 = vshrl.u32 %v3031_v38, 16  ;;  %v14221_v38 = vld [vmem:[%s18626_s4 + $0x560] ss:$8 sps:$4 sm:$0xff]  }
 0x1de   : > { %v13311_v58 = vpop.f32.mrb[31].mxu1  ;;  %13457 = vmatprep.subr.bf16.mxu1 %v14120_v46  ;;  %v14166_v50 = vld [vmem:[%s18623_s1 + $0x1b8] sm:$0xff]  }
 0x1df   : > { %v1757_v60 = vadd.f32 %v13309_v54, %v16200_v10  ;;  %4472 = vmatpush1.bf16.msra.mxu0 %v14117_v47  ;;  %v14135_v10 = vld [vmem:[%s18623_s1 + $0x1c8] sm:$0xff]   ;;  %v14167_v55 = vld [vmem:[%s18626_s4 + $0x4d0] ss:$8 sps:$4 sm:$0xff]  }
 0x1e0   : > { %4473 = vmatprep.subr.bf16.mxu0 %v14124_v49  ;;  %v14162_v49 = vld [vmem:[%s18626_s4 + $0x4c0] ss:$8 sps:$4 sm:$0xff]   ;;  %v14172_v54 = vld [vmem:[%s18626_s4 + $0x84] ss:$8 sps:$4 sm:$0xff]  }
 0x1e1   : > { %v1758_v1 = vmul.f32 %v15045_v0, %v1757_v60  ;;  %13458 = vmatpush3.bf16.msra.mxu1 %v14121_v51  ;;  %v14169_v51 = vld [vmem:[%s18626_s4 + $0x4d4] ss:$8 sps:$4 sm:$0xff]   ;;  %v14173_v60 = vld [vmem:[%s18626_s4 + $0x4e0] ss:$8 sps:$4 sm:$0xff]   ;;  %v14179_v0 = vld [vmem:[%s18626_s4 + $0x4f0] ss:$8 sps:$4 sm:$0xff]  }
 0x1e2   : > { %13459 = vmatprep.subr.bf16.mxu1 %v14125_v53  ;;  %v3070_v53 = vrot.slane %v3068_v45, 1  ;;  %v14235_v45 = vld [vmem:[%s18626_s4 + $0x584] ss:$8 sps:$4 sm:$0xff]  }
 0x1e3   : > { %v1759_v7 = vadd.f32 %v15046_v6, %v1758_v1  ;;  %4474 = vmatpush1.bf16.msra.mxu0 %v14122_v56  ;;  %v14170_v56 = vld [vmem:[%s18626_s4 + $0x80] ss:$8 sps:$4 sm:$0xff]   ;;  %v14188_v6 = vld [vmem:[%s18626_s4 + $0xb0] ss:$8 sps:$4 sm:$0xff]  }
 0x1e4   : > { %4475 = vmatprep.subr.bf16.mxu0 %v14129_v59  ;;  %v3071_v58 = vor.u32 %v3070_v53, %v3066_v52  ;;  %v14178_v59 = vld [vmem:[%s18626_s4 + $0x94] ss:$8 sps:$4 sm:$0xff]   ;;  %v14182_v1 = vld [vmem:[%s18626_s4 + $0xa0] ss:$8 sps:$4 sm:$0xff]   ;;  %v14244_v52 = vld [vmem:[%s18626_s4 + $0x44] ss:$8 sps:$4 sm:$0xff]  }
 0x1e5   : > { %vm1760_vm1 = vcmp.ge.f32.partialorder %v1759_v7, 0.0  ;;  %v1761_v11 = vmul.f32 0.2, %v1759_v7  ;;  %13460 = vmatpush3.bf16.msra.mxu1 %v14126_v61  ;;  %v14176_v61 = vld [vmem:[%s18626_s4 + $0x90] ss:$8 sps:$4 sm:$0xff]  }
 0x1e6   : > { %13467 = vmatprep.subr.bf16.mxu1 %v14130_v63  ;;  %v14184_v63 = vld [vmem:[%s18626_s4 + $0xa4] ss:$8 sps:$4 sm:$0xff]   ;;  %v14239_v53 = vld [vmem:[%s18626_s4 + $0x590] ss:$8 sps:$4 sm:$0xff]  }
 0x1e7   : > { %v1762_v14 = vsel %vm1760_vm1, %v1759_v7, %v1761_v11  ;;  %4476 = vmatpush1.bf16.msra.mxu0 %v14127_v2  ;;  %v14187_v2 = vld [vmem:[%s18626_s4 + $0x504] ss:$8 sps:$4 sm:$0xff]   ;;  %v14193_v7 = vld [vmem:[%s18626_s4 + $0x514] ss:$8 sps:$4 sm:$0xff]   ;;  %v14194_v11 = vld [vmem:[%s18626_s4 + $0xc0] ss:$8 sps:$4 sm:$0xff]  }
 0x1e8   : > { %1764 = vst [vmem:[#allocation2 + $0x11] sm:$0xf] %v1762_v14  ;;  %3021 = vmatmul.mubr.bf16.vlgmr.msra.gmra.mrb[56].mxu1 %v2858_v9  ;;  %4477 = vmatprep.subr.bf16.mxu0 %v14134_v5  ;;  %v14185_v5 = vld [vmem:[%s18626_s4 + $0x500] ss:$8 sps:$4 sm:$0xff]   ;;  %v14196_v9 = vld [vmem:[%s18626_s4 + $0xc4] ss:$8 sps:$4 sm:$0xff]  }
 0x1e9   : > { %13468 = vmatpush3.bf16.msra.mxu1 %v14131_v8  ;;  %3209 = vmatprep.mubr.bf16.mxu1 %v3078_v13  ;;  %v14202_v13 = vld [vmem:[%s18626_s4 + $0xd4] ss:$8 sps:$4 sm:$0xff]   ;;  %v14197_v14 = vld [vmem:[%s18626_s4 + $0x520] ss:$8 sps:$4 sm:$0xff]  }
 0x1ea   : > { %13469 = vmatprep.subr.bf16.mxu1 %v14135_v10  ;;  %v14191_v10 = vld [vmem:[%s18626_s4 + $0x510] ss:$8 sps:$4 sm:$0xff]  }
 0x1eb   : > { %4478 = vmatpush1.bf16.msra.mxu0 %v14132_v12  ;;  %v14199_v12 = vld [vmem:[%s18626_s4 + $0x524] ss:$8 sps:$4 sm:$0xff]  }
 0x1ec   : > { %4479 = vmatprep.subr.bf16.mxu0 %v14139_v15  ;;  %v14200_v15 = vld [vmem:[%s18626_s4 + $0xd0] ss:$8 sps:$4 sm:$0xff]  }
 0x1ed   : > { %13470 = vmatpush3.bf16.msra.mxu1 %v14136_v16  ;;  %v14205_v16 = vld [vmem:[%s18626_s4 + $0x534] ss:$8 sps:$4 sm:$0xff]  }
 0x1ee   : > { %13471 = vmatprep.subr.bf16.mxu1 %v14140_v17  ;;  %v14208_v17 = vld [vmem:[%s18626_s4 + $0xe4] ss:$8 sps:$4 sm:$0xff]  }
 0x1ef   : > { %4480 = vmatpush1.bf16.msra.mxu0 %v14137_v18  ;;  %v4366_v24 = vld [vmem:[#allocation2 + $0x10] sm:$0x7] }
 0x1f0   : > { %4607 = vmatprep.subr.bf16.mxu0 %v14144_v19  ;;  %v4367_v25 = vpack.c.bf16 %v4366_v24, %v4366_v24  ;;  %v4508_v3 = vld [vmem:[#allocation2 + $0x11] sm:$0x7]  ;;  %v14214_v24 = vld [vmem:[%s18626_s4 + $0xf4] ss:$8 sps:$4 sm:$0xff]  }
 0x1f1   : > { %13472 = vmatpush3.bf16.msra.mxu1 %v14141_v20  ;;  %v4509_v8 = vpack.c.bf16 %v4508_v3, %v4508_v3  ;;  %v14203_v19 = vld [vmem:[%s18626_s4 + $0x530] ss:$8 sps:$4 sm:$0xff]   ;;  %v14206_v20 = vld [vmem:[%s18626_s4 + $0xe0] ss:$8 sps:$4 sm:$0xff]  }
 0x1f2   : > { %4498 = vmatmul.mubr.bf16.vlgmr.msra.gmra.mrb[0].mxu0 %v4367_v25  ;;  %13473 = vmatprep.subr.bf16.mxu1 %v14145_v22 }
 0x1f3   : > { %4608 = vmatpush1.bf16.msra.mxu0 %v14142_v23  ;;  %4639 = vmatprep.mubr.bf16.mxu0 %v15058_v21  ;;  %v14211_v23 = vld [vmem:[%s18626_s4 + $0x544] ss:$8 sps:$4 sm:$0xff]  }
 0x1f4   : > { %4609 = vmatprep.subr.bf16.mxu0 %v14149_v26 }
 0x1f5   : > { %13474 = vmatpush3.bf16.msra.mxu1 %v14146_v27 }
 0x1f6   : > { %13475 = vmatprep.subr.bf16.mxu1 %v14150_v28 }
 0x1f7   : > { %4610 = vmatpush1.bf16.msra.mxu0 %v14147_v29  ;;  %v14209_v29 = vld [vmem:[%s18626_s4 + $0x540] ss:$8 sps:$4 sm:$0xff]  }
 0x1f8   : > { %4611 = vmatprep.subr.bf16.mxu0 %v14154_v31  ;;  %v14217_v31 = vld [vmem:[%s18626_s4 + $0x554] ss:$8 sps:$4 sm:$0xff]  }
 0x1f9   : > { %13476 = vmatpush3.bf16.msra.mxu1 %v14151_v30  ;;  %v14212_v30 = vld [vmem:[%s18626_s4 + $0xf0] ss:$8 sps:$4 sm:$0xff]  }
 0x1fa   : > { %13477 = vmatprep.subr.bf16.mxu1 %v14155_v33  ;;  %v5535_v33 = vld [vmem:[#allocation2 + $0x9] sm:$0x7] }
 0x1fb   : > { %4612 = vmatpush1.bf16.msra.mxu0 %v14152_v34  ;;  %v13329_v39 = vpop.f32.mrb[32].mxu1  ;;  %v14215_v34 = vld [vmem:[%s18626_s4 + $0x550] ss:$8 sps:$4 sm:$0xff]  }
 0x1fc   : > { %v13330_v42 = vpop.f32.mrb[33].mxu1  ;;  %4613 = vmatprep.subr.bf16.mxu0 %v14159_v36  ;;  %v14223_v36 = vld [vmem:[%s18626_s4 + $0x564] ss:$8 sps:$4 sm:$0xff]  }
 0x1fd   : > { %v16408_v46 = vadd.f32 %v13330_v42, %v13329_v39  ;;  %v13332_v47 = vpop.f32.mrb[34].mxu1  ;;  %13478 = vmatpush3.bf16.msra.mxu1 %v14156_v35  ;;  %v14218_v35 = vld [vmem:[%s18626_s4] ss:$8 sps:$4 sm:$0xff]   ;;  %v5536_v39 = vpack.c.bf16 %v5535_v33, %v5535_v33  ;;  %v14232_v42 = vld [vmem:[%s18626_s4 + $0x24] ss:$8 sps:$4 sm:$0xff]  }
 0x1fe   : > { %v13333_v48 = vpop.f32.mrb[35].mxu1  ;;  %13479 = vmatprep.subr.bf16.mxu1 %v14160_v37  ;;  %v14226_v37 = vld [vmem:[%s18626_s4 + $0x14] ss:$8 sps:$4 sm:$0xff]   ;;  %v14290_v33 = vld [vmem:[%s18626_s4 + $0x140] ss:$8 sps:$4 sm:$0xff]  }
 0x1ff   : > { %4614 = vmatpush1.bf16.msra.mxu0 %v14157_v40  ;;  %v14229_v40 = vld [vmem:[%s18626_s4 + $0x574] ss:$8 sps:$4 sm:$0xff]   ;;  %v14233_v48 = vld [vmem:[%s18626_s4 + $0x580] ss:$8 sps:$4 sm:$0xff]  }
 0x200   : > { %4615 = vmatprep.subr.bf16.mxu0 %v14164_v43  ;;  %v14227_v43 = vld [vmem:[%s18626_s4 + $0x570] ss:$8 sps:$4 sm:$0xff]   ;;  %v14238_v47 = vld [vmem:[%s18626_s4 + $0x34] ss:$8 sps:$4 sm:$0xff]  }
 0x201   : > { %13480 = vmatpush3.bf16.msra.mxu1 %v14161_v41  ;;  %v14224_v41 = vld [vmem:[%s18626_s4 + $0x10] ss:$8 sps:$4 sm:$0xff]  }
 0x202   : > { %13481 = vmatprep.subr.bf16.mxu1 %v14165_v44  ;;  %v14230_v44 = vld [vmem:[%s18626_s4 + $0x20] ss:$8 sps:$4 sm:$0xff]  }
 0x203   : > { %4616 = vmatpush1.bf16.msra.mxu0 %v14162_v49  ;;  %v14236_v49 = vld [vmem:[%s18626_s4 + $0x30] ss:$8 sps:$4 sm:$0xff]  }
 0x204   : > { %4617 = vmatprep.subr.bf16.mxu0 %v14169_v51 }
 0x205   : > { %13482 = vmatpush3.bf16.msra.mxu1 %v14166_v50  ;;  %v14241_v50 = vld [vmem:[%s18626_s4 + $0x594] ss:$8 sps:$4 sm:$0xff]  }
 0x206   : > { %5633 = vmatprep.subr.bf16.mxu1 %v14172_v54  ;;  %v14242_v54 = vld [vmem:[%s18626_s4 + $0x40] ss:$8 sps:$4 sm:$0xff]  }
 0x207   : > { %4618 = vmatpush1.bf16.msra.mxu0 %v14167_v55  ;;  %v14247_v55 = vld [vmem:[%s18626_s4 + $0x5a4] ss:$8 sps:$4 sm:$0xff]  }
 0x208   : > { %3210 = vmatmul.mubr.bf16.vlgmr.msra.gmra.mrb[60].mxu1 %v3071_v58  ;;  %4619 = vmatprep.subr.bf16.mxu0 %v14175_v57  ;;  %v14245_v57 = vld [vmem:[%s18626_s4 + $0x5a0] ss:$8 sps:$4 sm:$0xff]   ;;  %v14248_v58 = vld [vmem:[%s18626_s4 + $0x50] ss:$8 sps:$4 sm:$0xff]  }
 0x209   : > { %5634 = vmatpush1.bf16.msra.mxu1 %v14170_v56  ;;  %5665 = vmatprep.mubr.bf16.mxu1 %v15058_v21  ;;  %v14250_v56 = vld [vmem:[%s18626_s4 + $0x54] ss:$8 sps:$4 sm:$0xff]  }
 0x20a   : > { %5635 = vmatprep.subr.bf16.mxu1 %v14178_v59  ;;  %v14253_v59 = vld [vmem:[%s18626_s4 + $0x5b4] ss:$8 sps:$4 sm:$0xff]  }
 0x20b   : > { %4620 = vmatpush1.bf16.msra.mxu0 %v14173_v60  ;;  %v14256_v60 = vld [vmem:[%s18626_s4 + $0x64] ss:$8 sps:$4 sm:$0xff]  }
 0x20c   : > { %4621 = vmatprep.subr.bf16.mxu0 %v14181_v62  ;;  %v14251_v62 = vld [vmem:[%s18626_s4 + $0x5b0] ss:$8 sps:$4 sm:$0xff]  }
 0x20d   : > { %5636 = vmatpush1.bf16.msra.mxu1 %v14176_v61 }
 0x20e   : > { %5637 = vmatprep.subr.bf16.mxu1 %v14184_v63  ;;  %v14254_v63 = vld [vmem:[%s18626_s4 + $0x60] ss:$8 sps:$4 sm:$0xff]  }
 0x20f   : > { %4622 = vmatpush1.bf16.msra.mxu0 %v14179_v0 }
 0x210   : > { %4749 = vmatprep.subr.bf16.mxu0 %v14187_v2  ;;  %v14262_v2 = vld [vmem:[%s18626_s4 + $0x74] ss:$8 sps:$4 sm:$0xff]  }
 0x211   : > { %5638 = vmatpush1.bf16.msra.mxu1 %v14182_v1  ;;  %v14259_v1 = vld [vmem:[%s18626_s4 + $0x5c4] ss:$8 sps:$4 sm:$0xff]  }
 0x212   : > { %4640 = vmatmul.mubr.bf16.vlgmr.msra.gmra.mrb[0].mxu0 %v4509_v8  ;;  %5639 = vmatprep.subr.bf16.mxu1 %v14190_v4  ;;  %v14260_v8 = vld [vmem:[%s18626_s4 + $0x70] ss:$8 sps:$4 sm:$0xff]  }
 0x213   : > { %4750 = vmatpush1.bf16.msra.mxu0 %v14185_v5  ;;  %4781 = vmatprep.mubr.bf16.mxu0 %v15058_v21 }
 0x214   : > { %4751 = vmatprep.subr.bf16.mxu0 %v14193_v7  ;;  %v14257_v7 = vld [vmem:[%s18626_s4 + $0x5c0] ss:$8 sps:$4 sm:$0xff]  }
 0x215   : > { %5640 = vmatpush1.bf16.msra.mxu1 %v14188_v6 }
 0x216   : > { %5641 = vmatprep.subr.bf16.mxu1 %v14196_v9  ;;  %v14265_v9 = vld [vmem:[%s18626_s4 + $0x5d4] ss:$8 sps:$4 sm:$0xff]  }
 0x217   : > { %4752 = vmatpush1.bf16.msra.mxu0 %v14191_v10  ;;  %v14268_v10 = vld [vmem:[%s18626_s4 + $0x104] ss:$8 sps:$4 sm:$0xff]  }
 0x218   : > { %4753 = vmatprep.subr.bf16.mxu0 %v14199_v12  ;;  %v14263_v12 = vld [vmem:[%s18626_s4 + $0x5d0] ss:$8 sps:$4 sm:$0xff]  }
 0x219   : > { %5642 = vmatpush1.bf16.msra.mxu1 %v14194_v11  ;;  %v5517_v11 = vld [vmem:[#allocation2 + $0x8] sm:$0x7] }
 0x21a   : > { %5643 = vmatprep.subr.bf16.mxu1 %v14202_v13  ;;  %v14266_v13 = vld [vmem:[%s18626_s4 + $0x100] ss:$8 sps:$4 sm:$0xff]  }
 0x21b   : > { %4754 = vmatpush1.bf16.msra.mxu0 %v14197_v14  ;;  %v13351_v18 = vpop.f32.mrb[36].mxu1  ;;  %v14271_v14 = vld [vmem:[%s18626_s4 + $0x5e4] ss:$8 sps:$4 sm:$0xff]  }
 0x21c   : > { %v13352_v22 = vpop.f32.mrb[37].mxu1  ;;  %4755 = vmatprep.subr.bf16.mxu0 %v14205_v16  ;;  %v14269_v16 = vld [vmem:[%s18626_s4 + $0x5e0] ss:$8 sps:$4 sm:$0xff]  }
 0x21d   : > { %v13353_v25 = vadd.f32 %v13352_v22, %v13351_v18  ;;  %v13354_v26 = vpop.f32.mrb[38].mxu1  ;;  %5644 = vmatpush1.bf16.msra.mxu1 %v14200_v15  ;;  %v14274_v15 = vld [vmem:[%s18626_s4 + $0x114] ss:$8 sps:$4 sm:$0xff]   ;;  %v14272_v18 = vld [vmem:[%s18626_s4 + $0x110] ss:$8 sps:$4 sm:$0xff]  }
 0x21e   : > { %v13355_v27 = vpop.f32.mrb[39].mxu1  ;;  %5645 = vmatprep.subr.bf16.mxu1 %v14208_v17  ;;  %v5518_v17 = vpack.c.bf16 %v5517_v11, %v5517_v11  ;;  %v14275_v22 = vld [vmem:[%s18626_s4 + $0x5f0] ss:$8 sps:$4 sm:$0xff]   ;;  %v14286_v26 = vld [vmem:[%s18626_s4 + $0x134] ss:$8 sps:$4 sm:$0xff]  }
 0x21f   : > { %v16509_v28 = vadd.f32 %v13353_v25, %v16408_v46  ;;  %4756 = vmatpush1.bf16.msra.mxu0 %v14203_v19  ;;  %v4650_v46 = vld [vmem:[#allocation2 + $0x12] sm:$0x7]  ;;  %v14281_v27 = vld [vmem:[%s18626_s4 + $0x600] ss:$8 sps:$4 sm:$0xff]  }
 0x220   : > { %4757 = vmatprep.subr.bf16.mxu0 %v14211_v23  ;;  %v4651_v51 = vpack.c.bf16 %v4650_v46, %v4650_v46  ;;  %v14277_v19 = vld [vmem:[%s18626_s4 + $0x5f4] ss:$8 sps:$4 sm:$0xff]   ;;  %v14278_v23 = vld [vmem:[%s18626_s4 + $0x120] ss:$8 sps:$4 sm:$0xff]  }
 0x221   : > { %5646 = vmatpush1.bf16.msra.mxu1 %v14206_v20  ;;  %v14280_v20 = vld [vmem:[%s18626_s4 + $0x124] ss:$8 sps:$4 sm:$0xff]   ;;  %v4792_v25 = vld [vmem:[#allocation2 + $0x13] sm:$0x7] }
 0x222   : > { %5647 = vmatprep.subr.bf16.mxu1 %v14214_v24  ;;  %v14283_v24 = vld [vmem:[%s18626_s4 + $0x604] ss:$8 sps:$4 sm:$0xff]  }
 0x223   : > { %4758 = vmatpush1.bf16.msra.mxu0 %v14209_v29  ;;  %v14289_v29 = vld [vmem:[%s18626_s4 + $0x614] ss:$8 sps:$4 sm:$0xff]  }
 0x224   : > { %4759 = vmatprep.subr.bf16.mxu0 %v14217_v31  ;;  %v14287_v31 = vld [vmem:[%s18626_s4 + $0x610] ss:$8 sps:$4 sm:$0xff]  }
 0x225   : > { %5648 = vmatpush1.bf16.msra.mxu1 %v14212_v30  ;;  %v4793_v30 = vpack.c.bf16 %v4792_v25, %v4792_v25  ;;  %v14352_v25 = vld [vmem:[%s18626_s4 + $0x1e4] ss:$8 sps:$4 sm:$0xff]  }
 0x226   : > { %5754 = vmatprep.subr.bf16.mxu1 %v14220_v32  ;;  %v14292_v32 = vld [vmem:[%s18626_s4 + $0x144] ss:$8 sps:$4 sm:$0xff]  }
 0x227   : > { %4760 = vmatpush1.bf16.msra.mxu0 %v14215_v34  ;;  %v14295_v34 = vld [vmem:[%s18626_s4 + $0x624] ss:$8 sps:$4 sm:$0xff]  }
 0x228   : > { %5666 = vmatmul.mubr.bf16.vlgmr.msra.gmra.mrb[64].mxu1 %v5536_v39  ;;  %4761 = vmatprep.subr.bf16.mxu0 %v14223_v36  ;;  %v14298_v36 = vld [vmem:[%s18626_s4 + $0x154] ss:$8 sps:$4 sm:$0xff]   ;;  %v14299_v39 = vld [vmem:[%s18626_s4 + $0x630] ss:$8 sps:$4 sm:$0xff]  }
 0x229   : > { %5755 = vmatpush1.bf16.msra.mxu1 %v14218_v35  ;;  %5786 = vmatprep.mubr.bf16.mxu1 %v15058_v21  ;;  %v14293_v35 = vld [vmem:[%s18626_s4 + $0x620] ss:$8 sps:$4 sm:$0xff]  }
 0x22a   : > { %5756 = vmatprep.subr.bf16.mxu1 %v14226_v37  ;;  %v14296_v37 = vld [vmem:[%s18626_s4 + $0x150] ss:$8 sps:$4 sm:$0xff]  }
 0x22b   : > { %4762 = vmatpush1.bf16.msra.mxu0 %v14221_v38  ;;  %v14301_v38 = vld [vmem:[%s18626_s4 + $0x634] ss:$8 sps:$4 sm:$0xff]  }
 0x22c   : > { %4763 = vmatprep.subr.bf16.mxu0 %v14229_v40  ;;  %v14304_v40 = vld [vmem:[%s18626_s4 + $0x164] ss:$8 sps:$4 sm:$0xff]  }
 0x22d   : > { %5757 = vmatpush1.bf16.msra.mxu1 %v14224_v41 }
 0x22e   : > { %5758 = vmatprep.subr.bf16.mxu1 %v14232_v42  ;;  %v14302_v42 = vld [vmem:[%s18626_s4 + $0x160] ss:$8 sps:$4 sm:$0xff]  }
 0x22f   : > { %4764 = vmatpush1.bf16.msra.mxu0 %v14227_v43  ;;  %v14307_v43 = vld [vmem:[%s18626_s4 + $0x644] ss:$8 sps:$4 sm:$0xff]  }
 0x230   : > { %4891 = vmatprep.subr.bf16.mxu0 %v14235_v45 }
 0x231   : > { %5759 = vmatpush1.bf16.msra.mxu1 %v14230_v44 }
 0x232   : > { %4782 = vmatmul.mubr.bf16.vlgmr.msra.gmra.mrb[0].mxu0 %v4651_v51  ;;  %5760 = vmatprep.subr.bf16.mxu1 %v14238_v47  ;;  %v14305_v47 = vld [vmem:[%s18626_s4 + $0x640] ss:$8 sps:$4 sm:$0xff]   ;;  %v14308_v51 = vld [vmem:[%s18626_s4 + $0x170] ss:$8 sps:$4 sm:$0xff]  }
 0x233   : > { %4892 = vmatpush1.bf16.msra.mxu0 %v14233_v48  ;;  %4923 = vmatprep.mubr.bf16.mxu0 %v15058_v21  ;;  %v14310_v48 = vld [vmem:[%s18626_s4 + $0x174] ss:$8 sps:$4 sm:$0xff]  }
 0x234   : > { %4893 = vmatprep.subr.bf16.mxu0 %v14241_v50 }
 0x235   : > { %5761 = vmatpush1.bf16.msra.mxu1 %v14236_v49 }
 0x236   : > { %5762 = vmatprep.subr.bf16.mxu1 %v14244_v52  ;;  %v14313_v52 = vld [vmem:[%s18626_s4 + $0x654] ss:$8 sps:$4 sm:$0xff]  }
 0x237   : > { %4894 = vmatpush1.bf16.msra.mxu0 %v14239_v53  ;;  %v16723_v53 = vld [vmem:[%s18624_s2] ss:$0 sm:$0xff] }
 0x238   : > { %4895 = vmatprep.subr.bf16.mxu0 %v14247_v55  ;;  %v14311_v55 = vld [vmem:[%s18626_s4 + $0x650] ss:$8 sps:$4 sm:$0xff]  }
 0x239   : > { %5763 = vmatpush1.bf16.msra.mxu1 %v14242_v54 }
 0x23a   : > { %5764 = vmatprep.subr.bf16.mxu1 %v14250_v56  ;;  %v5795_v56 = vld [vmem:[#allocation2 + $0xa] sm:$0x7] }
 0x23b   : > { %4896 = vmatpush1.bf16.msra.mxu0 %v14245_v57  ;;  %v13373_v61 = vpop.f32.mrb[40].mxu1  ;;  %v14316_v57 = vld [vmem:[%s18626_s4 + $0x184] ss:$8 sps:$4 sm:$0xff]  }
 0x23c   : > { %v13374_v0 = vpop.f32.mrb[41].mxu1  ;;  %4897 = vmatprep.subr.bf16.mxu0 %v14253_v59 }
 0x23d   : > { %v13375_v3 = vadd.f32 %v13374_v0, %v13373_v61  ;;  %v13376_v4 = vpop.f32.mrb[42].mxu1  ;;  %5765 = vmatpush1.bf16.msra.mxu1 %v14248_v58  ;;  %v16735_v58 = vld [vmem:[%s18625_s3] ss:$0 sm:$0xff]  ;;  %v14319_v61 = vld [vmem:[%s18626_s4 + $0x664] ss:$8 sps:$4 sm:$0xff]   ;;  %v5796_v0 = vpack.c.bf16 %v5795_v56, %v5795_v56 }
 0x23e   : > { %v13377_v5 = vpop.f32.mrb[43].mxu1  ;;  %5766 = vmatprep.subr.bf16.mxu1 %v14256_v60  ;;  %v14314_v60 = vld [vmem:[%s18626_s4 + $0x180] ss:$8 sps:$4 sm:$0xff]   ;;  %v14320_v4 = vld [vmem:[%s18626_s4 + $0x190] ss:$8 sps:$4 sm:$0xff]  }
 0x23f   : > { %v16610_v6 = vadd.f32 %v13375_v3, %v16509_v28  ;;  %4898 = vmatpush1.bf16.msra.mxu0 %v14251_v62  ;;  %v14284_v28 = vld [vmem:[%s18626_s4 + $0x130] ss:$8 sps:$4 sm:$0xff]   ;;  %v14325_v3 = vld [vmem:[%s18626_s4 + $0x674] ss:$8 sps:$4 sm:$0xff]   ;;  %v14328_v5 = vld [vmem:[%s18626_s4 + $0x1a4] ss:$8 sps:$4 sm:$0xff]  }
 0x240   : > { %4899 = vmatprep.subr.bf16.mxu0 %v14259_v1  ;;  %v14322_v1 = vld [vmem:[%s18626_s4 + $0x194] ss:$8 sps:$4 sm:$0xff]   ;;  %v14391_v56 = vld [vmem:[%s18626_s4 + $0x724] ss:$8 sps:$4 sm:$0xff]  }
 0x241   : > { %5767 = vmatpush1.bf16.msra.mxu1 %v14254_v63  ;;  %v14317_v63 = vld [vmem:[%s18626_s4 + $0x660] ss:$8 sps:$4 sm:$0xff]  }
 0x242   : > { %5768 = vmatprep.subr.bf16.mxu1 %v14262_v2 }
 0x243   : > { %4900 = vmatpush1.bf16.msra.mxu0 %v14257_v7  ;;  %v14331_v7 = vld [vmem:[%s18626_s4 + $0x684] ss:$8 sps:$4 sm:$0xff]  }
 0x244   : > { %4901 = vmatprep.subr.bf16.mxu0 %v14265_v9  ;;  %v14334_v9 = vld [vmem:[%s18626_s4 + $0x1b4] ss:$8 sps:$4 sm:$0xff]  }
 0x245   : > { %5769 = vmatpush1.bf16.msra.mxu1 %v14260_v8  ;;  %v14326_v8 = vld [vmem:[%s18626_s4 + $0x1a0] ss:$8 sps:$4 sm:$0xff]  }
 0x246   : > { %5893 = vmatprep.subr.bf16.mxu1 %v14268_v10  ;;  %v14329_v10 = vld [vmem:[%s18626_s4 + $0x680] ss:$8 sps:$4 sm:$0xff]  }
 0x247   : > { %4902 = vmatpush1.bf16.msra.mxu0 %v14263_v12 }
 0x248   : > { %5787 = vmatmul.mubr.bf16.vlgmr.msra.gmra.mrb[64].mxu1 %v5518_v17  ;;  %4903 = vmatprep.subr.bf16.mxu0 %v14271_v14  ;;  %v14332_v14 = vld [vmem:[%s18626_s4 + $0x1b0] ss:$8 sps:$4 sm:$0xff]   ;;  %v14338_v17 = vld [vmem:[%s18626_s4 + $0x1c0] ss:$8 sps:$4 sm:$0xff]  }
 0x249   : > { %5894 = vmatpush1.bf16.msra.mxu1 %v14266_v13  ;;  %5925 = vmatprep.mubr.bf16.mxu1 %v15058_v21  ;;  %v14337_v13 = vld [vmem:[%s18626_s4 + $0x694] ss:$8 sps:$4 sm:$0xff]  }
 0x24a   : > { %5895 = vmatprep.subr.bf16.mxu1 %v14274_v15  ;;  %v14340_v15 = vld [vmem:[%s18626_s4 + $0x1c4] ss:$8 sps:$4 sm:$0xff]  }
 0x24b   : > { %4904 = vmatpush1.bf16.msra.mxu0 %v14269_v16  ;;  %v14335_v16 = vld [vmem:[%s18626_s4 + $0x690] ss:$8 sps:$4 sm:$0xff]  }
 0x24c   : > { %4905 = vmatprep.subr.bf16.mxu0 %v14277_v19  ;;  %v14341_v19 = vld [vmem:[%s18626_s4 + $0x6a0] ss:$8 sps:$4 sm:$0xff]  }
 0x24d   : > { %5896 = vmatpush1.bf16.msra.mxu1 %v14272_v18  ;;  %v14343_v18 = vld [vmem:[%s18626_s4 + $0x6a4] ss:$8 sps:$4 sm:$0xff]  }
 0x24e   : > { %5897 = vmatprep.subr.bf16.mxu1 %v14280_v20  ;;  %v14346_v20 = vld [vmem:[%s18626_s4 + $0x1d4] ss:$8 sps:$4 sm:$0xff]  }
 0x24f   : > { %4906 = vmatpush1.bf16.msra.mxu0 %v14275_v22  ;;  %v14344_v22 = vld [vmem:[%s18626_s4 + $0x1d0] ss:$8 sps:$4 sm:$0xff]  }
 0x250   : > { %5033 = vmatprep.subr.bf16.mxu0 %v14283_v24  ;;  %v14347_v24 = vld [vmem:[%s18626_s4 + $0x6b0] ss:$8 sps:$4 sm:$0xff]  }
 0x251   : > { %5898 = vmatpush1.bf16.msra.mxu1 %v14278_v23  ;;  %v14349_v23 = vld [vmem:[%s18626_s4 + $0x6b4] ss:$8 sps:$4 sm:$0xff]  }
 0x252   : > { %4924 = vmatmul.mubr.bf16.vlgmr.msra.gmra.mrb[0].mxu0 %v4793_v30  ;;  %5899 = vmatprep.subr.bf16.mxu1 %v14286_v26  ;;  %v14350_v26 = vld [vmem:[%s18626_s4 + $0x1e0] ss:$8 sps:$4 sm:$0xff]   ;;  %v14356_v30 = vld [vmem:[%s18626_s4 + $0x1f0] ss:$8 sps:$4 sm:$0xff]  }
 0x253   : > { %5034 = vmatpush1.bf16.msra.mxu0 %v14281_v27  ;;  %5065 = vmatprep.mubr.bf16.mxu0 %v15058_v21  ;;  %v14355_v27 = vld [vmem:[%s18626_s4 + $0x6c4] ss:$8 sps:$4 sm:$0xff]  }
 0x254   : > { %5035 = vmatprep.subr.bf16.mxu0 %v14289_v29  ;;  %v14358_v29 = vld [vmem:[%s18626_s4 + $0x1f4] ss:$8 sps:$4 sm:$0xff]  }
 0x255   : > { %5900 = vmatpush1.bf16.msra.mxu1 %v14284_v28  ;;  %v14353_v28 = vld [vmem:[%s18626_s4 + $0x6c0] ss:$8 sps:$4 sm:$0xff]  }
 0x256   : > { %5901 = vmatprep.subr.bf16.mxu1 %v14292_v32  ;;  %v14359_v32 = vld [vmem:[%s18626_s4 + $0x6d0] ss:$8 sps:$4 sm:$0xff]  }
 0x257   : > { %5036 = vmatpush1.bf16.msra.mxu0 %v14287_v31  ;;  %v14361_v31 = vld [vmem:[%s18626_s4 + $0x6d4] ss:$8 sps:$4 sm:$0xff]  }
 0x258   : > { %5037 = vmatprep.subr.bf16.mxu0 %v14295_v34  ;;  %v14364_v34 = vld [vmem:[%s18626_s4 + $0x204] ss:$8 sps:$4 sm:$0xff]  }
 0x259   : > { %5902 = vmatpush1.bf16.msra.mxu1 %v14290_v33  ;;  %v5936_v33 = vld [vmem:[#allocation2 + $0xb] sm:$0x7] }
 0x25a   : > { %5903 = vmatprep.subr.bf16.mxu1 %v14298_v36  ;;  %v14367_v36 = vld [vmem:[%s18626_s4 + $0x6e4] ss:$8 sps:$4 sm:$0xff]  }
 0x25b   : > { %5038 = vmatpush1.bf16.msra.mxu0 %v14293_v35  ;;  %v13395_v41 = vpop.f32.mrb[44].mxu1  ;;  %v14362_v35 = vld [vmem:[%s18626_s4 + $0x200] ss:$8 sps:$4 sm:$0xff]  }
 0x25c   : > { %v13396_v44 = vpop.f32.mrb[45].mxu1  ;;  %5039 = vmatprep.subr.bf16.mxu0 %v14301_v38  ;;  %v14370_v38 = vld [vmem:[%s18626_s4 + $0x214] ss:$8 sps:$4 sm:$0xff]  }
 0x25d   : > { %v13397_v45 = vadd.f32 %v13396_v44, %v13395_v41  ;;  %v13398_v46 = vpop.f32.mrb[46].mxu1  ;;  %5904 = vmatpush1.bf16.msra.mxu1 %v14296_v37  ;;  %v14365_v37 = vld [vmem:[%s18626_s4 + $0x6e0] ss:$8 sps:$4 sm:$0xff]   ;;  %v14373_v41 = vld [vmem:[%s18626_s4 + $0x6f4] ss:$8 sps:$4 sm:$0xff]  }
 0x25e   : > { %v13399_v49 = vpop.f32.mrb[47].mxu1  ;;  %5905 = vmatprep.subr.bf16.mxu1 %v14304_v40  ;;  %v14368_v40 = vld [vmem:[%s18626_s4 + $0x210] ss:$8 sps:$4 sm:$0xff]   ;;  %v14374_v44 = vld [vmem:[%s18626_s4 + $0x220] ss:$8 sps:$4 sm:$0xff]  }
 0x25f   : > { %v2487_v50 = vadd.f32 %v13397_v45, %v16610_v6  ;;  %5040 = vmatpush1.bf16.msra.mxu0 %v14299_v39  ;;  %v14323_v6 = vld [vmem:[%s18626_s4 + $0x670] ss:$8 sps:$4 sm:$0xff]   ;;  %v5937_v39 = vpack.c.bf16 %v5936_v33, %v5936_v33  ;;  %v14379_v45 = vld [vmem:[%s18626_s4 + $0x704] ss:$8 sps:$4 sm:$0xff]  }
 0x260   : > { %5041 = vmatprep.subr.bf16.mxu0 %v14307_v43  ;;  %v14376_v43 = vld [vmem:[%s18626_s4 + $0x224] ss:$8 sps:$4 sm:$0xff]   ;;  %v14380_v49 = vld [vmem:[%s18626_s4 + $0x230] ss:$8 sps:$4 sm:$0xff]  }
 0x261   : > { %v2488_v54 = vmul.f32 %v16723_v53, %v2487_v50  ;;  %5906 = vmatpush1.bf16.msra.mxu1 %v14302_v42  ;;  %v14371_v42 = vld [vmem:[%s18626_s4 + $0x6f0] ss:$8 sps:$4 sm:$0xff]   ;;  %v14385_v50 = vld [vmem:[%s18626_s4 + $0x714] ss:$8 sps:$4 sm:$0xff]  }
 0x262   : > { %5907 = vmatprep.subr.bf16.mxu1 %v14310_v48  ;;  %v14382_v48 = vld [vmem:[%s18626_s4 + $0x234] ss:$8 sps:$4 sm:$0xff]  }
 0x263   : > { %v2489_v59 = vadd.f32 %v16735_v58, %v2488_v54  ;;  %5042 = vmatpush1.bf16.msra.mxu0 %v14305_v47  ;;  %v14377_v47 = vld [vmem:[%s18626_s4 + $0x700] ss:$8 sps:$4 sm:$0xff]   ;;  %v14388_v54 = vld [vmem:[%s18626_s4 + $0x244] ss:$8 sps:$4 sm:$0xff]  }
 0x264   : > { %5043 = vmatprep.subr.bf16.mxu0 %v14313_v52  ;;  %v14383_v52 = vld [vmem:[%s18626_s4 + $0x710] ss:$8 sps:$4 sm:$0xff]  }
 0x265   : > { %vm2490_vm2 = vcmp.ge.f32.partialorder %v2489_v59, 0.0  ;;  %v2491_v62 = vmul.f32 0.2, %v2489_v59  ;;  %5908 = vmatpush1.bf16.msra.mxu1 %v14308_v51 }
 0x266   : > { %6034 = vmatprep.subr.bf16.mxu1 %v14316_v57  ;;  %v14389_v57 = vld [vmem:[%s18626_s4 + $0x720] ss:$8 sps:$4 sm:$0xff]  }
 0x267   : > { %v2492_v2 = vsel %vm2490_vm2, %v2489_v59, %v2491_v62  ;;  %5044 = vmatpush1.bf16.msra.mxu0 %v14311_v55  ;;  %v14386_v55 = vld [vmem:[%s18626_s4 + $0x240] ss:$8 sps:$4 sm:$0xff]   ;;  %v14394_v59 = vld [vmem:[%s18626_s4 + $0x254] ss:$8 sps:$4 sm:$0xff]   ;;  %v14395_v62 = vld [vmem:[%s18626_s4 + $0x730] ss:$8 sps:$4 sm:$0xff]  }
 0x268   : > { %2494 = vst [vmem:[#allocation2 + $0x19] sm:$0xf] %v2492_v2  ;;  %5926 = vmatmul.mubr.bf16.vlgmr.msra.gmra.mrb[64].mxu1 %v5796_v0  ;;  %5045 = vmatprep.subr.bf16.mxu0 %v14319_v61  ;;  %v14397_v61 = vld [vmem:[%s18626_s4 + $0x734] ss:$8 sps:$4 sm:$0xff]   ;;  %v14398_v0 = vld [vmem:[%s18626_s4 + $0x260] ss:$8 sps:$4 sm:$0xff]  }
 0x269   : > { %6035 = vmatpush1.bf16.msra.mxu1 %v14314_v60  ;;  %6066 = vmatprep.mubr.bf16.mxu1 %v15058_v21  ;;  %v14392_v60 = vld [vmem:[%s18626_s4 + $0x250] ss:$8 sps:$4 sm:$0xff]   ;;  %v14401_v2 = vld [vmem:[%s18626_s4 + $0x740] ss:$8 sps:$4 sm:$0xff]  }
 0x26a   : > { %6036 = vmatprep.subr.bf16.mxu1 %v14322_v1  ;;  %v14403_v1 = vld [vmem:[%s18626_s4 + $0x744] ss:$8 sps:$4 sm:$0xff]  }
 0x26b   : > { %5046 = vmatpush1.bf16.msra.mxu0 %v14317_v63  ;;  %v14400_v63 = vld [vmem:[%s18626_s4 + $0x264] ss:$8 sps:$4 sm:$0xff]  }
 0x26c   : > { %5047 = vmatprep.subr.bf16.mxu0 %v14325_v3  ;;  %v14406_v3 = vld [vmem:[%s18626_s4 + $0x274] ss:$8 sps:$4 sm:$0xff]  }
 0x26d   : > { %6037 = vmatpush1.bf16.msra.mxu1 %v14320_v4  ;;  %v14404_v4 = vld [vmem:[%s18626_s4 + $0x270] ss:$8 sps:$4 sm:$0xff]  }
 0x26e   : > { %6038 = vmatprep.subr.bf16.mxu1 %v14328_v5  ;;  %v14409_v5 = vld [vmem:[%s18626_s4 + $0x754] ss:$8 sps:$4 sm:$0xff]  }
 0x26f   : > { %5048 = vmatpush1.bf16.msra.mxu0 %v14323_v6  ;;  %v4934_v11 = vld [vmem:[#allocation2 + $0x18] sm:$0x7] }
 0x270   : > { %5175 = vmatprep.subr.bf16.mxu0 %v14331_v7  ;;  %v4935_v12 = vpack.c.bf16 %v4934_v11, %v4934_v11  ;;  %v5076_v46 = vld [vmem:[#allocation2 + $0x19] sm:$0x7]  ;;  %v6077_v7 = vld [vmem:[#allocation2 + $0x10] sm:$0x7]  ;;  %v14413_v11 = vld [vmem:[%s18626_s4 + $0x760] ss:$8 sps:$4 sm:$0xff]  }
 0x271   : > { %6039 = vmatpush1.bf16.msra.mxu1 %v14326_v8  ;;  %v5077_v51 = vpack.c.bf16 %v5076_v46, %v5076_v46  ;;  %v14407_v6 = vld [vmem:[%s18626_s4 + $0x750] ss:$8 sps:$4 sm:$0xff]   ;;  %v14412_v8 = vld [vmem:[%s18626_s4 + $0x284] ss:$8 sps:$4 sm:$0xff]  }
 0x272   : > { %5066 = vmatmul.mubr.bf16.vlgmr.msra.gmra.mrb[0].mxu0 %v4935_v12  ;;  %6040 = vmatprep.subr.bf16.mxu1 %v14334_v9  ;;  %v14410_v9 = vld [vmem:[%s18626_s4 + $0x280] ss:$8 sps:$4 sm:$0xff]   ;;  %v14418_v12 = vld [vmem:[%s18626_s4 + $0x294] ss:$8 sps:$4 sm:$0xff]   ;;  %v14448_v46 = vld [vmem:[%s18626_s4 + $0x2e4] ss:$8 sps:$4 sm:$0xff]  }
 0x273   : > { %5176 = vmatpush1.bf16.msra.mxu0 %v14329_v10  ;;  %5207 = vmatprep.mubr.bf16.mxu0 %v15058_v21  ;;  %v14415_v10 = vld [vmem:[%s18626_s4 + $0x764] ss:$8 sps:$4 sm:$0xff]  }
 0x274   : > { %5177 = vmatprep.subr.bf16.mxu0 %v14337_v13  ;;  %v6078_v13 = vpack.c.bf16 %v6077_v7, %v6077_v7  ;;  %v14464_v7 = vld [vmem:[%s18626_s4 + $0x310] ss:$8 sps:$4 sm:$0xff]  }
 0x275   : > { %6041 = vmatpush1.bf16.msra.mxu1 %v14332_v14  ;;  %v14421_v14 = vld [vmem:[%s18626_s4 + $0x774] ss:$8 sps:$4 sm:$0xff]  }
 0x276   : > { %6042 = vmatprep.subr.bf16.mxu1 %v14340_v15  ;;  %v14416_v15 = vld [vmem:[%s18626_s4 + $0x290] ss:$8 sps:$4 sm:$0xff]  }
 0x277   : > { %5178 = vmatpush1.bf16.msra.mxu0 %v14335_v16  ;;  %v14424_v16 = vld [vmem:[%s18626_s4 + $0x2a4] ss:$8 sps:$4 sm:$0xff]  }
 0x278   : > { %5179 = vmatprep.subr.bf16.mxu0 %v14343_v18  ;;  %v14419_v18 = vld [vmem:[%s18626_s4 + $0x770] ss:$8 sps:$4 sm:$0xff]  }
 0x279   : > { %6043 = vmatpush1.bf16.msra.mxu1 %v14338_v17 }
 0x27a   : > { %6044 = vmatprep.subr.bf16.mxu1 %v14346_v20  ;;  %v14427_v20 = vld [vmem:[%s18626_s4 + $0x784] ss:$8 sps:$4 sm:$0xff]  }
 0x27b   : > { %5180 = vmatpush1.bf16.msra.mxu0 %v14341_v19  ;;  %v13417_v17 = vpop.f32.mrb[48].mxu1 }
 0x27c   : > { %5181 = vmatprep.subr.bf16.mxu0 %v14349_v23  ;;  %v13418_v19 = vpop.f32.mrb[49].mxu1 }
 0x27d   : > { %6045 = vmatpush1.bf16.msra.mxu1 %v14344_v22  ;;  %v13419_v22 = vadd.f32 %v13418_v19, %v13417_v17  ;;  %v13420_v23 = vpop.f32.mrb[50].mxu1  ;;  %v14476_v17 = vld [vmem:[%s18626_s4 + $0x330] ss:$8 sps:$4 sm:$0xff]  }
 0x27e   : > { %6046 = vmatprep.subr.bf16.mxu1 %v14352_v25  ;;  %v5218_v25 = vld [vmem:[#allocation2 + $0x1a] sm:$0x7] }
 0x27f   : > { %5182 = vmatpush1.bf16.msra.mxu0 %v14347_v24  ;;  %v14422_v24 = vld [vmem:[%s18626_s4 + $0x2a0] ss:$8 sps:$4 sm:$0xff]   ;;  %v14479_v19 = vld [vmem:[%s18626_s4 + $0x90] ss:$8 sps:$4 sm:$0xff]   ;;  %v14490_v23 = vld [vmem:[%s18626_s4 + $0x354] ss:$8 sps:$4 sm:$0xff]  }
 0x280   : > { %5183 = vmatprep.subr.bf16.mxu0 %v14355_v27  ;;  %v14430_v27 = vld [vmem:[%s18626_s4 + $0x2b4] ss:$8 sps:$4 sm:$0xff]  }
 0x281   : > { %6047 = vmatpush1.bf16.msra.mxu1 %v14350_v26  ;;  %v13421_v26 = vpop.f32.mrb[51].mxu1 }
 0x282   : > { %6048 = vmatprep.subr.bf16.mxu1 %v14358_v29  ;;  %v14425_v29 = vld [vmem:[%s18626_s4 + $0x780] ss:$8 sps:$4 sm:$0xff]   ;;  %v14488_v26 = vld [vmem:[%s18626_s4 + $0x350] ss:$8 sps:$4 sm:$0xff]  }
 0x283   : > { %5184 = vmatpush1.bf16.msra.mxu0 %v14353_v28 }
 0x284   : > { %5185 = vmatprep.subr.bf16.mxu0 %v14361_v31  ;;  %v5219_v31 = vpack.c.bf16 %v5218_v25, %v5218_v25  ;;  %v14493_v25 = vld [vmem:[%s18626_s4 + $0xb4] ss:$8 sps:$4 sm:$0xff]  }
 0x285   : > { %6049 = vmatpush1.bf16.msra.mxu1 %v14356_v30 }
 0x286   : > { %6175 = vmatprep.subr.bf16.mxu1 %v14364_v34 }
 0x287   : > { %5186 = vmatpush1.bf16.msra.mxu0 %v14359_v32  ;;  %v14433_v32 = vld [vmem:[%s18626_s4 + $0x794] ss:$8 sps:$4 sm:$0xff]  }
 0x288   : > { %6067 = vmatmul.mubr.bf16.vlgmr.msra.gmra.mrb[64].mxu1 %v5937_v39  ;;  %5187 = vmatprep.subr.bf16.mxu0 %v14367_v36  ;;  %v14431_v39 = vld [vmem:[%s18626_s4 + $0x790] ss:$8 sps:$4 sm:$0xff]  }
 0x289   : > { %6176 = vmatpush1.bf16.msra.mxu1 %v14362_v35  ;;  %6207 = vmatprep.mubr.bf16.mxu1 %v15058_v21  ;;  %v14428_v35 = vld [vmem:[%s18626_s4 + $0x2b0] ss:$8 sps:$4 sm:$0xff]  }
 0x28a   : > { %6177 = vmatprep.subr.bf16.mxu1 %v14370_v38 }
 0x28b   : > { %5188 = vmatpush1.bf16.msra.mxu0 %v14365_v37  ;;  %v14436_v37 = vld [vmem:[%s18626_s4 + $0x2c4] ss:$8 sps:$4 sm:$0xff]  }
 0x28c   : > { %5189 = vmatprep.subr.bf16.mxu0 %v14373_v41  ;;  %v14434_v41 = vld [vmem:[%s18626_s4 + $0x2c0] ss:$8 sps:$4 sm:$0xff]  }
 0x28d   : > { %6178 = vmatpush1.bf16.msra.mxu1 %v14368_v40  ;;  %v14439_v40 = vld [vmem:[%s18626_s4 + $0x7a4] ss:$8 sps:$4 sm:$0xff]  }
 0x28e   : > { %6179 = vmatprep.subr.bf16.mxu1 %v14376_v43  ;;  %v14437_v43 = vld [vmem:[%s18626_s4 + $0x7a0] ss:$8 sps:$4 sm:$0xff]  }
 0x28f   : > { %5190 = vmatpush1.bf16.msra.mxu0 %v14371_v42  ;;  %v14442_v42 = vld [vmem:[%s18626_s4 + $0x2d4] ss:$8 sps:$4 sm:$0xff]  }
 0x290   : > { %5317 = vmatprep.subr.bf16.mxu0 %v14379_v45  ;;  %v14440_v45 = vld [vmem:[%s18626_s4 + $0x2d0] ss:$8 sps:$4 sm:$0xff]  }
 0x291   : > { %6180 = vmatpush1.bf16.msra.mxu1 %v14374_v44  ;;  %v14445_v44 = vld [vmem:[%s18626_s4 + $0x7b4] ss:$8 sps:$4 sm:$0xff]  }
 0x292   : > { %5208 = vmatmul.mubr.bf16.vlgmr.msra.gmra.mrb[0].mxu0 %v5077_v51  ;;  %6181 = vmatprep.subr.bf16.mxu1 %v14382_v48  ;;  %v14446_v51 = vld [vmem:[%s18626_s4 + $0x2e0] ss:$8 sps:$4 sm:$0xff]  }
 0x293   : > { %5318 = vmatpush1.bf16.msra.mxu0 %v14377_v47  ;;  %5349 = vmatprep.mubr.bf16.mxu0 %v15058_v21  ;;  %v14443_v47 = vld [vmem:[%s18626_s4 + $0x7b0] ss:$8 sps:$4 sm:$0xff]  }
 0x294   : > { %5319 = vmatprep.subr.bf16.mxu0 %v14385_v50 }
 0x295   : > { %6182 = vmatpush1.bf16.msra.mxu1 %v14380_v49  ;;  %v14451_v49 = vld [vmem:[%s18626_s4 + $0x7c4] ss:$8 sps:$4 sm:$0xff]  }
 0x296   : > { %6183 = vmatprep.subr.bf16.mxu1 %v14388_v54 }
 0x297   : > { %5320 = vmatpush1.bf16.msra.mxu0 %v14383_v52 }
 0x298   : > { %5321 = vmatprep.subr.bf16.mxu0 %v14391_v56 }
 0x299   : > { %6184 = vmatpush1.bf16.msra.mxu1 %v14386_v55  ;;  %v14454_v55 = vld [vmem:[%s18626_s4 + $0x2f4] ss:$8 sps:$4 sm:$0xff]  }
 0x29a   : > { %6185 = vmatprep.subr.bf16.mxu1 %v14394_v59 }
 0x29b   : > { %5322 = vmatpush1.bf16.msra.mxu0 %v14389_v57  ;;  %v13439_v28 = vpop.f32.mrb[52].mxu1  ;;  %v14449_v57 = vld [vmem:[%s18626_s4 + $0x7c0] ss:$8 sps:$4 sm:$0xff]  }
 0x29c   : > { %5323 = vmatprep.subr.bf16.mxu0 %v14397_v61  ;;  %v13440_v30 = vpop.f32.mrb[53].mxu1  ;;  %v14452_v61 = vld [vmem:[%s18626_s4 + $0x2f0] ss:$8 sps:$4 sm:$0xff]  }
 0x29d   : > { %6186 = vmatpush1.bf16.msra.mxu1 %v14392_v60  ;;  %v13441_v33 = vadd.f32 %v13440_v30, %v13439_v28  ;;  %v13442_v34 = vpop.f32.mrb[54].mxu1  ;;  %v14457_v60 = vld [vmem:[%s18626_s4 + $0x7d4] ss:$8 sps:$4 sm:$0xff]   ;;  %v14491_v28 = vld [vmem:[%s18626_s4 + $0xb0] ss:$8 sps:$4 sm:$0xff]  }
 0x29e   : > { %6187 = vmatprep.subr.bf16.mxu1 %v14400_v63  ;;  %v13443_v36 = vpop.f32.mrb[55].mxu1  ;;  %v14455_v63 = vld [vmem:[%s18626_s4 + $0x7d0] ss:$8 sps:$4 sm:$0xff]   ;;  %v14499_v30 = vld [vmem:[%s18626_s4 + $0xc4] ss:$8 sps:$4 sm:$0xff]  }
 0x29f   : > { %5324 = vmatpush1.bf16.msra.mxu0 %v14395_v62  ;;  %v2850_v38 = vadd.f32 %v13441_v33, %v13419_v22  ;;  %v14460_v62 = vld [vmem:[%s18626_s4 + $0x304] ss:$8 sps:$4 sm:$0xff]   ;;  %v14482_v22 = vld [vmem:[%s18626_s4 + $0x340] ss:$8 sps:$4 sm:$0xff]  }
 0x2a0   : > { %5325 = vmatprep.subr.bf16.mxu0 %v14403_v1  ;;  %v14463_v1 = vld [vmem:[%s18626_s4 + $0x7e4] ss:$8 sps:$4 sm:$0xff]  }
 0x2a1   : > { %6188 = vmatpush1.bf16.msra.mxu1 %v14398_v0  ;;  %v6218_v0 = vld [vmem:[#allocation2 + $0x11] sm:$0x7] }
 0x2a2   : > { %6189 = vmatprep.subr.bf16.mxu1 %v14406_v3  ;;  %v6219_v3 = vpack.c.bf16 %v6218_v0, %v6218_v0  ;;  %v14524_v0 = vld [vmem:[%s18626_s4 + $0x3b0] ss:$8 sps:$4 sm:$0xff]  }
 0x2a3   : > { %5326 = vmatpush1.bf16.msra.mxu0 %v14401_v2  ;;  %v14458_v2 = vld [vmem:[%s18626_s4 + $0x300] ss:$8 sps:$4 sm:$0xff]  }
 0x2a4   : > { %5327 = vmatprep.subr.bf16.mxu0 %v14409_v5  ;;  %v14461_v5 = vld [vmem:[%s18626_s4 + $0x7e0] ss:$8 sps:$4 sm:$0xff]  }
 0x2a5   : > { %6190 = vmatpush1.bf16.msra.mxu1 %v14404_v4  ;;  %v14466_v4 = vld [vmem:[%s18626_s4 + $0x314] ss:$8 sps:$4 sm:$0xff]  }
 0x2a6   : > { %6316 = vmatprep.subr.bf16.mxu1 %v14412_v8  ;;  %v14472_v8 = vld [vmem:[%s18626_s4 + $0x324] ss:$8 sps:$4 sm:$0xff]  }
 0x2a7   : > { %5328 = vmatpush1.bf16.msra.mxu0 %v14407_v6  ;;  %v14469_v6 = vld [vmem:[%s18626_s4 + $0x7f4] ss:$8 sps:$4 sm:$0xff]  }
 0x2a8   : > { %6208 = vmatmul.mubr.bf16.vlgmr.msra.gmra.mrb[64].mxu1 %v6078_v13  ;;  %5329 = vmatprep.subr.bf16.mxu0 %v14415_v10  ;;  %v14475_v10 = vld [vmem:[%s18626_s4 + $0x84] ss:$8 sps:$4 sm:$0xff]   ;;  %v14478_v13 = vld [vmem:[%s18626_s4 + $0x334] ss:$8 sps:$4 sm:$0xff]  }
 0x2a9   : > { %6317 = vmatpush1.bf16.msra.mxu1 %v14410_v9  ;;  %6348 = vmatprep.mubr.bf16.mxu1 %v15058_v21  ;;  %v14467_v9 = vld [vmem:[%s18626_s4 + $0x7f0] ss:$8 sps:$4 sm:$0xff]  }
 0x2aa   : > { %6318 = vmatprep.subr.bf16.mxu1 %v14418_v12  ;;  %v5360_v12 = vld [vmem:[#allocation2 + $0x1b] sm:$0x7] }
 0x2ab   : > { %5330 = vmatpush1.bf16.msra.mxu0 %v14413_v11  ;;  %v14470_v11 = vld [vmem:[%s18626_s4 + $0x320] ss:$8 sps:$4 sm:$0xff]  }
 0x2ac   : > { %5331 = vmatprep.subr.bf16.mxu0 %v14421_v14  ;;  %v14473_v14 = vld [vmem:[%s18626_s4 + $0x80] ss:$8 sps:$4 sm:$0xff]  }
 0x2ad   : > { %6319 = vmatpush1.bf16.msra.mxu1 %v14416_v15  ;;  %v5361_v15 = vpack.c.bf16 %v5360_v12, %v5360_v12  ;;  %v14542_v12 = vld [vmem:[%s18626_s4 + $0x3e0] ss:$8 sps:$4 sm:$0xff]  }
 0x2ae   : > { %6320 = vmatprep.subr.bf16.mxu1 %v14424_v16  ;;  %v14481_v16 = vld [vmem:[%s18626_s4 + $0x94] ss:$8 sps:$4 sm:$0xff]  }
 0x2af   : > { %5332 = vmatpush1.bf16.msra.mxu0 %v14419_v18  ;;  %v14484_v18 = vld [vmem:[%s18626_s4 + $0x344] ss:$8 sps:$4 sm:$0xff]  }
 0x2b0   : > { %5459 = vmatprep.subr.bf16.mxu0 %v14427_v20  ;;  %v14487_v20 = vld [vmem:[%s18626_s4 + $0xa4] ss:$8 sps:$4 sm:$0xff]  }
 0x2b1   : > { %6321 = vmatpush1.bf16.msra.mxu1 %v14422_v24  ;;  %v14485_v24 = vld [vmem:[%s18626_s4 + $0xa0] ss:$8 sps:$4 sm:$0xff]  }
 0x2b2   : > { %5350 = vmatmul.mubr.bf16.vlgmr.msra.gmra.mrb[0].mxu0 %v5219_v31  ;;  %6322 = vmatprep.subr.bf16.mxu1 %v14430_v27  ;;  %v14496_v27 = vld [vmem:[%s18626_s4 + $0x364] ss:$8 sps:$4 sm:$0xff]  }
 0x2b3   : > { %5460 = vmatpush1.bf16.msra.mxu0 %v14425_v29  ;;  %5491 = vmatprep.mubr.bf16.mxu0 %v15058_v21 }
 0x2b4   : > { %5461 = vmatprep.subr.bf16.mxu0 %v14433_v32  ;;  %v14494_v32 = vld [vmem:[%s18626_s4 + $0x360] ss:$8 sps:$4 sm:$0xff]  }
 0x2b5   : > { %6323 = vmatpush1.bf16.msra.mxu1 %v14428_v35  ;;  %v14502_v35 = vld [vmem:[%s18626_s4 + $0x374] ss:$8 sps:$4 sm:$0xff]  }
 0x2b6   : > { %6324 = vmatprep.subr.bf16.mxu1 %v14436_v37  ;;  %v14497_v37 = vld [vmem:[%s18626_s4 + $0xc0] ss:$8 sps:$4 sm:$0xff]  }
 0x2b7   : > { %5462 = vmatpush1.bf16.msra.mxu0 %v14431_v39  ;;  %v14505_v39 = vld [vmem:[%s18626_s4 + $0xd4] ss:$8 sps:$4 sm:$0xff]  }
 0x2b8   : > { %5463 = vmatprep.subr.bf16.mxu0 %v14439_v40  ;;  %v14500_v40 = vld [vmem:[%s18626_s4 + $0x370] ss:$8 sps:$4 sm:$0xff]  }
 0x2b9   : > { %6325 = vmatpush1.bf16.msra.mxu1 %v14434_v41 }
 0x2ba   : > { %6326 = vmatprep.subr.bf16.mxu1 %v14442_v42  ;;  %v14508_v42 = vld [vmem:[%s18626_s4 + $0x384] ss:$8 sps:$4 sm:$0xff]  }
 0x2bb   : > { %5464 = vmatpush1.bf16.msra.mxu0 %v14437_v43  ;;  %v13461_v48 = vpop.f32.mrb[56].mxu1  ;;  %v14503_v43 = vld [vmem:[%s18626_s4 + $0xd0] ss:$8 sps:$4 sm:$0xff]  }
 0x2bc   : > { %5465 = vmatprep.subr.bf16.mxu0 %v14445_v44  ;;  %v13462_v50 = vpop.f32.mrb[57].mxu1  ;;  %v6359_v44 = vld [vmem:[#allocation2 + $0x12] sm:$0x7] }
 0x2bd   : > { %6327 = vmatpush1.bf16.msra.mxu1 %v14440_v45  ;;  %v13463_v52 = vadd.f32 %v13462_v50, %v13461_v48  ;;  %v13464_v54 = vpop.f32.mrb[58].mxu1  ;;  %v6360_v48 = vpack.c.bf16 %v6359_v44, %v6359_v44  ;;  %v14589_v44 = vld [vmem:[%s18626_s4 + $0x134] ss:$8 sps:$4 sm:$0xff]  }
 0x2be   : > { %6328 = vmatprep.subr.bf16.mxu1 %v14448_v46  ;;  %v13465_v56 = vpop.f32.mrb[59].mxu1  ;;  %v14511_v46 = vld [vmem:[%s18626_s4 + $0xe4] ss:$8 sps:$4 sm:$0xff]  }
 0x2bf   : > { %5466 = vmatpush1.bf16.msra.mxu0 %v14443_v47  ;;  %v17020_v59 = vadd.f32 %v13463_v52, %v2850_v38  ;;  %v14512_v52 = vld [vmem:[%s18626_s4 + $0x390] ss:$8 sps:$4 sm:$0xff]   ;;  %v14520_v54 = vld [vmem:[%s18626_s4 + $0x3a4] ss:$8 sps:$4 sm:$0xff]  }
 0x2c0   : > { %5467 = vmatprep.subr.bf16.mxu0 %v14451_v49  ;;  %v14514_v49 = vld [vmem:[%s18626_s4 + $0x394] ss:$8 sps:$4 sm:$0xff]   ;;  %v14523_v56 = vld [vmem:[%s18626_s4 + $0x4] ss:$8 sps:$4 sm:$0xff]  }
 0x2c1   : > { %6329 = vmatpush1.bf16.msra.mxu1 %v14446_v51  ;;  %v14517_v51 = vld [vmem:[%s18626_s4 + $0xf4] ss:$8 sps:$4 sm:$0xff]  }
 0x2c2   : > { %6330 = vmatprep.subr.bf16.mxu1 %v14454_v55  ;;  %v14515_v55 = vld [vmem:[%s18626_s4 + $0xf0] ss:$8 sps:$4 sm:$0xff]  }
 0x2c3   : > { %5468 = vmatpush1.bf16.msra.mxu0 %v14449_v57  ;;  %v14518_v57 = vld [vmem:[%s18626_s4 + $0x3a0] ss:$8 sps:$4 sm:$0xff]  }
 0x2c4   : > { %5469 = vmatprep.subr.bf16.mxu0 %v14457_v60  ;;  %v14526_v60 = vld [vmem:[%s18626_s4 + $0x3b4] ss:$8 sps:$4 sm:$0xff]  }
 0x2c5   : > { %6331 = vmatpush1.bf16.msra.mxu1 %v14452_v61  ;;  %v14521_v61 = vld [vmem:[%s18626_s4] ss:$8 sps:$4 sm:$0xff]  }
 0x2c6   : > { %6457 = vmatprep.subr.bf16.mxu1 %v14460_v62 }
 0x2c7   : > { %5470 = vmatpush1.bf16.msra.mxu0 %v14455_v63  ;;  %v14529_v63 = vld [vmem:[%s18626_s4 + $0x14] ss:$8 sps:$4 sm:$0xff]  }
 0x2c8   : > { %6349 = vmatmul.mubr.bf16.vlgmr.msra.gmra.mrb[64].mxu1 %v6219_v3  ;;  %5471 = vmatprep.subr.bf16.mxu0 %v14463_v1  ;;  %v14532_v1 = vld [vmem:[%s18626_s4 + $0x3c4] ss:$8 sps:$4 sm:$0xff]  }
 0x2c9   : > { %6458 = vmatpush1.bf16.msra.mxu1 %v14458_v2  ;;  %6489 = vmatprep.mubr.bf16.mxu1 %v15058_v21  ;;  %v14527_v2 = vld [vmem:[%s18626_s4 + $0x10] ss:$8 sps:$4 sm:$0xff]   ;;  %v14535_v3 = vld [vmem:[%s18626_s4 + $0x24] ss:$8 sps:$4 sm:$0xff]  }
 0x2ca   : > { %6459 = vmatprep.subr.bf16.mxu1 %v14466_v4  ;;  %v14530_v4 = vld [vmem:[%s18626_s4 + $0x3c0] ss:$8 sps:$4 sm:$0xff]  }
 0x2cb   : > { %5472 = vmatpush1.bf16.msra.mxu0 %v14461_v5  ;;  %v14538_v5 = vld [vmem:[%s18626_s4 + $0x3d4] ss:$8 sps:$4 sm:$0xff]  }
 0x2cc   : > { %5473 = vmatprep.subr.bf16.mxu0 %v14469_v6  ;;  %v14533_v6 = vld [vmem:[%s18626_s4 + $0x20] ss:$8 sps:$4 sm:$0xff]  }
 0x2cd   : > { %6460 = vmatpush1.bf16.msra.mxu1 %v14464_v7  ;;  %v14541_v7 = vld [vmem:[%s18626_s4 + $0x34] ss:$8 sps:$4 sm:$0xff]  }
 0x2ce   : > { %6461 = vmatprep.subr.bf16.mxu1 %v14472_v8  ;;  %v14536_v8 = vld [vmem:[%s18626_s4 + $0x3d0] ss:$8 sps:$4 sm:$0xff]  }
 0x2cf   : > { %5474 = vmatpush1.bf16.msra.mxu0 %v14467_v9  ;;  %v14544_v9 = vld [vmem:[%s18626_s4 + $0x3e4] ss:$8 sps:$4 sm:$0xff]  }
 0x2d0   : > { %7900 = vmatprep.subr.bf16.mxu0 %v14475_v10  ;;  %v14539_v10 = vld [vmem:[%s18626_s4 + $0x30] ss:$8 sps:$4 sm:$0xff]  }
 0x2d1   : > { %6462 = vmatpush1.bf16.msra.mxu1 %v14470_v11  ;;  %v14547_v11 = vld [vmem:[%s18626_s4 + $0x44] ss:$8 sps:$4 sm:$0xff]  }
 0x2d2   : > { %5492 = vmatmul.mubr.bf16.vlgmr.msra.gmra.mrb[0].mxu0 %v5361_v15  ;;  %6463 = vmatprep.subr.bf16.mxu1 %v14478_v13  ;;  %v14550_v13 = vld [vmem:[%s18626_s4 + $0x3f4] ss:$8 sps:$4 sm:$0xff]  }
 0x2d3   : > { %7901 = vmatpush1.bf16.msra.mxu0 %v14473_v14  ;;  %7932 = vmatprep.mubr.bf16.mxu0 %v15058_v21  ;;  %v14545_v14 = vld [vmem:[%s18626_s4 + $0x40] ss:$8 sps:$4 sm:$0xff]   ;;  %v14553_v15 = vld [vmem:[%s18626_s4 + $0x54] ss:$8 sps:$4 sm:$0xff]  }
 0x2d4   : > { %7902 = vmatprep.subr.bf16.mxu0 %v14481_v16  ;;  %v14548_v16 = vld [vmem:[%s18626_s4 + $0x3f0] ss:$8 sps:$4 sm:$0xff]  }
 0x2d5   : > { %6464 = vmatpush1.bf16.msra.mxu1 %v14476_v17  ;;  %v14556_v17 = vld [vmem:[%s18626_s4 + $0x404] ss:$8 sps:$4 sm:$0xff]  }
 0x2d6   : > { %6465 = vmatprep.subr.bf16.mxu1 %v14484_v18  ;;  %v14551_v18 = vld [vmem:[%s18626_s4 + $0x50] ss:$8 sps:$4 sm:$0xff]  }
 0x2d7   : > { %7903 = vmatpush1.bf16.msra.mxu0 %v14479_v19  ;;  %v6500_v19 = vld [vmem:[#allocation2 + $0x13] sm:$0x7] }
 0x2d8   : > { %7904 = vmatprep.subr.bf16.mxu0 %v14487_v20  ;;  %v14559_v20 = vld [vmem:[%s18626_s4 + $0x64] ss:$8 sps:$4 sm:$0xff]  }
 0x2d9   : > { %6466 = vmatpush1.bf16.msra.mxu1 %v14482_v22  ;;  %v14554_v22 = vld [vmem:[%s18626_s4 + $0x400] ss:$8 sps:$4 sm:$0xff]  }
 0x2da   : > { %6467 = vmatprep.subr.bf16.mxu1 %v14490_v23  ;;  %v6501_v23 = vpack.c.bf16 %v6500_v19, %v6500_v19  ;;  %v10077_v19 = vld [vmem:[#allocation3 + $0x8] sm:$0x6] }
 0x2db   : > { %7905 = vmatpush1.bf16.msra.mxu0 %v14485_v24  ;;  %v13483_v29 = vpop.f32.mrb[60].mxu1  ;;  %v14562_v24 = vld [vmem:[%s18626_s4 + $0x414] ss:$8 sps:$4 sm:$0xff]  }
 0x2dc   : > { %7906 = vmatprep.subr.bf16.mxu0 %v14493_v25  ;;  %v13484_v31 = vpop.f32.mrb[61].mxu1  ;;  %v14557_v25 = vld [vmem:[%s18626_s4 + $0x60] ss:$8 sps:$4 sm:$0xff]  }
 0x2dd   : > { %6468 = vmatpush1.bf16.msra.mxu1 %v14488_v26  ;;  %v13485_v33 = vadd.f32 %v13484_v31, %v13483_v29  ;;  %v13486_v34 = vpop.f32.mrb[62].mxu1  ;;  %v14565_v26 = vld [vmem:[%s18626_s4 + $0x74] ss:$8 sps:$4 sm:$0xff]   ;;  %v14563_v29 = vld [vmem:[%s18626_s4 + $0x70] ss:$8 sps:$4 sm:$0xff]  }
 0x2de   : > { %6469 = vmatprep.subr.bf16.mxu1 %v14496_v27  ;;  %v13487_v36 = vpop.f32.mrb[63].mxu1  ;;  %v14560_v27 = vld [vmem:[%s18626_s4 + $0x410] ss:$8 sps:$4 sm:$0xff]   ;;  %v14566_v31 = vld [vmem:[%s18626_s4 + $0x420] ss:$8 sps:$4 sm:$0xff]  }
 0x2df   : > { %7907 = vmatpush1.bf16.msra.mxu0 %v14491_v28  ;;  %v3217_v38 = vadd.f32 %v13485_v33, %v17020_v59  ;;  %v7802_v59 = vld [vmem:[#allocation2 + $0x11] sm:$0x7]  ;;  %v14568_v28 = vld [vmem:[%s18626_s4 + $0x424] ss:$8 sps:$4 sm:$0xff]   ;;  %v14574_v33 = vld [vmem:[%s18626_s4 + $0x434] ss:$8 sps:$4 sm:$0xff]  }
 0x2e0   : > { %7908 = vmatprep.subr.bf16.mxu0 %v14499_v30  ;;  %v7803_v62 = vpack.c.bf16 %v7802_v59, %v7802_v59  ;;  %v14571_v30 = vld [vmem:[%s18626_s4 + $0x104] ss:$8 sps:$4 sm:$0xff]   ;;  %v14569_v34 = vld [vmem:[%s18626_s4 + $0x100] ss:$8 sps:$4 sm:$0xff]   ;;  %v14577_v36 = vld [vmem:[%s18626_s4 + $0x114] ss:$8 sps:$4 sm:$0xff]  }
 0x2e1   : > { %6470 = vmatpush1.bf16.msra.mxu1 %v14494_v32  ;;  %v3218_v41 = vmul.f32 %v16723_v53, %v3217_v38  ;;  %v14506_v53 = vld [vmem:[%s18626_s4 + $0x380] ss:$8 sps:$4 sm:$0xff]   ;;  %v7784_v32 = vld [vmem:[#allocation2 + $0x10] sm:$0x7]  ;;  %v14580_v38 = vld [vmem:[%s18626_s4 + $0x444] ss:$8 sps:$4 sm:$0xff]  }
 0x2e2   : > { %6471 = vmatprep.subr.bf16.mxu1 %v14502_v35  ;;  %v7785_v35 = vpack.c.bf16 %v7784_v32, %v7784_v32 }
 0x2e3   : > { %7909 = vmatpush1.bf16.msra.mxu0 %v14497_v37  ;;  %v3219_v45 = vadd.f32 %v16735_v58, %v3218_v41  ;;  %v14509_v58 = vld [vmem:[%s18626_s4 + $0xe0] ss:$8 sps:$4 sm:$0xff]   ;;  %v14572_v37 = vld [vmem:[%s18626_s4 + $0x430] ss:$8 sps:$4 sm:$0xff]  }
 0x2e4   : > { %7910 = vmatprep.subr.bf16.mxu0 %v14505_v39  ;;  %v14575_v39 = vld [vmem:[%s18626_s4 + $0x110] ss:$8 sps:$4 sm:$0xff]   ;;  %v14578_v41 = vld [vmem:[%s18626_s4 + $0x440] ss:$8 sps:$4 sm:$0xff]  }
 0x2e5   : > { %6472 = vmatpush1.bf16.msra.mxu1 %v14500_v40  ;;  %vm3220_vm3 = vcmp.ge.f32.partialorder %v3219_v45, 0.0  ;;  %v3221_v47 = vmul.f32 0.2, %v3219_v45  ;;  %v14583_v40 = vld [vmem:[%s18626_s4 + $0x124] ss:$8 sps:$4 sm:$0xff]  }
 0x2e6   : > { %6598 = vmatprep.subr.bf16.mxu1 %v14508_v42  ;;  %v14586_v42 = vld [vmem:[%s18626_s4 + $0x454] ss:$8 sps:$4 sm:$0xff]  }
 0x2e7   : > { %7911 = vmatpush1.bf16.msra.mxu0 %v14503_v43  ;;  %v3222_v50 = vsel %vm3220_vm3, %v3219_v45, %v3221_v47  ;;  %v14581_v43 = vld [vmem:[%s18626_s4 + $0x120] ss:$8 sps:$4 sm:$0xff]   ;;  %v14584_v45 = vld [vmem:[%s18626_s4 + $0x450] ss:$8 sps:$4 sm:$0xff]   ;;  %v14595_v47 = vld [vmem:[%s18626_s4 + $0x144] ss:$8 sps:$4 sm:$0xff]  }
 0x2e8   : > { %6490 = vmatmul.mubr.bf16.vlgmr.msra.gmra.mrb[64].mxu1 %v6360_v48  ;;  %7912 = vmatprep.subr.bf16.mxu0 %v14511_v46  ;;  %3224 = vst [vmem:[#allocation2 + $0x21] sm:$0xf] %v3222_v50  ;;  %v14592_v46 = vld [vmem:[%s18626_s4 + $0x464] ss:$8 sps:$4 sm:$0xff]   ;;  %v14590_v48 = vld [vmem:[%s18626_s4 + $0x460] ss:$8 sps:$4 sm:$0xff]  }
 0x2e9   : > { %6599 = vmatpush1.bf16.msra.mxu1 %v14506_v53  ;;  %6630 = vmatprep.mubr.bf16.mxu1 %v15058_v21  ;;  %v14587_v53 = vld [vmem:[%s18626_s4 + $0x130] ss:$8 sps:$4 sm:$0xff]   ;;  %v14601_v50 = vld [vmem:[%s18626_s4 + $0x154] ss:$8 sps:$4 sm:$0xff]  }
 0x2ea   : > { %6600 = vmatprep.subr.bf16.mxu1 %v14514_v49  ;;  %v14598_v49 = vld [vmem:[%s18626_s4 + $0x474] ss:$8 sps:$4 sm:$0xff]  }
 0x2eb   : > { %7913 = vmatpush1.bf16.msra.mxu0 %v14509_v58  ;;  %v14593_v58 = vld [vmem:[%s18626_s4 + $0x140] ss:$8 sps:$4 sm:$0xff]  }
 0x2ec   : > { %7914 = vmatprep.subr.bf16.mxu0 %v14517_v51  ;;  %v14596_v51 = vld [vmem:[%s18626_s4 + $0x470] ss:$8 sps:$4 sm:$0xff]  }
 0x2ed   : > { %6601 = vmatpush1.bf16.msra.mxu1 %v14512_v52  ;;  %v14604_v52 = vld [vmem:[%s18626_s4 + $0x484] ss:$8 sps:$4 sm:$0xff]  }
 0x2ee   : > { %6602 = vmatprep.subr.bf16.mxu1 %v14520_v54  ;;  %v14599_v54 = vld [vmem:[%s18626_s4 + $0x150] ss:$8 sps:$4 sm:$0xff]  }
 0x2ef   : > { %7915 = vmatpush1.bf16.msra.mxu0 %v14515_v55  ;;  %v6641_v55 = vld [vmem:[#allocation2 + $0x18] sm:$0x7] }
 0x2f0   : > { %8021 = vmatprep.subr.bf16.mxu0 %v14523_v56  ;;  %v14607_v56 = vld [vmem:[%s18626_s4 + $0x164] ss:$8 sps:$4 sm:$0xff]   ;;  %v6642_v59 = vpack.c.bf16 %v6641_v55, %v6641_v55 }
 0x2f1   : > { %6603 = vmatpush1.bf16.msra.mxu1 %v14518_v57  ;;  %v14602_v57 = vld [vmem:[%s18626_s4 + $0x480] ss:$8 sps:$4 sm:$0xff]  }
 0x2f2   : > { %7933 = vmatmul.mubr.bf16.vlgmr.msra.gmra.mrb[4].mxu0 %v7803_v62  ;;  %6604 = vmatprep.subr.bf16.mxu1 %v14526_v60  ;;  %v14610_v60 = vld [vmem:[%s18626_s4 + $0x494] ss:$8 sps:$4 sm:$0xff]  }
 0x2f3   : > { %8022 = vmatpush1.bf16.msra.mxu0 %v14521_v61  ;;  %8053 = vmatprep.mubr.bf16.mxu0 %v15058_v21  ;;  %v14605_v61 = vld [vmem:[%s18626_s4 + $0x160] ss:$8 sps:$4 sm:$0xff]   ;;  %v14613_v62 = vld [vmem:[%s18626_s4 + $0x174] ss:$8 sps:$4 sm:$0xff]  }
 0x2f4   : > { %8023 = vmatprep.subr.bf16.mxu0 %v14529_v63  ;;  %v14608_v63 = vld [vmem:[%s18626_s4 + $0x490] ss:$8 sps:$4 sm:$0xff]  }
 0x2f5   : > { %6605 = vmatpush1.bf16.msra.mxu1 %v14524_v0  ;;  %v14616_v0 = vld [vmem:[%s18626_s4 + $0x4a4] ss:$8 sps:$4 sm:$0xff]  }
 0x2f6   : > { %6606 = vmatprep.subr.bf16.mxu1 %v14532_v1  ;;  %v14611_v1 = vld [vmem:[%s18626_s4 + $0x170] ss:$8 sps:$4 sm:$0xff]  }
 0x2f7   : > { %8024 = vmatpush1.bf16.msra.mxu0 %v14527_v2  ;;  %v14619_v2 = vld [vmem:[%s18626_s4 + $0x184] ss:$8 sps:$4 sm:$0xff]  }
 0x2f8   : > { %8025 = vmatprep.subr.bf16.mxu0 %v14535_v3  ;;  %v10057_v3 = vlaneseq }
 0x2f9   : > { %6607 = vmatpush1.bf16.msra.mxu1 %v14530_v4  ;;  %v14614_v4 = vld [vmem:[%s18626_s4 + $0x4a0] ss:$8 sps:$4 sm:$0xff]  }
 0x2fa   : > { %6608 = vmatprep.subr.bf16.mxu1 %v14538_v5  ;;  %v8062_v5 = vld [vmem:[#allocation2 + $0x12] sm:$0x7] }
 0x2fb   : > { %8026 = vmatpush1.bf16.msra.mxu0 %v14533_v6  ;;  %v14617_v6 = vld [vmem:[%s18626_s4 + $0x180] ss:$8 sps:$4 sm:$0xff]  }
 0x2fc   : > { %8027 = vmatprep.subr.bf16.mxu0 %v14541_v7  ;;  %v14622_v7 = vld [vmem:[%s18626_s4 + $0x4b4] ss:$8 sps:$4 sm:$0xff]  }
 0x2fd   : > { %6609 = vmatpush1.bf16.msra.mxu1 %v14536_v8  ;;  %v14625_v8 = vld [vmem:[%s18626_s4 + $0x194] ss:$8 sps:$4 sm:$0xff]  }
 0x2fe   : > { %6610 = vmatprep.subr.bf16.mxu1 %v14544_v9  ;;  %v10058_v9 = vshrl.u32 %v10057_v3, 7  ;;  %v10772_v3 = vld [vmem:[#allocation3 + $0x48] sm:$0x3] }
 0x2ff   : > { %8028 = vmatpush1.bf16.msra.mxu0 %v14539_v10  ;;  %v14620_v10 = vld [vmem:[%s18626_s4 + $0x4b0] ss:$8 sps:$4 sm:$0xff]  }
 0x300   : > { %8029 = vmatprep.subr.bf16.mxu0 %v14547_v11  ;;  %v10053_v11 = vld [vmem:[#allocation3] sm:$0x3] }
 0x301   : > { %6611 = vmatpush1.bf16.msra.mxu1 %v14542_v12  ;;  %v10054_v12 = vld [vmem:[#allocation3 + $0x8] sm:$0x3] }
 0x302   : > { %6612 = vmatprep.subr.bf16.mxu1 %v14550_v13  ;;  %v10055_v13 = vld [vmem:[%s18627_s5] ss:$8 sm:$0x3] }
 0x303   : > { %8030 = vmatpush1.bf16.msra.mxu0 %v14545_v14  ;;  %v8063_v14 = vpack.c.bf16 %v8062_v5, %v8062_v5 }
 0x304   : > { %8031 = vmatprep.subr.bf16.mxu0 %v14553_v15  ;;  %v14628_v15 = vld [vmem:[%s18626_s4 + $0x4c4] ss:$8 sps:$4 sm:$0xff]  }
 0x305   : > { %6613 = vmatpush1.bf16.msra.mxu1 %v14548_v16  ;;  %v17380_v16 = vsub.s32 0, %v10058_v9 }
 0x306   : > { %6739 = vmatprep.subr.bf16.mxu1 %v14556_v17  ;;  %v17382_v17 = vsub.s32 1, %v10058_v9 }
 0x307   : > { %8032 = vmatpush1.bf16.msra.mxu0 %v14551_v18  ;;  %v10076_v18 = vld [vmem:[#allocation3] sm:$0x6] }
 0x308   : > { %6631 = vmatmul.mubr.bf16.vlgmr.msra.gmra.mrb[64].mxu1 %v6501_v23  ;;  %8033 = vmatprep.subr.bf16.mxu0 %v14559_v20  ;;  %v13102_v20 = vld [vmem:[%s18627_s5 + $0x1] ss:$8 sm:$0x3]  ;;  %v10060_v23 = vrot.slane %v10055_v13, %v17380_v16 }
 0x309   : > { %6740 = vmatpush1.bf16.msra.mxu1 %v14554_v22  ;;  %6771 = vmatprep.mubr.bf16.mxu1 %v15058_v21  ;;  %v10103_v22 = vld [vmem:[#allocation3] sm:$0xc] }
 0x30a   : > { %6741 = vmatprep.subr.bf16.mxu1 %v14562_v24  ;;  %v10064_v24 = vrot.slane %v10055_v13, %v17382_v17  ;;  %v13131_v13 = vld [vmem:[%s18627_s5 + $0x16] ss:$8 sm:$0x3] }
 0x30b   : > { %8034 = vmatpush1.bf16.msra.mxu0 %v14557_v25  ;;  %v10084_v25 = vrot.slane %v13102_v20, %v17380_v16 }
 0x30c   : > { %8035 = vmatprep.subr.bf16.mxu0 %v14565_v26  ;;  %v10104_v26 = vld [vmem:[#allocation3 + $0x8] sm:$0xc] }
 0x30d   : > { %6742 = vmatpush1.bf16.msra.mxu1 %v14560_v27  ;;  %v13103_v27 = vld [vmem:[%s18627_s5 + $0x2] ss:$8 sm:$0x3] }
 0x30e   : > { %6743 = vmatprep.subr.bf16.mxu1 %v14568_v28  ;;  %v14623_v28 = vld [vmem:[%s18626_s4 + $0x190] ss:$8 sps:$4 sm:$0xff]   ;;  %v10115_v32 = vrot.slane %v13103_v27, %v17382_v17 }
 0x30f   : > { %8036 = vmatpush1.bf16.msra.mxu0 %v14563_v29  ;;  %v14626_v29 = vld [vmem:[%s18626_s4 + $0x4c0] ss:$8 sps:$4 sm:$0xff]  }
 0x310   : > { %8160 = vmatprep.subr.bf16.mxu0 %v14571_v30  ;;  %v10088_v30 = vrot.slane %v13102_v20, %v17382_v17  ;;  %v14638_v20 = vld [vmem:[%s18626_s4 + $0x4e0] ss:$8 sps:$4 sm:$0xff]  }
 0x311   : > { %6744 = vmatpush1.bf16.msra.mxu1 %v14566_v31  ;;  %v10111_v31 = vrot.slane %v13103_v27, %v17380_v16 }
 0x312   : > { %8054 = vmatmul.mubr.bf16.vlgmr.msra.gmra.mrb[4].mxu0 %v7785_v35  ;;  %6745 = vmatprep.subr.bf16.mxu1 %v14574_v33  ;;  %v14631_v33 = vld [vmem:[%s18626_s4 + $0x1a4] ss:$8 sps:$4 sm:$0xff]   ;;  %v10067_v35 = vmul.f32 %v10060_v23, %v10053_v11 }
 0x313   : > { %8161 = vmatpush1.bf16.msra.mxu0 %v14569_v34  ;;  %8192 = vmatprep.mubr.bf16.mxu0 %v15058_v21  ;;  %v14634_v34 = vld [vmem:[%s18626_s4 + $0x4d4] ss:$8 sps:$4 sm:$0xff]  }
 0x314   : > { %8162 = vmatprep.subr.bf16.mxu0 %v14577_v36  ;;  %v10068_v36 = vmul.f32 %v10064_v24, %v10054_v12  ;;  %v10819_v12 = vld [vmem:[#allocation3 + $0x48] sm:$0xc] }
 0x315   : > { %6746 = vmatpush1.bf16.msra.mxu1 %v14572_v37  ;;  %v10091_v37 = vmul.f32 %v10084_v25, %v10076_v18  ;;  %v10825_v18 = vrot.slane %v13131_v13, %v17380_v16 }
 0x316   : > { %6747 = vmatprep.subr.bf16.mxu1 %v14580_v38  ;;  %v14629_v38 = vld [vmem:[%s18626_s4 + $0x1a0] ss:$8 sps:$4 sm:$0xff]  }
 0x317   : > { %8163 = vmatpush1.bf16.msra.mxu0 %v14575_v39  ;;  %v10092_v39 = vmul.f32 %v10088_v30, %v10077_v19  ;;  %v10829_v19 = vrot.slane %v13131_v13, %v17382_v17  ;;  %v14695_v13 = vld [vmem:[%s18626_s4 + $0x250] ss:$8 sps:$4 sm:$0xff]  }
 0x318   : > { %8164 = vmatprep.subr.bf16.mxu0 %v14583_v40  ;;  %v10118_v40 = vmul.f32 %v10111_v31, %v10103_v22  ;;  %v14641_v31 = vld [vmem:[%s18626_s4 + $0x1c0] ss:$8 sps:$4 sm:$0xff]  }
 0x319   : > { %6748 = vmatpush1.bf16.msra.mxu1 %v14578_v41  ;;  %v10119_v41 = vmul.f32 %v10115_v32, %v10104_v26  ;;  %v14646_v26 = vld [vmem:[%s18626_s4 + $0x4f4] ss:$8 sps:$4 sm:$0xff]   ;;  %v10833_v30 = vmul.f32 %v10829_v19, %v10819_v12  ;;  %v14700_v12 = vld [vmem:[%s18626_s4 + $0x584] ss:$8 sps:$4 sm:$0xff]  }
 0x31a   : > { %6749 = vmatprep.subr.bf16.mxu1 %v14586_v42  ;;  %v10130_v42 = vld [vmem:[#allocation3] sm:$0x18] }
 0x31b   : > { %8165 = vmatpush1.bf16.msra.mxu0 %v14581_v43  ;;  %v13104_v43 = vld [vmem:[%s18627_s5 + $0x3] ss:$8 sm:$0x3] }
 0x31c   : > { %8166 = vmatprep.subr.bf16.mxu0 %v14589_v44  ;;  %v10070_v44 = vsel %vm10069_vm4, %v10067_v35, 0.0 }
 0x31d   : > { %6750 = vmatpush1.bf16.msra.mxu1 %v14584_v45  ;;  %v10071_v45 = vsel %vm10069_vm4, %v10068_v36, 0.0  ;;  %v10835_v36 = vsel %vm10120_vm6, %v10833_v30, 0.0  ;;  %v14718_v30 = vld [vmem:[%s18626_s4 + $0x5b4] ss:$8 sps:$4 sm:$0xff]  }
 0x31e   : > { %6751 = vmatprep.subr.bf16.mxu1 %v14592_v46  ;;  %v10094_v46 = vsel %vm10093_vm5, %v10091_v37, 0.0  ;;  %v14644_v37 = vld [vmem:[%s18626_s4 + $0x4f0] ss:$8 sps:$4 sm:$0xff]  }
 0x31f   : > { %8167 = vmatpush1.bf16.msra.mxu0 %v14587_v53  ;;  %v10138_v53 = vrot.slane %v13104_v43, %v17380_v16 }
 0x320   : > { %8168 = vmatprep.subr.bf16.mxu0 %v14595_v47  ;;  %v13130_v47 = vld [vmem:[%s18627_s5 + $0x15] ss:$8 sm:$0x3] }
 0x321   : > { %6752 = vmatpush1.bf16.msra.mxu1 %v14590_v48  ;;  %v14632_v48 = vld [vmem:[%s18626_s4 + $0x4d0] ss:$8 sps:$4 sm:$0xff]  }
 0x322   : > { %6753 = vmatprep.subr.bf16.mxu1 %v14598_v49  ;;  %v10072_v49 = vadd.f32 %v10071_v45, %v10070_v44  ;;  %v14650_v44 = vld [vmem:[%s18626_s4 + $0x500] ss:$8 sps:$4 sm:$0xff]  }
 0x323   : > { %8169 = vmatpush1.bf16.msra.mxu0 %v14593_v58  ;;  %v10095_v58 = vsel %vm10093_vm5, %v10092_v39, 0.0 }
 0x324   : > { %8170 = vmatprep.subr.bf16.mxu0 %v14601_v50  ;;  %v10121_v50 = vsel %vm10120_vm6, %v10118_v40, 0.0  ;;  %v10096_v55 = vadd.f32 %v10095_v58, %v10094_v46  ;;  %10073 = vadd.xlane.f32.xlu1 %v10072_v49  ;;  %v14652_v40 = vld [vmem:[%s18626_s4 + $0x504] ss:$8 sps:$4 sm:$0xff]   ;;  %v14658_v46 = vld [vmem:[%s18626_s4 + $0x514] ss:$8 sps:$4 sm:$0xff]  }
 0x325   : > { %6754 = vmatpush1.bf16.msra.mxu1 %v14596_v51  ;;  %v10122_v51 = vsel %vm10120_vm6, %v10119_v41, 0.0  ;;  %v14647_v41 = vld [vmem:[%s18626_s4 + $0x1d0] ss:$8 sps:$4 sm:$0xff]   ;;  %v14664_v49 = vld [vmem:[%s18626_s4 + $0x524] ss:$8 sps:$4 sm:$0xff]  }
 0x326   : > { %6880 = vmatprep.subr.bf16.mxu1 %v14604_v52  ;;  %v10131_v52 = vld [vmem:[#allocation3 + $0x8] sm:$0x18]  ;;  %10097 = vadd.xlane.f32.xlu0 %v10096_v55  ;;  %v14665_v55 = vld [vmem:[%s18626_s4 + $0x200] ss:$8 sps:$4 sm:$0xff]  }
 0x327   : > { %8171 = vmatpush1.bf16.msra.mxu0 %v14599_v54  ;;  %v14637_v54 = vld [vmem:[%s18626_s4 + $0x1b4] ss:$8 sps:$4 sm:$0xff]   ;;  %v14659_v58 = vld [vmem:[%s18626_s4 + $0x1f0] ss:$8 sps:$4 sm:$0xff]  }
 0x328   : > { %6772 = vmatmul.mubr.bf16.vlgmr.msra.gmra.mrb[64].mxu1 %v6642_v59  ;;  %8172 = vmatprep.subr.bf16.mxu0 %v14607_v56  ;;  %v10142_v56 = vrot.slane %v13104_v43, %v17382_v17  ;;  %v10793_v59 = vld [vmem:[#allocation3 + $0x40] sm:$0x6]  ;;  %v14655_v43 = vld [vmem:[%s18626_s4 + $0x1e4] ss:$8 sps:$4 sm:$0xff]  }
 0x329   : > { %6881 = vmatpush1.bf16.msra.mxu1 %v14602_v57  ;;  %6912 = vmatprep.mubr.bf16.mxu1 %v15058_v21  ;;  %v10145_v57 = vmul.f32 %v10138_v53, %v10130_v42  ;;  %v6782_v42 = vld [vmem:[#allocation2 + $0x19] sm:$0x7]  ;;  %v14653_v53 = vld [vmem:[%s18626_s4 + $0x1e0] ss:$8 sps:$4 sm:$0xff]  }
 0x32a   : > { %6882 = vmatprep.subr.bf16.mxu1 %v14610_v60  ;;  %v10794_v60 = vld [vmem:[#allocation3 + $0x48] sm:$0x6]  ;;  %v6783_v45 = vpack.c.bf16 %v6782_v42, %v6782_v42 }
 0x32b   : > { %8173 = vmatpush1.bf16.msra.mxu0 %v14605_v61  ;;  %v14635_v61 = vld [vmem:[%s18626_s4 + $0x1b0] ss:$8 sps:$4 sm:$0xff]   ;;  %v10148_v5 = vsel %vm10147_vm7, %v10145_v57, 0.0  ;;  %v14673_v57 = vld [vmem:[%s18626_s4 + $0x214] ss:$8 sps:$4 sm:$0xff]  }
 0x32c   : > { %8174 = vmatprep.subr.bf16.mxu0 %v14613_v62  ;;  %v14640_v62 = vld [vmem:[%s18626_s4 + $0x4e4] ss:$8 sps:$4 sm:$0xff]   ;;  %v14728_v42 = vld [vmem:[%s18626_s4 + $0x5d0] ss:$8 sps:$4 sm:$0xff]  }
 0x32d   : > { %6883 = vmatpush1.bf16.msra.mxu1 %v14608_v63  ;;  %v10123_v63 = vadd.f32 %v10122_v51, %v10121_v50  ;;  %v14667_v50 = vld [vmem:[%s18626_s4 + $0x204] ss:$8 sps:$4 sm:$0xff]   ;;  %v14662_v51 = vld [vmem:[%s18626_s4 + $0x520] ss:$8 sps:$4 sm:$0xff]  }
 0x32e   : > { %6884 = vmatprep.subr.bf16.mxu1 %v14616_v0  ;;  %v10800_v0 = vrot.slane %v13130_v47, %v17380_v16 }
 0x32f   : > { %8175 = vmatpush1.bf16.msra.mxu0 %v14611_v1  ;;  %v10804_v1 = vrot.slane %v13130_v47, %v17382_v17  ;;  %10124 = vadd.xlane.f32.xlu1 %v10123_v63  ;;  %v14661_v47 = vld [vmem:[%s18626_s4 + $0x1f4] ss:$8 sps:$4 sm:$0xff]   ;;  %v14674_v63 = vld [vmem:[%s18626_s4 + $0x540] ss:$8 sps:$4 sm:$0xff]  }
 0x330   : > { %8301 = vmatprep.subr.bf16.mxu0 %v14619_v2  ;;  %v10771_v2 = vld [vmem:[#allocation3 + $0x40] sm:$0x3] }
 0x331   : > { %6885 = vmatpush1.bf16.msra.mxu1 %v14614_v4  ;;  %v10146_v4 = vmul.f32 %v10142_v56, %v10131_v52  ;;  %v10808_v9 = vmul.f32 %v10804_v1, %v10794_v60  ;;  %v8203_v52 = vld [vmem:[#allocation2 + $0x13] sm:$0x7]  ;;  %v14676_v60 = vld [vmem:[%s18626_s4 + $0x544] ss:$8 sps:$4 sm:$0xff]   ;;  %v14677_v1 = vld [vmem:[%s18626_s4 + $0x220] ss:$8 sps:$4 sm:$0xff]  }
 0x332   : > { %8193 = vmatmul.mubr.bf16.vlgmr.msra.gmra.mrb[4].mxu0 %v8063_v14  ;;  %6886 = vmatprep.subr.bf16.mxu1 %v14622_v7  ;;  %v10818_v7 = vld [vmem:[#allocation3 + $0x40] sm:$0xc]  ;;  %v14643_v14 = vld [vmem:[%s18626_s4 + $0x1c4] ss:$8 sps:$4 sm:$0xff]   ;;  %v8204_v56 = vpack.c.bf16 %v8203_v52, %v8203_v52 }
 0x333   : > { %8302 = vmatpush1.bf16.msra.mxu0 %v14617_v6  ;;  %8333 = vmatprep.mubr.bf16.mxu0 %v15058_v21  ;;  %v13129_v6 = vld [vmem:[%s18627_s5 + $0x14] ss:$8 sm:$0x3]  ;;  %v10810_v24 = vsel %vm10093_vm5, %v10808_v9, 0.0  ;;  %v14689_v9 = vld [vmem:[%s18626_s4 + $0x240] ss:$8 sps:$4 sm:$0xff]  }
 0x334   : > { %8303 = vmatprep.subr.bf16.mxu0 %v14625_v8  ;;  %v10807_v8 = vmul.f32 %v10800_v0, %v10793_v59  ;;  %v10782_v11 = vrot.slane %v13129_v6, %v17382_v17  ;;  %v14668_v59 = vld [vmem:[%s18626_s4 + $0x530] ss:$8 sps:$4 sm:$0xff]   ;;  %v14682_v0 = vld [vmem:[%s18626_s4 + $0x554] ss:$8 sps:$4 sm:$0xff]   ;;  %v14751_v52 = vld [vmem:[%s18626_s4 + $0x2e4] ss:$8 sps:$4 sm:$0xff]  }
 0x335   : > { %6887 = vmatpush1.bf16.msra.mxu1 %v14620_v10  ;;  %v10778_v10 = vrot.slane %v13129_v6, %v17380_v16  ;;  %v14691_v6 = vld [vmem:[%s18626_s4 + $0x244] ss:$8 sps:$4 sm:$0xff]  }
 0x336   : > { %6888 = vmatprep.subr.bf16.mxu1 %v14628_v15  ;;  %v10149_v15 = vsel %vm10147_vm7, %v10146_v4, 0.0  ;;  %v10809_v23 = vsel %vm10093_vm5, %v10807_v8, 0.0  ;;  %v14688_v4 = vld [vmem:[%s18626_s4 + $0x564] ss:$8 sps:$4 sm:$0xff]   ;;  %v14694_v8 = vld [vmem:[%s18626_s4 + $0x574] ss:$8 sps:$4 sm:$0xff]  }
 0x337   : > { %8304 = vmatpush1.bf16.msra.mxu0 %v14623_v28  ;;  %v10150_v22 = vadd.f32 %v10149_v15, %v10148_v5  ;;  %v10785_v25 = vmul.f32 %v10778_v10, %v10771_v2  ;;  %v10811_v27 = vadd.f32 %v10810_v24, %v10809_v23  ;;  %v10786_v28 = vmul.f32 %v10782_v11, %v10772_v3  ;;  %v14685_v2 = vld [vmem:[%s18626_s4 + $0x234] ss:$8 sps:$4 sm:$0xff]   ;;  %v14680_v3 = vld [vmem:[%s18626_s4 + $0x550] ss:$8 sps:$4 sm:$0xff]   ;;  %v14703_v15 = vld [vmem:[%s18626_s4 + $0x264] ss:$8 sps:$4 sm:$0xff]  }
 0x338   : > { %8305 = vmatprep.subr.bf16.mxu0 %v14631_v33  ;;  %v14649_v33 = vld [vmem:[%s18626_s4 + $0x1d4] ss:$8 sps:$4 sm:$0xff]   ;;  %v14683_v5 = vld [vmem:[%s18626_s4 + $0x230] ss:$8 sps:$4 sm:$0xff]  }
 0x339   : > { %6889 = vmatpush1.bf16.msra.mxu1 %v14626_v29  ;;  %v10832_v29 = vmul.f32 %v10825_v18, %v10818_v7  ;;  %10151 = vadd.xlane.f32.xlu0 %v10150_v22  ;;  %v10787_v32 = vsel %vm10069_vm4, %v10785_v25, 0.0  ;;  %v14686_v7 = vld [vmem:[%s18626_s4 + $0x560] ss:$8 sps:$4 sm:$0xff]   ;;  %v14697_v10 = vld [vmem:[%s18626_s4 + $0x254] ss:$8 sps:$4 sm:$0xff]  }
 0x33a   : > { %6890 = vmatprep.subr.bf16.mxu1 %v14634_v34  ;;  %v10788_v34 = vsel %vm10069_vm4, %v10786_v28, 0.0  ;;  %10812 = vadd.xlane.f32.xlu1 %v10811_v27  ;;  %v14692_v11 = vld [vmem:[%s18626_s4 + $0x570] ss:$8 sps:$4 sm:$0xff]   ;;  %v14698_v18 = vld [vmem:[%s18626_s4 + $0x580] ss:$8 sps:$4 sm:$0xff]  }
 0x33b   : > { %8306 = vmatpush1.bf16.msra.mxu0 %v14629_v38  ;;  %v10834_v35 = vsel %vm10120_vm6, %v10832_v29, 0.0  ;;  %v10789_v38 = vadd.f32 %v10788_v34, %v10787_v32  ;;  %v14701_v22 = vld [vmem:[%s18626_s4 + $0x260] ss:$8 sps:$4 sm:$0xff]   ;;  %v14709_v23 = vld [vmem:[%s18626_s4 + $0x274] ss:$8 sps:$4 sm:$0xff]  }
 0x33c   : > { %8307 = vmatprep.subr.bf16.mxu0 %v14637_v54  ;;  %v10836_v39 = vadd.f32 %v10835_v36, %v10834_v35  ;;  %v14670_v54 = vld [vmem:[%s18626_s4 + $0x534] ss:$8 sps:$4 sm:$0xff]   ;;  %v14704_v24 = vld [vmem:[%s18626_s4 + $0x590] ss:$8 sps:$4 sm:$0xff]   ;;  %v14712_v25 = vld [vmem:[%s18626_s4 + $0x5a4] ss:$8 sps:$4 sm:$0xff]  }
 0x33d   : > { %6891 = vmatpush1.bf16.msra.mxu1 %v14632_v48  ;;  %10790 = vadd.xlane.f32.xlu0 %v10789_v38  ;;  %v14656_v48 = vld [vmem:[%s18626_s4 + $0x510] ss:$8 sps:$4 sm:$0xff]   ;;  %v14715_v27 = vld [vmem:[%s18626_s4 + $0x284] ss:$8 sps:$4 sm:$0xff]   ;;  %v14710_v28 = vld [vmem:[%s18626_s4 + $0x5a0] ss:$8 sps:$4 sm:$0xff]  }
 0x33e   : > { %6892 = vmatprep.subr.bf16.mxu1 %v14640_v62  ;;  %10837 = vadd.xlane.f32.xlu1 %v10836_v39  ;;  %v14679_v62 = vld [vmem:[%s18626_s4 + $0x224] ss:$8 sps:$4 sm:$0xff]   ;;  %v8344_v29 = vld [vmem:[#allocation2 + $0x18] sm:$0x7]  ;;  %v14722_v38 = vld [vmem:[%s18626_s4 + $0x5c0] ss:$8 sps:$4 sm:$0xff]  }
 0x33f   : > { %8308 = vmatpush1.bf16.msra.mxu0 %v14635_v61  ;;  %v14671_v61 = vld [vmem:[%s18626_s4 + $0x210] ss:$8 sps:$4 sm:$0xff]   ;;  %v8345_v32 = vpack.c.bf16 %v8344_v29, %v8344_v29  ;;  %v14724_v35 = vld [vmem:[%s18626_s4 + $0x5c4] ss:$8 sps:$4 sm:$0xff]   ;;  %v14730_v39 = vld [vmem:[%s18626_s4 + $0x5d4] ss:$8 sps:$4 sm:$0xff]  }
 0x340   : > { %8309 = vmatprep.subr.bf16.mxu0 %v14643_v14  ;;  %v6923_v14 = vld [vmem:[#allocation2 + $0x1a] sm:$0x7]  ;;  %v14799_v29 = vld [vmem:[%s18626_s4 + $0x364] ss:$8 sps:$4 sm:$0xff]  }
 0x341   : > { %6893 = vmatpush1.bf16.msra.mxu1 %v14638_v20  ;;  %v6924_v19 = vpack.c.bf16 %v6923_v14, %v6923_v14  ;;  %v14706_v20 = vld [vmem:[%s18626_s4 + $0x594] ss:$8 sps:$4 sm:$0xff]   ;;  %v14716_v34 = vld [vmem:[%s18626_s4 + $0x5b0] ss:$8 sps:$4 sm:$0xff]  }
 0x342   : > { %6894 = vmatprep.subr.bf16.mxu1 %v14646_v26  ;;  %v14707_v26 = vld [vmem:[%s18626_s4 + $0x270] ss:$8 sps:$4 sm:$0xff]  }
 0x343   : > { %8310 = vmatpush1.bf16.msra.mxu0 %v14641_v31  ;;  %v14713_v31 = vld [vmem:[%s18626_s4 + $0x280] ss:$8 sps:$4 sm:$0xff]   ;;  %v14719_v36 = vld [vmem:[%s18626_s4 + $0x290] ss:$8 sps:$4 sm:$0xff]  }
 0x344   : > { %8311 = vmatprep.subr.bf16.mxu0 %v14649_v33  ;;  %v14721_v33 = vld [vmem:[%s18626_s4 + $0x294] ss:$8 sps:$4 sm:$0xff]   ;;  %v14776_v14 = vld [vmem:[%s18626_s4 + $0x650] ss:$8 sps:$4 sm:$0xff]  }
 0x345   : > { %6895 = vmatpush1.bf16.msra.mxu1 %v14644_v37  ;;  %v14727_v37 = vld [vmem:[%s18626_s4 + $0x2a4] ss:$8 sps:$4 sm:$0xff]  }
 0x346   : > { %7021 = vmatprep.subr.bf16.mxu1 %v14652_v40  ;;  %v14725_v40 = vld [vmem:[%s18626_s4 + $0x2a0] ss:$8 sps:$4 sm:$0xff]  }
 0x347   : > { %8312 = vmatpush1.bf16.msra.mxu0 %v14647_v41  ;;  %v14733_v41 = vld [vmem:[%s18626_s4 + $0x2b4] ss:$8 sps:$4 sm:$0xff]  }
 0x348   : > { %6913 = vmatmul.mubr.bf16.vlgmr.msra.gmra.mrb[64].mxu1 %v6783_v45  ;;  %8313 = vmatprep.subr.bf16.mxu0 %v14655_v43  ;;  %v14736_v43 = vld [vmem:[%s18626_s4 + $0x5e4] ss:$8 sps:$4 sm:$0xff]  }
 0x349   : > { %7022 = vmatpush1.bf16.msra.mxu1 %v14650_v44  ;;  %7053 = vmatprep.mubr.bf16.mxu1 %v15058_v21  ;;  %v14731_v44 = vld [vmem:[%s18626_s4 + $0x2b0] ss:$8 sps:$4 sm:$0xff]   ;;  %v14739_v45 = vld [vmem:[%s18626_s4 + $0x2c4] ss:$8 sps:$4 sm:$0xff]  }
 0x34a   : > { %7023 = vmatprep.subr.bf16.mxu1 %v14658_v46  ;;  %v14734_v46 = vld [vmem:[%s18626_s4 + $0x5e0] ss:$8 sps:$4 sm:$0xff]  }
 0x34b   : > { %8314 = vmatpush1.bf16.msra.mxu0 %v14653_v53  ;;  %v14742_v53 = vld [vmem:[%s18626_s4 + $0x5f4] ss:$8 sps:$4 sm:$0xff]  }
 0x34c   : > { %8315 = vmatprep.subr.bf16.mxu0 %v14661_v47  ;;  %v14737_v47 = vld [vmem:[%s18626_s4 + $0x2c0] ss:$8 sps:$4 sm:$0xff]  }
 0x34d   : > { %7024 = vmatpush1.bf16.msra.mxu1 %v14656_v48  ;;  %v14745_v48 = vld [vmem:[%s18626_s4 + $0x2d4] ss:$8 sps:$4 sm:$0xff]  }
 0x34e   : > { %7025 = vmatprep.subr.bf16.mxu1 %v14664_v49  ;;  %v14740_v49 = vld [vmem:[%s18626_s4 + $0x5f0] ss:$8 sps:$4 sm:$0xff]  }
 0x34f   : > { %8316 = vmatpush1.bf16.msra.mxu0 %v14659_v58  ;;  %v14748_v58 = vld [vmem:[%s18626_s4 + $0x604] ss:$8 sps:$4 sm:$0xff]  }
 0x350   : > { %8442 = vmatprep.subr.bf16.mxu0 %v14667_v50  ;;  %v14743_v50 = vld [vmem:[%s18626_s4 + $0x2d0] ss:$8 sps:$4 sm:$0xff]  }
 0x351   : > { %7026 = vmatpush1.bf16.msra.mxu1 %v14662_v51  ;;  %v7064_v51 = vld [vmem:[#allocation2 + $0x1b] sm:$0x7] }
 0x352   : > { %8334 = vmatmul.mubr.bf16.vlgmr.msra.gmra.mrb[4].mxu0 %v8204_v56  ;;  %7027 = vmatprep.subr.bf16.mxu1 %v14670_v54  ;;  %v14746_v54 = vld [vmem:[%s18626_s4 + $0x600] ss:$8 sps:$4 sm:$0xff]   ;;  %v14754_v56 = vld [vmem:[%s18626_s4 + $0x614] ss:$8 sps:$4 sm:$0xff]  }
 0x353   : > { %8443 = vmatpush1.bf16.msra.mxu0 %v14665_v55  ;;  %8474 = vmatprep.mubr.bf16.mxu0 %v15058_v21  ;;  %v7065_v55 = vpack.c.bf16 %v7064_v51, %v7064_v51  ;;  %v8626_v51 = vld [vmem:[#allocation2 + $0x1a] sm:$0x7] }
 0x354   : > { %8444 = vmatprep.subr.bf16.mxu0 %v14673_v57  ;;  %v14749_v57 = vld [vmem:[%s18626_s4 + $0x2e0] ss:$8 sps:$4 sm:$0xff]  }
 0x355   : > { %7028 = vmatpush1.bf16.msra.mxu1 %v14668_v59  ;;  %v14757_v59 = vld [vmem:[%s18626_s4 + $0x2f4] ss:$8 sps:$4 sm:$0xff]  }
 0x356   : > { %7029 = vmatprep.subr.bf16.mxu1 %v14676_v60  ;;  %v14752_v60 = vld [vmem:[%s18626_s4 + $0x610] ss:$8 sps:$4 sm:$0xff]  }
 0x357   : > { %8445 = vmatpush1.bf16.msra.mxu0 %v14671_v61  ;;  %v14760_v61 = vld [vmem:[%s18626_s4 + $0x624] ss:$8 sps:$4 sm:$0xff]  }
 0x358   : > { %8446 = vmatprep.subr.bf16.mxu0 %v14679_v62  ;;  %v14755_v62 = vld [vmem:[%s18626_s4 + $0x2f0] ss:$8 sps:$4 sm:$0xff]  }
 0x359   : > { %7030 = vmatpush1.bf16.msra.mxu1 %v14674_v63  ;;  %v14763_v63 = vld [vmem:[%s18626_s4 + $0x304] ss:$8 sps:$4 sm:$0xff]  }
 0x35a   : > { %7031 = vmatprep.subr.bf16.mxu1 %v14682_v0  ;;  %v14758_v0 = vld [vmem:[%s18626_s4 + $0x620] ss:$8 sps:$4 sm:$0xff]  }
 0x35b   : > { %8447 = vmatpush1.bf16.msra.mxu0 %v14677_v1  ;;  %v8485_v1 = vld [vmem:[#allocation2 + $0x19] sm:$0x7] }
 0x35c   : > { %8448 = vmatprep.subr.bf16.mxu0 %v14685_v2  ;;  %v14766_v2 = vld [vmem:[%s18626_s4 + $0x634] ss:$8 sps:$4 sm:$0xff]  }
 0x35d   : > { %7032 = vmatpush1.bf16.msra.mxu1 %v14680_v3  ;;  %v14761_v3 = vld [vmem:[%s18626_s4 + $0x300] ss:$8 sps:$4 sm:$0xff]  }
 0x35e   : > { %7033 = vmatprep.subr.bf16.mxu1 %v14688_v4  ;;  %v8486_v4 = vpack.c.bf16 %v8485_v1, %v8485_v1 }
 0x35f   : > { %8449 = vmatpush1.bf16.msra.mxu0 %v14683_v5  ;;  %v14769_v5 = vld [vmem:[%s18626_s4 + $0x314] ss:$8 sps:$4 sm:$0xff]  }
 0x360   : > { %8450 = vmatprep.subr.bf16.mxu0 %v14691_v6  ;;  %v14764_v6 = vld [vmem:[%s18626_s4 + $0x630] ss:$8 sps:$4 sm:$0xff]  }
 0x361   : > { %7034 = vmatpush1.bf16.msra.mxu1 %v14686_v7  ;;  %v14772_v7 = vld [vmem:[%s18626_s4 + $0x644] ss:$8 sps:$4 sm:$0xff]  }
 0x362   : > { %7035 = vmatprep.subr.bf16.mxu1 %v14694_v8  ;;  %v14767_v8 = vld [vmem:[%s18626_s4 + $0x310] ss:$8 sps:$4 sm:$0xff]  }
 0x363   : > { %8451 = vmatpush1.bf16.msra.mxu0 %v14689_v9  ;;  %v14775_v9 = vld [vmem:[%s18626_s4 + $0x324] ss:$8 sps:$4 sm:$0xff]  }
 0x364   : > { %8452 = vmatprep.subr.bf16.mxu0 %v14697_v10  ;;  %v14770_v10 = vld [vmem:[%s18626_s4 + $0x640] ss:$8 sps:$4 sm:$0xff]  }
 0x365   : > { %7036 = vmatpush1.bf16.msra.mxu1 %v14692_v11  ;;  %v14778_v11 = vld [vmem:[%s18626_s4 + $0x654] ss:$8 sps:$4 sm:$0xff]  }
 0x366   : > { %7162 = vmatprep.subr.bf16.mxu1 %v14700_v12  ;;  %v14773_v12 = vld [vmem:[%s18626_s4 + $0x320] ss:$8 sps:$4 sm:$0xff]  }
 0x367   : > { %8453 = vmatpush1.bf16.msra.mxu0 %v14695_v13  ;;  %v14781_v13 = vld [vmem:[%s18626_s4 + $0x334] ss:$8 sps:$4 sm:$0xff]  }
 0x368   : > { %7054 = vmatmul.mubr.bf16.vlgmr.msra.gmra.mrb[64].mxu1 %v6924_v19  ;;  %8454 = vmatprep.subr.bf16.mxu0 %v14703_v15  ;;  %v14784_v15 = vld [vmem:[%s18626_s4 + $0x664] ss:$8 sps:$4 sm:$0xff]  }
 0x369   : > { %7163 = vmatpush1.bf16.msra.mxu1 %v14698_v18  ;;  %7194 = vmatprep.mubr.bf16.mxu1 %v15058_v21  ;;  %v14779_v18 = vld [vmem:[%s18626_s4 + $0x330] ss:$8 sps:$4 sm:$0xff]   ;;  %v14787_v19 = vld [vmem:[%s18626_s4 + $0x344] ss:$8 sps:$4 sm:$0xff]  }
 0x36a   : > { %7164 = vmatprep.subr.bf16.mxu1 %v14706_v20  ;;  %v14782_v20 = vld [vmem:[%s18626_s4 + $0x660] ss:$8 sps:$4 sm:$0xff]  }
 0x36b   : > { %8455 = vmatpush1.bf16.msra.mxu0 %v14701_v22  ;;  %v14790_v22 = vld [vmem:[%s18626_s4 + $0x674] ss:$8 sps:$4 sm:$0xff]  }
 0x36c   : > { %8456 = vmatprep.subr.bf16.mxu0 %v14709_v23  ;;  %v14785_v23 = vld [vmem:[%s18626_s4 + $0x340] ss:$8 sps:$4 sm:$0xff]  }
 0x36d   : > { %7165 = vmatpush1.bf16.msra.mxu1 %v14704_v24  ;;  %v14793_v24 = vld [vmem:[%s18626_s4 + $0x354] ss:$8 sps:$4 sm:$0xff]  }
 0x36e   : > { %7166 = vmatprep.subr.bf16.mxu1 %v14712_v25  ;;  %v14788_v25 = vld [vmem:[%s18626_s4 + $0x670] ss:$8 sps:$4 sm:$0xff]  }
 0x36f   : > { %8457 = vmatpush1.bf16.msra.mxu0 %v14707_v26  ;;  %v14796_v26 = vld [vmem:[%s18626_s4 + $0x684] ss:$8 sps:$4 sm:$0xff]  }
 0x370   : > { %8583 = vmatprep.subr.bf16.mxu0 %v14715_v27  ;;  %v14791_v27 = vld [vmem:[%s18626_s4 + $0x350] ss:$8 sps:$4 sm:$0xff]  }
 0x371   : > { %7167 = vmatpush1.bf16.msra.mxu1 %v14710_v28  ;;  %v7205_v28 = vld [vmem:[#allocation2 + $0x20] sm:$0x7] }
 0x372   : > { %8475 = vmatmul.mubr.bf16.vlgmr.msra.gmra.mrb[4].mxu0 %v8345_v32  ;;  %7168 = vmatprep.subr.bf16.mxu1 %v14718_v30 }
 0x373   : > { %8584 = vmatpush1.bf16.msra.mxu0 %v14713_v31  ;;  %8615 = vmatprep.mubr.bf16.mxu0 %v15058_v21  ;;  %v14794_v31 = vld [vmem:[%s18626_s4 + $0x680] ss:$8 sps:$4 sm:$0xff]  }
 0x374   : > { %8585 = vmatprep.subr.bf16.mxu0 %v14721_v33 }
 0x375   : > { %7169 = vmatpush1.bf16.msra.mxu1 %v14716_v34  ;;  %v7206_v34 = vpack.c.bf16 %v7205_v28, %v7205_v28  ;;  %v14823_v28 = vld [vmem:[%s18626_s4 + $0x3a4] ss:$8 sps:$4 sm:$0xff]  }
 0x376   : > { %7170 = vmatprep.subr.bf16.mxu1 %v14724_v35  ;;  %v14802_v35 = vld [vmem:[%s18626_s4 + $0x694] ss:$8 sps:$4 sm:$0xff]  }
 0x377   : > { %8586 = vmatpush1.bf16.msra.mxu0 %v14719_v36 }
 0x378   : > { %8587 = vmatprep.subr.bf16.mxu0 %v14727_v37 }
 0x379   : > { %7171 = vmatpush1.bf16.msra.mxu1 %v14722_v38  ;;  %v14797_v38 = vld [vmem:[%s18626_s4 + $0x360] ss:$8 sps:$4 sm:$0xff]  }
 0x37a   : > { %7172 = vmatprep.subr.bf16.mxu1 %v14730_v39 }
 0x37b   : > { %8588 = vmatpush1.bf16.msra.mxu0 %v14725_v40 }
 0x37c   : > { %8589 = vmatprep.subr.bf16.mxu0 %v14733_v41  ;;  %v14805_v41 = vld [vmem:[%s18626_s4 + $0x374] ss:$8 sps:$4 sm:$0xff]  }
 0x37d   : > { %7173 = vmatpush1.bf16.msra.mxu1 %v14728_v42 }
 0x37e   : > { %7174 = vmatprep.subr.bf16.mxu1 %v14736_v43 }
 0x37f   : > { %8590 = vmatpush1.bf16.msra.mxu0 %v14731_v44  ;;  %v14800_v44 = vld [vmem:[%s18626_s4 + $0x690] ss:$8 sps:$4 sm:$0xff]  }
 0x380   : > { %8591 = vmatprep.subr.bf16.mxu0 %v14739_v45 }
 0x381   : > { %7175 = vmatpush1.bf16.msra.mxu1 %v14734_v46  ;;  %v14803_v46 = vld [vmem:[%s18626_s4 + $0x370] ss:$8 sps:$4 sm:$0xff]  }
 0x382   : > { %7176 = vmatprep.subr.bf16.mxu1 %v14742_v53  ;;  %v14808_v53 = vld [vmem:[%s18626_s4 + $0x6a4] ss:$8 sps:$4 sm:$0xff]  }
 0x383   : > { %8592 = vmatpush1.bf16.msra.mxu0 %v14737_v47  ;;  %v14811_v47 = vld [vmem:[%s18626_s4 + $0x384] ss:$8 sps:$4 sm:$0xff]  }
 0x384   : > { %8593 = vmatprep.subr.bf16.mxu0 %v14745_v48  ;;  %v13119_v48 = vld [vmem:[%s18627_s5 + $0x2] ss:$8 sm:$0x3] }
 0x385   : > { %7177 = vmatpush1.bf16.msra.mxu1 %v14740_v49  ;;  %v13118_v49 = vld [vmem:[%s18627_s5 + $0x1] ss:$8 sm:$0x3]  ;;  %v10537_v1 = vrot.slane %v13119_v48, %v17382_v17 }
 0x386   : > { %7303 = vmatprep.subr.bf16.mxu1 %v14748_v58  ;;  %v13120_v58 = vld [vmem:[%s18627_s5 + $0x3] ss:$8 sm:$0x3] }
 0x387   : > { %8594 = vmatpush1.bf16.msra.mxu0 %v14743_v50  ;;  %v14806_v50 = vld [vmem:[%s18626_s4 + $0x6a0] ss:$8 sps:$4 sm:$0xff]  }
 0x388   : > { %7195 = vmatmul.mubr.bf16.vlgmr.msra.gmra.mrb[64].mxu1 %v7065_v55  ;;  %8595 = vmatprep.subr.bf16.mxu0 %v14751_v52  ;;  %v14814_v52 = vld [vmem:[%s18626_s4 + $0x6b4] ss:$8 sps:$4 sm:$0xff]   ;;  %v17825_v55 = vld [vmem:[%s18627_s5 + $0x5] ss:$8 sm:$0x3] }
 0x389   : > { %7304 = vmatpush1.bf16.msra.mxu1 %v14746_v54  ;;  %7335 = vmatprep.mubr.bf16.mxu1 %v15058_v21  ;;  %v10481_v54 = vld [vmem:[%s18627_s5] ss:$8 sm:$0x3] }
 0x38a   : > { %7305 = vmatprep.subr.bf16.mxu1 %v14754_v56  ;;  %v14809_v56 = vld [vmem:[%s18626_s4 + $0x380] ss:$8 sps:$4 sm:$0xff]  }
 0x38b   : > { %8596 = vmatpush1.bf16.msra.mxu0 %v14749_v57  ;;  %v10533_v57 = vrot.slane %v13119_v48, %v17380_v16 }
 0x38c   : > { %8597 = vmatprep.subr.bf16.mxu0 %v14757_v59  ;;  %v10508_v59 = vrot.slane %v13118_v49, %v17380_v16 }
 0x38d   : > { %7306 = vmatpush1.bf16.msra.mxu1 %v14752_v60  ;;  %v10558_v60 = vrot.slane %v13120_v58, %v17380_v16 }
 0x38e   : > { %7307 = vmatprep.subr.bf16.mxu1 %v14760_v61  ;;  %v17836_v61 = vld [vmem:[%s18627_s5 + $0x4] ss:$8 sm:$0x3] }
 0x38f   : > { %8598 = vmatpush1.bf16.msra.mxu0 %v14755_v62  ;;  %v8627_v62 = vpack.c.bf16 %v8626_v51, %v8626_v51  ;;  %v14829_v51 = vld [vmem:[%s18626_s4 + $0x3b4] ss:$8 sps:$4 sm:$0xff]  }
 0x390   : > { %8724 = vmatprep.subr.bf16.mxu0 %v14763_v63  ;;  %v14812_v63 = vld [vmem:[%s18626_s4 + $0x6b0] ss:$8 sps:$4 sm:$0xff]  }
 0x391   : > { %7308 = vmatpush1.bf16.msra.mxu1 %v14758_v0  ;;  %v14817_v0 = vld [vmem:[%s18626_s4 + $0x394] ss:$8 sps:$4 sm:$0xff]  }
 0x392   : > { %8616 = vmatmul.mubr.bf16.vlgmr.msra.gmra.mrb[4].mxu0 %v8486_v4  ;;  %7309 = vmatprep.subr.bf16.mxu1 %v14766_v2  ;;  %v10512_v2 = vrot.slane %v13118_v49, %v17382_v17  ;;  %v14815_v4 = vld [vmem:[%s18626_s4 + $0x390] ss:$8 sps:$4 sm:$0xff]  }
 0x393   : > { %8725 = vmatpush1.bf16.msra.mxu0 %v14761_v3  ;;  %8756 = vmatprep.mubr.bf16.mxu0 %v15058_v21  ;;  %v10562_v3 = vrot.slane %v13120_v58, %v17382_v17 }
 0x394   : > { %8726 = vmatprep.subr.bf16.mxu0 %v14769_v5  ;;  %v14820_v5 = vld [vmem:[%s18626_s4 + $0x6c4] ss:$8 sps:$4 sm:$0xff]  }
 0x395   : > { %7310 = vmatpush1.bf16.msra.mxu1 %v14764_v6  ;;  %v10486_v6 = vrot.slane %v10481_v54, %v17380_v16 }
 0x396   : > { %7311 = vmatprep.subr.bf16.mxu1 %v14772_v7  ;;  %v10490_v7 = vrot.slane %v10481_v54, %v17382_v17 }
 0x397   : > { %8727 = vmatpush1.bf16.msra.mxu0 %v14767_v8  ;;  %v10188_v8 = vrot.slane %v17825_v55, %v17380_v16 }
 0x398   : > { %8728 = vmatprep.subr.bf16.mxu0 %v14775_v9  ;;  %v17860_v9 = vld [vmem:[%s18627_s5 + $0x6] ss:$8 sm:$0x3] }
 0x399   : > { %7312 = vmatpush1.bf16.msra.mxu1 %v14770_v10 }
 0x39a   : > { %7313 = vmatprep.subr.bf16.mxu1 %v14778_v11 }
 0x39b   : > { %8729 = vmatpush1.bf16.msra.mxu0 %v14773_v12 }
 0x39c   : > { %8730 = vmatprep.subr.bf16.mxu0 %v14781_v13  ;;  %v10192_v13 = vrot.slane %v17825_v55, %v17382_v17 }
 0x39d   : > { %7314 = vmatpush1.bf16.msra.mxu1 %v14776_v14  ;;  %v10165_v14 = vrot.slane %v17836_v61, %v17380_v16 }
 0x39e   : > { %7315 = vmatprep.subr.bf16.mxu1 %v14784_v15  ;;  %v10169_v15 = vrot.slane %v17836_v61, %v17382_v17 }
 0x39f   : > { %8731 = vmatpush1.bf16.msra.mxu0 %v14779_v18 }
 0x3a0   : > { %8732 = vmatprep.subr.bf16.mxu0 %v14787_v19 }
 0x3a1   : > { %7316 = vmatpush1.bf16.msra.mxu1 %v14782_v20 }
 0x3a2   : > { %7317 = vmatprep.subr.bf16.mxu1 %v14790_v22 }
 0x3a3   : > { %8733 = vmatpush1.bf16.msra.mxu0 %v14785_v23 }
 0x3a4   : > { %8734 = vmatprep.subr.bf16.mxu0 %v14793_v24 }
 0x3a5   : > { %v5493_v30 = vpop.f32.mrb[0].mxu0  ;;  %7318 = vmatpush1.bf16.msra.mxu1 %v14788_v25  ;;  %v14818_v25 = vld [vmem:[%s18626_s4 + $0x6c0] ss:$8 sps:$4 sm:$0xff]  }
 0x3a6   : > { %vm5502_vm8 = vcmp.ge.f32.partialorder %v5493_v30, 0.0  ;;  %v5504_v32 = vmul.f32 0.2, %v5493_v30  ;;  %v5495_v33 = vpop.f32.mrb[1].mxu0  ;;  %7444 = vmatprep.subr.bf16.mxu1 %v14796_v26 }
 0x3a7   : > { %vm5503_vm9 = vcmp.ge.f32.partialorder %v5495_v33, 0.0  ;;  %v5505_v36 = vmul.f32 0.2, %v5495_v33  ;;  %v5497_v37 = vpop.f32.mrb[2].mxu0  ;;  %8735 = vmatpush1.bf16.msra.mxu0 %v14791_v27 }
 0x3a8   : > { %v5506_v39 = vsel %vm5502_vm8, %v5493_v30, %v5504_v32  ;;  %v5498_v40 = vpop.f32.mrb[3].mxu0  ;;  %7336 = vmatmul.mubr.bf16.vlgmr.msra.gmra.mrb[64].mxu1 %v7206_v34  ;;  %8736 = vmatprep.subr.bf16.mxu0 %v14799_v29  ;;  %v10214_v32 = vrot.slane %v17860_v9, %v17380_v16 }
 0x3a9   : > { %v5510_v42 = vrot.slane %v5506_v39, 7  ;;  %v5507_v43 = vsel %vm5503_vm9, %v5495_v33, %v5505_v36  ;;  %7445 = vmatpush1.bf16.msra.mxu1 %v14794_v31  ;;  %7476 = vmatprep.mubr.bf16.mxu1 %v15058_v21  ;;  %v10218_v39 = vrot.slane %v17860_v9, %v17382_v17  ;;  %v13108_v40 = vld [vmem:[%s18627_s5 + $0x7] ss:$8 sm:$0x3] }
 0x3aa   : > { %v5511_v45 = vrot.slane %v5507_v43, 7  ;;  %7446 = vmatprep.subr.bf16.mxu1 %v14802_v35  ;;  %v14821_v35 = vld [vmem:[%s18626_s4 + $0x3a0] ss:$8 sps:$4 sm:$0xff]   ;;  %v10240_v61 = vrot.slane %v13108_v40, %v17380_v16 }
 0x3ab   : > { %5515 = vst [vmem:[#allocation3 + $0x10] sm:$0xe] %v5510_v42  ;;  %8737 = vmatpush1.bf16.msra.mxu0 %v14797_v38 }
 0x3ac   : > { %5516 = vst [vmem:[#allocation3 + $0x18] sm:$0xe] %v5511_v45  ;;  %8738 = vmatprep.subr.bf16.mxu0 %v14805_v41 }
 0x3ad   : > { %7447 = vmatpush1.bf16.msra.mxu1 %v14800_v44 }
 0x3ae   : > { %7448 = vmatprep.subr.bf16.mxu1 %v14808_v53 }
 0x3af   : > { %8739 = vmatpush1.bf16.msra.mxu0 %v14803_v46 }
 0x3b0   : > { %8865 = vmatprep.subr.bf16.mxu0 %v14811_v47  ;;  %v14826_v47 = vld [vmem:[%s18626_s4 + $0x6d4] ss:$8 sps:$4 sm:$0xff]  }
 0x3b1   : > { %7449 = vmatpush1.bf16.msra.mxu1 %v14806_v50 }
 0x3b2   : > { %8757 = vmatmul.mubr.bf16.vlgmr.msra.gmra.mrb[4].mxu0 %v8627_v62  ;;  %7450 = vmatprep.subr.bf16.mxu1 %v14814_v52  ;;  %v10526_v10 = vld [vmem:[#allocation3 + $0x10] sm:$0xc]  ;;  %v10479_v30 = vld [vmem:[#allocation3 + $0x10] sm:$0x3]  ;;  %v10244_v62 = vrot.slane %v13108_v40, %v17382_v17  ;;  %v14851_v40 = vld [vmem:[%s18626_s4 + $0x3f0] ss:$8 sps:$4 sm:$0xff]  }
 0x3b3   : > { %v10501_v11 = vld [vmem:[#allocation3 + $0x10] sm:$0x6]  ;;  %v10551_v12 = vld [vmem:[#allocation3 + $0x10] sm:$0x18]  ;;  %8866 = vmatpush1.bf16.msra.mxu0 %v14809_v56  ;;  %v10527_v18 = vld [vmem:[#allocation3 + $0x18] sm:$0xc]  ;;  %v10540_v19 = vmul.f32 %v10533_v57, %v10526_v10  ;;  %8897 = vmatprep.mubr.bf16.mxu0 %v15058_v21  ;;  %v10493_v36 = vmul.f32 %v10486_v6, %v10479_v30 }
 0x3b4   : > { %v10502_v20 = vld [vmem:[#allocation3 + $0x18] sm:$0x6]  ;;  %v10515_v22 = vmul.f32 %v10508_v59, %v10501_v11  ;;  %v10552_v23 = vld [vmem:[#allocation3 + $0x18] sm:$0x18]  ;;  %v10565_v24 = vmul.f32 %v10558_v60, %v10551_v12  ;;  %8867 = vmatprep.subr.bf16.mxu0 %v14817_v0  ;;  %v10541_v26 = vmul.f32 %v10537_v1, %v10527_v18  ;;  %v10180_v37 = vld [vmem:[#allocation3 + $0x10] sm:$0x6] }
 0x3b5   : > { %v10516_v27 = vmul.f32 %v10512_v2, %v10502_v20  ;;  %v10566_v29 = vmul.f32 %v10562_v3, %v10552_v23  ;;  %v10480_v31 = vld [vmem:[#allocation3 + $0x18] sm:$0x3]  ;;  %7451 = vmatpush1.bf16.msra.mxu1 %v14812_v63  ;;  %v10542_v33 = vsel %vm10120_vm6, %v10540_v19, 0.0  ;;  %v10157_v45 = vld [vmem:[#allocation3 + $0x10] sm:$0x3]  ;;  %v10495_v49 = vsel %vm10069_vm4, %v10493_v36, 0.0 }
 0x3b6   : > { %v10517_v34 = vsel %vm10093_vm5, %v10515_v22, 0.0  ;;  %v10181_v38 = vld [vmem:[#allocation3 + $0x18] sm:$0x6]  ;;  %7452 = vmatprep.subr.bf16.mxu1 %v14820_v5  ;;  %v10543_v41 = vsel %vm10120_vm6, %v10541_v26, 0.0  ;;  %v10567_v43 = vsel %vm10147_vm7, %v10565_v24, 0.0  ;;  %v10494_v44 = vmul.f32 %v10490_v7, %v10480_v31 }
 0x3b7   : > { %v10518_v42 = vsel %vm10093_vm5, %v10516_v27, 0.0  ;;  %8868 = vmatpush1.bf16.msra.mxu0 %v14815_v4  ;;  %v10544_v46 = vadd.f32 %v10543_v41, %v10542_v33  ;;  %v10568_v48 = vsel %vm10147_vm7, %v10566_v29, 0.0  ;;  %v10158_v58 = vld [vmem:[#allocation3 + $0x18] sm:$0x3]  ;;  %v10195_v52 = vmul.f32 %v10188_v8, %v10180_v37  ;;  %v10206_v56 = vld [vmem:[#allocation3 + $0x10] sm:$0xc] }
 0x3b8   : > { %v10519_v53 = vadd.f32 %v10518_v42, %v10517_v34  ;;  %8869 = vmatprep.subr.bf16.mxu0 %v14823_v28  ;;  %v10496_v50 = vsel %vm10069_vm4, %v10494_v44, 0.0  ;;  %v10196_v54 = vmul.f32 %v10192_v13, %v10181_v38  ;;  %v10172_v55 = vmul.f32 %v10165_v14, %v10157_v45  ;;  %v10207_v59 = vld [vmem:[#allocation3 + $0x18] sm:$0xc]  ;;  %v14824_v60 = vld [vmem:[%s18626_s4 + $0x6d0] ss:$8 sps:$4 sm:$0xff]  }
 0x3b9   : > { %10545 = vadd.xlane.f32.xlu1 %v10544_v46  ;;  %v10173_v57 = vmul.f32 %v10169_v15, %v10158_v58  ;;  %7453 = vmatpush1.bf16.msra.mxu1 %v14818_v25  ;;  %v10569_v63 = vadd.f32 %v10568_v48, %v10567_v43  ;;  %v10497_v0 = vadd.f32 %v10496_v50, %v10495_v49  ;;  %v14827_v1 = vld [vmem:[%s18626_s4 + $0x3b0] ss:$8 sps:$4 sm:$0xff]   ;;  %v14832_v2 = vld [vmem:[%s18626_s4 + $0x6e4] ss:$8 sps:$4 sm:$0xff]   ;;  %v10197_v3 = vsel %vm10093_vm5, %v10195_v52, 0.0 }
 0x3ba   : > { %10520 = vadd.xlane.f32.xlu0 %v10519_v53  ;;  %7454 = vmatprep.subr.bf16.mxu1 %v14826_v47  ;;  %v10221_v4 = vmul.f32 %v10214_v32, %v10206_v56  ;;  %v10198_v5 = vsel %vm10093_vm5, %v10196_v54, 0.0  ;;  %v10174_v6 = vsel %vm10069_vm4, %v10172_v55, 0.0  ;;  %v14835_v8 = vld [vmem:[%s18626_s4 + $0x3c4] ss:$8 sps:$4 sm:$0xff]   ;;  %v10222_v9 = vmul.f32 %v10218_v39, %v10207_v59  ;;  %v14830_v12 = vld [vmem:[%s18626_s4 + $0x6e0] ss:$8 sps:$4 sm:$0xff]  }
 0x3bb   : > { %8870 = vmatpush1.bf16.msra.mxu0 %v14821_v35  ;;  %v10175_v7 = vsel %vm10069_vm4, %v10173_v57, 0.0  ;;  %v10232_v10 = vld [vmem:[#allocation3 + $0x10] sm:$0x18]  ;;  %v10233_v11 = vld [vmem:[#allocation3 + $0x18] sm:$0x18]  ;;  %v10199_v13 = vadd.f32 %v10198_v5, %v10197_v3 }
 0x3bc   : > { %8871 = vmatprep.subr.bf16.mxu0 %v14829_v51  ;;  %v10176_v14 = vadd.f32 %v10175_v7, %v10174_v6  ;;  %v14833_v15 = vld [vmem:[%s18626_s4 + $0x3c0] ss:$8 sps:$4 sm:$0xff]   ;;  %v17926_v18 = vld [vmem:[%s18626_s4 + $0x6f4] ss:$8 sps:$4 sm:$0xff]   ;;  %v10223_v19 = vsel %vm10120_vm6, %v10221_v4, 0.0  ;;  %v10224_v20 = vsel %vm10120_vm6, %v10222_v9, 0.0  ;;  %v10247_v23 = vmul.f32 %v10240_v61, %v10232_v10 }
 0x3bd   : > { %10570 = vadd.xlane.f32.xlu1 %v10569_v63  ;;  %7455 = vmatpush1.bf16.msra.mxu1 %v14824_v60  ;;  %v14841_v22 = vld [vmem:[%s18626_s4 + $0x3d4] ss:$8 sps:$4 sm:$0xff]   ;;  %v10248_v24 = vmul.f32 %v10244_v62, %v10233_v11  ;;  %v17936_v25 = vld [vmem:[%s18626_s4 + $0x6f0] ss:$8 sps:$4 sm:$0xff]   ;;  %v10225_v26 = vadd.f32 %v10224_v20, %v10223_v19  ;;  %v17945_v28 = vld [vmem:[%s18626_s4 + $0x704] ss:$8 sps:$4 sm:$0xff]  }
 0x3be   : > { %10498 = vadd.xlane.f32.xlu0 %v10497_v0  ;;  %7456 = vmatprep.subr.bf16.mxu1 %v14832_v2  ;;  %v14839_v27 = vld [vmem:[%s18626_s4 + $0x3d0] ss:$8 sps:$4 sm:$0xff]   ;;  %v7346_v29 = vld [vmem:[#allocation2 + $0x21] sm:$0x7]  ;;  %v10249_v30 = vsel %vm10147_vm7, %v10247_v23, 0.0 }
 0x3bf   : > { %8872 = vmatpush1.bf16.msra.mxu0 %v14827_v1  ;;  %v10250_v31 = vsel %vm10147_vm7, %v10248_v24, 0.0  ;;  %v14847_v32 = vld [vmem:[%s18626_s4 + $0x3e4] ss:$8 sps:$4 sm:$0xff]   ;;  %v17956_v33 = vld [vmem:[%s18626_s4 + $0x700] ss:$8 sps:$4 sm:$0xff]   ;;  %v7347_v34 = vpack.c.bf16 %v7346_v29, %v7346_v29 }
 0x3c0   : > { %8873 = vmatprep.subr.bf16.mxu0 %v14835_v8  ;;  %v10251_v35 = vadd.f32 %v10250_v31, %v10249_v30  ;;  %v14845_v36 = vld [vmem:[%s18626_s4 + $0x3e0] ss:$8 sps:$4 sm:$0xff]   ;;  %v17965_v37 = vld [vmem:[%s18626_s4 + $0x714] ss:$8 sps:$4 sm:$0xff]   ;;  %v17974_v39 = vld [vmem:[%s18626_s4 + $0x710] ss:$8 sps:$4 sm:$0xff]  }
 0x3c1   : > { %10200 = vadd.xlane.f32.xlu1 %v10199_v13  ;;  %7457 = vmatpush1.bf16.msra.mxu1 %v14830_v12  ;;  %v14853_v38 = vld [vmem:[%s18626_s4 + $0x3f4] ss:$8 sps:$4 sm:$0xff]   ;;  %v17984_v41 = vld [vmem:[%s18626_s4 + $0x724] ss:$8 sps:$4 sm:$0xff]   ;;  %v17993_v44 = vld [vmem:[%s18626_s4 + $0x720] ss:$8 sps:$4 sm:$0xff]  }
 0x3c2   : > { %10177 = vadd.xlane.f32.xlu0 %v10176_v14  ;;  %7458 = vmatprep.subr.bf16.mxu1 %v17926_v18  ;;  %v14859_v42 = vld [vmem:[%s18626_s4 + $0x404] ss:$8 sps:$4 sm:$0xff]   ;;  %v8767_v43 = vld [vmem:[#allocation2 + $0x1b] sm:$0x7]  ;;  %v14857_v45 = vld [vmem:[%s18626_s4 + $0x400] ss:$8 sps:$4 sm:$0xff]  }
 0x3c3   : > { %8874 = vmatpush1.bf16.msra.mxu0 %v14833_v15  ;;  %v18002_v46 = vld [vmem:[%s18626_s4 + $0x734] ss:$8 sps:$4 sm:$0xff]   ;;  %v8768_v53 = vpack.c.bf16 %v8767_v43, %v8767_v43  ;;  %v18011_v48 = vld [vmem:[%s18626_s4 + $0x730] ss:$8 sps:$4 sm:$0xff]   ;;  %v18020_v58 = vld [vmem:[%s18626_s4 + $0x744] ss:$8 sps:$4 sm:$0xff]  }
 0x3c4   : > { %8875 = vmatprep.subr.bf16.mxu0 %v14841_v22  ;;  %v14865_v47 = vld [vmem:[%s18626_s4 + $0x414] ss:$8 sps:$4 sm:$0xff]   ;;  %v14863_v49 = vld [vmem:[%s18626_s4 + $0x410] ss:$8 sps:$4 sm:$0xff]   ;;  %v14871_v50 = vld [vmem:[%s18626_s4 + $0x424] ss:$8 sps:$4 sm:$0xff]  }
 0x3c5   : > { %7459 = vmatpush1.bf16.msra.mxu1 %v17936_v25  ;;  %v18030_v51 = vld [vmem:[%s18626_s4 + $0x740] ss:$8 sps:$4 sm:$0xff]   ;;  %v18039_v54 = vld [vmem:[%s18626_s4 + $0x754] ss:$8 sps:$4 sm:$0xff]   ;;  %v18048_v56 = vld [vmem:[%s18626_s4 + $0x750] ss:$8 sps:$4 sm:$0xff]  }
 0x3c6   : > { %10226 = vadd.xlane.f32.xlu0 %v10225_v26  ;;  %7585 = vmatprep.subr.bf16.mxu1 %v17945_v28  ;;  %v14869_v52 = vld [vmem:[%s18626_s4 + $0x420] ss:$8 sps:$4 sm:$0xff]   ;;  %v14877_v55 = vld [vmem:[%s18626_s4 + $0x434] ss:$8 sps:$4 sm:$0xff]   ;;  %v14875_v57 = vld [vmem:[%s18626_s4 + $0x430] ss:$8 sps:$4 sm:$0xff]  }
 0x3c7   : > { %8876 = vmatpush1.bf16.msra.mxu0 %v14839_v27  ;;  %v18057_v59 = vld [vmem:[%s18626_s4 + $0x764] ss:$8 sps:$4 sm:$0xff]   ;;  %v18066_v61 = vld [vmem:[%s18626_s4 + $0x760] ss:$8 sps:$4 sm:$0xff]   ;;  %v18075_v63 = vld [vmem:[%s18626_s4 + $0x774] ss:$8 sps:$4 sm:$0xff]  }
 0x3c8   : > { %8877 = vmatprep.subr.bf16.mxu0 %v14847_v32  ;;  %7477 = vmatmul.mubr.bf16.vlgmr.msra.gmra.mrb[64].mxu1 %v7347_v34  ;;  %v14883_v60 = vld [vmem:[%s18626_s4 + $0x444] ss:$8 sps:$4 sm:$0xff]   ;;  %v14881_v62 = vld [vmem:[%s18626_s4 + $0x440] ss:$8 sps:$4 sm:$0xff]   ;;  %v14889_v0 = vld [vmem:[%s18626_s4 + $0x454] ss:$8 sps:$4 sm:$0xff]  }
 0x3c9   : > { %7586 = vmatpush1.bf16.msra.mxu1 %v17956_v33  ;;  %7617 = vmatprep.mubr.bf16.mxu1 %v15058_v21  ;;  %v18084_v1 = vld [vmem:[%s18626_s4 + $0x770] ss:$8 sps:$4 sm:$0xff]   ;;  %v18093_v3 = vld [vmem:[%s18626_s4 + $0x784] ss:$8 sps:$4 sm:$0xff]   ;;  %v18102_v6 = vld [vmem:[%s18626_s4 + $0x780] ss:$8 sps:$4 sm:$0xff]  }
 0x3ca   : > { %10252 = vadd.xlane.f32.xlu0 %v10251_v35  ;;  %7587 = vmatprep.subr.bf16.mxu1 %v17965_v37  ;;  %v14887_v2 = vld [vmem:[%s18626_s4 + $0x450] ss:$8 sps:$4 sm:$0xff]   ;;  %v7487_v4 = vld [vmem:[#allocation2 + $0x22] sm:$0x7]  ;;  %v18111_v9 = vld [vmem:[%s18626_s4 + $0x794] ss:$8 sps:$4 sm:$0xff]  }
 0x3cb   : > { %8878 = vmatpush1.bf16.msra.mxu0 %v14845_v36  ;;  %v14895_v5 = vld [vmem:[%s18626_s4 + $0x464] ss:$8 sps:$4 sm:$0xff]   ;;  %v7488_v7 = vpack.c.bf16 %v7487_v4, %v7487_v4  ;;  %v14893_v8 = vld [vmem:[%s18626_s4 + $0x460] ss:$8 sps:$4 sm:$0xff]   ;;  %v14901_v10 = vld [vmem:[%s18626_s4 + $0x474] ss:$8 sps:$4 sm:$0xff]  }
 0x3cc   : > { %8879 = vmatprep.subr.bf16.mxu0 %v14853_v38  ;;  %v18120_v11 = vld [vmem:[%s18626_s4 + $0x790] ss:$8 sps:$4 sm:$0xff]   ;;  %v18130_v13 = vld [vmem:[%s18626_s4 + $0x7a4] ss:$8 sps:$4 sm:$0xff]   ;;  %v8908_v15 = vld [vmem:[#allocation2 + $0x20] sm:$0x7] }
 0x3cd   : > { %7588 = vmatpush1.bf16.msra.mxu1 %v17974_v39  ;;  %v14899_v12 = vld [vmem:[%s18626_s4 + $0x470] ss:$8 sps:$4 sm:$0xff]   ;;  %v14907_v14 = vld [vmem:[%s18626_s4 + $0x484] ss:$8 sps:$4 sm:$0xff]   ;;  %v18139_v19 = vld [vmem:[%s18626_s4 + $0x7a0] ss:$8 sps:$4 sm:$0xff]   ;;  %v8909_v23 = vpack.c.bf16 %v8908_v15, %v8908_v15 }
 0x3ce   : > { %7589 = vmatprep.subr.bf16.mxu1 %v17984_v41  ;;  %v14905_v20 = vld [vmem:[%s18626_s4 + $0x480] ss:$8 sps:$4 sm:$0xff]   ;;  %v18148_v22 = vld [vmem:[%s18626_s4 + $0x7b4] ss:$8 sps:$4 sm:$0xff]   ;;  %v18157_v26 = vld [vmem:[%s18626_s4 + $0x7b0] ss:$8 sps:$4 sm:$0xff]  }
 0x3cf   : > { %8880 = vmatpush1.bf16.msra.mxu0 %v14851_v40  ;;  %v14913_v24 = vld [vmem:[%s18626_s4 + $0x494] ss:$8 sps:$4 sm:$0xff]   ;;  %v14911_v27 = vld [vmem:[%s18626_s4 + $0x490] ss:$8 sps:$4 sm:$0xff]   ;;  %v18166_v29 = vld [vmem:[%s18626_s4 + $0x7c4] ss:$8 sps:$4 sm:$0xff]  }
 0x3d0   : > { %9006 = vmatprep.subr.bf16.mxu0 %v14859_v42  ;;  %v14919_v30 = vld [vmem:[%s18626_s4 + $0x4a4] ss:$8 sps:$4 sm:$0xff]   ;;  %v18176_v31 = vld [vmem:[%s18626_s4 + $0x7c0] ss:$8 sps:$4 sm:$0xff]   ;;  %v18185_v34 = vld [vmem:[%s18626_s4 + $0x7d4] ss:$8 sps:$4 sm:$0xff]  }
 0x3d1   : > { %7590 = vmatpush1.bf16.msra.mxu1 %v17993_v44  ;;  %v14917_v32 = vld [vmem:[%s18626_s4 + $0x4a0] ss:$8 sps:$4 sm:$0xff]   ;;  %v14925_v35 = vld [vmem:[%s18626_s4 + $0x4b4] ss:$8 sps:$4 sm:$0xff]   ;;  %v18194_v36 = vld [vmem:[%s18626_s4 + $0x7d0] ss:$8 sps:$4 sm:$0xff]  }
 0x3d2   : > { %8898 = vmatmul.mubr.bf16.vlgmr.msra.gmra.mrb[4].mxu0 %v8768_v53  ;;  %7591 = vmatprep.subr.bf16.mxu1 %v18002_v46  ;;  %v14923_v38 = vld [vmem:[%s18626_s4 + $0x4b0] ss:$8 sps:$4 sm:$0xff]   ;;  %v18203_v40 = vld [vmem:[%s18626_s4 + $0x7e4] ss:$8 sps:$4 sm:$0xff]   ;;  %v18212_v43 = vld [vmem:[%s18626_s4 + $0x7e0] ss:$8 sps:$4 sm:$0xff]  }
 0x3d3   : > { %9007 = vmatpush1.bf16.msra.mxu0 %v14857_v45  ;;  %9038 = vmatprep.mubr.bf16.mxu0 %v15058_v21  ;;  %v14931_v42 = vld [vmem:[%s18626_s4 + $0x4c4] ss:$8 sps:$4 sm:$0xff]   ;;  %v14929_v45 = vld [vmem:[%s18626_s4 + $0x4c0] ss:$8 sps:$4 sm:$0xff]   ;;  %v18221_v53 = vld [vmem:[%s18626_s4 + $0x7f4] ss:$8 sps:$4 sm:$0xff]  }
 0x3d4   : > { %9008 = vmatprep.subr.bf16.mxu0 %v14865_v47  ;;  %v14937_v47 = vld [vmem:[%s18626_s4 + $0x4d4] ss:$8 sps:$4 sm:$0xff]   ;;  %v9049_v4 = vld [vmem:[#allocation2 + $0x21] sm:$0x7] }
 0x3d5   : > { %7592 = vmatpush1.bf16.msra.mxu1 %v18011_v48  ;;  %v14955_v15 = vld [vmem:[%s18626_s4 + $0x534] ss:$8 sps:$4 sm:$0xff]  }
 0x3d6   : > { %7593 = vmatprep.subr.bf16.mxu1 %v18020_v58 }
 0x3d7   : > { %9009 = vmatpush1.bf16.msra.mxu0 %v14863_v49  ;;  %v18230_v49 = vld [vmem:[%s18626_s4 + $0x7f0] ss:$8 sps:$4 sm:$0xff]  }
 0x3d8   : > { %9010 = vmatprep.subr.bf16.mxu0 %v14871_v50  ;;  %v14935_v50 = vld [vmem:[%s18626_s4 + $0x4d0] ss:$8 sps:$4 sm:$0xff]  }
 0x3d9   : > { %7594 = vmatpush1.bf16.msra.mxu1 %v18030_v51 }
 0x3da   : > { %7595 = vmatprep.subr.bf16.mxu1 %v18039_v54 }
 0x3db   : > { %9011 = vmatpush1.bf16.msra.mxu0 %v14869_v52  ;;  %v7628_v52 = vld [vmem:[#allocation2 + $0x23] sm:$0x7] }
 0x3dc   : > { %9012 = vmatprep.subr.bf16.mxu0 %v14877_v55  ;;  %v14940_v55 = vld [vmem:[%s18626_s4 + $0x4e4] ss:$8 sps:$4 sm:$0xff]  }
 0x3dd   : > { %7596 = vmatpush1.bf16.msra.mxu1 %v18048_v56 }
 0x3de   : > { %7597 = vmatprep.subr.bf16.mxu1 %v18057_v59 }
 0x3df   : > { %9013 = vmatpush1.bf16.msra.mxu0 %v14875_v57  ;;  %v7629_v57 = vpack.c.bf16 %v7628_v52, %v7628_v52 }
 0x3e0   : > { %9014 = vmatprep.subr.bf16.mxu0 %v14883_v60  ;;  %v14938_v60 = vld [vmem:[%s18626_s4 + $0x4e0] ss:$8 sps:$4 sm:$0xff]  }
 0x3e1   : > { %7598 = vmatpush1.bf16.msra.mxu1 %v18066_v61 }
 0x3e2   : > { %7599 = vmatprep.subr.bf16.mxu1 %v18075_v63 }
 0x3e3   : > { %9015 = vmatpush1.bf16.msra.mxu0 %v14881_v62  ;;  %v14943_v62 = vld [vmem:[%s18626_s4 + $0x4f4] ss:$8 sps:$4 sm:$0xff]  }
 0x3e4   : > { %9016 = vmatprep.subr.bf16.mxu0 %v14889_v0  ;;  %v14941_v0 = vld [vmem:[%s18626_s4 + $0x4f0] ss:$8 sps:$4 sm:$0xff]  }
 0x3e5   : > { %7600 = vmatpush1.bf16.msra.mxu1 %v18084_v1 }
 0x3e6   : > { %7726 = vmatprep.subr.bf16.mxu1 %v18093_v3 }
 0x3e7   : > { %9017 = vmatpush1.bf16.msra.mxu0 %v14887_v2  ;;  %v14946_v2 = vld [vmem:[%s18626_s4 + $0x504] ss:$8 sps:$4 sm:$0xff]  }
 0x3e8   : > { %9018 = vmatprep.subr.bf16.mxu0 %v14895_v5  ;;  %7618 = vmatmul.mubr.bf16.vlgmr.msra.gmra.mrb[64].mxu1 %v7488_v7  ;;  %v14944_v5 = vld [vmem:[%s18626_s4 + $0x500] ss:$8 sps:$4 sm:$0xff]   ;;  %v9050_v7 = vpack.c.bf16 %v9049_v4, %v9049_v4  ;;  %v14982_v4 = vld [vmem:[%s18626_s4 + $0x5c4] ss:$8 sps:$4 sm:$0xff]  }
 0x3e9   : > { %7727 = vmatpush1.bf16.msra.mxu1 %v18102_v6  ;;  %7758 = vmatprep.mubr.bf16.mxu1 %v15058_v21 }
 0x3ea   : > { %7728 = vmatprep.subr.bf16.mxu1 %v18111_v9 }
 0x3eb   : > { %9019 = vmatpush1.bf16.msra.mxu0 %v14893_v8  ;;  %v14949_v8 = vld [vmem:[%s18626_s4 + $0x514] ss:$8 sps:$4 sm:$0xff]  }
 0x3ec   : > { %9020 = vmatprep.subr.bf16.mxu0 %v14901_v10  ;;  %v14947_v10 = vld [vmem:[%s18626_s4 + $0x510] ss:$8 sps:$4 sm:$0xff]  }
 0x3ed   : > { %7729 = vmatpush1.bf16.msra.mxu1 %v18120_v11 }
 0x3ee   : > { %7730 = vmatprep.subr.bf16.mxu1 %v18130_v13 }
 0x3ef   : > { %9021 = vmatpush1.bf16.msra.mxu0 %v14899_v12  ;;  %v14952_v12 = vld [vmem:[%s18626_s4 + $0x524] ss:$8 sps:$4 sm:$0xff]  }
 0x3f0   : > { %9147 = vmatprep.subr.bf16.mxu0 %v14907_v14  ;;  %v14950_v14 = vld [vmem:[%s18626_s4 + $0x520] ss:$8 sps:$4 sm:$0xff]  }
 0x3f1   : > { %7731 = vmatpush1.bf16.msra.mxu1 %v18139_v19 }
 0x3f2   : > { %9039 = vmatmul.mubr.bf16.vlgmr.msra.gmra.mrb[4].mxu0 %v8909_v23  ;;  %7732 = vmatprep.subr.bf16.mxu1 %v18148_v22  ;;  %v14958_v23 = vld [vmem:[%s18626_s4 + $0x544] ss:$8 sps:$4 sm:$0xff]  }
 0x3f3   : > { %9148 = vmatpush1.bf16.msra.mxu0 %v14905_v20  ;;  %9179 = vmatprep.mubr.bf16.mxu0 %v15058_v21  ;;  %v14953_v20 = vld [vmem:[%s18626_s4 + $0x530] ss:$8 sps:$4 sm:$0xff]  }
 0x3f4   : > { %9149 = vmatprep.subr.bf16.mxu0 %v14913_v24  ;;  %v14956_v24 = vld [vmem:[%s18626_s4 + $0x540] ss:$8 sps:$4 sm:$0xff]  }
 0x3f5   : > { %7733 = vmatpush1.bf16.msra.mxu1 %v18157_v26 }
 0x3f6   : > { %7734 = vmatprep.subr.bf16.mxu1 %v18166_v29 }
 0x3f7   : > { %9150 = vmatpush1.bf16.msra.mxu0 %v14911_v27  ;;  %v14961_v27 = vld [vmem:[%s18626_s4 + $0x554] ss:$8 sps:$4 sm:$0xff]  }
 0x3f8   : > { %9151 = vmatprep.subr.bf16.mxu0 %v14919_v30  ;;  %v14959_v30 = vld [vmem:[%s18626_s4 + $0x550] ss:$8 sps:$4 sm:$0xff]  }
 0x3f9   : > { %7735 = vmatpush1.bf16.msra.mxu1 %v18176_v31 }
 0x3fa   : > { %7736 = vmatprep.subr.bf16.mxu1 %v18185_v34 }
 0x3fb   : > { %9152 = vmatpush1.bf16.msra.mxu0 %v14917_v32  ;;  %v14964_v32 = vld [vmem:[%s18626_s4 + $0x564] ss:$8 sps:$4 sm:$0xff]  }
 0x3fc   : > { %9153 = vmatprep.subr.bf16.mxu0 %v14925_v35  ;;  %v14962_v35 = vld [vmem:[%s18626_s4 + $0x560] ss:$8 sps:$4 sm:$0xff]  }
 0x3fd   : > { %7737 = vmatpush1.bf16.msra.mxu1 %v18194_v36 }
 0x3fe   : > { %7738 = vmatprep.subr.bf16.mxu1 %v18203_v40 }
 0x3ff   : > { %9154 = vmatpush1.bf16.msra.mxu0 %v14923_v38  ;;  %v14967_v38 = vld [vmem:[%s18626_s4 + $0x574] ss:$8 sps:$4 sm:$0xff]  }
 0x400   : > { %9155 = vmatprep.subr.bf16.mxu0 %v14931_v42  ;;  %v14965_v42 = vld [vmem:[%s18626_s4 + $0x570] ss:$8 sps:$4 sm:$0xff]  }
 0x401   : > { %7739 = vmatpush1.bf16.msra.mxu1 %v18212_v43 }
 0x402   : > { %7740 = vmatprep.subr.bf16.mxu1 %v18221_v53 }
 0x403   : > { %9156 = vmatpush1.bf16.msra.mxu0 %v14929_v45  ;;  %v14970_v45 = vld [vmem:[%s18626_s4 + $0x584] ss:$8 sps:$4 sm:$0xff]  }
 0x404   : > { %9157 = vmatprep.subr.bf16.mxu0 %v14937_v47  ;;  %v9190_v47 = vld [vmem:[#allocation2 + $0x22] sm:$0x7] }
 0x405   : > { %7741 = vmatpush1.bf16.msra.mxu1 %v18230_v49  ;;  %v9191_v52 = vpack.c.bf16 %v9190_v47, %v9190_v47  ;;  %v15006_v47 = vld [vmem:[%s18626_s4 + $0x644] ss:$8 sps:$4 sm:$0xff]  }
 0x407   : > { %9158 = vmatpush1.bf16.msra.mxu0 %v14935_v50  ;;  %v14968_v50 = vld [vmem:[%s18626_s4 + $0x580] ss:$8 sps:$4 sm:$0xff]  }
 0x408   : > { %9159 = vmatprep.subr.bf16.mxu0 %v14940_v55  ;;  %7759 = vmatmul.mubr.bf16.vlgmr.msra.gmra.mrb[64].mxu1 %v7629_v57  ;;  %v14973_v55 = vld [vmem:[%s18626_s4 + $0x594] ss:$8 sps:$4 sm:$0xff]   ;;  %v14971_v57 = vld [vmem:[%s18626_s4 + $0x590] ss:$8 sps:$4 sm:$0xff]  }
 0x40b   : > { %9160 = vmatpush1.bf16.msra.mxu0 %v14938_v60  ;;  %v14976_v60 = vld [vmem:[%s18626_s4 + $0x5a4] ss:$8 sps:$4 sm:$0xff]  }
 0x40c   : > { %9161 = vmatprep.subr.bf16.mxu0 %v14943_v62  ;;  %v14974_v62 = vld [vmem:[%s18626_s4 + $0x5a0] ss:$8 sps:$4 sm:$0xff]  }
 0x40f   : > { %9162 = vmatpush1.bf16.msra.mxu0 %v14941_v0  ;;  %v14979_v0 = vld [vmem:[%s18626_s4 + $0x5b4] ss:$8 sps:$4 sm:$0xff]  }
 0x410   : > { %9288 = vmatprep.subr.bf16.mxu0 %v14946_v2  ;;  %v14977_v2 = vld [vmem:[%s18626_s4 + $0x5b0] ss:$8 sps:$4 sm:$0xff]  }
 0x412   : > { %9180 = vmatmul.mubr.bf16.vlgmr.msra.gmra.mrb[4].mxu0 %v9050_v7  ;;  %v14985_v7 = vld [vmem:[%s18626_s4 + $0x5d4] ss:$8 sps:$4 sm:$0xff]  }
 0x413   : > { %9289 = vmatpush1.bf16.msra.mxu0 %v14944_v5  ;;  %9320 = vmatprep.mubr.bf16.mxu0 %v15058_v21  ;;  %v14980_v5 = vld [vmem:[%s18626_s4 + $0x5c0] ss:$8 sps:$4 sm:$0xff]  }
 0x414   : > { %9290 = vmatprep.subr.bf16.mxu0 %v14949_v8  ;;  %v14983_v8 = vld [vmem:[%s18626_s4 + $0x5d0] ss:$8 sps:$4 sm:$0xff]  }
 0x417   : > { %9291 = vmatpush1.bf16.msra.mxu0 %v14947_v10  ;;  %v14988_v10 = vld [vmem:[%s18626_s4 + $0x5e4] ss:$8 sps:$4 sm:$0xff]  }
 0x418   : > { %9292 = vmatprep.subr.bf16.mxu0 %v14952_v12  ;;  %v14986_v12 = vld [vmem:[%s18626_s4 + $0x5e0] ss:$8 sps:$4 sm:$0xff]  }
 0x41b   : > { %9293 = vmatpush1.bf16.msra.mxu0 %v14950_v14  ;;  %v14991_v14 = vld [vmem:[%s18626_s4 + $0x5f4] ss:$8 sps:$4 sm:$0xff]  }
 0x41c   : > { %9294 = vmatprep.subr.bf16.mxu0 %v14955_v15  ;;  %v14989_v15 = vld [vmem:[%s18626_s4 + $0x5f0] ss:$8 sps:$4 sm:$0xff]  }
 0x41f   : > { %9295 = vmatpush1.bf16.msra.mxu0 %v14953_v20  ;;  %v14994_v20 = vld [vmem:[%s18626_s4 + $0x604] ss:$8 sps:$4 sm:$0xff]  }
 0x420   : > { %9296 = vmatprep.subr.bf16.mxu0 %v14958_v23  ;;  %v9331_v23 = vld [vmem:[#allocation2 + $0x23] sm:$0x7] }
 0x423   : > { %9297 = vmatpush1.bf16.msra.mxu0 %v14956_v24  ;;  %v14992_v24 = vld [vmem:[%s18626_s4 + $0x600] ss:$8 sps:$4 sm:$0xff]  }
 0x424   : > { %9298 = vmatprep.subr.bf16.mxu0 %v14961_v27  ;;  %v9332_v27 = vpack.c.bf16 %v9331_v23, %v9331_v23  ;;  %v15030_v23 = vld [vmem:[%s18626_s4 + $0x6c4] ss:$8 sps:$4 sm:$0xff]  }
 0x427   : > { %9299 = vmatpush1.bf16.msra.mxu0 %v14959_v30  ;;  %v14997_v30 = vld [vmem:[%s18626_s4 + $0x614] ss:$8 sps:$4 sm:$0xff]  }
 0x428   : > { %9300 = vmatprep.subr.bf16.mxu0 %v14964_v32  ;;  %v14995_v32 = vld [vmem:[%s18626_s4 + $0x610] ss:$8 sps:$4 sm:$0xff]  }
 0x42b   : > { %9301 = vmatpush1.bf16.msra.mxu0 %v14962_v35  ;;  %v15000_v35 = vld [vmem:[%s18626_s4 + $0x624] ss:$8 sps:$4 sm:$0xff]  }
 0x42c   : > { %9302 = vmatprep.subr.bf16.mxu0 %v14967_v38  ;;  %v14998_v38 = vld [vmem:[%s18626_s4 + $0x620] ss:$8 sps:$4 sm:$0xff]  }
 0x42f   : > { %9303 = vmatpush1.bf16.msra.mxu0 %v14965_v42  ;;  %v15003_v42 = vld [vmem:[%s18626_s4 + $0x634] ss:$8 sps:$4 sm:$0xff]  }
 0x430   : > { %9429 = vmatprep.subr.bf16.mxu0 %v14970_v45  ;;  %v15001_v45 = vld [vmem:[%s18626_s4 + $0x630] ss:$8 sps:$4 sm:$0xff]  }
 0x432   : > { %9321 = vmatmul.mubr.bf16.vlgmr.msra.gmra.mrb[4].mxu0 %v9191_v52  ;;  %v15009_v52 = vld [vmem:[%s18626_s4 + $0x654] ss:$8 sps:$4 sm:$0xff]  }
 0x433   : > { %9430 = vmatpush1.bf16.msra.mxu0 %v14968_v50  ;;  %9461 = vmatprep.mubr.bf16.mxu0 %v15058_v21  ;;  %v15004_v50 = vld [vmem:[%s18626_s4 + $0x640] ss:$8 sps:$4 sm:$0xff]  }
 0x434   : > { %9431 = vmatprep.subr.bf16.mxu0 %v14973_v55  ;;  %v15007_v55 = vld [vmem:[%s18626_s4 + $0x650] ss:$8 sps:$4 sm:$0xff]  }
 0x437   : > { %9432 = vmatpush1.bf16.msra.mxu0 %v14971_v57  ;;  %v15012_v57 = vld [vmem:[%s18626_s4 + $0x664] ss:$8 sps:$4 sm:$0xff]  }
 0x438   : > { %9433 = vmatprep.subr.bf16.mxu0 %v14976_v60  ;;  %v15010_v60 = vld [vmem:[%s18626_s4 + $0x660] ss:$8 sps:$4 sm:$0xff]  }
 0x43b   : > { %9434 = vmatpush1.bf16.msra.mxu0 %v14974_v62  ;;  %v15015_v62 = vld [vmem:[%s18626_s4 + $0x674] ss:$8 sps:$4 sm:$0xff]  }
 0x43c   : > { %9435 = vmatprep.subr.bf16.mxu0 %v14979_v0  ;;  %v15013_v0 = vld [vmem:[%s18626_s4 + $0x670] ss:$8 sps:$4 sm:$0xff]  }
 0x43f   : > { %9436 = vmatpush1.bf16.msra.mxu0 %v14977_v2  ;;  %v9473_v2 = vld [vmem:[#allocation2 + $0x28] sm:$0x7] }
 0x440   : > { %9437 = vmatprep.subr.bf16.mxu0 %v14982_v4  ;;  %v15018_v4 = vld [vmem:[%s18626_s4 + $0x684] ss:$8 sps:$4 sm:$0xff]  }
 0x443   : > { %9438 = vmatpush1.bf16.msra.mxu0 %v14980_v5  ;;  %v9474_v5 = vpack.c.bf16 %v9473_v2, %v9473_v2 }
 0x444   : > { %9439 = vmatprep.subr.bf16.mxu0 %v14985_v7  ;;  %v15016_v7 = vld [vmem:[%s18626_s4 + $0x680] ss:$8 sps:$4 sm:$0xff]  }
 0x447   : > { %9440 = vmatpush1.bf16.msra.mxu0 %v14983_v8  ;;  %v15021_v8 = vld [vmem:[%s18626_s4 + $0x694] ss:$8 sps:$4 sm:$0xff]  }
 0x448   : > { %9441 = vmatprep.subr.bf16.mxu0 %v14988_v10  ;;  %v15019_v10 = vld [vmem:[%s18626_s4 + $0x690] ss:$8 sps:$4 sm:$0xff]  }
 0x44b   : > { %9442 = vmatpush1.bf16.msra.mxu0 %v14986_v12  ;;  %v15024_v12 = vld [vmem:[%s18626_s4 + $0x6a4] ss:$8 sps:$4 sm:$0xff]  }
 0x44c   : > { %9443 = vmatprep.subr.bf16.mxu0 %v14991_v14  ;;  %v15022_v14 = vld [vmem:[%s18626_s4 + $0x6a0] ss:$8 sps:$4 sm:$0xff]  }
 0x44f   : > { %9444 = vmatpush1.bf16.msra.mxu0 %v14989_v15  ;;  %v15027_v15 = vld [vmem:[%s18626_s4 + $0x6b4] ss:$8 sps:$4 sm:$0xff]  }
 0x450   : > { %9571 = vmatprep.subr.bf16.mxu0 %v14994_v20  ;;  %v15025_v20 = vld [vmem:[%s18626_s4 + $0x6b0] ss:$8 sps:$4 sm:$0xff]  }
 0x452   : > { %9462 = vmatmul.mubr.bf16.vlgmr.msra.gmra.mrb[4].mxu0 %v9332_v27  ;;  %v15033_v27 = vld [vmem:[%s18626_s4 + $0x6d4] ss:$8 sps:$4 sm:$0xff]  }
 0x453   : > { %9572 = vmatpush1.bf16.msra.mxu0 %v14992_v24  ;;  %9603 = vmatprep.mubr.bf16.mxu0 %v15058_v21  ;;  %v15028_v24 = vld [vmem:[%s18626_s4 + $0x6c0] ss:$8 sps:$4 sm:$0xff]  }
 0x454   : > { %9573 = vmatprep.subr.bf16.mxu0 %v14997_v30  ;;  %v15031_v30 = vld [vmem:[%s18626_s4 + $0x6d0] ss:$8 sps:$4 sm:$0xff]  }
 0x457   : > { %9574 = vmatpush1.bf16.msra.mxu0 %v14995_v32  ;;  %v15036_v32 = vld [vmem:[%s18626_s4 + $0x6e4] ss:$8 sps:$4 sm:$0xff]  }
 0x458   : > { %9575 = vmatprep.subr.bf16.mxu0 %v15000_v35  ;;  %v15034_v35 = vld [vmem:[%s18626_s4 + $0x6e0] ss:$8 sps:$4 sm:$0xff]  }
 0x45b   : > { %9576 = vmatpush1.bf16.msra.mxu0 %v14998_v38  ;;  %v9614_v38 = vld [vmem:[#allocation2 + $0x29] sm:$0x7] }
 0x45c   : > { %9577 = vmatprep.subr.bf16.mxu0 %v15003_v42  ;;  %v9615_v42 = vpack.c.bf16 %v9614_v38, %v9614_v38 }
 0x45f   : > { %9578 = vmatpush1.bf16.msra.mxu0 %v15001_v45 }
 0x460   : > { %9579 = vmatprep.subr.bf16.mxu0 %v15006_v47 }
 0x463   : > { %9580 = vmatpush1.bf16.msra.mxu0 %v15004_v50 }
 0x464   : > { %9581 = vmatprep.subr.bf16.mxu0 %v15009_v52 }
 0x467   : > { %9582 = vmatpush1.bf16.msra.mxu0 %v15007_v55 }
 0x468   : > { %9583 = vmatprep.subr.bf16.mxu0 %v15012_v57 }
 0x46b   : > { %9584 = vmatpush1.bf16.msra.mxu0 %v15010_v60 }
 0x46c   : > { %9585 = vmatprep.subr.bf16.mxu0 %v15015_v62 }
 0x46f   : > { %9586 = vmatpush1.bf16.msra.mxu0 %v15013_v0 }
 0x470   : > { %9712 = vmatprep.subr.bf16.mxu0 %v15018_v4 }
 0x472   : > { %9604 = vmatmul.mubr.bf16.vlgmr.msra.gmra.mrb[4].mxu0 %v9474_v5 }
 0x473   : > { %9713 = vmatpush1.bf16.msra.mxu0 %v15016_v7  ;;  %9744 = vmatprep.mubr.bf16.mxu0 %v15058_v21 }
 0x474   : > { %9714 = vmatprep.subr.bf16.mxu0 %v15021_v8 }
 0x477   : > { %9715 = vmatpush1.bf16.msra.mxu0 %v15019_v10 }
 0x478   : > { %9716 = vmatprep.subr.bf16.mxu0 %v15024_v12 }
 0x47b   : > { %9717 = vmatpush1.bf16.msra.mxu0 %v15022_v14 }
 0x47c   : > { %9718 = vmatprep.subr.bf16.mxu0 %v15027_v15 }
 0x47f   : > { %9719 = vmatpush1.bf16.msra.mxu0 %v15025_v20 }
 0x480   : > { %9720 = vmatprep.subr.bf16.mxu0 %v15030_v23 }
 0x483   : > { %9721 = vmatpush1.bf16.msra.mxu0 %v15028_v24 }
 0x484   : > { %9722 = vmatprep.subr.bf16.mxu0 %v15033_v27 }
 0x487   : > { %9723 = vmatpush1.bf16.msra.mxu0 %v15031_v30 }
 0x488   : > { %9724 = vmatprep.subr.bf16.mxu0 %v15036_v32 }
 0x48b   : > { %9725 = vmatpush1.bf16.msra.mxu0 %v15034_v35 }
 0x48c   : > { %9726 = vmatprep.subr.bf16.mxu0 %v17926_v18  ;;  %v9755_v18 = vld [vmem:[#allocation2 + $0x2a] sm:$0x7] }
 0x48f   : > { %9727 = vmatpush1.bf16.msra.mxu0 %v17936_v25  ;;  %v9756_v25 = vpack.c.bf16 %v9755_v18, %v9755_v18 }
 0x490   : > { %9853 = vmatprep.subr.bf16.mxu0 %v17945_v28 }
 0x492   : > { %9745 = vmatmul.mubr.bf16.vlgmr.msra.gmra.mrb[4].mxu0 %v9615_v42 }
 0x493   : > { %9854 = vmatpush1.bf16.msra.mxu0 %v17956_v33  ;;  %9885 = vmatprep.mubr.bf16.mxu0 %v15058_v21 }
 0x494   : > { %9855 = vmatprep.subr.bf16.mxu0 %v17965_v37 }
 0x497   : > { %9856 = vmatpush1.bf16.msra.mxu0 %v17974_v39 }
 0x498   : > { %9857 = vmatprep.subr.bf16.mxu0 %v17984_v41 }
 0x49b   : > { %9858 = vmatpush1.bf16.msra.mxu0 %v17993_v44 }
 0x49c   : > { %9859 = vmatprep.subr.bf16.mxu0 %v18002_v46 }
 0x49f   : > { %9860 = vmatpush1.bf16.msra.mxu0 %v18011_v48 }
 0x4a0   : > { %9861 = vmatprep.subr.bf16.mxu0 %v18020_v58 }
 0x4a3   : > { %9862 = vmatpush1.bf16.msra.mxu0 %v18030_v51 }
 0x4a4   : > { %9863 = vmatprep.subr.bf16.mxu0 %v18039_v54 }
 0x4a7   : > { %9864 = vmatpush1.bf16.msra.mxu0 %v18048_v56  ;;  %v13122_v56 = vld [vmem:[%s18627_s5 + $0x5] ss:$8 sm:$0x3] }
 0x4a8   : > { %9865 = vmatprep.subr.bf16.mxu0 %v18057_v59  ;;  %v13121_v59 = vld [vmem:[%s18627_s5 + $0x4] ss:$8 sm:$0x3] }
 0x4ab   : > { %9866 = vmatpush1.bf16.msra.mxu0 %v18066_v61  ;;  %v13123_v61 = vld [vmem:[%s18627_s5 + $0x6] ss:$8 sm:$0x3] }
 0x4ac   : > { %9867 = vmatprep.subr.bf16.mxu0 %v18075_v63  ;;  %v13109_v63 = vld [vmem:[%s18627_s5 + $0x10] ss:$8 sm:$0x3] }
 0x4af   : > { %9868 = vmatpush1.bf16.msra.mxu0 %v18084_v1  ;;  %v13124_v1 = vld [vmem:[%s18627_s5 + $0x7] ss:$8 sm:$0x3] }
 0x4b0   : > { %9994 = vmatprep.subr.bf16.mxu0 %v18093_v3  ;;  %v10605_v3 = vrot.slane %v13122_v56, %v17380_v16 }
 0x4b2   : > { %9886 = vmatmul.mubr.bf16.vlgmr.msra.gmra.mrb[4].mxu0 %v9756_v25 }
 0x4b3   : > { %9995 = vmatpush1.bf16.msra.mxu0 %v18102_v6  ;;  %10026 = vmatprep.mubr.bf16.mxu0 %v15058_v21  ;;  %v9896_v21 = vld [vmem:[#allocation2 + $0x2b] sm:$0x7]  ;;  %v10583_v6 = vrot.slane %v13121_v59, %v17380_v16 }
 0x4b4   : > { %9996 = vmatprep.subr.bf16.mxu0 %v18111_v9  ;;  %v9897_v28 = vpack.c.bf16 %v9896_v21, %v9896_v21  ;;  %v10630_v9 = vrot.slane %v13123_v61, %v17380_v16 }
 0x4b7   : > { %9997 = vmatpush1.bf16.msra.mxu0 %v18120_v11  ;;  %v13111_v11 = vld [vmem:[%s18627_s5 + $0x12] ss:$8 sm:$0x3] }
 0x4b8   : > { %9998 = vmatprep.subr.bf16.mxu0 %v18130_v13  ;;  %v18499_v13 = vld [vmem:[%s18627_s5 + $0x11] ss:$8 sm:$0x3]  ;;  %v10315_v45 = vrot.slane %v13111_v11, %v17380_v16  ;;  %v10319_v47 = vrot.slane %v13111_v11, %v17382_v17 }
 0x4b9   : > { %v10289_v50 = vrot.slane %v18499_v13, %v17380_v16  ;;  %v10293_v2 = vrot.slane %v18499_v13, %v17382_v17 }
 0x4bb   : > { %9999 = vmatpush1.bf16.msra.mxu0 %v18139_v19  ;;  %v10609_v19 = vrot.slane %v13122_v56, %v17382_v17 }
 0x4bc   : > { %10000 = vmatprep.subr.bf16.mxu0 %v18148_v22  ;;  %v10587_v22 = vrot.slane %v13121_v59, %v17382_v17 }
 0x4bf   : > { %10001 = vmatpush1.bf16.msra.mxu0 %v18157_v26  ;;  %v10634_v26 = vrot.slane %v13123_v61, %v17382_v17 }
 0x4c0   : > { %10002 = vmatprep.subr.bf16.mxu0 %v18166_v29  ;;  %v10266_v29 = vrot.slane %v13109_v63, %v17380_v16 }
 0x4c3   : > { %10003 = vmatpush1.bf16.msra.mxu0 %v18176_v31  ;;  %v10270_v31 = vrot.slane %v13109_v63, %v17382_v17 }
 0x4c4   : > { %10004 = vmatprep.subr.bf16.mxu0 %v18185_v34  ;;  %v10655_v34 = vrot.slane %v13124_v1, %v17380_v16 }
 0x4c7   : > { %10005 = vmatpush1.bf16.msra.mxu0 %v18194_v36  ;;  %v13112_v36 = vld [vmem:[%s18627_s5 + $0x13] ss:$8 sm:$0x3] }
 0x4c8   : > { %10006 = vmatprep.subr.bf16.mxu0 %v18203_v40  ;;  %v10341_v12 = vrot.slane %v13112_v36, %v17380_v16  ;;  %v10345_v27 = vrot.slane %v13112_v36, %v17382_v17 }
 0x4cb   : > { %10007 = vmatpush1.bf16.msra.mxu0 %v18212_v43 }
 0x4cc   : > { %10008 = vmatprep.subr.bf16.mxu0 %v18221_v53 }
 0x4cf   : > { %10009 = vmatpush1.bf16.msra.mxu0 %v18230_v49  ;;  %v10659_v49 = vrot.slane %v13124_v1, %v17382_v17 }
 0x4d2   : > { %10027 = vmatmul.mubr.bf16.vlgmr.msra.gmra.mrb[4].mxu0 %v9897_v28 }
 0x4db   : > { %v7760_v33 = vpop.f32.mrb[64].mxu1 }
 0x4dc   : > { %vm7769_vm10 = vcmp.ge.f32.partialorder %v7760_v33, 0.0  ;;  %v7771_v37 = vmul.f32 0.2, %v7760_v33  ;;  %v7762_v39 = vpop.f32.mrb[65].mxu1 }
 0x4dd   : > { %vm7770_vm11 = vcmp.ge.f32.partialorder %v7762_v39, 0.0  ;;  %v7772_v41 = vmul.f32 0.2, %v7762_v39  ;;  %v7764_v44 = vpop.f32.mrb[66].mxu1 }
 0x4de   : > { %v7773_v46 = vsel %vm7769_vm10, %v7760_v33, %v7771_v37  ;;  %v7765_v48 = vpop.f32.mrb[67].mxu1 }
 0x4df   : > { %v7777_v58 = vrot.slane %v7773_v46, 7  ;;  %v7774_v51 = vsel %vm7770_vm11, %v7762_v39, %v7772_v41 }
 0x4e0   : > { %v7778_v54 = vrot.slane %v7774_v51, 7 }
 0x4e1   : > { %7782 = vst [vmem:[#allocation3 + $0x20] sm:$0xe] %v7777_v58 }
 0x4e2   : > { %7783 = vst [vmem:[#allocation3 + $0x28] sm:$0xe] %v7778_v54 }
 0x4e8   : > { %v10598_v40 = vld [vmem:[#allocation3 + $0x20] sm:$0x6]  ;;  %v10648_v23 = vld [vmem:[#allocation3 + $0x20] sm:$0x18] }
 0x4e9   : > { %v10576_v43 = vld [vmem:[#allocation3 + $0x20] sm:$0x3]  ;;  %v10623_v53 = vld [vmem:[#allocation3 + $0x20] sm:$0xc]  ;;  %v10599_v52 = vld [vmem:[#allocation3 + $0x28] sm:$0x6]  ;;  %v10612_v55 = vmul.f32 %v10605_v3, %v10598_v40  ;;  %v10662_v39 = vmul.f32 %v10655_v34, %v10648_v23 }
 0x4ea   : > { %v10577_v57 = vld [vmem:[#allocation3 + $0x28] sm:$0x3]  ;;  %v10590_v60 = vmul.f32 %v10583_v6, %v10576_v43  ;;  %v10624_v62 = vld [vmem:[#allocation3 + $0x28] sm:$0xc]  ;;  %v10637_v0 = vmul.f32 %v10630_v9, %v10623_v53  ;;  %v10613_v4 = vmul.f32 %v10609_v19, %v10599_v52  ;;  %v10258_v8 = vld [vmem:[#allocation3 + $0x20] sm:$0x3] }
 0x4eb   : > { %v10591_v5 = vmul.f32 %v10587_v22, %v10577_v57  ;;  %v10638_v7 = vmul.f32 %v10634_v26, %v10624_v62  ;;  %v10259_v10 = vld [vmem:[#allocation3 + $0x28] sm:$0x3]  ;;  %v10614_v14 = vsel %vm10093_vm5, %v10612_v55, 0.0  ;;  %v10273_v20 = vmul.f32 %v10266_v29, %v10258_v8  ;;  %v10649_v24 = vld [vmem:[#allocation3 + $0x28] sm:$0x18] }
 0x4ec   : > { %v10592_v15 = vsel %vm10069_vm4, %v10590_v60, 0.0  ;;  %v10615_v30 = vsel %vm10093_vm5, %v10613_v4, 0.0  ;;  %v10639_v35 = vsel %vm10120_vm6, %v10637_v0, 0.0  ;;  %v10274_v38 = vmul.f32 %v10270_v31, %v10259_v10  ;;  %v10307_v42 = vld [vmem:[#allocation3 + $0x20] sm:$0xc] }
 0x4ed   : > { %v10593_v32 = vsel %vm10069_vm4, %v10591_v5, 0.0  ;;  %v10616_v18 = vadd.f32 %v10615_v30, %v10614_v14  ;;  %v10640_v21 = vsel %vm10120_vm6, %v10638_v7, 0.0  ;;  %v10275_v28 = vsel %vm10069_vm4, %v10273_v20, 0.0  ;;  %v10308_v33 = vld [vmem:[#allocation3 + $0x28] sm:$0xc] }
 0x4ee   : > { %v10594_v25 = vadd.f32 %v10593_v32, %v10592_v15  ;;  %v10276_v37 = vsel %vm10069_vm4, %v10274_v38, 0.0  ;;  %v10663_v41 = vmul.f32 %v10659_v49, %v10649_v24  ;;  %v10322_v44 = vmul.f32 %v10315_v45, %v10307_v42  ;;  %v10281_v46 = vld [vmem:[#allocation3 + $0x20] sm:$0x6]  ;;  %v10282_v58 = vld [vmem:[#allocation3 + $0x28] sm:$0x6] }
 0x4ef   : > { %10617 = vadd.xlane.f32.xlu1 %v10616_v18  ;;  %v10323_v48 = vmul.f32 %v10319_v47, %v10308_v33  ;;  %v10333_v51 = vld [vmem:[#allocation3 + $0x20] sm:$0x18]  ;;  %v10334_v54 = vld [vmem:[#allocation3 + $0x28] sm:$0x18]  ;;  %v10641_v56 = vadd.f32 %v10640_v21, %v10639_v35  ;;  %v10277_v59 = vadd.f32 %v10276_v37, %v10275_v28  ;;  %v10664_v61 = vsel %vm10147_vm7, %v10662_v39, 0.0 }
 0x4f0   : > { %10595 = vadd.xlane.f32.xlu0 %v10594_v25  ;;  %v10665_v63 = vsel %vm10147_vm7, %v10663_v41, 0.0  ;;  %v10324_v1 = vsel %vm10120_vm6, %v10322_v44, 0.0  ;;  %v10296_v3 = vmul.f32 %v10289_v50, %v10281_v46  ;;  %v10297_v9 = vmul.f32 %v10293_v2, %v10282_v58  ;;  %v13126_v62 = vld [vmem:[%s18627_s5 + $0x11] ss:$8 sm:$0x3] }
 0x4f1   : > { %v10325_v6 = vsel %vm10120_vm6, %v10323_v48, 0.0  ;;  %v10348_v11 = vmul.f32 %v10341_v12, %v10333_v51  ;;  %v10349_v13 = vmul.f32 %v10345_v27, %v10334_v54  ;;  %v10666_v19 = vadd.f32 %v10665_v63, %v10664_v61  ;;  %v13125_v0 = vld [vmem:[%s18627_s5 + $0x10] ss:$8 sm:$0x3] }
 0x4f2   : > { %v10326_v22 = vadd.f32 %v10325_v6, %v10324_v1  ;;  %v10298_v26 = vsel %vm10093_vm5, %v10296_v3, 0.0  ;;  %v10299_v29 = vsel %vm10093_vm5, %v10297_v9, 0.0  ;;  %v13127_v2 = vld [vmem:[%s18627_s5 + $0x12] ss:$8 sm:$0x3]  ;;  %v10702_v7 = vrot.slane %v13126_v62, %v17380_v16 }
 0x4f3   : > { %10642 = vadd.xlane.f32.xlu1 %v10641_v56  ;;  %v10350_v31 = vsel %vm10147_vm7, %v10348_v11, 0.0  ;;  %v10351_v34 = vsel %vm10147_vm7, %v10349_v13, 0.0  ;;  %v10300_v36 = vadd.f32 %v10299_v29, %v10298_v26  ;;  %v13113_v4 = vld [vmem:[%s18627_s5 + $0x14] ss:$8 sm:$0x3]  ;;  %v10680_v8 = vrot.slane %v13125_v0, %v17380_v16 }
 0x4f4   : > { %10278 = vadd.xlane.f32.xlu0 %v10277_v59  ;;  %v10352_v40 = vadd.f32 %v10351_v34, %v10350_v31  ;;  %v13128_v5 = vld [vmem:[%s18627_s5 + $0x13] ss:$8 sm:$0x3]  ;;  %v10727_v10 = vrot.slane %v13127_v2, %v17380_v16  ;;  %v13115_v12 = vld [vmem:[%s18627_s5 + $0x16] ss:$8 sm:$0x3]  ;;  %v10706_v15 = vrot.slane %v13126_v62, %v17382_v17  ;;  %v10684_v20 = vrot.slane %v13125_v0, %v17382_v17 }
 0x4f5   : > { %v18559_v14 = vld [vmem:[%s18627_s5 + $0x15] ss:$8 sm:$0x3]  ;;  %v10731_v23 = vrot.slane %v13127_v2, %v17382_v17  ;;  %v10367_v24 = vrot.slane %v13113_v4, %v17380_v16  ;;  %v10371_v27 = vrot.slane %v13113_v4, %v17382_v17  ;;  %v10752_v30 = vrot.slane %v13128_v5, %v17380_v16  ;;  %v18570_v32 = vld [vmem:[%s18627_s5 + $0x17] ss:$8 sm:$0x3] }
 0x4f6   : > { %v10756_v18 = vrot.slane %v13128_v5, %v17382_v17  ;;  %v10416_v25 = vrot.slane %v13115_v12, %v17380_v16  ;;  %v10420_v21 = vrot.slane %v13115_v12, %v17382_v17  ;;  %v10390_v28 = vrot.slane %v18559_v14, %v17380_v16  ;;  %v13132_v13 = vld [vmem:[%s18627_s5 + $0x17] ss:$8 sm:$0x3]  ;;  %v10843_v4 = vld [vmem:[#allocation3 + $0x40] sm:$0x18] }
 0x4f7   : > { %10667 = vadd.xlane.f32.xlu1 %v10666_v19  ;;  %v10394_v48 = vrot.slane %v18559_v14, %v17382_v17  ;;  %v10442_v61 = vrot.slane %v18570_v32, %v17380_v16  ;;  %v10446_v11 = vrot.slane %v18570_v32, %v17382_v17  ;;  %v10850_v5 = vrot.slane %v13132_v13, %v17380_v16 }
 0x4f8   : > { %10327 = vadd.xlane.f32.xlu0 %v10326_v22 }
 0x4fb   : > { %10301 = vadd.xlane.f32.xlu1 %v10300_v36 }
 0x4fc   : > { %10353 = vadd.xlane.f32.xlu0 %v10352_v40 }
 0x5a5   : > { %v10028_v43 = vpop.f32.mrb[4].mxu0 }
 0x5a6   : > { %vm10037_vm12 = vcmp.ge.f32.partialorder %v10028_v43, 0.0  ;;  %v10039_v53 = vmul.f32 0.2, %v10028_v43  ;;  %v10030_v49 = vpop.f32.mrb[5].mxu0 }
 0x5a7   : > { %vm10038_vm13 = vcmp.ge.f32.partialorder %v10030_v49, 0.0  ;;  %v10040_v45 = vmul.f32 0.2, %v10030_v49  ;;  %v10032_v47 = vpop.f32.mrb[6].mxu0 }
 0x5a8   : > { %v10041_v50 = vsel %vm10037_vm12, %v10028_v43, %v10039_v53  ;;  %v10033_v52 = vpop.f32.mrb[7].mxu0 }
 0x5a9   : > { %v10045_v55 = vrot.slane %v10041_v50, 7  ;;  %v10042_v57 = vsel %vm10038_vm13, %v10030_v49, %v10040_v45 }
 0x5aa   : > { %v10046_v60 = vrot.slane %v10042_v57, 7 }
 0x5ab   : > { %10050 = vst [vmem:[#allocation3 + $0x30] sm:$0xe] %v10045_v55 }
 0x5ac   : > { %10051 = vst [vmem:[#allocation3 + $0x38] sm:$0xe] %v10046_v60 }
 0x5b2   : > { %v10695_v35 = vld [vmem:[#allocation3 + $0x30] sm:$0x6]  ;;  %v10745_v6 = vld [vmem:[#allocation3 + $0x30] sm:$0x18] }
 0x5b3   : > { %v10673_v38 = vld [vmem:[#allocation3 + $0x30] sm:$0x3]  ;;  %v10720_v42 = vld [vmem:[#allocation3 + $0x30] sm:$0xc]  ;;  %v10696_v33 = vld [vmem:[#allocation3 + $0x38] sm:$0x6]  ;;  %v10709_v37 = vmul.f32 %v10702_v7, %v10695_v35  ;;  %v10759_v45 = vmul.f32 %v10752_v30, %v10745_v6  ;;  %v10854_v7 = vrot.slane %v13132_v13, %v17382_v17  ;;  %v10857_v30 = vmul.f32 %v10850_v5, %v10843_v4 }
 0x5b4   : > { %v10674_v39 = vld [vmem:[#allocation3 + $0x38] sm:$0x3]  ;;  %v10687_v41 = vmul.f32 %v10680_v8, %v10673_v38  ;;  %v10721_v44 = vld [vmem:[#allocation3 + $0x38] sm:$0xc]  ;;  %v10734_v46 = vmul.f32 %v10727_v10, %v10720_v42  ;;  %v10710_v58 = vmul.f32 %v10706_v15, %v10696_v33  ;;  %v10359_v56 = vld [vmem:[#allocation3 + $0x30] sm:$0x3] }
 0x5b5   : > { %v10688_v51 = vmul.f32 %v10684_v20, %v10674_v39  ;;  %v10735_v54 = vmul.f32 %v10731_v23, %v10721_v44  ;;  %v10360_v59 = vld [vmem:[#allocation3 + $0x38] sm:$0x3]  ;;  %v10711_v63 = vsel %vm10093_vm5, %v10709_v37, 0.0  ;;  %v10374_v3 = vmul.f32 %v10367_v24, %v10359_v56  ;;  %v10746_v9 = vld [vmem:[#allocation3 + $0x38] sm:$0x18]  ;;  %v10098_v39 = vpop.xlane.xlu0 %10097 }
 0x5b6   : > { %v10689_v1 = vsel %vm10069_vm4, %v10687_v41, 0.0  ;;  %v10712_v19 = vsel %vm10093_vm5, %v10710_v58, 0.0  ;;  %v10736_v26 = vsel %vm10120_vm6, %v10734_v46, 0.0  ;;  %v10375_v29 = vmul.f32 %v10371_v27, %v10360_v59  ;;  %v10408_v31 = vld [vmem:[#allocation3 + $0x30] sm:$0xc]  ;;  %v10074_v41 = vpop.xlane.xlu1 %10073 }
 0x5b7   : > { %v10690_v22 = vsel %vm10069_vm4, %v10688_v51, 0.0  ;;  %v10713_v34 = vadd.f32 %v10712_v19, %v10711_v63  ;;  %v10737_v40 = vsel %vm10120_vm6, %v10735_v54, 0.0  ;;  %v10376_v43 = vsel %vm10069_vm4, %v10374_v3, 0.0  ;;  %v10409_v53 = vld [vmem:[#allocation3 + $0x38] sm:$0xc] }
 0x5b8   : > { %v10691_v36 = vadd.f32 %v10690_v22, %v10689_v1  ;;  %v10377_v49 = vsel %vm10069_vm4, %v10375_v29, 0.0  ;;  %v10760_v47 = vmul.f32 %v10756_v18, %v10746_v9  ;;  %v10423_v50 = vmul.f32 %v10416_v25, %v10408_v31  ;;  %v10382_v52 = vld [vmem:[#allocation3 + $0x30] sm:$0x6]  ;;  %v10383_v57 = vld [vmem:[#allocation3 + $0x38] sm:$0x6] }
 0x5b9   : > { %10714 = vadd.xlane.f32.xlu1 %v10713_v34  ;;  %v10424_v55 = vmul.f32 %v10420_v21, %v10409_v53  ;;  %v10434_v60 = vld [vmem:[#allocation3 + $0x30] sm:$0x18]  ;;  %v10435_v62 = vld [vmem:[#allocation3 + $0x38] sm:$0x18]  ;;  %v10738_v0 = vadd.f32 %v10737_v40, %v10736_v26  ;;  %v10378_v2 = vadd.f32 %v10377_v49, %v10376_v43  ;;  %v10761_v8 = vsel %vm10147_vm7, %v10759_v45, 0.0  ;;  %v10152_v44 = vpop.xlane.xlu0 %10151 }
 0x5ba   : > { %10692 = vadd.xlane.f32.xlu0 %v10691_v36  ;;  %v10762_v10 = vsel %vm10147_vm7, %v10760_v47, 0.0  ;;  %v10425_v12 = vsel %vm10120_vm6, %v10423_v50, 0.0  ;;  %v10397_v14 = vmul.f32 %v10390_v28, %v10382_v52  ;;  %v10844_v15 = vld [vmem:[#allocation3 + $0x48] sm:$0x18]  ;;  %v10398_v23 = vmul.f32 %v10394_v48, %v10383_v57  ;;  %v10125_v46 = vpop.xlane.xlu1 %10124 }
 0x5bb   : > { %v10426_v20 = vsel %vm10120_vm6, %v10424_v55, 0.0  ;;  %v10449_v24 = vmul.f32 %v10442_v61, %v10434_v60  ;;  %v10450_v27 = vmul.f32 %v10446_v11, %v10435_v62  ;;  %v10858_v32 = vmul.f32 %v10854_v7, %v10844_v15 }
 0x5bc   : > { %v10763_v16 = vadd.f32 %v10762_v10, %v10761_v8  ;;  %v10427_v35 = vadd.f32 %v10426_v20, %v10425_v12  ;;  %v10399_v17 = vsel %vm10093_vm5, %v10397_v14, 0.0  ;;  %v10400_v38 = vsel %vm10093_vm5, %v10398_v23, 0.0 }
 0x5bd   : > { %10739 = vadd.xlane.f32.xlu1 %v10738_v0  ;;  %v10451_v42 = vsel %vm10147_vm7, %v10449_v24, 0.0  ;;  %v10452_v18 = vsel %vm10147_vm7, %v10450_v27, 0.0  ;;  %v10859_v25 = vsel %vm10147_vm7, %v10857_v30, 0.0  ;;  %v10860_v21 = vsel %vm10147_vm7, %v10858_v32, 0.0  ;;  %v18606_v48 = vpop.xlane.xlu0 %10790 }
 0x5be   : > { %10379 = vadd.xlane.f32.xlu0 %v10378_v2  ;;  %v10401_v28 = vadd.f32 %v10400_v38, %v10399_v17  ;;  %v10453_v33 = vadd.f32 %v10452_v18, %v10451_v42  ;;  %v10861_v37 = vadd.f32 %v10860_v21, %v10859_v25  ;;  %v18608_v58 = vpop.xlane.xlu1 %10812  ;;  %v10100_v9 = vrot.slane %v10098_v39, 1 }
 0x5bf   : > { %v10127_v22 = vrot.slane %v10125_v46, 2  ;;  %v10154_v31 = vrot.slane %v10152_v44, 3 }
 0x5c0   : > { %v10102_v19 = vadd.f32 %v10100_v9, %v10074_v41 }
 0x5c1   : > { %10764 = vadd.xlane.f32.xlu1 %v10763_v16  ;;  %v10521_v51 = vpop.xlane.xlu0 %10520 }
 0x5c2   : > { %10428 = vadd.xlane.f32.xlu0 %v10427_v35  ;;  %v18610_v54 = vpop.xlane.xlu1 %10837  ;;  %v10523_v26 = vrot.slane %v10521_v51, 1  ;;  %v10129_v29 = vadd.f32 %v10127_v22, %v10102_v19 }
 0x5c4   : > { %v10156_v49 = vadd.f32 %v10154_v31, %v10129_v29 }
 0x5c5   : > { %10402 = vadd.xlane.f32.xlu1 %v10401_v28  ;;  %v10499_v56 = vpop.xlane.xlu0 %10498 }
 0x5c6   : > { %10454 = vadd.xlane.f32.xlu0 %v10453_v33  ;;  %v10546_v59 = vpop.xlane.xlu1 %10545  ;;  %v10525_v34 = vadd.f32 %v10523_v26, %v10499_v56 }
 0x5c7   : > { %v10548_v43 = vrot.slane %v10546_v59, 2  ;;  %v10815_v59 = vrot.slane %v18608_v58, 1 }
 0x5c9   : > { %10862 = vadd.xlane.f32.xlu1 %v10861_v37  ;;  %v10178_v61 = vpop.xlane.xlu0 %10177  ;;  %v10550_v53 = vadd.f32 %v10548_v43, %v10525_v34  ;;  %v13117_v34 = vld [vmem:[#allocation4] ss:$0 sm:$0xff] }
 0x5ca   : > { %v10571_v63 = vpop.xlane.xlu1 %10570  ;;  %v10179_v55 = vadd.f32 %v10178_v61, %v10156_v49 }
 0x5cb   : > { %v10573_v45 = vrot.slane %v10571_v63, 3 }
 0x5cd   : > { %v10227_v1 = vpop.xlane.xlu0 %10226  ;;  %v10575_v57 = vadd.f32 %v10573_v45, %v10550_v53 }
 0x5ce   : > { %v10201_v3 = vpop.xlane.xlu1 %10200  ;;  %v10229_v60 = vrot.slane %v10227_v1, 2 }
 0x5cf   : > { %v10203_v52 = vrot.slane %v10201_v3, 1 }
 0x5d1   : > { %v10253_v6 = vpop.xlane.xlu0 %10252  ;;  %v10205_v2 = vadd.f32 %v10203_v52, %v10179_v55 }
 0x5d2   : > { %v10618_v11 = vpop.xlane.xlu1 %10617  ;;  %v10255_v4 = vrot.slane %v10253_v6, 3  ;;  %v10840_v6 = vrot.slane %v18610_v54, 2 }
 0x5d3   : > { %v10620_v62 = vrot.slane %v10618_v11, 1  ;;  %v10231_v10 = vadd.f32 %v10229_v60, %v10205_v2 }
 0x5d5   : > { %v10596_v13 = vpop.xlane.xlu0 %10595  ;;  %v10257_v20 = vadd.f32 %v10255_v4, %v10231_v10 }
 0x5d6   : > { %v10643_v36 = vpop.xlane.xlu1 %10642  ;;  %v10597_v0 = vadd.f32 %v10596_v13, %v10575_v57 }
 0x5d7   : > { %v10645_v5 = vrot.slane %v10643_v36, 2 }
 0x5d8   : > { %v10622_v12 = vadd.f32 %v10620_v62, %v10597_v0 }
 0x5d9   : > { %v10279_v40 = vpop.xlane.xlu0 %10278 }
 0x5da   : > { %v10668_v47 = vpop.xlane.xlu1 %10667  ;;  %v10647_v15 = vadd.f32 %v10645_v5, %v10622_v12  ;;  %v10280_v30 = vadd.f32 %v10279_v40, %v10257_v20 }
 0x5db   : > { %v10670_v14 = vrot.slane %v10668_v47, 3 }
 0x5dd   : > { %v10328_v50 = vpop.xlane.xlu0 %10327  ;;  %v10672_v32 = vadd.f32 %v10670_v14, %v10647_v15 }
 0x5de   : > { %v10302_v7 = vpop.xlane.xlu1 %10301  ;;  %v10330_v18 = vrot.slane %v10328_v50, 2 }
 0x5df   : > { %v10304_v23 = vrot.slane %v10302_v7, 1 }
 0x5e1   : > { %v10354_v8 = vpop.xlane.xlu0 %10353  ;;  %v10306_v16 = vadd.f32 %v10304_v23, %v10280_v30 }
 0x5e2   : > { %v10356_v39 = vrot.slane %v10354_v8, 3 }
 0x5e3   : > { %v10332_v28 = vadd.f32 %v10330_v18, %v10306_v16 }
 0x5e5   : > { %v10358_v46 = vadd.f32 %v10356_v39, %v10332_v28 }
 0x646   : > { %v10715_v24 = vpop.xlane.xlu1 %10714 }
 0x647   : > { %v10693_v27 = vpop.xlane.xlu0 %10692  ;;  %v10717_v35 = vrot.slane %v10715_v24, 1 }
 0x648   : > { %v10694_v17 = vadd.f32 %v10693_v27, %v10672_v32 }
 0x64a   : > { %v10740_v38 = vpop.xlane.xlu1 %10739  ;;  %v10719_v21 = vadd.f32 %v10717_v35, %v10694_v17 }
 0x64b   : > { %v10380_v42 = vpop.xlane.xlu0 %10379  ;;  %v10742_v25 = vrot.slane %v10740_v38, 2 }
 0x64c   : > { %v10381_v61 = vadd.f32 %v10380_v42, %v10358_v46 }
 0x64d   : > { %v10744_v41 = vadd.f32 %v10742_v25, %v10719_v21 }
 0x64e   : > { %v10765_v33 = vpop.xlane.xlu1 %10764 }
 0x64f   : > { %v10429_v37 = vpop.xlane.xlu0 %10428  ;;  %v10767_v44 = vrot.slane %v10765_v33, 3 }
 0x650   : > { %v10431_v9 = vrot.slane %v10429_v37, 2 }
 0x651   : > { %v10769_v51 = vadd.f32 %v10767_v44, %v10744_v41 }
 0x652   : > { %v10403_v56 = vpop.xlane.xlu1 %10402 }
 0x653   : > { %v10792_v63 = vadd.f32 %v18606_v48, %v10769_v51  ;;  %v10405_v1 = vrot.slane %v10403_v56, 1  ;;  %v10455_v3 = vpop.xlane.xlu0 %10454 }
 0x654   : > { %v10457_v26 = vrot.slane %v10455_v3, 3 }
 0x655   : > { %v10407_v11 = vadd.f32 %v10405_v1, %v10381_v61  ;;  %v10817_v13 = vadd.f32 %v10815_v59, %v10792_v63 }
 0x656   : > { %v10863_v19 = vpop.xlane.xlu1 %10862 }
 0x657   : > { %v10433_v22 = vadd.f32 %v10431_v9, %v10407_v11  ;;  %v10842_v29 = vadd.f32 %v10840_v6, %v10817_v13  ;;  %v10865_v31 = vrot.slane %v10863_v19, 3 }
 0x659   : > { %v10459_v36 = vadd.f32 %v10457_v26, %v10433_v22  ;;  %v10867_v40 = vadd.f32 %v10865_v31, %v10842_v29 }
 0x65b   : > { %v10466_v43 = vadd.f32 %v13117_v34, %v10459_v36  ;;  %v10868_v58 = vadd.f32 %v13117_v34, %v10867_v40 }
 0x65d   : > { %v10467_v53 = vand.u32 2147483647, %v10466_v43  ;;  %v10869_v48 = vand.u32 2147483647, %v10868_v58  ;;  %vm10471_vm15 = vcmp.ge.f32.partialorder %v10466_v43, 0.0  ;;  %vm10873_vm0 = vcmp.ge.f32.partialorder %v10868_v58, 0.0 }
 0x65f   : > { %v10468_v49 = vsub.f32 0.0, %v10467_v53  ;;  %v10870_v45 = vsub.f32 0.0, %v10869_v48 }
 0x661   : > { %v10469_v47 = vmul.f32 1.442695, %v10468_v49  ;;  %v10871_v54 = vmul.f32 1.442695, %v10870_v45 }
 0x663   : > { %15037 = vpow2.f32 %v10469_v47 }
 0x664   : > { %15039 = vpow2.f32 %v10871_v54 }
 0x66d   : > { %v15038_v50 = vpop.eup %15037 }
 0x66e   : > { %v15040_v52 = vpop.eup %15039  ;;  %v10472_v55 = vadd.f32 1.0, %v15038_v50 }
 0x66f   : > { %v10874_v57 = vadd.f32 1.0, %v15040_v52 }
 0x670   : > { %15041 = vrcp.f32 %v10472_v55 }
 0x671   : > { %15043 = vrcp.f32 %v10874_v57 }
 0x67a   : > { %v15042_v60 = vpop.eup %15041 }
 0x67b   : > { %v15044_v62 = vpop.eup %15043  ;;  %v10475_v0 = vmul.f32 %v15042_v60, %v15038_v50 }
 0x67c   : > { %v10877_v2 = vmul.f32 %v15044_v62, %v15040_v52 }
 0x67d   : > { %v10476_v4 = vsel %vm10471_vm15, %v15042_v60, %v10475_v0 }
 0x67e   : > { %10478 = vst.msk [vmem:[%s280_s14] sm:$0x3] %vm10477_vm14, %v10476_v4  ;;  %v10878_v5 = vsel %vm10873_vm0, %v15044_v62, %v10877_v2 }
 0x67f   : > { %13133 = vst.msk [vmem:[%s280_s14 + $0x2] sm:$0x3] %vm10477_vm14, %v10878_v5 }
 0x680 PF: > { %s19_s26 = sadd.s32 1, %s15055_s26  }
 0x681   : > { %p16_p4 = scmp.ge.s32.totalorder %s19_s26, 4  }
 0x683   :  { %18 = sbr.rel (!%p16_p4) target bundleno = 3 (0x3), region = 125 }

</bundles_post_ra>
